<compile_context>
chip_gen: v7x
topology: tpu7x:2x2x1
jax: 0.10.0
libtpu: 0.0.40
codegen_flags: <defaults>
</compile_context>

<pallas_src>
import functools

import jax
import jax.numpy as jnp
from jax import lax
from jax.experimental import pallas as pl
from jax.experimental.pallas import tpu as pltpu

# ----------------------------- config (small synthetic) -----------------------------
IMG_C, IMG_SIZE, PATCH = 3, 32, 8
N_PATCH = (IMG_SIZE // PATCH) ** 2            # 16 patches / image (multiple of 8)
TV = N_PATCH + 1                              # +CLS token -> 17 valid tokens per image
TVP = 24                                      # padded token rows (multiple of 8 sublanes)
DV, V_HEADS, V_HDIM, V_FFN, V_LAYERS = 128, 4, 32, 256, 2   # lane-dense vision tower
DT, L_HEADS, L_HDIM, L_FFN, L_LAYERS = 128, 4, 32, 256, 2
VOCAB = 256
IMAGE_TOKEN_INDEX = 255
B_IMG = 2                                     # batch_size * num_images
T_SEQ = 40                                    # text sequence length (8 text + 32 image tokens)

F32 = jnp.float32
BF16 = jnp.bfloat16
NEG_INF = -1e30


# ----------------------------------- shared helpers ---------------------------------
def _softmax_rows(s):
    # f32 softmax; divide moved to the EUP slot via approximate reciprocal.
    m = jnp.max(s, axis=-1, keepdims=True)
    e = jnp.exp(s - m)
    denom = jnp.sum(e, axis=-1, keepdims=True)
    return e * pl.reciprocal(denom, approx=True)


# ------------------------------ vision tower + projector ----------------------------
def _vision_stack_kernel(x0_ref, pw_ref, add_ref, preg_ref, preb_ref,
                         ln1g_ref, ln1b_ref, wqkv_ref, bqkv_ref, wo_ref, bo_ref,
                         ln2g_ref, ln2b_ref, fc1w_ref, fc1b_ref, fc2w_ref, fc2b_ref,
                         pjw1_ref, pjb1_ref, pjw2_ref, pjb2_ref,
                         o_ref, x_scr, *, n_heads, head_dim, n_layers, n_valid, eps):
    layer = pl.program_id(1)
    d_model = n_heads * head_dim
    rows = x_scr.shape[0]
    n_patch = x0_ref.shape[1]
    scale = 1.0 / float(head_dim) ** 0.5

    def ln(v, g, b):
        mu = jnp.mean(v, axis=-1, keepdims=True)
        var = jnp.mean((v - mu) ** 2, axis=-1, keepdims=True)
        return (v - mu) * lax.rsqrt(var + eps) * g + b

    @pl.when(layer == 0)
    def _():
        # patch-embed conv (stride == kernel => matmul) fused into the first grid step.
        # row layout: [0:n_patch) = patch tokens, n_patch = CLS, remaining rows = pad (zeros).
        emb = jnp.dot(x0_ref[0].astype(BF16), pw_ref[...], preferred_element_type=F32)
        emb = jnp.concatenate(
            [emb, jnp.zeros((rows - n_patch, d_model), F32)], axis=0)
        x_scr[...] = ln(add_ref[...] + emb,
                        preg_ref[...].astype(F32), preb_ref[...].astype(F32))

    x = x_scr[...]

    # pad rows must not contribute as attention keys: mask generated in-kernel (no HBM DMA).
    col = lax.broadcasted_iota(jnp.int32, (rows, rows), 1)
    key_ok = (col < n_valid)[None]

    # ---- attention block: pre-LN + fused QKV + batched all-head attention + out-proj ----
    h = ln(x, ln1g_ref[0].astype(F32), ln1b_ref[0].astype(F32))
    qkv = jnp.dot(h.astype(BF16), wqkv_ref[0], preferred_element_type=F32)
    qkv = qkv + bqkv_ref[0].astype(F32)
    q = qkv[:, :d_model] * scale                 # scale folded into q
    k = qkv[:, d_model:2 * d_model]              # splits land on 128-aligned boundaries
    v = qkv[:, 2 * d_model:]
    # TODO(synk): head_dim=32 underfills the MXU contraction; at real CLIP dims use a larger
    # head_dim or co-tile heads along the contraction.
    q3 = jnp.transpose(q.reshape(rows, n_heads, head_dim), (1, 0, 2)).astype(BF16)
    k3 = jnp.transpose(k.reshape(rows, n_heads, head_dim), (1, 0, 2)).astype(BF16)
    v3 = jnp.transpose(v.reshape(rows, n_heads, head_dim), (1, 0, 2)).astype(BF16)
    s = jnp.einsum('hqd,hkd->hqk', q3, k3, preferred_element_type=F32)
    s = jnp.where(key_ok, s, NEG_INF)
    p = _softmax_rows(s)
    o3 = jnp.einsum('hqk,hkd->hqd', p.astype(BF16), v3, preferred_element_type=F32)
    attn = jnp.transpose(o3, (1, 0, 2)).reshape(rows, d_model)   # lane-dense (rows, D)
    x = x + jnp.dot(attn.astype(BF16), wo_ref[0], preferred_element_type=F32) \
          + bo_ref[0].astype(F32)

    # ---- MLP block (GELU) ----
    h = ln(x, ln2g_ref[0].astype(F32), ln2b_ref[0].astype(F32))
    h1 = jnp.dot(h.astype(BF16), fc1w_ref[0], preferred_element_type=F32) \
         + fc1b_ref[0].astype(F32)
    h1 = jax.nn.gelu(h1, approximate=True)   # TODO(synk): CLIP towers often use quick_gelu
    x = x + jnp.dot(h1.astype(BF16), fc2w_ref[0], preferred_element_type=F32) \
          + fc2b_ref[0].astype(F32)

    x_scr[...] = x

    @pl.when(layer == n_layers - 1)
    def _():
        # vLLM truncates the tower at vision_feature_layer, so the last built layer IS the
        # feature layer; strategy == 'default' drops the CLS token (stored at row n_patch).
        feats = x[:n_patch, :]
        # MiniMaxVL01MultiModalProjector fused into the epilogue: linear_1 -> act -> linear_2.
        h1 = jnp.dot(feats.astype(BF16), pjw1_ref[...], preferred_element_type=F32) \
             + pjb1_ref[...].astype(F32)
        h1 = jax.nn.gelu(h1, approximate=True)  # TODO(synk): projector_hidden_act is config-dependent
        proj = jnp.dot(h1.astype(BF16), pjw2_ref[...], preferred_element_type=F32) \
               + pjb2_ref[...].astype(F32)
        o_ref[0] = proj.astype(o_ref.dtype)


def vision_tower_and_project(pixel_values, vp, pp):
    # patchify NCHW -> (B, N_PATCH, C*P*P) rows; conv matmul happens inside the kernel.
    B, C, H, W = pixel_values.shape
    ph = H // PATCH
    patches = pixel_values.reshape(B, C, ph, PATCH, ph, PATCH)
    patches = patches.transpose(0, 2, 4, 1, 3, 5).reshape(B, ph * ph, C * PATCH * PATCH)

    # additive constants per row: patch rows get conv bias + pos, CLS row gets cls + pos[0].
    addend = jnp.zeros((TVP, DV), F32)
    addend = addend.at[:N_PATCH].set(vp["pos"][1:] + vp["patch_b"][None, :])
    addend = addend.at[N_PATCH].set(vp["pos"][0] + vp["cls"])

    L = vp["wqkv"].shape[0]
    ffn = vp["fc1_w"].shape[2]
    kern = functools.partial(_vision_stack_kernel, n_heads=V_HEADS, head_dim=V_HDIM,
                             n_layers=L, n_valid=TV, eps=1e-5)

    def full2(shape):
        return pl.BlockSpec(shape, lambda b, l: (0, 0))

    def stack3(shape):
        return pl.BlockSpec((1,) + shape, lambda b, l: (l, 0, 0))

    return pl.pallas_call(
        kern,
        out_shape=jax.ShapeDtypeStruct((B, N_PATCH, DT), F32),
        grid_spec=pltpu.PrefetchScalarGridSpec(
            num_scalar_prefetch=0,
            grid=(B, L),                                          # (image, layer)
            in_specs=[
                pl.BlockSpec((1, N_PATCH, C * PATCH * PATCH), lambda b, l: (b, 0, 0)),
                full2((C * PATCH * PATCH, DV)),                   # patch-embed weight
                full2((TVP, DV)),                                 # pos/cls/bias addend (padded)
                full2((1, DV)), full2((1, DV)),                   # pre-LN g, b
                stack3((1, DV)), stack3((1, DV)),                 # ln1 g, b
                stack3((DV, 3 * DV)), stack3((1, 3 * DV)),        # wqkv, bqkv
                stack3((DV, DV)), stack3((1, DV)),                # wo, bo
                stack3((1, DV)), stack3((1, DV)),                 # ln2 g, b
                stack3((DV, ffn)), stack3((1, ffn)),              # fc1 w, b
                stack3((ffn, DV)), stack3((1, DV)),               # fc2 w, b
                full2((DV, DT)), full2((1, DT)),                  # projector linear_1
                full2((DT, DT)), full2((1, DT)),                  # projector linear_2
            ],
            out_specs=pl.BlockSpec((1, N_PATCH, DT), lambda b, l: (b, 0, 0)),
            scratch_shapes=[pltpu.VMEM((TVP, DV), F32)],
        ),
        compiler_params=pltpu.CompilerParams(
            dimension_semantics=("parallel", "arbitrary"),
            vmem_limit_bytes=32 * 1024 * 1024),
    )(patches, vp["patch_w"], addend, vp["pre_ln_g"], vp["pre_ln_b"],
      vp["ln1_g"], vp["ln1_b"], vp["wqkv"], vp["bqkv"], vp["wo"], vp["bo"],
      vp["ln2_g"], vp["ln2_b"], vp["fc1_w"], vp["fc1_b"], vp["fc2_w"], vp["fc2_b"],
      pp["w1"], pp["b1"], pp["w2"], pp["b2"])


# ------------------------------------ language model --------------------------------
def _lm_stack_kernel(emb_ref, cos_ref, sin_ref, fln_ref,
                     ln1_ref, wqkv_ref, wo_ref, ln2_ref, wgu_ref, wd_ref,
                     o_ref, x_scr, *, n_heads, head_dim, ffn, n_layers, eps):
    layer = pl.program_id(0)
    d_model = n_heads * head_dim
    seq = x_scr.shape[0]
    half = head_dim // 2
    scale = 1.0 / float(head_dim) ** 0.5

    def rms(v, g):
        var = jnp.mean(v * v, axis=-1, keepdims=True)
        return v * lax.rsqrt(var + eps) * g

    @pl.when(layer == 0)
    def _():
        x_scr[...] = emb_ref[...].astype(F32)

    x = x_scr[...]
    cos = cos_ref[...]
    sin = sin_ref[...]

    # rotate-half via XLU lane rolls (no dense (D,D) rotation matmul): within each head's
    # 32-lane block, partner lane is j +/- half with rotate_half signs.
    lane = lax.broadcasted_iota(jnp.int32, (seq, d_model), 1)
    first_half = (lane % head_dim) < half

    def rope(vv):
        rot = jnp.where(first_half,
                        -pltpu.roll(vv, d_model - half, axis=1),
                        pltpu.roll(vv, half, axis=1))
        return vv * cos + rot * sin

    # ---- attention block: fused rmsnorm + QKV + RoPE + batched all-head attn + out-proj ----
    h = rms(x, ln1_ref[0].astype(F32))
    qkv = jnp.dot(h.astype(BF16), wqkv_ref[0], preferred_element_type=F32)
    q = rope(qkv[:, :d_model] * scale)           # scale folded into q
    k = rope(qkv[:, d_model:2 * d_model])
    v = qkv[:, 2 * d_model:]
    q3 = jnp.transpose(q.reshape(seq, n_heads, head_dim), (1, 0, 2)).astype(BF16)
    k3 = jnp.transpose(k.reshape(seq, n_heads, head_dim), (1, 0, 2)).astype(BF16)
    v3 = jnp.transpose(v.reshape(seq, n_heads, head_dim), (1, 0, 2)).astype(BF16)
    # TODO(synk): at realistic sequence lengths switch to an online-softmax (flash-style)
    # loop over KV tiles instead of materializing the full (H, T, T) score tensor.
    s = jnp.einsum('hqd,hkd->hqk', q3, k3, preferred_element_type=F32)
    row = lax.broadcasted_iota(jnp.int32, (seq, seq), 0)
    col = lax.broadcasted_iota(jnp.int32, (seq, seq), 1)
    s = jnp.where((row >= col)[None], s, NEG_INF)          # causal mask generated in-kernel
    p = _softmax_rows(s)
    o3 = jnp.einsum('hqk,hkd->hqd', p.astype(BF16), v3, preferred_element_type=F32)
    attn = jnp.transpose(o3, (1, 0, 2)).reshape(seq, d_model)   # lane-dense (T, D)
    x = x + jnp.dot(attn.astype(BF16), wo_ref[0], preferred_element_type=F32)

    # ---- MLP block: fused rmsnorm + SwiGLU + residual ----
    h = rms(x, ln2_ref[0].astype(F32))
    gu = jnp.dot(h.astype(BF16), wgu_ref[0], preferred_element_type=F32)
    hmid = jax.nn.silu(gu[:, :ffn]) * gu[:, ffn:]
    x = x + jnp.dot(hmid.astype(BF16), wd_ref[0], preferred_element_type=F32)

    x_scr[...] = x

    @pl.when(layer == n_layers - 1)
    def _():
        o_ref[...] = rms(x, fln_ref[...].astype(F32)).astype(o_ref.dtype)


def language_model(inputs_embeds, positions, p):
    # TODO(synk): MiniMax text backbone is a hybrid lightning/linear-attention MoE model;
    # a small RoPE softmax-attention decoder stands in here.
    T, D = inputs_embeds.shape
    L = p["wqkv"].shape[0]
    ffn = p["w_down"].shape[1]

    # RoPE tables, tiled per head so the kernel works on the (T, H*Dh) layout directly.
    half = L_HDIM // 2
    freqs = 1.0 / (10000.0 ** (jnp.arange(half, dtype=F32) / half))
    ang = positions[:, None].astype(F32) * freqs[None, :]                   # (T, half)
    cos = jnp.tile(jnp.concatenate([jnp.cos(ang), jnp.cos(ang)], -1), (1, L_HEADS))
    sin = jnp.tile(jnp.concatenate([jnp.sin(ang), jnp.sin(ang)], -1), (1, L_HEADS))

    kern = functools.partial(_lm_stack_kernel, n_heads=L_HEADS, head_dim=L_HDIM,
                             ffn=ffn, n_layers=L, eps=1e-6)

    def full2(shape):
        return pl.BlockSpec(shape, lambda l: (0, 0))

    def stack3(shape):
        return pl.BlockSpec((1,) + shape, lambda l: (l, 0, 0))

    return pl.pallas_call(
        kern,
        out_shape=jax.ShapeDtypeStruct((T, D), F32),
        grid_spec=pltpu.PrefetchScalarGridSpec(
            num_scalar_prefetch=0,
            grid=(L,),
            in_specs=[
                full2((T, D)),                 # inputs_embeds
                full2((T, D)),                 # cos
                full2((T, D)),                 # sin
                full2((1, D)),                 # final rmsnorm gain
                stack3((1, D)),                # ln1_g
                stack3((D, 3 * D)),            # wqkv
                stack3((D, D)),                # wo
                stack3((1, D)),                # ln2_g
                stack3((D, 2 * ffn)),          # w_gate_up
                stack3((ffn, D)),              # w_down
            ],
            out_specs=pl.BlockSpec((T, D), lambda l: (0, 0)),
            scratch_shapes=[pltpu.VMEM((T, D), F32)],
        ),
        compiler_params=pltpu.CompilerParams(
            dimension_semantics=("arbitrary",),
            vmem_limit_bytes=32 * 1024 * 1024),
    )(inputs_embeds, cos, sin, p["final_ln_g"],
      p["ln1_g"], p["wqkv"], p["wo"], p["ln2_g"], p["w_gate_up"], p["w_down"])


# ----------------------------------- model glue --------------------------------------
def merge_multimodal_embeddings(input_ids, inputs_embeds, mm_embeds, image_token_index):
    mask = input_ids == image_token_index
    idx = jnp.cumsum(mask.astype(jnp.int32)) - 1
    gathered = mm_embeds[jnp.clip(idx, 0, mm_embeds.shape[0] - 1)]
    return jnp.where(mask[:, None], gathered, inputs_embeds)


@jax.jit
def forward(input_ids, positions, pixel_values, params):
    # get_multimodal_embeddings -> _process_image_input
    # (vision tower + feature-select + multi_modal_projector, projector fused in-kernel)
    mm_embeds = vision_tower_and_project(pixel_values, params["vision"], params["proj"])
    mm_embeds = mm_embeds.reshape(-1, DT)                        # (B*N_PATCH, DT)
    # get_input_embeddings
    text_embeds = jnp.take(params["lm"]["embed"], input_ids, axis=0)
    inputs_embeds = merge_multimodal_embeddings(
        input_ids, text_embeds, mm_embeds, IMAGE_TOKEN_INDEX)
    # language_model.model(...)
    return language_model(inputs_embeds, positions, params["lm"])


# ----------------------------------- parameters --------------------------------------
def init_params(seed=0):
    key_holder = [jax.random.PRNGKey(seed)]

    def nk():
        key_holder[0], sub = jax.random.split(key_holder[0])
        return sub

    def w(shape, scale=0.02):
        return scale * jax.random.normal(nk(), shape, F32)

    vision = dict(
        patch_w=w((IMG_C * PATCH * PATCH, DV)).astype(BF16),
        patch_b=jnp.zeros((DV,), F32),
        cls=w((DV,)),
        pos=w((TV, DV)),
        pre_ln_g=jnp.ones((1, DV), F32), pre_ln_b=jnp.zeros((1, DV), F32),
        # per-layer weights stacked on a leading layer axis for the (image, layer) grid kernel
        ln1_g=jnp.ones((V_LAYERS, 1, DV), F32), ln1_b=jnp.zeros((V_LAYERS, 1, DV), F32),
        wqkv=w((V_LAYERS, DV, 3 * DV)).astype(BF16),
        bqkv=jnp.zeros((V_LAYERS, 1, 3 * DV), F32),
        wo=w((V_LAYERS, DV, DV)).astype(BF16),
        bo=jnp.zeros((V_LAYERS, 1, DV), F32),
        ln2_g=jnp.ones((V_LAYERS, 1, DV), F32), ln2_b=jnp.zeros((V_LAYERS, 1, DV), F32),
        fc1_w=w((V_LAYERS, DV, V_FFN)).astype(BF16),
        fc1_b=jnp.zeros((V_LAYERS, 1, V_FFN), F32),
        fc2_w=w((V_LAYERS, V_FFN, DV)).astype(BF16),
        fc2_b=jnp.zeros((V_LAYERS, 1, DV), F32),
    )

    proj = dict(w1=w((DV, DT)).astype(BF16), b1=jnp.zeros((1, DT), F32),
                w2=w((DT, DT)).astype(BF16), b2=jnp.zeros((1, DT), F32))

    lm = dict(
        embed=w((VOCAB, DT)),
        ln1_g=jnp.ones((L_LAYERS, 1, DT), F32),
        wqkv=w((L_LAYERS, DT, 3 * DT)).astype(BF16),
        wo=w((L_LAYERS, DT, DT)).astype(BF16),
        ln2_g=jnp.ones((L_LAYERS, 1, DT), F32),
        w_gate_up=w((L_LAYERS, DT, 2 * L_FFN)).astype(BF16),
        w_down=w((L_LAYERS, L_FFN, DT)).astype(BF16),
        final_ln_g=jnp.ones((1, DT), F32),
    )

    # image_newline exists in the module but is unused in this forward path.
    image_newline = w((DT,))
    return dict(vision=vision, proj=proj, lm=lm, image_newline=image_newline)


# -------------------------------------- main ------------------------------------------
if __name__ == "__main__":
    params = init_params(0)

    key = jax.random.PRNGKey(0)
    k_pix, k_ids = jax.random.split(key)
    pixel_values = jax.random.normal(k_pix, (B_IMG, IMG_C, IMG_SIZE, IMG_SIZE), F32)

    input_ids = jax.random.randint(k_ids, (T_SEQ,), 0, VOCAB - 1, dtype=jnp.int32)
    # place B_IMG * N_PATCH = 32 image placeholder tokens at positions 4..36
    input_ids = input_ids.at[4:4 + B_IMG * N_PATCH].set(IMAGE_TOKEN_INDEX)
    positions = jnp.arange(T_SEQ, dtype=jnp.int32)

    hidden_states = forward(input_ids, positions, pixel_values, params)
    hidden_states = jax.block_until_ready(hidden_states)

    assert hidden_states.shape == (T_SEQ, DT), hidden_states.shape
    assert bool(jnp.all(jnp.isfinite(hidden_states)))
    print("KERNEL_OK")
</pallas_src>

<mosaic_0001>
module attributes {stable_mosaic.version = 11 : i64} {
  func.func @_vision_stack_kernel(%arg0: i32, %arg1: i32, %arg2: memref<1x16x192xf32, #tpu.memory_space<vmem>>, %arg3: memref<192x128xbf16, #tpu.memory_space<vmem>>, %arg4: memref<24x128xf32, #tpu.memory_space<vmem>>, %arg5: memref<1x128xf32, #tpu.memory_space<vmem>>, %arg6: memref<1x128xf32, #tpu.memory_space<vmem>>, %arg7: memref<1x1x128xf32, #tpu.memory_space<vmem>>, %arg8: memref<1x1x128xf32, #tpu.memory_space<vmem>>, %arg9: memref<1x128x384xbf16, #tpu.memory_space<vmem>>, %arg10: memref<1x1x384xf32, #tpu.memory_space<vmem>>, %arg11: memref<1x128x128xbf16, #tpu.memory_space<vmem>>, %arg12: memref<1x1x128xf32, #tpu.memory_space<vmem>>, %arg13: memref<1x1x128xf32, #tpu.memory_space<vmem>>, %arg14: memref<1x1x128xf32, #tpu.memory_space<vmem>>, %arg15: memref<1x128x256xbf16, #tpu.memory_space<vmem>>, %arg16: memref<1x1x256xf32, #tpu.memory_space<vmem>>, %arg17: memref<1x256x128xbf16, #tpu.memory_space<vmem>>, %arg18: memref<1x1x128xf32, #tpu.memory_space<vmem>>, %arg19: memref<128x128xbf16, #tpu.memory_space<vmem>>, %arg20: memref<1x128xf32, #tpu.memory_space<vmem>>, %arg21: memref<128x128xbf16, #tpu.memory_space<vmem>>, %arg22: memref<1x128xf32, #tpu.memory_space<vmem>>, %arg23: memref<1x16x128xf32, #tpu.memory_space<vmem>>, %arg24: memref<24x128xf32, #tpu.memory_space<vmem>>) attributes {dimension_semantics = [#tpu.dimension_semantics<parallel>, #tpu.dimension_semantics<arbitrary>], iteration_bounds = array<i64: 2, 2>, scalar_prefetch = 0 : i64, scratch_operands = 1 : i64, tpu.core_type = #tpu.core_type<tc>, window_params = [{transform_indices = @transform_0, window_bounds = array<i64: 1, 16, 192>}, {pipeline_mode = #tpu.pipeline_mode<synchronous>, transform_indices = @transform_1, window_bounds = array<i64: 192, 128>}, {pipeline_mode = #tpu.pipeline_mode<synchronous>, transform_indices = @transform_2, window_bounds = array<i64: 24, 128>}, {pipeline_mode = #tpu.pipeline_mode<synchronous>, transform_indices = @transform_3, window_bounds = array<i64: 1, 128>}, {pipeline_mode = #tpu.pipeline_mode<synchronous>, transform_indices = @transform_4, window_bounds = array<i64: 1, 128>}, {transform_indices = @transform_5, window_bounds = array<i64: 1, 1, 128>}, {transform_indices = @transform_6, window_bounds = array<i64: 1, 1, 128>}, {transform_indices = @transform_7, window_bounds = array<i64: 1, 128, 384>}, {transform_indices = @transform_8, window_bounds = array<i64: 1, 1, 384>}, {transform_indices = @transform_9, window_bounds = array<i64: 1, 128, 128>}, {transform_indices = @transform_10, window_bounds = array<i64: 1, 1, 128>}, {transform_indices = @transform_11, window_bounds = array<i64: 1, 1, 128>}, {transform_indices = @transform_12, window_bounds = array<i64: 1, 1, 128>}, {transform_indices = @transform_13, window_bounds = array<i64: 1, 128, 256>}, {transform_indices = @transform_14, window_bounds = array<i64: 1, 1, 256>}, {transform_indices = @transform_15, window_bounds = array<i64: 1, 256, 128>}, {transform_indices = @transform_16, window_bounds = array<i64: 1, 1, 128>}, {pipeline_mode = #tpu.pipeline_mode<synchronous>, transform_indices = @transform_17, window_bounds = array<i64: 128, 128>}, {pipeline_mode = #tpu.pipeline_mode<synchronous>, transform_indices = @transform_18, window_bounds = array<i64: 1, 128>}, {pipeline_mode = #tpu.pipeline_mode<synchronous>, transform_indices = @transform_19, window_bounds = array<i64: 128, 128>}, {pipeline_mode = #tpu.pipeline_mode<synchronous>, transform_indices = @transform_20, window_bounds = array<i64: 1, 128>}, {transform_indices = @transform_21, window_bounds = array<i64: 1, 16, 128>}]} {
    %c0_i32 = arith.constant 0 : i32
    %0 = arith.cmpi eq, %arg1, %c0_i32 : i32
    %1 = arith.extui %0 : i1 to i32
    %c0_i32_0 = arith.constant 0 : i32
    %2 = arith.cmpi ne, %1, %c0_i32_0 : i32
    scf.if %2 {
      %c0_64 = arith.constant 0 : index
      %c0_65 = arith.constant 0 : index
      %c0_66 = arith.constant 0 : index
      %144 = vector.load %arg2[%c0_64, %c0_65, %c0_66] : memref<1x16x192xf32, #tpu.memory_space<vmem>>, vector<1x16x192xf32>
      %145 = vector.shape_cast %144 : vector<1x16x192xf32> to vector<16x192xf32>
      %146 = arith.truncf %145 : vector<16x192xf32> to vector<16x192xbf16>
      %c0_67 = arith.constant 0 : index
      %c0_68 = arith.constant 0 : index
      %147 = vector.load %arg3[%c0_67, %c0_68] : memref<192x128xbf16, #tpu.memory_space<vmem>>, vector<192x128xbf16>
      %cst_69 = arith.constant dense<0.000000e+00> : vector<16x128xf32>
      %148 = tpu.matmul %146, %147, %cst_69 {dimension_numbers = #tpu.dot_dimension_numbers<[1], [0], [0], [1], [0, 0, 1, 1], [], []>} : vector<16x192xbf16>, vector<192x128xbf16>, vector<16x128xf32> -> vector<16x128xf32>
      %cst_70 = arith.constant 0.000000e+00 : f32
      %149 = vector.broadcast %cst_70 : f32 to vector<8x128xf32>
      %150 = tpu.concatenate %148, %149 in 0 : vector<16x128xf32>, vector<8x128xf32> -> vector<24x128xf32>
      %c0_71 = arith.constant 0 : index
      %c0_72 = arith.constant 0 : index
      %151 = vector.load %arg4[%c0_71, %c0_72] : memref<24x128xf32, #tpu.memory_space<vmem>>, vector<24x128xf32>
      %152 = arith.addf %151, %150 : vector<24x128xf32>
      %c0_73 = arith.constant 0 : index
      %c0_74 = arith.constant 0 : index
      %153 = vector.load %arg5[%c0_73, %c0_74] : memref<1x128xf32, #tpu.memory_space<vmem>>, vector<1x128xf32>
      %c0_75 = arith.constant 0 : index
      %c0_76 = arith.constant 0 : index
      %154 = vector.load %arg6[%c0_75, %c0_76] : memref<1x128xf32, #tpu.memory_space<vmem>>, vector<1x128xf32>
      %cst_77 = arith.constant dense<0.000000e+00> : vector<24xf32>
      %155 = vector.multi_reduction <add>, %152, %cst_77 [1] : vector<24x128xf32> to vector<24xf32>
      %156 = vector.shape_cast %155 : vector<24xf32> to vector<24x1xf32>
      %cst_78 = arith.constant 1.280000e+02 : f32
      %157 = vector.broadcast %cst_78 : f32 to vector<24x1xf32>
      %158 = arith.divf %156, %157 : vector<24x1xf32>
      %159 = vector.broadcast %158 : vector<24x1xf32> to vector<24x128xf32>
      %160 = arith.subf %152, %159 : vector<24x128xf32>
      %161 = arith.mulf %160, %160 : vector<24x128xf32>
      %cst_79 = arith.constant dense<0.000000e+00> : vector<24xf32>
      %162 = vector.multi_reduction <add>, %161, %cst_79 [1] : vector<24x128xf32> to vector<24xf32>
      %163 = vector.shape_cast %162 : vector<24xf32> to vector<24x1xf32>
      %cst_80 = arith.constant 1.280000e+02 : f32
      %164 = vector.broadcast %cst_80 : f32 to vector<24x1xf32>
      %165 = arith.divf %163, %164 : vector<24x1xf32>
      %166 = vector.broadcast %158 : vector<24x1xf32> to vector<24x128xf32>
      %167 = arith.subf %152, %166 : vector<24x128xf32>
      %cst_81 = arith.constant 9.99999974E-6 : f32
      %168 = vector.broadcast %cst_81 : f32 to vector<24x1xf32>
      %169 = arith.addf %165, %168 : vector<24x1xf32>
      %170 = math.rsqrt %169 : vector<24x1xf32>
      %171 = vector.broadcast %170 : vector<24x1xf32> to vector<24x128xf32>
      %172 = arith.mulf %167, %171 : vector<24x128xf32>
      %173 = vector.broadcast %153 : vector<1x128xf32> to vector<24x128xf32>
      %174 = arith.mulf %172, %173 : vector<24x128xf32>
      %175 = vector.broadcast %154 : vector<1x128xf32> to vector<24x128xf32>
      %176 = arith.addf %174, %175 : vector<24x128xf32>
      %c0_82 = arith.constant 0 : index
      %c0_83 = arith.constant 0 : index
      %177 = vector.load %arg24[%c0_82, %c0_83] : memref<24x128xf32, #tpu.memory_space<vmem>>, vector<24x128xf32>
      tpu.vector_store %arg24[%c0_82, %c0_83], %176 {strides = array<i32>} : memref<24x128xf32, #tpu.memory_space<vmem>>, vector<24x128xf32>,
    } else {
    }
    %c0 = arith.constant 0 : index
    %c0_1 = arith.constant 0 : index
    %3 = vector.load %arg24[%c0, %c0_1] : memref<24x128xf32, #tpu.memory_space<vmem>>, vector<24x128xf32>
    %4 = tpu.iota {dimensions = array<i32: 1>} : vector<24x24xi32>
    %c17_i32 = arith.constant 17 : i32
    %5 = vector.broadcast %c17_i32 : i32 to vector<24x24xi32>
    %6 = arith.cmpi slt, %4, %5 : vector<24x24xi32>
    %7 = vector.shape_cast %6 : vector<24x24xi1> to vector<1x24x24xi1>
    %c0_2 = arith.constant 0 : index
    %c0_3 = arith.constant 0 : index
    %c0_4 = arith.constant 0 : index
    %8 = vector.load %arg7[%c0_2, %c0_3, %c0_4] : memref<1x1x128xf32, #tpu.memory_space<vmem>>, vector<1x1x128xf32>
    %9 = vector.shape_cast %8 : vector<1x1x128xf32> to vector<1x128xf32>
    %c0_5 = arith.constant 0 : index
    %c0_6 = arith.constant 0 : index
    %c0_7 = arith.constant 0 : index
    %10 = vector.load %arg8[%c0_5, %c0_6, %c0_7] : memref<1x1x128xf32, #tpu.memory_space<vmem>>, vector<1x1x128xf32>
    %11 = vector.shape_cast %10 : vector<1x1x128xf32> to vector<1x128xf32>
    %cst = arith.constant dense<0.000000e+00> : vector<24xf32>
    %12 = vector.multi_reduction <add>, %3, %cst [1] : vector<24x128xf32> to vector<24xf32>
    %13 = vector.shape_cast %12 : vector<24xf32> to vector<24x1xf32>
    %cst_8 = arith.constant 1.280000e+02 : f32
    %14 = vector.broadcast %cst_8 : f32 to vector<24x1xf32>
    %15 = arith.divf %13, %14 : vector<24x1xf32>
    %16 = vector.broadcast %15 : vector<24x1xf32> to vector<24x128xf32>
    %17 = arith.subf %3, %16 : vector<24x128xf32>
    %18 = arith.mulf %17, %17 : vector<24x128xf32>
    %cst_9 = arith.constant dense<0.000000e+00> : vector<24xf32>
    %19 = vector.multi_reduction <add>, %18, %cst_9 [1] : vector<24x128xf32> to vector<24xf32>
    %20 = vector.shape_cast %19 : vector<24xf32> to vector<24x1xf32>
    %cst_10 = arith.constant 1.280000e+02 : f32
    %21 = vector.broadcast %cst_10 : f32 to vector<24x1xf32>
    %22 = arith.divf %20, %21 : vector<24x1xf32>
    %23 = vector.broadcast %15 : vector<24x1xf32> to vector<24x128xf32>
    %24 = arith.subf %3, %23 : vector<24x128xf32>
    %cst_11 = arith.constant 9.99999974E-6 : f32
    %25 = vector.broadcast %cst_11 : f32 to vector<24x1xf32>
    %26 = arith.addf %22, %25 : vector<24x1xf32>
    %27 = math.rsqrt %26 : vector<24x1xf32>
    %28 = vector.broadcast %27 : vector<24x1xf32> to vector<24x128xf32>
    %29 = arith.mulf %24, %28 : vector<24x128xf32>
    %30 = vector.broadcast %9 : vector<1x128xf32> to vector<24x128xf32>
    %31 = arith.mulf %29, %30 : vector<24x128xf32>
    %32 = vector.broadcast %11 : vector<1x128xf32> to vector<24x128xf32>
    %33 = arith.addf %31, %32 : vector<24x128xf32>
    %34 = arith.truncf %33 : vector<24x128xf32> to vector<24x128xbf16>
    %c0_12 = arith.constant 0 : index
    %c0_13 = arith.constant 0 : index
    %c0_14 = arith.constant 0 : index
    %35 = vector.load %arg9[%c0_12, %c0_13, %c0_14] : memref<1x128x384xbf16, #tpu.memory_space<vmem>>, vector<1x128x384xbf16>
    %36 = vector.shape_cast %35 : vector<1x128x384xbf16> to vector<128x384xbf16>
    %cst_15 = arith.constant dense<0.000000e+00> : vector<24x384xf32>
    %37 = tpu.matmul %34, %36, %cst_15 {dimension_numbers = #tpu.dot_dimension_numbers<[1], [0], [0], [1], [0, 0, 1, 1], [], []>} : vector<24x128xbf16>, vector<128x384xbf16>, vector<24x384xf32> -> vector<24x384xf32>
    %c0_16 = arith.constant 0 : index
    %c0_17 = arith.constant 0 : index
    %c0_18 = arith.constant 0 : index
    %38 = vector.load %arg10[%c0_16, %c0_17, %c0_18] : memref<1x1x384xf32, #tpu.memory_space<vmem>>, vector<1x1x384xf32>
    %39 = vector.shape_cast %38 : vector<1x1x384xf32> to vector<1x384xf32>
    %40 = vector.broadcast %39 : vector<1x384xf32> to vector<24x384xf32>
    %41 = arith.addf %37, %40 : vector<24x384xf32>
    %42 = vector.extract_strided_slice %41 {offsets = [0, 0], sizes = [24, 128], strides = [1, 1]} : vector<24x384xf32> to vector<24x128xf32>
    %cst_19 = arith.constant 0.176776692 : f32
    %43 = vector.broadcast %cst_19 : f32 to vector<24x128xf32>
    %44 = arith.mulf %42, %43 : vector<24x128xf32>
    %45 = vector.extract_strided_slice %41 {offsets = [0, 128], sizes = [24, 128], strides = [1, 1]} : vector<24x384xf32> to vector<24x128xf32>
    %46 = vector.extract_strided_slice %41 {offsets = [0, 256], sizes = [24, 128], strides = [1, 1]} : vector<24x384xf32> to vector<24x128xf32>
    %47 = vector.shape_cast %44 : vector<24x128xf32> to vector<24x4x32xf32>
    %48 = tpu.transpose %47, [1, 0, 2] : vector<24x4x32xf32> -> vector<4x24x32xf32>
    %49 = arith.truncf %48 : vector<4x24x32xf32> to vector<4x24x32xbf16>
    %50 = vector.shape_cast %45 : vector<24x128xf32> to vector<24x4x32xf32>
    %51 = tpu.transpose %50, [1, 0, 2] : vector<24x4x32xf32> -> vector<4x24x32xf32>
    %52 = arith.truncf %51 : vector<4x24x32xf32> to vector<4x24x32xbf16>
    %53 = vector.shape_cast %46 : vector<24x128xf32> to vector<24x4x32xf32>
    %54 = tpu.transpose %53, [1, 0, 2] : vector<24x4x32xf32> -> vector<4x24x32xf32>
    %55 = arith.truncf %54 : vector<4x24x32xf32> to vector<4x24x32xbf16>
    "tpu.trace_start"() <{level = 10 : i32, message = "hqd,hkd->hqk"}> : () -> ()
    %cst_20 = arith.constant dense<0.000000e+00> : vector<4x24x24xf32>
    %56 = tpu.matmul %49, %52, %cst_20 {dimension_numbers = #tpu.dot_dimension_numbers<[2], [2], [1], [1], [0, 0, 0, 1, 1, 1], [0], [0]>} : vector<4x24x32xbf16>, vector<4x24x32xbf16>, vector<4x24x24xf32> -> vector<4x24x24xf32>
    %cst_21 = arith.constant -1.000000e+30 : f32
    "tpu.trace_stop"() : () -> ()
    %57 = vector.shape_cast %7 : vector<1x24x24xi1> to vector<1x24x24xi1>
    %58 = vector.broadcast %57 : vector<1x24x24xi1> to vector<4x24x24xi1>
    %59 = vector.broadcast %cst_21 : f32 to vector<4x24x24xf32>
    %60 = arith.select %58, %56, %59 : vector<4x24x24xi1>, vector<4x24x24xf32>
    %cst_22 = arith.constant dense<0xFF800000> : vector<4x24xf32>
    %61 = vector.multi_reduction <maximumf>, %60, %cst_22 [2] : vector<4x24x24xf32> to vector<4x24xf32>
    %62 = vector.shape_cast %61 : vector<4x24xf32> to vector<4x24x1xf32>
    %63 = vector.broadcast %62 : vector<4x24x1xf32> to vector<4x24x24xf32>
    %64 = arith.subf %60, %63 : vector<4x24x24xf32>
    %65 = math.exp %64 : vector<4x24x24xf32>
    %cst_23 = arith.constant dense<0.000000e+00> : vector<4x24xf32>
    %66 = vector.multi_reduction <add>, %65, %cst_23 [2] : vector<4x24x24xf32> to vector<4x24xf32>
    %67 = vector.shape_cast %66 : vector<4x24xf32> to vector<4x24x1xf32>
    %68 = tpu.reciprocal %67 {approx = true} : vector<4x24x1xf32> -> vector<4x24x1xf32>
    %69 = vector.broadcast %68 : vector<4x24x1xf32> to vector<4x24x24xf32>
    %70 = arith.mulf %65, %69 : vector<4x24x24xf32>
    %71 = arith.truncf %70 : vector<4x24x24xf32> to vector<4x24x24xbf16>
    "tpu.trace_start"() <{level = 10 : i32, message = "hqk,hkd->hqd"}> : () -> ()
    %cst_24 = arith.constant dense<0.000000e+00> : vector<4x24x32xf32>
    %72 = tpu.matmul %71, %55, %cst_24 {dimension_numbers = #tpu.dot_dimension_numbers<[2], [1], [1], [2], [0, 0, 0, 1, 1, 2], [0], [0]>} : vector<4x24x24xbf16>, vector<4x24x32xbf16>, vector<4x24x32xf32> -> vector<4x24x32xf32>
    "tpu.trace_stop"() : () -> ()
    %73 = tpu.transpose %72, [1, 0, 2] : vector<4x24x32xf32> -> vector<24x4x32xf32>
    %74 = vector.shape_cast %73 : vector<24x4x32xf32> to vector<24x128xf32>
    %75 = arith.truncf %74 : vector<24x128xf32> to vector<24x128xbf16>
    %c0_25 = arith.constant 0 : index
    %c0_26 = arith.constant 0 : index
    %c0_27 = arith.constant 0 : index
    %76 = vector.load %arg11[%c0_25, %c0_26, %c0_27] : memref<1x128x128xbf16, #tpu.memory_space<vmem>>, vector<1x128x128xbf16>
    %77 = vector.shape_cast %76 : vector<1x128x128xbf16> to vector<128x128xbf16>
    %cst_28 = arith.constant dense<0.000000e+00> : vector<24x128xf32>
    %78 = tpu.matmul %75, %77, %cst_28 {dimension_numbers = #tpu.dot_dimension_numbers<[1], [0], [0], [1], [0, 0, 1, 1], [], []>} : vector<24x128xbf16>, vector<128x128xbf16>, vector<24x128xf32> -> vector<24x128xf32>
    %79 = arith.addf %3, %78 : vector<24x128xf32>
    %c0_29 = arith.constant 0 : index
    %c0_30 = arith.constant 0 : index
    %c0_31 = arith.constant 0 : index
    %80 = vector.load %arg12[%c0_29, %c0_30, %c0_31] : memref<1x1x128xf32, #tpu.memory_space<vmem>>, vector<1x1x128xf32>
    %81 = vector.shape_cast %80 : vector<1x1x128xf32> to vector<1x128xf32>
    %82 = vector.broadcast %81 : vector<1x128xf32> to vector<24x128xf32>
    %83 = arith.addf %79, %82 : vector<24x128xf32>
    %c0_32 = arith.constant 0 : index
    %c0_33 = arith.constant 0 : index
    %c0_34 = arith.constant 0 : index
    %84 = vector.load %arg13[%c0_32, %c0_33, %c0_34] : memref<1x1x128xf32, #tpu.memory_space<vmem>>, vector<1x1x128xf32>
    %85 = vector.shape_cast %84 : vector<1x1x128xf32> to vector<1x128xf32>
    %c0_35 = arith.constant 0 : index
    %c0_36 = arith.constant 0 : index
    %c0_37 = arith.constant 0 : index
    %86 = vector.load %arg14[%c0_35, %c0_36, %c0_37] : memref<1x1x128xf32, #tpu.memory_space<vmem>>, vector<1x1x128xf32>
    %87 = vector.shape_cast %86 : vector<1x1x128xf32> to vector<1x128xf32>
    %cst_38 = arith.constant dense<0.000000e+00> : vector<24xf32>
    %88 = vector.multi_reduction <add>, %83, %cst_38 [1] : vector<24x128xf32> to vector<24xf32>
    %89 = vector.shape_cast %88 : vector<24xf32> to vector<24x1xf32>
    %cst_39 = arith.constant 1.280000e+02 : f32
    %90 = vector.broadcast %cst_39 : f32 to vector<24x1xf32>
    %91 = arith.divf %89, %90 : vector<24x1xf32>
    %92 = vector.broadcast %91 : vector<24x1xf32> to vector<24x128xf32>
    %93 = arith.subf %83, %92 : vector<24x128xf32>
    %94 = arith.mulf %93, %93 : vector<24x128xf32>
    %cst_40 = arith.constant dense<0.000000e+00> : vector<24xf32>
    %95 = vector.multi_reduction <add>, %94, %cst_40 [1] : vector<24x128xf32> to vector<24xf32>
    %96 = vector.shape_cast %95 : vector<24xf32> to vector<24x1xf32>
    %cst_41 = arith.constant 1.280000e+02 : f32
    %97 = vector.broadcast %cst_41 : f32 to vector<24x1xf32>
    %98 = arith.divf %96, %97 : vector<24x1xf32>
    %99 = vector.broadcast %91 : vector<24x1xf32> to vector<24x128xf32>
    %100 = arith.subf %83, %99 : vector<24x128xf32>
    %cst_42 = arith.constant 9.99999974E-6 : f32
    %101 = vector.broadcast %cst_42 : f32 to vector<24x1xf32>
    %102 = arith.addf %98, %101 : vector<24x1xf32>
    %103 = math.rsqrt %102 : vector<24x1xf32>
    %104 = vector.broadcast %103 : vector<24x1xf32> to vector<24x128xf32>
    %105 = arith.mulf %100, %104 : vector<24x128xf32>
    %106 = vector.broadcast %85 : vector<1x128xf32> to vector<24x128xf32>
    %107 = arith.mulf %105, %106 : vector<24x128xf32>
    %108 = vector.broadcast %87 : vector<1x128xf32> to vector<24x128xf32>
    %109 = arith.addf %107, %108 : vector<24x128xf32>
    %110 = arith.truncf %109 : vector<24x128xf32> to vector<24x128xbf16>
    %c0_43 = arith.constant 0 : index
    %c0_44 = arith.constant 0 : index
    %c0_45 = arith.constant 0 : index
    %111 = vector.load %arg15[%c0_43, %c0_44, %c0_45] : memref<1x128x256xbf16, #tpu.memory_space<vmem>>, vector<1x128x256xbf16>
    %112 = vector.shape_cast %111 : vector<1x128x256xbf16> to vector<128x256xbf16>
    %cst_46 = arith.constant dense<0.000000e+00> : vector<24x256xf32>
    %113 = tpu.matmul %110, %112, %cst_46 {dimension_numbers = #tpu.dot_dimension_numbers<[1], [0], [0], [1], [0, 0, 1, 1], [], []>} : vector<24x128xbf16>, vector<128x256xbf16>, vector<24x256xf32> -> vector<24x256xf32>
    %c0_47 = arith.constant 0 : index
    %c0_48 = arith.constant 0 : index
    %c0_49 = arith.constant 0 : index
    %114 = vector.load %arg16[%c0_47, %c0_48, %c0_49] : memref<1x1x256xf32, #tpu.memory_space<vmem>>, vector<1x1x256xf32>
    %115 = vector.shape_cast %114 : vector<1x1x256xf32> to vector<1x256xf32>
    %116 = vector.broadcast %115 : vector<1x256xf32> to vector<24x256xf32>
    %117 = arith.addf %113, %116 : vector<24x256xf32>
    %118 = arith.mulf %117, %117 : vector<24x256xf32>
    %119 = arith.mulf %117, %118 : vector<24x256xf32>
    %cst_50 = arith.constant 4.471500e-02 : f32
    %120 = vector.broadcast %cst_50 : f32 to vector<24x256xf32>
    %121 = arith.mulf %120, %119 : vector<24x256xf32>
    %122 = arith.addf %117, %121 : vector<24x256xf32>
    %cst_51 = arith.constant 0.797884583 : f32
    %123 = vector.broadcast %cst_51 : f32 to vector<24x256xf32>
    %124 = arith.mulf %123, %122 : vector<24x256xf32>
    %125 = math.tanh %124 : vector<24x256xf32>
    %cst_52 = arith.constant 1.000000e+00 : f32
    %126 = vector.broadcast %cst_52 : f32 to vector<24x256xf32>
    %127 = arith.addf %126, %125 : vector<24x256xf32>
    %cst_53 = arith.constant 5.000000e-01 : f32
    %128 = vector.broadcast %cst_53 : f32 to vector<24x256xf32>
    %129 = arith.mulf %128, %127 : vector<24x256xf32>
    %130 = arith.mulf %117, %129 : vector<24x256xf32>
    %131 = arith.truncf %130 : vector<24x256xf32> to vector<24x256xbf16>
    %c0_54 = arith.constant 0 : index
    %c0_55 = arith.constant 0 : index
    %c0_56 = arith.constant 0 : index
    %132 = vector.load %arg17[%c0_54, %c0_55, %c0_56] : memref<1x256x128xbf16, #tpu.memory_space<vmem>>, vector<1x256x128xbf16>
    %133 = vector.shape_cast %132 : vector<1x256x128xbf16> to vector<256x128xbf16>
    %cst_57 = arith.constant dense<0.000000e+00> : vector<24x128xf32>
    %134 = tpu.matmul %131, %133, %cst_57 {dimension_numbers = #tpu.dot_dimension_numbers<[1], [0], [0], [1], [0, 0, 1, 1], [], []>} : vector<24x256xbf16>, vector<256x128xbf16>, vector<24x128xf32> -> vector<24x128xf32>
    %135 = arith.addf %83, %134 : vector<24x128xf32>
    %c0_58 = arith.constant 0 : index
    %c0_59 = arith.constant 0 : index
    %c0_60 = arith.constant 0 : index
    %136 = vector.load %arg18[%c0_58, %c0_59, %c0_60] : memref<1x1x128xf32, #tpu.memory_space<vmem>>, vector<1x1x128xf32>
    %137 = vector.shape_cast %136 : vector<1x1x128xf32> to vector<1x128xf32>
    %138 = vector.broadcast %137 : vector<1x128xf32> to vector<24x128xf32>
    %139 = arith.addf %135, %138 : vector<24x128xf32>
    %c0_61 = arith.constant 0 : index
    %c0_62 = arith.constant 0 : index
    %140 = vector.load %arg24[%c0_61, %c0_62] : memref<24x128xf32, #tpu.memory_space<vmem>>, vector<24x128xf32>
    tpu.vector_store %arg24[%c0_61, %c0_62], %139 {strides = array<i32>} : memref<24x128xf32, #tpu.memory_space<vmem>>, vector<24x128xf32>,
    %c1_i32 = arith.constant 1 : i32
    %141 = arith.cmpi eq, %arg1, %c1_i32 : i32
    %142 = arith.extui %141 : i1 to i32
    %c0_i32_63 = arith.constant 0 : i32
    %143 = arith.cmpi ne, %142, %c0_i32_63 : i32
    scf.if %143 {
      %144 = vector.extract_strided_slice %139 {offsets = [0, 0], sizes = [16, 128], strides = [1, 1]} : vector<24x128xf32> to vector<16x128xf32>
      %145 = arith.truncf %144 : vector<16x128xf32> to vector<16x128xbf16>
      %c0_64 = arith.constant 0 : index
      %c0_65 = arith.constant 0 : index
      %146 = vector.load %arg19[%c0_64, %c0_65] : memref<128x128xbf16, #tpu.memory_space<vmem>>, vector<128x128xbf16>
      %cst_66 = arith.constant dense<0.000000e+00> : vector<16x128xf32>
      %147 = tpu.matmul %145, %146, %cst_66 {dimension_numbers = #tpu.dot_dimension_numbers<[1], [0], [0], [1], [0, 0, 1, 1], [], []>} : vector<16x128xbf16>, vector<128x128xbf16>, vector<16x128xf32> -> vector<16x128xf32>
      %c0_67 = arith.constant 0 : index
      %c0_68 = arith.constant 0 : index
      %148 = vector.load %arg20[%c0_67, %c0_68] : memref<1x128xf32, #tpu.memory_space<vmem>>, vector<1x128xf32>
      %149 = vector.broadcast %148 : vector<1x128xf32> to vector<16x128xf32>
      %150 = arith.addf %147, %149 : vector<16x128xf32>
      %151 = arith.mulf %150, %150 : vector<16x128xf32>
      %152 = arith.mulf %150, %151 : vector<16x128xf32>
      %cst_69 = arith.constant 4.471500e-02 : f32
      %153 = vector.broadcast %cst_69 : f32 to vector<16x128xf32>
      %154 = arith.mulf %153, %152 : vector<16x128xf32>
      %155 = arith.addf %150, %154 : vector<16x128xf32>
      %cst_70 = arith.constant 0.797884583 : f32
      %156 = vector.broadcast %cst_70 : f32 to vector<16x128xf32>
      %157 = arith.mulf %156, %155 : vector<16x128xf32>
      %158 = math.tanh %157 : vector<16x128xf32>
      %cst_71 = arith.constant 1.000000e+00 : f32
      %159 = vector.broadcast %cst_71 : f32 to vector<16x128xf32>
      %160 = arith.addf %159, %158 : vector<16x128xf32>
      %cst_72 = arith.constant 5.000000e-01 : f32
      %161 = vector.broadcast %cst_72 : f32 to vector<16x128xf32>
      %162 = arith.mulf %161, %160 : vector<16x128xf32>
      %163 = arith.mulf %150, %162 : vector<16x128xf32>
      %164 = arith.truncf %163 : vector<16x128xf32> to vector<16x128xbf16>
      %c0_73 = arith.constant 0 : index
      %c0_74 = arith.constant 0 : index
      %165 = vector.load %arg21[%c0_73, %c0_74] : memref<128x128xbf16, #tpu.memory_space<vmem>>, vector<128x128xbf16>
      %cst_75 = arith.constant dense<0.000000e+00> : vector<16x128xf32>
      %166 = tpu.matmul %164, %165, %cst_75 {dimension_numbers = #tpu.dot_dimension_numbers<[1], [0], [0], [1], [0, 0, 1, 1], [], []>} : vector<16x128xbf16>, vector<128x128xbf16>, vector<16x128xf32> -> vector<16x128xf32>
      %c0_76 = arith.constant 0 : index
      %c0_77 = arith.constant 0 : index
      %167 = vector.load %arg22[%c0_76, %c0_77] : memref<1x128xf32, #tpu.memory_space<vmem>>, vector<1x128xf32>
      %168 = vector.broadcast %167 : vector<1x128xf32> to vector<16x128xf32>
      %169 = arith.addf %166, %168 : vector<16x128xf32>
      %c0_78 = arith.constant 0 : index
      %c0_79 = arith.constant 0 : index
      %c0_80 = arith.constant 0 : index
      %170 = vector.load %arg23[%c0_78, %c0_79, %c0_80] : memref<1x16x128xf32, #tpu.memory_space<vmem>>, vector<1x16x128xf32>
      %171 = vector.shape_cast %170 : vector<1x16x128xf32> to vector<16x128xf32>
      %172 = vector.shape_cast %169 : vector<16x128xf32> to vector<1x16x128xf32>
      tpu.vector_store %arg23[%c0_78, %c0_79, %c0_80], %172 {strides = array<i32>} : memref<1x16x128xf32, #tpu.memory_space<vmem>>, vector<1x16x128xf32>,
    } else {
    }
    return
  }
  func.func @transform_0(%arg0: i32, %arg1: i32) -> (i32, i32, i32) {
    %c0_i32 = arith.constant 0 : i32
    %c0_i32_0 = arith.constant 0 : i32
    %c0_i32_1 = arith.constant 0 : i32
    return %arg0, %c0_i32, %c0_i32_0 : i32, i32, i32
  }
  func.func @transform_1(%arg0: i32, %arg1: i32) -> (i32, i32) {
    %c0_i32 = arith.constant 0 : i32
    %c0_i32_0 = arith.constant 0 : i32
    %c0_i32_1 = arith.constant 0 : i32
    return %c0_i32, %c0_i32_0 : i32, i32
  }
  func.func @transform_2(%arg0: i32, %arg1: i32) -> (i32, i32) {
    %c0_i32 = arith.constant 0 : i32
    %c0_i32_0 = arith.constant 0 : i32
    %c0_i32_1 = arith.constant 0 : i32
    return %c0_i32, %c0_i32_0 : i32, i32
  }
  func.func @transform_3(%arg0: i32, %arg1: i32) -> (i32, i32) {
    %c0_i32 = arith.constant 0 : i32
    %c0_i32_0 = arith.constant 0 : i32
    %c0_i32_1 = arith.constant 0 : i32
    return %c0_i32, %c0_i32_0 : i32, i32
  }
  func.func @transform_4(%arg0: i32, %arg1: i32) -> (i32, i32) {
    %c0_i32 = arith.constant 0 : i32
    %c0_i32_0 = arith.constant 0 : i32
    %c0_i32_1 = arith.constant 0 : i32
    return %c0_i32, %c0_i32_0 : i32, i32
  }
  func.func @transform_5(%arg0: i32, %arg1: i32) -> (i32, i32, i32) {
    %c0_i32 = arith.constant 0 : i32
    %c0_i32_0 = arith.constant 0 : i32
    %c0_i32_1 = arith.constant 0 : i32
    return %arg1, %c0_i32, %c0_i32_0 : i32, i32, i32
  }
  func.func @transform_6(%arg0: i32, %arg1: i32) -> (i32, i32, i32) {
    %c0_i32 = arith.constant 0 : i32
    %c0_i32_0 = arith.constant 0 : i32
    %c0_i32_1 = arith.constant 0 : i32
    return %arg1, %c0_i32, %c0_i32_0 : i32, i32, i32
  }
  func.func @transform_7(%arg0: i32, %arg1: i32) -> (i32, i32, i32) {
    %c0_i32 = arith.constant 0 : i32
    %c0_i32_0 = arith.constant 0 : i32
    %c0_i32_1 = arith.constant 0 : i32
    return %arg1, %c0_i32, %c0_i32_0 : i32, i32, i32
  }
  func.func @transform_8(%arg0: i32, %arg1: i32) -> (i32, i32, i32) {
    %c0_i32 = arith.constant 0 : i32
    %c0_i32_0 = arith.constant 0 : i32
    %c0_i32_1 = arith.constant 0 : i32
    return %arg1, %c0_i32, %c0_i32_0 : i32, i32, i32
  }
  func.func @transform_9(%arg0: i32, %arg1: i32) -> (i32, i32, i32) {
    %c0_i32 = arith.constant 0 : i32
    %c0_i32_0 = arith.constant 0 : i32
    %c0_i32_1 = arith.constant 0 : i32
    return %arg1, %c0_i32, %c0_i32_0 : i32, i32, i32
  }
  func.func @transform_10(%arg0: i32, %arg1: i32) -> (i32, i32, i32) {
    %c0_i32 = arith.constant 0 : i32
    %c0_i32_0 = arith.constant 0 : i32
    %c0_i32_1 = arith.constant 0 : i32
    return %arg1, %c0_i32, %c0_i32_0 : i32, i32, i32
  }
  func.func @transform_11(%arg0: i32, %arg1: i32) -> (i32, i32, i32) {
    %c0_i32 = arith.constant 0 : i32
    %c0_i32_0 = arith.constant 0 : i32
    %c0_i32_1 = arith.constant 0 : i32
    return %arg1, %c0_i32, %c0_i32_0 : i32, i32, i32
  }
  func.func @transform_12(%arg0: i32, %arg1: i32) -> (i32, i32, i32) {
    %c0_i32 = arith.constant 0 : i32
    %c0_i32_0 = arith.constant 0 : i32
    %c0_i32_1 = arith.constant 0 : i32
    return %arg1, %c0_i32, %c0_i32_0 : i32, i32, i32
  }
  func.func @transform_13(%arg0: i32, %arg1: i32) -> (i32, i32, i32) {
    %c0_i32 = arith.constant 0 : i32
    %c0_i32_0 = arith.constant 0 : i32
    %c0_i32_1 = arith.constant 0 : i32
    return %arg1, %c0_i32, %c0_i32_0 : i32, i32, i32
  }
  func.func @transform_14(%arg0: i32, %arg1: i32) -> (i32, i32, i32) {
    %c0_i32 = arith.constant 0 : i32
    %c0_i32_0 = arith.constant 0 : i32
    %c0_i32_1 = arith.constant 0 : i32
    return %arg1, %c0_i32, %c0_i32_0 : i32, i32, i32
  }
  func.func @transform_15(%arg0: i32, %arg1: i32) -> (i32, i32, i32) {
    %c0_i32 = arith.constant 0 : i32
    %c0_i32_0 = arith.constant 0 : i32
    %c0_i32_1 = arith.constant 0 : i32
    return %arg1, %c0_i32, %c0_i32_0 : i32, i32, i32
  }
  func.func @transform_16(%arg0: i32, %arg1: i32) -> (i32, i32, i32) {
    %c0_i32 = arith.constant 0 : i32
    %c0_i32_0 = arith.constant 0 : i32
    %c0_i32_1 = arith.constant 0 : i32
    return %arg1, %c0_i32, %c0_i32_0 : i32, i32, i32
  }
  func.func @transform_17(%arg0: i32, %arg1: i32) -> (i32, i32) {
    %c0_i32 = arith.constant 0 : i32
    %c0_i32_0 = arith.constant 0 : i32
    %c0_i32_1 = arith.constant 0 : i32
    return %c0_i32, %c0_i32_0 : i32, i32
  }
  func.func @transform_18(%arg0: i32, %arg1: i32) -> (i32, i32) {
    %c0_i32 = arith.constant 0 : i32
    %c0_i32_0 = arith.constant 0 : i32
    %c0_i32_1 = arith.constant 0 : i32
    return %c0_i32, %c0_i32_0 : i32, i32
  }
  func.func @transform_19(%arg0: i32, %arg1: i32) -> (i32, i32) {
    %c0_i32 = arith.constant 0 : i32
    %c0_i32_0 = arith.constant 0 : i32
    %c0_i32_1 = arith.constant 0 : i32
    return %c0_i32, %c0_i32_0 : i32, i32
  }
  func.func @transform_20(%arg0: i32, %arg1: i32) -> (i32, i32) {
    %c0_i32 = arith.constant 0 : i32
    %c0_i32_0 = arith.constant 0 : i32
    %c0_i32_1 = arith.constant 0 : i32
    return %c0_i32, %c0_i32_0 : i32, i32
  }
  func.func @transform_21(%arg0: i32, %arg1: i32) -> (i32, i32, i32) {
    %c0_i32 = arith.constant 0 : i32
    %c0_i32_0 = arith.constant 0 : i32
    %c0_i32_1 = arith.constant 0 : i32
    return %arg0, %c0_i32, %c0_i32_0 : i32, i32, i32
  }
}

module attributes {stable_mosaic.version = 11 : i64} {
  func.func @_lm_stack_kernel(%arg0: i32, %arg1: memref<40x128xf32, #tpu.memory_space<vmem>>, %arg2: memref<40x128xf32, #tpu.memory_space<vmem>>, %arg3: memref<40x128xf32, #tpu.memory_space<vmem>>, %arg4: memref<1x128xf32, #tpu.memory_space<vmem>>, %arg5: memref<1x1x128xf32, #tpu.memory_space<vmem>>, %arg6: memref<1x128x384xbf16, #tpu.memory_space<vmem>>, %arg7: memref<1x128x128xbf16, #tpu.memory_space<vmem>>, %arg8: memref<1x1x128xf32, #tpu.memory_space<vmem>>, %arg9: memref<1x128x512xbf16, #tpu.memory_space<vmem>>, %arg10: memref<1x256x128xbf16, #tpu.memory_space<vmem>>, %arg11: memref<40x128xf32, #tpu.memory_space<vmem>>, %arg12: memref<40x128xf32, #tpu.memory_space<vmem>>) attributes {dimension_semantics = [#tpu.dimension_semantics<arbitrary>], iteration_bounds = array<i64: 2>, scalar_prefetch = 0 : i64, scratch_operands = 1 : i64, tpu.core_type = #tpu.core_type<tc>, window_params = [{pipeline_mode = #tpu.pipeline_mode<synchronous>, transform_indices = @transform_0, window_bounds = array<i64: 40, 128>}, {pipeline_mode = #tpu.pipeline_mode<synchronous>, transform_indices = @transform_1, window_bounds = array<i64: 40, 128>}, {pipeline_mode = #tpu.pipeline_mode<synchronous>, transform_indices = @transform_2, window_bounds = array<i64: 40, 128>}, {pipeline_mode = #tpu.pipeline_mode<synchronous>, transform_indices = @transform_3, window_bounds = array<i64: 1, 128>}, {transform_indices = @transform_4, window_bounds = array<i64: 1, 1, 128>}, {transform_indices = @transform_5, window_bounds = array<i64: 1, 128, 384>}, {transform_indices = @transform_6, window_bounds = array<i64: 1, 128, 128>}, {transform_indices = @transform_7, window_bounds = array<i64: 1, 1, 128>}, {transform_indices = @transform_8, window_bounds = array<i64: 1, 128, 512>}, {transform_indices = @transform_9, window_bounds = array<i64: 1, 256, 128>}, {pipeline_mode = #tpu.pipeline_mode<synchronous>, transform_indices = @transform_10, window_bounds = array<i64: 40, 128>}]} {
    %c0_i32 = arith.constant 0 : i32
    %0 = arith.cmpi eq, %arg0, %c0_i32 : i32
    %1 = arith.extui %0 : i1 to i32
    %c0_i32_0 = arith.constant 0 : i32
    %2 = arith.cmpi ne, %1, %c0_i32_0 : i32
    scf.if %2 {
      %c0_53 = arith.constant 0 : index
      %c0_54 = arith.constant 0 : index
      %137 = vector.load %arg1[%c0_53, %c0_54] : memref<40x128xf32, #tpu.memory_space<vmem>>, vector<40x128xf32>
      %c0_55 = arith.constant 0 : index
      %c0_56 = arith.constant 0 : index
      %138 = vector.load %arg12[%c0_55, %c0_56] : memref<40x128xf32, #tpu.memory_space<vmem>>, vector<40x128xf32>
      tpu.vector_store %arg12[%c0_55, %c0_56], %137 {strides = array<i32>} : memref<40x128xf32, #tpu.memory_space<vmem>>, vector<40x128xf32>,
    } else {
    }
    %c0 = arith.constant 0 : index
    %c0_1 = arith.constant 0 : index
    %3 = vector.load %arg12[%c0, %c0_1] : memref<40x128xf32, #tpu.memory_space<vmem>>, vector<40x128xf32>
    %c0_2 = arith.constant 0 : index
    %c0_3 = arith.constant 0 : index
    %4 = vector.load %arg2[%c0_2, %c0_3] : memref<40x128xf32, #tpu.memory_space<vmem>>, vector<40x128xf32>
    %c0_4 = arith.constant 0 : index
    %c0_5 = arith.constant 0 : index
    %5 = vector.load %arg3[%c0_4, %c0_5] : memref<40x128xf32, #tpu.memory_space<vmem>>, vector<40x128xf32>
    %6 = tpu.iota {dimensions = array<i32: 1>} : vector<40x128xi32>
    %c32_i32 = arith.constant 32 : i32
    %c0_i32_6 = arith.constant 0 : i32
    %7 = arith.cmpi eq, %c32_i32, %c0_i32_6 : i32
    %c1_i32 = arith.constant 1 : i32
    %8 = arith.select %7, %c1_i32, %c32_i32 : i32
    %9 = vector.broadcast %8 : i32 to vector<40x128xi32>
    %10 = arith.remsi %6, %9 : vector<40x128xi32>
    %c0_i32_7 = arith.constant 0 : i32
    %11 = vector.broadcast %c0_i32_7 : i32 to vector<40x128xi32>
    %12 = arith.cmpi ne, %10, %11 : vector<40x128xi32>
    %c0_i32_8 = arith.constant 0 : i32
    %13 = vector.broadcast %c0_i32_8 : i32 to vector<40x128xi32>
    %14 = arith.cmpi slt, %10, %13 : vector<40x128xi32>
    %c0_i32_9 = arith.constant 0 : i32
    %15 = arith.cmpi slt, %8, %c0_i32_9 : i32
    %16 = vector.broadcast %15 : i1 to vector<40x128xi1>
    %17 = vector.broadcast %16 : vector<40x128xi1> to vector<40x128xi1>
    %18 = arith.xori %14, %17 : vector<40x128xi1>
    %19 = arith.andi %18, %12 : vector<40x128xi1>
    %20 = vector.broadcast %8 : i32 to vector<40x128xi32>
    %21 = arith.addi %10, %20 : vector<40x128xi32>
    %22 = arith.select %19, %21, %10 : vector<40x128xi1>, vector<40x128xi32>
    %c16_i32 = arith.constant 16 : i32
    %23 = vector.broadcast %c16_i32 : i32 to vector<40x128xi32>
    %24 = arith.cmpi slt, %22, %23 : vector<40x128xi32>
    %c0_10 = arith.constant 0 : index
    %c0_11 = arith.constant 0 : index
    %c0_12 = arith.constant 0 : index
    %25 = vector.load %arg5[%c0_10, %c0_11, %c0_12] : memref<1x1x128xf32, #tpu.memory_space<vmem>>, vector<1x1x128xf32>
    %26 = vector.shape_cast %25 : vector<1x1x128xf32> to vector<1x128xf32>
    %27 = arith.mulf %3, %3 : vector<40x128xf32>
    %cst = arith.constant dense<0.000000e+00> : vector<40xf32>
    %28 = vector.multi_reduction <add>, %27, %cst [1] : vector<40x128xf32> to vector<40xf32>
    %29 = vector.shape_cast %28 : vector<40xf32> to vector<40x1xf32>
    %cst_13 = arith.constant 1.280000e+02 : f32
    %30 = vector.broadcast %cst_13 : f32 to vector<40x1xf32>
    %31 = arith.divf %29, %30 : vector<40x1xf32>
    %cst_14 = arith.constant 9.99999997E-7 : f32
    %32 = vector.broadcast %cst_14 : f32 to vector<40x1xf32>
    %33 = arith.addf %31, %32 : vector<40x1xf32>
    %34 = math.rsqrt %33 : vector<40x1xf32>
    %35 = vector.broadcast %34 : vector<40x1xf32> to vector<40x128xf32>
    %36 = arith.mulf %3, %35 : vector<40x128xf32>
    %37 = vector.broadcast %26 : vector<1x128xf32> to vector<40x128xf32>
    %38 = arith.mulf %36, %37 : vector<40x128xf32>
    %39 = arith.truncf %38 : vector<40x128xf32> to vector<40x128xbf16>
    %c0_15 = arith.constant 0 : index
    %c0_16 = arith.constant 0 : index
    %c0_17 = arith.constant 0 : index
    %40 = vector.load %arg6[%c0_15, %c0_16, %c0_17] : memref<1x128x384xbf16, #tpu.memory_space<vmem>>, vector<1x128x384xbf16>
    %41 = vector.shape_cast %40 : vector<1x128x384xbf16> to vector<128x384xbf16>
    %cst_18 = arith.constant dense<0.000000e+00> : vector<40x384xf32>
    %42 = tpu.matmul %39, %41, %cst_18 {dimension_numbers = #tpu.dot_dimension_numbers<[1], [0], [0], [1], [0, 0, 1, 1], [], []>} : vector<40x128xbf16>, vector<128x384xbf16>, vector<40x384xf32> -> vector<40x384xf32>
    %43 = vector.extract_strided_slice %42 {offsets = [0, 0], sizes = [40, 128], strides = [1, 1]} : vector<40x384xf32> to vector<40x128xf32>
    %cst_19 = arith.constant 0.176776692 : f32
    %44 = vector.broadcast %cst_19 : f32 to vector<40x128xf32>
    %45 = arith.mulf %43, %44 : vector<40x128xf32>
    %c112_i32 = arith.constant 112 : i32
    %46 = tpu.dynamic_rotate %45 by %c112_i32 dim 1 : vector<40x128xf32>, i32 -> vector<40x128xf32>
    %cst_20 = arith.constant 0.000000e+00 : f32
    %47 = vector.broadcast %cst_20 : f32 to vector<40x128xf32>
    %48 = arith.subf %47, %46 : vector<40x128xf32>
    %c16_i32_21 = arith.constant 16 : i32
    %49 = tpu.dynamic_rotate %45 by %c16_i32_21 dim 1 : vector<40x128xf32>, i32 -> vector<40x128xf32>
    %50 = arith.select %24, %48, %49 : vector<40x128xi1>, vector<40x128xf32>
    %51 = arith.mulf %45, %4 : vector<40x128xf32>
    %52 = arith.mulf %50, %5 : vector<40x128xf32>
    %53 = arith.addf %51, %52 : vector<40x128xf32>
    %54 = vector.extract_strided_slice %42 {offsets = [0, 128], sizes = [40, 128], strides = [1, 1]} : vector<40x384xf32> to vector<40x128xf32>
    %c112_i32_22 = arith.constant 112 : i32
    %55 = tpu.dynamic_rotate %54 by %c112_i32_22 dim 1 : vector<40x128xf32>, i32 -> vector<40x128xf32>
    %cst_23 = arith.constant 0.000000e+00 : f32
    %56 = vector.broadcast %cst_23 : f32 to vector<40x128xf32>
    %57 = arith.subf %56, %55 : vector<40x128xf32>
    %c16_i32_24 = arith.constant 16 : i32
    %58 = tpu.dynamic_rotate %54 by %c16_i32_24 dim 1 : vector<40x128xf32>, i32 -> vector<40x128xf32>
    %59 = arith.select %24, %57, %58 : vector<40x128xi1>, vector<40x128xf32>
    %60 = arith.mulf %54, %4 : vector<40x128xf32>
    %61 = arith.mulf %59, %5 : vector<40x128xf32>
    %62 = arith.addf %60, %61 : vector<40x128xf32>
    %63 = vector.extract_strided_slice %42 {offsets = [0, 256], sizes = [40, 128], strides = [1, 1]} : vector<40x384xf32> to vector<40x128xf32>
    %64 = vector.shape_cast %53 : vector<40x128xf32> to vector<40x4x32xf32>
    %65 = tpu.transpose %64, [1, 0, 2] : vector<40x4x32xf32> -> vector<4x40x32xf32>
    %66 = arith.truncf %65 : vector<4x40x32xf32> to vector<4x40x32xbf16>
    %67 = vector.shape_cast %62 : vector<40x128xf32> to vector<40x4x32xf32>
    %68 = tpu.transpose %67, [1, 0, 2] : vector<40x4x32xf32> -> vector<4x40x32xf32>
    %69 = arith.truncf %68 : vector<4x40x32xf32> to vector<4x40x32xbf16>
    %70 = vector.shape_cast %63 : vector<40x128xf32> to vector<40x4x32xf32>
    %71 = tpu.transpose %70, [1, 0, 2] : vector<40x4x32xf32> -> vector<4x40x32xf32>
    %72 = arith.truncf %71 : vector<4x40x32xf32> to vector<4x40x32xbf16>
    "tpu.trace_start"() <{level = 10 : i32, message = "hqd,hkd->hqk"}> : () -> ()
    %cst_25 = arith.constant dense<0.000000e+00> : vector<4x40x40xf32>
    %73 = tpu.matmul %66, %69, %cst_25 {dimension_numbers = #tpu.dot_dimension_numbers<[2], [2], [1], [1], [0, 0, 0, 1, 1, 1], [0], [0]>} : vector<4x40x32xbf16>, vector<4x40x32xbf16>, vector<4x40x40xf32> -> vector<4x40x40xf32>
    "tpu.trace_stop"() : () -> ()
    %74 = tpu.iota {dimensions = array<i32: 0>} : vector<40x40xi32>
    %75 = tpu.iota {dimensions = array<i32: 1>} : vector<40x40xi32>
    %76 = arith.cmpi sge, %74, %75 : vector<40x40xi32>
    %77 = vector.shape_cast %76 : vector<40x40xi1> to vector<1x40x40xi1>
    %cst_26 = arith.constant -1.000000e+30 : f32
    %78 = vector.shape_cast %77 : vector<1x40x40xi1> to vector<1x40x40xi1>
    %79 = vector.broadcast %78 : vector<1x40x40xi1> to vector<4x40x40xi1>
    %80 = vector.broadcast %cst_26 : f32 to vector<4x40x40xf32>
    %81 = arith.select %79, %73, %80 : vector<4x40x40xi1>, vector<4x40x40xf32>
    %cst_27 = arith.constant dense<0xFF800000> : vector<4x40xf32>
    %82 = vector.multi_reduction <maximumf>, %81, %cst_27 [2] : vector<4x40x40xf32> to vector<4x40xf32>
    %83 = vector.shape_cast %82 : vector<4x40xf32> to vector<4x40x1xf32>
    %84 = vector.broadcast %83 : vector<4x40x1xf32> to vector<4x40x40xf32>
    %85 = arith.subf %81, %84 : vector<4x40x40xf32>
    %86 = math.exp %85 : vector<4x40x40xf32>
    %cst_28 = arith.constant dense<0.000000e+00> : vector<4x40xf32>
    %87 = vector.multi_reduction <add>, %86, %cst_28 [2] : vector<4x40x40xf32> to vector<4x40xf32>
    %88 = vector.shape_cast %87 : vector<4x40xf32> to vector<4x40x1xf32>
    %89 = tpu.reciprocal %88 {approx = true} : vector<4x40x1xf32> -> vector<4x40x1xf32>
    %90 = vector.broadcast %89 : vector<4x40x1xf32> to vector<4x40x40xf32>
    %91 = arith.mulf %86, %90 : vector<4x40x40xf32>
    %92 = arith.truncf %91 : vector<4x40x40xf32> to vector<4x40x40xbf16>
    "tpu.trace_start"() <{level = 10 : i32, message = "hqk,hkd->hqd"}> : () -> ()
    %cst_29 = arith.constant dense<0.000000e+00> : vector<4x40x32xf32>
    %93 = tpu.matmul %92, %72, %cst_29 {dimension_numbers = #tpu.dot_dimension_numbers<[2], [1], [1], [2], [0, 0, 0, 1, 1, 2], [0], [0]>} : vector<4x40x40xbf16>, vector<4x40x32xbf16>, vector<4x40x32xf32> -> vector<4x40x32xf32>
    "tpu.trace_stop"() : () -> ()
    %94 = tpu.transpose %93, [1, 0, 2] : vector<4x40x32xf32> -> vector<40x4x32xf32>
    %95 = vector.shape_cast %94 : vector<40x4x32xf32> to vector<40x128xf32>
    %96 = arith.truncf %95 : vector<40x128xf32> to vector<40x128xbf16>
    %c0_30 = arith.constant 0 : index
    %c0_31 = arith.constant 0 : index
    %c0_32 = arith.constant 0 : index
    %97 = vector.load %arg7[%c0_30, %c0_31, %c0_32] : memref<1x128x128xbf16, #tpu.memory_space<vmem>>, vector<1x128x128xbf16>
    %98 = vector.shape_cast %97 : vector<1x128x128xbf16> to vector<128x128xbf16>
    %cst_33 = arith.constant dense<0.000000e+00> : vector<40x128xf32>
    %99 = tpu.matmul %96, %98, %cst_33 {dimension_numbers = #tpu.dot_dimension_numbers<[1], [0], [0], [1], [0, 0, 1, 1], [], []>} : vector<40x128xbf16>, vector<128x128xbf16>, vector<40x128xf32> -> vector<40x128xf32>
    %100 = arith.addf %3, %99 : vector<40x128xf32>
    %c0_34 = arith.constant 0 : index
    %c0_35 = arith.constant 0 : index
    %c0_36 = arith.constant 0 : index
    %101 = vector.load %arg8[%c0_34, %c0_35, %c0_36] : memref<1x1x128xf32, #tpu.memory_space<vmem>>, vector<1x1x128xf32>
    %102 = vector.shape_cast %101 : vector<1x1x128xf32> to vector<1x128xf32>
    %103 = arith.mulf %100, %100 : vector<40x128xf32>
    %cst_37 = arith.constant dense<0.000000e+00> : vector<40xf32>
    %104 = vector.multi_reduction <add>, %103, %cst_37 [1] : vector<40x128xf32> to vector<40xf32>
    %105 = vector.shape_cast %104 : vector<40xf32> to vector<40x1xf32>
    %cst_38 = arith.constant 1.280000e+02 : f32
    %106 = vector.broadcast %cst_38 : f32 to vector<40x1xf32>
    %107 = arith.divf %105, %106 : vector<40x1xf32>
    %cst_39 = arith.constant 9.99999997E-7 : f32
    %108 = vector.broadcast %cst_39 : f32 to vector<40x1xf32>
    %109 = arith.addf %107, %108 : vector<40x1xf32>
    %110 = math.rsqrt %109 : vector<40x1xf32>
    %111 = vector.broadcast %110 : vector<40x1xf32> to vector<40x128xf32>
    %112 = arith.mulf %100, %111 : vector<40x128xf32>
    %113 = vector.broadcast %102 : vector<1x128xf32> to vector<40x128xf32>
    %114 = arith.mulf %112, %113 : vector<40x128xf32>
    %115 = arith.truncf %114 : vector<40x128xf32> to vector<40x128xbf16>
    %c0_40 = arith.constant 0 : index
    %c0_41 = arith.constant 0 : index
    %c0_42 = arith.constant 0 : index
    %116 = vector.load %arg9[%c0_40, %c0_41, %c0_42] : memref<1x128x512xbf16, #tpu.memory_space<vmem>>, vector<1x128x512xbf16>
    %117 = vector.shape_cast %116 : vector<1x128x512xbf16> to vector<128x512xbf16>
    %cst_43 = arith.constant dense<0.000000e+00> : vector<40x512xf32>
    %118 = tpu.matmul %115, %117, %cst_43 {dimension_numbers = #tpu.dot_dimension_numbers<[1], [0], [0], [1], [0, 0, 1, 1], [], []>} : vector<40x128xbf16>, vector<128x512xbf16>, vector<40x512xf32> -> vector<40x512xf32>
    %119 = vector.extract_strided_slice %118 {offsets = [0, 0], sizes = [40, 256], strides = [1, 1]} : vector<40x512xf32> to vector<40x256xf32>
    %120 = arith.negf %119 : vector<40x256xf32>
    %121 = math.exp %120 : vector<40x256xf32>
    %cst_44 = arith.constant 1.000000e+00 : f32
    %122 = vector.broadcast %cst_44 : f32 to vector<40x256xf32>
    %123 = arith.addf %122, %121 : vector<40x256xf32>
    %124 = arith.divf %122, %123 : vector<40x256xf32>
    %125 = arith.mulf %119, %124 : vector<40x256xf32>
    %126 = vector.extract_strided_slice %118 {offsets = [0, 256], sizes = [40, 256], strides = [1, 1]} : vector<40x512xf32> to vector<40x256xf32>
    %127 = arith.mulf %125, %126 : vector<40x256xf32>
    %128 = arith.truncf %127 : vector<40x256xf32> to vector<40x256xbf16>
    %c0_45 = arith.constant 0 : index
    %c0_46 = arith.constant 0 : index
    %c0_47 = arith.constant 0 : index
    %129 = vector.load %arg10[%c0_45, %c0_46, %c0_47] : memref<1x256x128xbf16, #tpu.memory_space<vmem>>, vector<1x256x128xbf16>
    %130 = vector.shape_cast %129 : vector<1x256x128xbf16> to vector<256x128xbf16>
    %cst_48 = arith.constant dense<0.000000e+00> : vector<40x128xf32>
    %131 = tpu.matmul %128, %130, %cst_48 {dimension_numbers = #tpu.dot_dimension_numbers<[1], [0], [0], [1], [0, 0, 1, 1], [], []>} : vector<40x256xbf16>, vector<256x128xbf16>, vector<40x128xf32> -> vector<40x128xf32>
    %132 = arith.addf %100, %131 : vector<40x128xf32>
    %c0_49 = arith.constant 0 : index
    %c0_50 = arith.constant 0 : index
    %133 = vector.load %arg12[%c0_49, %c0_50] : memref<40x128xf32, #tpu.memory_space<vmem>>, vector<40x128xf32>
    tpu.vector_store %arg12[%c0_49, %c0_50], %132 {strides = array<i32>} : memref<40x128xf32, #tpu.memory_space<vmem>>, vector<40x128xf32>,
    %c1_i32_51 = arith.constant 1 : i32
    %134 = arith.cmpi eq, %arg0, %c1_i32_51 : i32
    %135 = arith.extui %134 : i1 to i32
    %c0_i32_52 = arith.constant 0 : i32
    %136 = arith.cmpi ne, %135, %c0_i32_52 : i32
    scf.if %136 {
      %c0_53 = arith.constant 0 : index
      %c0_54 = arith.constant 0 : index
      %137 = vector.load %arg4[%c0_53, %c0_54] : memref<1x128xf32, #tpu.memory_space<vmem>>, vector<1x128xf32>
      %138 = arith.mulf %132, %132 : vector<40x128xf32>
      %cst_55 = arith.constant dense<0.000000e+00> : vector<40xf32>
      %139 = vector.multi_reduction <add>, %138, %cst_55 [1] : vector<40x128xf32> to vector<40xf32>
      %140 = vector.shape_cast %139 : vector<40xf32> to vector<40x1xf32>
      %cst_56 = arith.constant 1.280000e+02 : f32
      %141 = vector.broadcast %cst_56 : f32 to vector<40x1xf32>
      %142 = arith.divf %140, %141 : vector<40x1xf32>
      %cst_57 = arith.constant 9.99999997E-7 : f32
      %143 = vector.broadcast %cst_57 : f32 to vector<40x1xf32>
      %144 = arith.addf %142, %143 : vector<40x1xf32>
      %145 = math.rsqrt %144 : vector<40x1xf32>
      %146 = vector.broadcast %145 : vector<40x1xf32> to vector<40x128xf32>
      %147 = arith.mulf %132, %146 : vector<40x128xf32>
      %148 = vector.broadcast %137 : vector<1x128xf32> to vector<40x128xf32>
      %149 = arith.mulf %147, %148 : vector<40x128xf32>
      %c0_58 = arith.constant 0 : index
      %c0_59 = arith.constant 0 : index
      %150 = vector.load %arg11[%c0_58, %c0_59] : memref<40x128xf32, #tpu.memory_space<vmem>>, vector<40x128xf32>
      tpu.vector_store %arg11[%c0_58, %c0_59], %149 {strides = array<i32>} : memref<40x128xf32, #tpu.memory_space<vmem>>, vector<40x128xf32>,
    } else {
    }
    return
  }
  func.func @transform_0(%arg0: i32) -> (i32, i32) {
    %c0_i32 = arith.constant 0 : i32
    %c0_i32_0 = arith.constant 0 : i32
    %c0_i32_1 = arith.constant 0 : i32
    return %c0_i32, %c0_i32_0 : i32, i32
  }
  func.func @transform_1(%arg0: i32) -> (i32, i32) {
    %c0_i32 = arith.constant 0 : i32
    %c0_i32_0 = arith.constant 0 : i32
    %c0_i32_1 = arith.constant 0 : i32
    return %c0_i32, %c0_i32_0 : i32, i32
  }
  func.func @transform_2(%arg0: i32) -> (i32, i32) {
    %c0_i32 = arith.constant 0 : i32
    %c0_i32_0 = arith.constant 0 : i32
    %c0_i32_1 = arith.constant 0 : i32
    return %c0_i32, %c0_i32_0 : i32, i32
  }
  func.func @transform_3(%arg0: i32) -> (i32, i32) {
    %c0_i32 = arith.constant 0 : i32
    %c0_i32_0 = arith.constant 0 : i32
    %c0_i32_1 = arith.constant 0 : i32
    return %c0_i32, %c0_i32_0 : i32, i32
  }
  func.func @transform_4(%arg0: i32) -> (i32, i32, i32) {
    %c0_i32 = arith.constant 0 : i32
    %c0_i32_0 = arith.constant 0 : i32
    %c0_i32_1 = arith.constant 0 : i32
    return %arg0, %c0_i32, %c0_i32_0 : i32, i32, i32
  }
  func.func @transform_5(%arg0: i32) -> (i32, i32, i32) {
    %c0_i32 = arith.constant 0 : i32
    %c0_i32_0 = arith.constant 0 : i32
    %c0_i32_1 = arith.constant 0 : i32
    return %arg0, %c0_i32, %c0_i32_0 : i32, i32, i32
  }
  func.func @transform_6(%arg0: i32) -> (i32, i32, i32) {
    %c0_i32 = arith.constant 0 : i32
    %c0_i32_0 = arith.constant 0 : i32
    %c0_i32_1 = arith.constant 0 : i32
    return %arg0, %c0_i32, %c0_i32_0 : i32, i32, i32
  }
  func.func @transform_7(%arg0: i32) -> (i32, i32, i32) {
    %c0_i32 = arith.constant 0 : i32
    %c0_i32_0 = arith.constant 0 : i32
    %c0_i32_1 = arith.constant 0 : i32
    return %arg0, %c0_i32, %c0_i32_0 : i32, i32, i32
  }
  func.func @transform_8(%arg0: i32) -> (i32, i32, i32) {
    %c0_i32 = arith.constant 0 : i32
    %c0_i32_0 = arith.constant 0 : i32
    %c0_i32_1 = arith.constant 0 : i32
    return %arg0, %c0_i32, %c0_i32_0 : i32, i32, i32
  }
  func.func @transform_9(%arg0: i32) -> (i32, i32, i32) {
    %c0_i32 = arith.constant 0 : i32
    %c0_i32_0 = arith.constant 0 : i32
    %c0_i32_1 = arith.constant 0 : i32
    return %arg0, %c0_i32, %c0_i32_0 : i32, i32, i32
  }
  func.func @transform_10(%arg0: i32) -> (i32, i32) {
    %c0_i32 = arith.constant 0 : i32
    %c0_i32_0 = arith.constant 0 : i32
    %c0_i32_1 = arith.constant 0 : i32
    return %c0_i32, %c0_i32_0 : i32, i32
  }
}

</mosaic_0001>

<bundles_post_ra>
// kernel: tile.14
= control target key start
LH: loop header
LB: loop body
LE: loop exit
PB: predicated region body
PF: predicated region fallthrough
CT: control target
= control target key end

     0   :  { %vm202_vm0 = vcmask 1047556   ;;  %s500_s10 = smov 96   ;;  %vm204_vm1 = vcmask 261120   ;;  %vm250_vm2 = vcmask 1048320   ;;  %vm304_vm3 = vcmask 785920   ;;  %s728_s0 = inlined_call_operand.vmem [shape: f32[40,4,32], index: 0, kind: input, shape index: {}]   ;;  %s729_s1 = inlined_call_operand.vmem [shape: f32[40,128], index: 1, kind: output, shape index: {}]  }
   0x1   :  { %v474_v0 = vld [vmem:[%s728_s0 + $0x1c] sm:$0xf]  ;;  %v475_v1 = vld [vmem:[%s728_s0 + $0x18] sm:$0xf]  ;;  %v476_v2 = vld [vmem:[%s728_s0 + $0x14] sm:$0xf] }
   0x2   :  { %168 = vst [vmem:[#allocation0 + $0x38] sm:$0xf] %v474_v0  ;;  %173 = vst [vmem:[#allocation0 + $0x30] sm:$0xf] %v475_v1  ;;  %v477_v3 = vld [vmem:[%s728_s0 + $0x10] sm:$0xf] }
   0x3   :  { %178 = vst [vmem:[#allocation0 + $0x28] sm:$0xf] %v476_v2  ;;  %v478_v4 = vld [vmem:[%s728_s0 + $0xc] sm:$0xf]  ;;  %v479_v5 = vld [vmem:[%s728_s0 + $0x8] sm:$0xf] }
   0x4   :  { %183 = vst [vmem:[#allocation0 + $0x20] sm:$0xf] %v477_v3  ;;  %188 = vst [vmem:[#allocation0 + $0x18] sm:$0xf] %v478_v4  ;;  %v480_v6 = vld [vmem:[%s728_s0 + $0x4] sm:$0xf] }
   0x5   :  { %193 = vst [vmem:[#allocation0 + $0x10] sm:$0xf] %v479_v5  ;;  %v198_v7 = vld [vmem:[%s728_s0] sm:$0xf]  ;;  %197 = vst [vmem:[#allocation0 + $0x8] sm:$0xf] %v480_v6 }
   0x6   :  { %199 = vst [vmem:[#allocation0] sm:$0xf] %v198_v7  ;;  %v466_v8 = vld [vmem:[%s728_s0 + $0x3c] sm:$0xf]  ;;  %v467_v9 = vld [vmem:[%s728_s0 + $0x38] sm:$0xf] }
   0x7   :  { %v468_v10 = vld [vmem:[%s728_s0 + $0x34] sm:$0xf]  ;;  %128 = vst [vmem:[#allocation0 + $0x78] sm:$0xf] %v466_v8  ;;  %133 = vst [vmem:[#allocation0 + $0x70] sm:$0xf] %v467_v9 }
   0x8   :  { %138 = vst [vmem:[#allocation0 + $0x68] sm:$0xf] %v468_v10  ;;  %v469_v11 = vld [vmem:[%s728_s0 + $0x30] sm:$0xf]  ;;  %v470_v12 = vld [vmem:[%s728_s0 + $0x2c] sm:$0xf] }
   0x9   :  { %v471_v13 = vld [vmem:[%s728_s0 + $0x28] sm:$0xf]  ;;  %143 = vst [vmem:[#allocation0 + $0x60] sm:$0xf] %v469_v11  ;;  %148 = vst [vmem:[#allocation0 + $0x58] sm:$0xf] %v470_v12 }
   0xa   :  { %153 = vst [vmem:[#allocation0 + $0x50] sm:$0xf] %v471_v13  ;;  %v472_v14 = vld [vmem:[%s728_s0 + $0x24] sm:$0xf]  ;;  %v473_v15 = vld [vmem:[%s728_s0 + $0x20] sm:$0xf] }
   0xb   :  { %v442_v16 = vld [vmem:[%s728_s0 + $0x9c] sm:$0xf]  ;;  %158 = vst [vmem:[#allocation0 + $0x48] sm:$0xf] %v472_v14  ;;  %163 = vst [vmem:[#allocation0 + $0x40] sm:$0xf] %v473_v15 }
   0xc   :  { %8 = vst [vmem:[#allocation0 + $0x138] sm:$0xf] %v442_v16  ;;  %v443_v17 = vld [vmem:[%s728_s0 + $0x98] sm:$0xf]  ;;  %v444_v18 = vld [vmem:[%s728_s0 + $0x94] sm:$0xf] }
   0xd   :  { %v445_v19 = vld [vmem:[%s728_s0 + $0x90] sm:$0xf]  ;;  %13 = vst [vmem:[#allocation0 + $0x130] sm:$0xf] %v443_v17  ;;  %18 = vst [vmem:[#allocation0 + $0x128] sm:$0xf] %v444_v18 }
   0xe   :  { %23 = vst [vmem:[#allocation0 + $0x120] sm:$0xf] %v445_v19  ;;  %v446_v20 = vld [vmem:[%s728_s0 + $0x8c] sm:$0xf]  ;;  %v447_v21 = vld [vmem:[%s728_s0 + $0x88] sm:$0xf] }
   0xf   :  { %v448_v22 = vld [vmem:[%s728_s0 + $0x84] sm:$0xf]  ;;  %28 = vst [vmem:[#allocation0 + $0x118] sm:$0xf] %v446_v20  ;;  %33 = vst [vmem:[#allocation0 + $0x110] sm:$0xf] %v447_v21 }
  0x10   :  { %38 = vst [vmem:[#allocation0 + $0x108] sm:$0xf] %v448_v22  ;;  %v449_v23 = vld [vmem:[%s728_s0 + $0x80] sm:$0xf]  ;;  %v458_v24 = vld [vmem:[%s728_s0 + $0x5c] sm:$0xf] }
  0x11   :  { %v459_v25 = vld [vmem:[%s728_s0 + $0x58] sm:$0xf]  ;;  %43 = vst [vmem:[#allocation0 + $0x100] sm:$0xf] %v449_v23  ;;  %88 = vst [vmem:[#allocation0 + $0xb8] sm:$0xf] %v458_v24 }
  0x12   :  { %v245_v26 = vld [vmem:[#allocation0 + $0x3] ss:$8 sm:$0xf0]   ;;  %93 = vst [vmem:[#allocation0 + $0xb0] sm:$0xf] %v459_v25  ;;  %vm358_vm4 = vcmask 523520  }
  0x13   :  { %v460_v27 = vld [vmem:[%s728_s0 + $0x54] sm:$0xf]  ;;  %v243_v28 = vld [vmem:[#allocation0 + $0x3] ss:$8 sm:$0xf]  }
  0x14   :  { %98 = vst [vmem:[#allocation0 + $0xa8] sm:$0xf] %v460_v27  ;;  %v461_v29 = vld [vmem:[%s728_s0 + $0x50] sm:$0xf]  ;;  %v247_v30 = vsel %vm202_vm0, %v245_v26, %v243_v28  ;;  %v462_v31 = vld [vmem:[%s728_s0 + $0x4c] sm:$0xf] }
  0x15   :  { %103 = vst [vmem:[#allocation0 + $0xa0] sm:$0xf] %v461_v29  ;;  %v463_v32 = vld [vmem:[%s728_s0 + $0x48] sm:$0xf]  ;;  %v464_v33 = vld [vmem:[%s728_s0 + $0x44] sm:$0xf]  ;;  %248 = vrot.lane.b32.xlu0 %v247_v30, %s500_s10 }
  0x16   :  { %v266_v34 = vld [vmem:[#allocation0 + $0x43] ss:$8 sm:$0xf0]   ;;  %108 = vst [vmem:[#allocation0 + $0x98] sm:$0xf] %v462_v31 }
  0x17   :  { %113 = vst [vmem:[#allocation0 + $0x90] sm:$0xf] %v463_v32  ;;  %118 = vst [vmem:[#allocation0 + $0x88] sm:$0xf] %v464_v33  ;;  %v465_v35 = vld [vmem:[%s728_s0 + $0x40] sm:$0xf] }
  0x18   :  { %v264_v36 = vld [vmem:[#allocation0 + $0x43] ss:$8 sm:$0xf]   ;;  %123 = vst [vmem:[#allocation0 + $0x80] sm:$0xf] %v465_v35 }
  0x19   :  { %v450_v37 = vld [vmem:[%s728_s0 + $0x7c] sm:$0xf]  ;;  %v268_v38 = vsel %vm202_vm0, %v266_v34, %v264_v36  ;;  %v255_v39 = vld [vmem:[#allocation0 + $0x103] ss:$8 sm:$0xf0]  }
  0x1a   :  { %48 = vst [vmem:[#allocation0 + $0xf8] sm:$0xf] %v450_v37  ;;  %v451_v40 = vld [vmem:[%s728_s0 + $0x78] sm:$0xf]  ;;  %269 = vrot.lane.b32.xlu1 %v268_v38, %s500_s10  ;;  %v452_v41 = vld [vmem:[%s728_s0 + $0x74] sm:$0xf] }
  0x1b   :  { %53 = vst [vmem:[#allocation0 + $0xf0] sm:$0xf] %v451_v40  ;;  %v453_v42 = vld [vmem:[%s728_s0 + $0x70] sm:$0xf]  ;;  %v454_v43 = vld [vmem:[%s728_s0 + $0x6c] sm:$0xf] }
  0x1c   :  { %v253_v44 = vld [vmem:[#allocation0 + $0x103] ss:$8 sm:$0xf]   ;;  %58 = vst [vmem:[#allocation0 + $0xe8] sm:$0xf] %v452_v41 }
  0x1d   :  { %63 = vst [vmem:[#allocation0 + $0xe0] sm:$0xf] %v453_v42  ;;  %68 = vst [vmem:[#allocation0 + $0xd8] sm:$0xf] %v454_v43  ;;  %v455_v45 = vld [vmem:[%s728_s0 + $0x68] sm:$0xf]  ;;  %v257_v46 = vsel %vm202_vm0, %v255_v39, %v253_v44 }
  0x1e   :  { %73 = vst [vmem:[#allocation0 + $0xd0] sm:$0xf] %v455_v45  ;;  %v456_v47 = vld [vmem:[%s728_s0 + $0x64] sm:$0xf]  ;;  %v457_v48 = vld [vmem:[%s728_s0 + $0x60] sm:$0xf]  ;;  %258 = vrot.lane.b32.xlu0 %v257_v46, %s500_s10 }
  0x1f   :  { %v277_v49 = vld [vmem:[#allocation0 + $0x83] ss:$8 sm:$0xf0]   ;;  %78 = vst [vmem:[#allocation0 + $0xc8] sm:$0xf] %v456_v47  ;;  %s501_s0 = smov 64  }
  0x20   :  { %83 = vst [vmem:[#allocation0 + $0xc0] sm:$0xf] %v457_v48  ;;  %v297_v50 = vld [vmem:[#allocation0 + $0x2] ss:$8 sm:$0xf]  }
  0x21   :  { %v275_v51 = vld [vmem:[#allocation0 + $0x83] ss:$8 sm:$0xf]   ;;  %v299_v52 = vld [vmem:[#allocation0 + $0x2] ss:$8 sm:$0xf0]  }
  0x22   :  { %v279_v53 = vsel %vm202_vm0, %v277_v49, %v275_v51  ;;  %v301_v55 = vsel %vm202_vm0, %v299_v52, %v297_v50  ;;  %v307_v56 = vld [vmem:[#allocation0 + $0x102] ss:$8 sm:$0xf]   ;;  %v361_v4 = vld [vmem:[#allocation0 + $0x101] ss:$8 sm:$0xf]  }
  0x23   :  { %280 = vrot.lane.b32.xlu1 %v279_v53, %s500_s10  ;;  %v318_v57 = vld [vmem:[#allocation0 + $0x42] ss:$8 sm:$0xf]   ;;  %v363_v5 = vld [vmem:[#allocation0 + $0x101] ss:$8 sm:$0xf0]  }
  0x24   :  { %v288_v54 = vld [vmem:[#allocation0 + $0xc3] ss:$8 sm:$0xf0]   ;;  %v320_v58 = vld [vmem:[#allocation0 + $0x42] ss:$8 sm:$0xf0]   ;;  %v365_v24 = vsel %vm202_vm0, %v363_v5, %v361_v4 }
  0x25   :  { %v309_v60 = vld [vmem:[#allocation0 + $0x102] ss:$8 sm:$0xf0]   ;;  %v322_v62 = vsel %vm202_vm0, %v320_v58, %v318_v57  ;;  %v200_v6 = vld [vmem:[#allocation0] ss:$8 sm:$0xf]  }
  0x26   :  { %v311_v63 = vsel %vm202_vm0, %v309_v60, %v307_v56  ;;  %v342_v1 = vld [vmem:[#allocation0 + $0xc2] ss:$8 sm:$0xf0]   ;;  %v201_v7 = vld [vmem:[#allocation0] ss:$8 sm:$0xf0]  }
  0x27   :  { %v286_v59 = vld [vmem:[#allocation0 + $0xc3] ss:$8 sm:$0xf]   ;;  %302 = vrot.lane.b32.xlu1 %v301_v55, %s501_s0  ;;  %v340_v0 = vld [vmem:[#allocation0 + $0xc2] ss:$8 sm:$0xf]   ;;  %v203_v11 = vsel %vm202_vm0, %v201_v7, %v200_v6 }
  0x28   :  { %v290_v61 = vsel %vm202_vm0, %v288_v54, %v286_v59  ;;  %v329_v2 = vld [vmem:[#allocation0 + $0x82] ss:$8 sm:$0xf]   ;;  %v344_v8 = vsel %vm202_vm0, %v342_v1, %v340_v0  ;;  %v351_v9 = vld [vmem:[#allocation0 + $0x1] ss:$8 sm:$0xf]  }
  0x29   :  { %291 = vrot.lane.b32.xlu0 %v290_v61, %s500_s10  ;;  %v331_v3 = vld [vmem:[#allocation0 + $0x82] ss:$8 sm:$0xf0]   ;;  %v353_v10 = vld [vmem:[#allocation0 + $0x1] ss:$8 sm:$0xf0]  }
  0x2a   :  { %v207_v12 = vld [vmem:[#allocation0 + $0x40] ss:$8 sm:$0xf]   ;;  %v333_v14 = vsel %vm202_vm0, %v331_v3, %v329_v2  ;;  %205 = vst.msk [vmem:[%s729_s1] sm:$0xff] %vm204_vm1, %v203_v11   ;;  %v355_v26 = vsel %vm202_vm0, %v353_v10, %v351_v9  ;;  %s502_s10 = smov 32  }
  0x2b   :  { %323 = vrot.lane.b32.xlu1 %v322_v62, %s501_s0  ;;  %v209_v13 = vld [vmem:[#allocation0 + $0x40] ss:$8 sm:$0xf0]   ;;  %v383_v27 = vld [vmem:[#allocation0 + $0x81] ss:$8 sm:$0xf]  }
  0x2c   :  { %v211_v15 = vsel %vm202_vm0, %v209_v13, %v207_v12  ;;  %v234_v16 = vld [vmem:[#allocation0 + $0x100] ss:$8 sm:$0xf]   ;;  %v385_v28 = vld [vmem:[#allocation0 + $0x81] ss:$8 sm:$0xf0]  }
  0x2d   :  { %312 = vrot.lane.b32.xlu0 %v311_v63, %s501_s0  ;;  %v236_v17 = vld [vmem:[#allocation0 + $0x100] ss:$8 sm:$0xf0]   ;;  %481 = vst.msk [vmem:[%s729_s1 + $0x8] sm:$0xff] %vm204_vm1, %v211_v15   ;;  %v387_v31 = vsel %vm202_vm0, %v385_v28, %v383_v27 }
  0x2e   :  { %v238_v18 = vsel %vm202_vm0, %v236_v17, %v234_v16  ;;  %v216_v19 = vld [vmem:[#allocation0 + $0x80] ss:$8 sm:$0xf]   ;;  %v372_v29 = vld [vmem:[#allocation0 + $0x41] ss:$8 sm:$0xf]  }
  0x2f   :  { %v218_v20 = vld [vmem:[#allocation0 + $0x80] ss:$8 sm:$0xf0]   ;;  %345 = vrot.lane.b32.xlu1 %v344_v8, %s501_s0  ;;  %484 = vst.msk [vmem:[%s729_s1 + $0x20] sm:$0xff] %vm204_vm1, %v238_v18  }
  0x30   :  { %v220_v21 = vsel %vm202_vm0, %v218_v20, %v216_v19  ;;  %v225_v22 = vld [vmem:[#allocation0 + $0xc0] ss:$8 sm:$0xf]   ;;  %v374_v30 = vld [vmem:[#allocation0 + $0x41] ss:$8 sm:$0xf0]  }
  0x31   :  { %v227_v23 = vld [vmem:[#allocation0 + $0xc0] ss:$8 sm:$0xf0]   ;;  %334 = vrot.lane.b32.xlu0 %v333_v14, %s501_s0  ;;  %482 = vst.msk [vmem:[%s729_s1 + $0x10] sm:$0xff] %vm204_vm1, %v220_v21   ;;  %v376_v32 = vsel %vm202_vm0, %v374_v30, %v372_v29 }
  0x32   :  { %v229_v25 = vsel %vm202_vm0, %v227_v23, %v225_v22  ;;  %v394_v33 = vld [vmem:[#allocation0 + $0xc1] ss:$8 sm:$0xf]  }
  0x33   :  { %483 = vst.msk [vmem:[%s729_s1 + $0x18] sm:$0xff] %vm204_vm1, %v229_v25   ;;  %366 = vrot.lane.b32.xlu1 %v365_v24, %s502_s10  ;;  %v396_v34 = vld [vmem:[#allocation0 + $0xc1] ss:$8 sm:$0xf0]  }
  0x34   :  { %v398_v35 = vsel %vm202_vm0, %v396_v34, %v394_v33 }
  0x35   :  { %356 = vrot.lane.b32.xlu0 %v355_v26, %s502_s10 }
  0x37   :  { %388 = vrot.lane.b32.xlu1 %v387_v31, %s502_s10 }
  0x39   :  { %377 = vrot.lane.b32.xlu0 %v376_v32, %s502_s10 }
  0x3d   :  { %399 = vrot.lane.b32.xlu0 %v398_v35, %s502_s10 }
  0x87   :  { %v249_v36 = vpop.permute.xlu0 %248  }
  0x88   :  { %251 = vst.msk [vmem:[%s729_s1] sm:$0xff] %vm250_vm2, %v249_v36  }
  0x8c   :  { %v270_v37 = vpop.permute.xlu1 %269  }
  0x8d   :  { %486 = vst.msk [vmem:[%s729_s1 + $0x8] sm:$0xff] %vm250_vm2, %v270_v37  }
  0x90   :  { %v259_v38 = vpop.permute.xlu0 %258  }
  0x91   :  { %485 = vst.msk [vmem:[%s729_s1 + $0x20] sm:$0xff] %vm250_vm2, %v259_v38  }
  0x95   :  { %v281_v39 = vpop.permute.xlu1 %280  }
  0x96   :  { %487 = vst.msk [vmem:[%s729_s1 + $0x10] sm:$0xff] %vm250_vm2, %v281_v39  }
  0x99   :  { %v303_v40 = vpop.permute.xlu1 %302  }
  0x9a   :  { %305 = vst.msk [vmem:[%s729_s1] sm:$0xff] %vm304_vm3, %v303_v40  }
  0x9b   :  { %v292_v41 = vpop.permute.xlu0 %291  }
  0x9c   :  { %488 = vst.msk [vmem:[%s729_s1 + $0x18] sm:$0xff] %vm250_vm2, %v292_v41  }
  0x9d   :  { %v324_v42 = vpop.permute.xlu1 %323  }
  0x9e   :  { %490 = vst.msk [vmem:[%s729_s1 + $0x8] sm:$0xff] %vm304_vm3, %v324_v42  }
  0x9f   :  { %v313_v43 = vpop.permute.xlu0 %312  }
  0xa0   :  { %489 = vst.msk [vmem:[%s729_s1 + $0x20] sm:$0xff] %vm304_vm3, %v313_v43  }
  0xa1   :  { %v346_v44 = vpop.permute.xlu1 %345  }
  0xa2   :  { %492 = vst.msk [vmem:[%s729_s1 + $0x18] sm:$0xff] %vm304_vm3, %v346_v44  }
  0xa3   :  { %v335_v45 = vpop.permute.xlu0 %334  }
  0xa4   :  { %491 = vst.msk [vmem:[%s729_s1 + $0x10] sm:$0xff] %vm304_vm3, %v335_v45  }
  0xa5   :  { %v367_v46 = vpop.permute.xlu1 %366  }
  0xa6   :  { %493 = vst.msk [vmem:[%s729_s1 + $0x20] sm:$0xff] %vm358_vm4, %v367_v46  }
  0xa7   :  { %v357_v47 = vpop.permute.xlu0 %356  }
  0xa8   :  { %359 = vst.msk [vmem:[%s729_s1] sm:$0xff] %vm358_vm4, %v357_v47  }
  0xa9   :  { %v389_v48 = vpop.permute.xlu1 %388  }
  0xaa   :  { %495 = vst.msk [vmem:[%s729_s1 + $0x10] sm:$0xff] %vm358_vm4, %v389_v48  }
  0xab   :  { %v378_v49 = vpop.permute.xlu0 %377  }
  0xac   :  { %494 = vst.msk [vmem:[%s729_s1 + $0x8] sm:$0xff] %vm358_vm4, %v378_v49  }
  0xaf   :  { %v400_v50 = vpop.permute.xlu0 %399  }
  0xb0   :  { %496 = vst.msk [vmem:[%s729_s1 + $0x18] sm:$0xff] %vm358_vm4, %v400_v50  }

// kernel: forward.2
= control target key start
LH: loop header
LB: loop body
LE: loop exit
PB: predicated region body
PF: predicated region fallthrough
CT: control target
= control target key end

     0   :  { %s5717_s25 = smov 0   ;;  %s5719_s26 = smov 0   ;;  %s6730_s0 = inlined_call_operand.vmem [shape: f32[2,16,192], index: 0, kind: input, shape index: {}]   ;;  %s6731_s1 = inlined_call_operand.vmem [shape: bf16[192,128], index: 1, kind: input, shape index: {}]   ;;  %s6732_s2 = inlined_call_operand.vmem [shape: f32[24,128], index: 2, kind: input, shape index: {}]   ;;  %s6733_s3 = inlined_call_operand.vmem [shape: f32[1,128], index: 3, kind: input, shape index: {}]   ;;  %s6734_s4 = inlined_call_operand.vmem [shape: f32[1,128], index: 4, kind: input, shape index: {}]   ;;  %s6735_s5 = inlined_call_operand.vmem [shape: f32[2,1,128], index: 5, kind: input, shape index: {}]   ;;  %s6736_s6 = inlined_call_operand.vmem [shape: f32[2,1,128], index: 6, kind: input, shape index: {}]   ;;  %s6737_s7 = inlined_call_operand.vmem [shape: bf16[2,128,384], index: 7, kind: input, shape index: {}]   ;;  %s6738_s8 = inlined_call_operand.vmem [shape: f32[2,1,384], index: 8, kind: input, shape index: {}]   ;;  %s6739_s9 = inlined_call_operand.vmem [shape: bf16[2,128,128], index: 9, kind: input, shape index: {}]   ;;  %s6740_s10 = inlined_call_operand.vmem [shape: f32[2,1,128], index: 10, kind: input, shape index: {}]   ;;  %s6741_s11 = inlined_call_operand.vmem [shape: f32[2,1,128], index: 11, kind: input, shape index: {}]   ;;  %s6742_s12 = inlined_call_operand.vmem [shape: f32[2,1,128], index: 12, kind: input, shape index: {}]   ;;  %s6743_s13 = inlined_call_operand.vmem [shape: bf16[2,128,256], index: 13, kind: input, shape index: {}]   ;;  %s6744_s14 = inlined_call_operand.vmem [shape: f32[2,1,256], index: 14, kind: input, shape index: {}]   ;;  %s6745_s15 = inlined_call_operand.vmem [shape: bf16[2,256,128], index: 15, kind: input, shape index: {}]   ;;  %s6746_s16 = inlined_call_operand.vmem [shape: f32[2,1,128], index: 16, kind: input, shape index: {}]   ;;  %s6747_s17 = inlined_call_operand.vmem [shape: bf16[128,128], index: 17, kind: input, shape index: {}]   ;;  %s6748_s18 = inlined_call_operand.vmem [shape: f32[1,128], index: 18, kind: input, shape index: {}]   ;;  %s6749_s19 = inlined_call_operand.vmem [shape: bf16[128,128], index: 19, kind: input, shape index: {}]   ;;  %s6750_s20 = inlined_call_operand.vmem [shape: f32[1,128], index: 20, kind: input, shape index: {}]   ;;  %s6751_s21 = inlined_call_operand.vmem [shape: f32[2,16,128], index: 21, kind: output, shape index: {}]  }
   0x1   :  { %6760 = sst [smem:[#allocation9_spill]] %s6730_s0  ;;  %s5721_s27 = smov 0  }
   0x2   :  { %6761 = sst [smem:[#allocation10_spill]] %s6731_s1 }
   0x3   :  { %6762 = sst [smem:[#allocation11_spill]] %s6732_s2  ;;  %s5715_s2 = smov 0  }
   0x4   :  { %6763 = sst [smem:[#allocation12_spill]] %s6733_s3  ;;  %s5723_s3 = smov 0  }
   0x5   :  { %6764 = sst [smem:[#allocation13_spill]] %s6734_s4 }
   0x6   :  { %6765 = sst [smem:[#allocation14_spill]] %s6735_s5 }
   0x7   :  { %6766 = sst [smem:[#allocation15_spill]] %s6737_s7 }
   0x8   :  { %6767 = sst [smem:[#allocation16_spill]] %s6738_s8 }
   0x9   :  { %6768 = sst [smem:[#allocation17_spill]] %s6739_s9 }
   0xa   :  { %6769 = sst [smem:[#allocation18_spill]] %s6747_s17 }
   0xb   :  { %6770 = sst [smem:[#allocation19_spill]] %s6748_s18 }
   0xc   :  { %6771 = sst [smem:[#allocation20_spill]] %s6749_s19 }
   0xd   :  { %6772 = sst [smem:[#allocation21_spill]] %s6750_s20 }
   0xe   :  { %6773 = sst [smem:[#allocation22_spill]] %s6751_s21 }
   0xf LB: > { %6774 = sst [smem:[#allocation3_spill]] %s5578_s2  ;;  %s40_s28 = sadd.s32 1, %s5586_s26  ;;  %s5594_s3 = sphi %s5723_s3, %s31_s3   ;;  %s5590_s27 = sphi %s5721_s27, %s6806_s27   ;;  %s5586_s26 = sphi %s5719_s26, %s6805_s26   ;;  %s5582_s25 = sphi %s5717_s25, %s6804_s25   ;;  %s5578_s2 = sphi %s5715_s2, %s6803_s2  }
  0x10   : > { %6775 = sst [smem:[#allocation4_spill]] %s5586_s26  ;;  %s43_s29 = sadd.s32 1, %s5590_s27 }
  0x11   : > { %6776 = sst [smem:[#allocation5_spill]] %s5590_s27  ;;  %p41_p0 = scmp.ge.s32.totalorder %s40_s28, 2 }
  0x12   : > { %6777 = sst [smem:[#allocation6_spill]] %s5594_s3  ;;  %p4878_p1 = scmp.ge.s32.totalorder %s5594_s3, 1 }
  0x13   : > { %p705_p2 = scmp.lt.s32.totalorder %s5594_s3, 5  ;;  %s6808_s28 = smov (%p41_p0, %s40_s28), 0 }
  0x14   : > { %6778 = sst [smem:[#allocation7_spill]] %s6808_s28  ;;  %s6810_s29 = smov (!%p41_p0, %s43_s29), %s5590_s27 }
  0x15   : > { %p706_p3 = pnand %p4878_p1, %p705_p2  ;;  %p45_p4 = scmp.ge.s32.totalorder %s6810_s29, 2 }
  0x16   : > { %p811_p5 = scmp.lt.s32.totalorder (!%p706_p3), %s5582_s25, 1  ;;  %p816_p6 = scmp.lt.s32.totalorder (!%p706_p3), %s5578_s2, 1 }
  0x17   : > { %s6812_s29 = smov (%p45_p4, %s6810_s29), 0  ;;  %709 = sbr.rel (%p706_p3) target bundleno = 3825 (0xef1), region = 104 }
  0x18   : > { %6779 = sst [smem:[#allocation8_spill]] %s6812_s29  ;;  %s6780_s23 = sld [smem:[#allocation9_spill]] (!%p706_p3) }
  0x19   : > { %s6782_s7 = sld [smem:[#allocation15_spill]] (!%p706_p3)  ;;  %s6783_s9 = sld [smem:[#allocation17_spill]] (!%p706_p3) }
  0x1a   : > { %s6784_s8 = sld [smem:[#allocation16_spill]] (!%p706_p3) }
  0x1e   : > { %s6814_s25 = smov (!%p811_p5, %s5582_s25), 1 }
  0x1f   : > { %s5749_s0 = scalar_select %p816_p6, %s5578_s2, 1 }
  0x20   : > { %s5038_s4 = sshll.u32 %s6814_s25, 5  ;;  %s5042_s30 = sshll.u32 %s6814_s25, 4 }
  0x21   : > { %s5754_s1 = scalar_lea.vmem %s6780_s23, %s5038_s4  ;;  %s5297_s18 = smul.u32 192, %s5749_s0 }
  0x22   : > { %s5298_s19 = smul.u32 3, %s5749_s0  ;;  %s5039_s17 = sshll.u32 %s5749_s0, 6 }
  0x23   : > { %s5770_s25 = scalar_lea.vmem %s6782_s7, %s5297_s18  ;;  %s5775_s22 = scalar_lea.vmem %s6783_s9, %s5039_s17 }
  0x24   : > { %s5780_s23 = scalar_lea.vmem %s6784_s8, %s5298_s19  ;;  %s5040_s5 = sshll.u32 %s5749_s0, 7 }
  0x25   : > { %s4886_s17 = sshll.u32 %s5749_s0, 1  ;;  %s5799_s29 = scalar_lea.vmem %s6743_s13, %s5040_s5 }
  0x26   : > { %s5804_s26 = scalar_lea.vmem %s6744_s14, %s4886_s17  ;;  %s5809_s20 = scalar_lea.vmem %s6745_s15, %s5040_s5 }
  0x27   : > { %s861_s2 = scalar_lea.vmem %s6746_s16, %s5749_s0  ;;  %s6785_s8 = sld [smem:[#allocation22_spill]] }
  0x28   : > { %s6786_s4 = sld [smem:[#allocation3_spill]] }
  0x2d   : > { %s5818_s9 = scalar_lea.vmem %s6785_s8, %s5042_s30 }
  0x2e   : > { %p4891_p7 = scmp.ne.s32.totalorder %s6786_s4, 0 }
  0x2f   : > { %s6787_s28 = sld [smem:[#allocation10_spill]] (!%p4891_p7)  ;;  %v5596_v1 = vmov (!%p4891_p7), 0   ;;  %v873_v5 = vld [vmem:[%s5754_s1 + $0x8] sm:$0xff] (!%p4891_p7)  ;;  %v875_v6 = vld [vmem:[%s5754_s1 + $0x18] sm:$0xff] (!%p4891_p7)  ;;  %vm974_vm0 = vcmask (!%p4891_p7), 523264   ;;  %v872_v16 = vld [vmem:[%s5754_s1] sm:$0xff] (!%p4891_p7) }
  0x30   : > { %871 = sbr.rel (%p4891_p7) target bundleno = 632 (0x278), region = 108  ;;  %978 = vmatprep.subr.bf16.mxu0 (!%p4891_p7), %v5596_v1  ;;  %v877_v7 = vpack.c.bf16 (!%p4891_p7), %v875_v6, %v873_v5  ;;  %v874_v17 = vld [vmem:[%s5754_s1 + $0x10] sm:$0xff] (!%p4891_p7)  ;;  %s6788_s24 = sld [smem:[#allocation11_spill]] (!%p4891_p7) }
  0x31   : > { %v876_v18 = vpack.c.bf16 (!%p4891_p7), %v874_v17, %v872_v16  ;;  %s6789_s3 = sld [smem:[#allocation12_spill]] (!%p4891_p7)  ;;  %s6790_s4 = sld [smem:[#allocation13_spill]] (!%p4891_p7) }
  0x32   : > { %4904 = vmatprep.mubr.msk.bf16.mxu0 (!%p4891_p7), %vm974_vm0, %v877_v7 }
  0x35   : > { %v5348_v0 = vld [vmem:[%s6787_s28] sm:$0xff] (!%p4891_p7)   ;;  %v5349_v2 = vld [vmem:[%s6787_s28 + $0x8] sm:$0xff] (!%p4891_p7)   ;;  %v5350_v3 = vld [vmem:[%s6787_s28 + $0x10] sm:$0xff] (!%p4891_p7)  }
  0x36   : > { %979 = vmatpush1.bf16.msra.mxu0 (!%p4891_p7), %v5348_v0  ;;  %v5351_v4 = vld [vmem:[%s6787_s28 + $0x18] sm:$0xff] (!%p4891_p7)   ;;  %v5352_v8 = vld [vmem:[%s6787_s28 + $0x20] sm:$0xff] (!%p4891_p7)   ;;  %v5353_v9 = vld [vmem:[%s6787_s28 + $0x28] sm:$0xff] (!%p4891_p7)  }
  0x37   : > { %980 = vmatprep.subr.bf16.mxu0 %v5596_v1  ;;  %v5354_v10 = vld [vmem:[%s6787_s28 + $0x30] sm:$0xff]   ;;  %v5355_v11 = vld [vmem:[%s6787_s28 + $0x38] sm:$0xff]   ;;  %v5356_v12 = vld [vmem:[%s6787_s28 + $0x40] sm:$0xff]  }
  0x38   : > { %v5357_v13 = vld [vmem:[%s6787_s28 + $0x48] sm:$0xff]   ;;  %v5358_v14 = vld [vmem:[%s6787_s28 + $0x50] sm:$0xff]   ;;  %v5359_v15 = vld [vmem:[%s6787_s28 + $0x58] sm:$0xff]  }
  0x39   : > { %v1021_v19 = vld [vmem:[%s6788_s24 + $0x10] sm:$0xff]  ;;  %v1019_v20 = vld [vmem:[%s6788_s24] sm:$0xff]  ;;  %v1020_v25 = vld [vmem:[%s6788_s24 + $0x8] sm:$0xff] }
  0x3a   : > { %981 = vmatpush1.bf16.msra.mxu0 %v5349_v2  ;;  %1031 = vadd.xlane.f32.xlu1 %v1021_v19  ;;  %v4905_v50 = vld [vmem:[%s6789_s3] ss:$0 sm:$0xff] }
  0x3b   : > { %982 = vmatprep.subr.bf16.mxu0 %v5596_v1  ;;  %v4906_v52 = vld [vmem:[%s6790_s4] ss:$0 sm:$0xff] }
  0x3e   : > { %983 = vmatpush1.bf16.msra.mxu0 %v5350_v3 }
  0x3f   : > { %984 = vmatprep.subr.bf16.mxu0 %v5596_v1 }
  0x42   : > { %985 = vmatpush1.bf16.msra.mxu0 %v5351_v4 }
  0x43   : > { %986 = vmatprep.subr.bf16.mxu0 %v5596_v1 }
  0x46   : > { %987 = vmatpush1.bf16.msra.mxu0 %v5352_v8 }
  0x47   : > { %988 = vmatprep.subr.bf16.mxu0 %v5596_v1 }
  0x4a   : > { %989 = vmatpush1.bf16.msra.mxu0 %v5353_v9 }
  0x4b   : > { %990 = vmatprep.subr.bf16.mxu0 %v5596_v1 }
  0x4e   : > { %991 = vmatpush1.bf16.msra.mxu0 %v5354_v10 }
  0x4f   : > { %992 = vmatprep.subr.bf16.mxu0 %v5596_v1 }
  0x52   : > { %993 = vmatpush1.bf16.msra.mxu0 %v5355_v11 }
  0x53   : > { %994 = vmatprep.subr.bf16.mxu0 %v5596_v1 }
  0x56   : > { %995 = vmatpush1.bf16.msra.mxu0 %v5356_v12 }
  0x57   : > { %996 = vmatprep.subr.bf16.mxu0 %v5596_v1 }
  0x5a   : > { %997 = vmatpush1.bf16.msra.mxu0 %v5357_v13 }
  0x5b   : > { %998 = vmatprep.subr.bf16.mxu0 %v5596_v1 }
  0x5e   : > { %999 = vmatpush1.bf16.msra.mxu0 %v5358_v14 }
  0x5f   : > { %1000 = vmatprep.subr.bf16.mxu0 %v5596_v1 }
  0x62   : > { %1001 = vmatpush1.bf16.msra.mxu0 %v5359_v15 }
  0x65   : > { %1011 = vmatmul.mubr.bf16.vlgmr.msra.gmra.mrb[0].mxu0 %v876_v18 }
  0xc7   : > { %v1032_v28 = vpop.xlane.xlu1 %1031 }
  0xc8   : > { %v1036_v29 = vmul.f32 0.0078125, %v1032_v28 }
  0xca   : > { %v1039_v33 = vsub.f32 %v1021_v19, %v1036_v29 }
  0xcc   : > { %v1042_v38 = vmul.f32 %v1039_v33, %v1039_v33 }
 0x138   : > { %v1012_v21 = vpop.f32.mrb[0].mxu0 }
 0x139   : > { %v1022_v22 = vadd.f32 %v1019_v20, %v1012_v21  ;;  %v1014_v23 = vpop.f32.mrb[1].mxu0 }
 0x13a   : > { %v1015_v24 = vpop.f32.mrb[2].mxu0 }
 0x13b   : > { %1027 = vadd.xlane.f32.xlu0 %v1022_v22  ;;  %v1017_v26 = vpop.f32.mrb[3].mxu0  ;;  %v1023_v27 = vadd.f32 %v1020_v25, %v1015_v24 }
 0x13f   : > { %1029 = vadd.xlane.f32.xlu0 %v1023_v27 }
 0x1c8   : > { %v1028_v30 = vpop.xlane.xlu0 %1027 }
 0x1c9   : > { %v1034_v31 = vmul.f32 0.0078125, %v1028_v30 }
 0x1cb   : > { %v1037_v32 = vsub.f32 %v1022_v22, %v1034_v31 }
 0x1cc   : > { %v1030_v34 = vpop.xlane.xlu0 %1029 }
 0x1cd   : > { %v1035_v35 = vmul.f32 0.0078125, %v1030_v34  ;;  %v1040_v36 = vmul.f32 %v1037_v32, %v1037_v32 }
 0x1cf   : > { %v1038_v37 = vsub.f32 %v1023_v27, %v1035_v35  ;;  %1043 = vadd.xlane.f32.xlu1 %v1040_v36 }
 0x1d1   : > { %v1041_v39 = vmul.f32 %v1038_v37, %v1038_v37 }
 0x1d3   : > { %1047 = vadd.xlane.f32.xlu1 %v1042_v38  ;;  %1045 = vadd.xlane.f32.xlu0 %v1041_v39 }
 0x25c   : > { %v1044_v40 = vpop.xlane.xlu1 %1043 }
 0x25d   : > { %v1049_v41 = vmul.f32 0.0078125, %v1044_v40 }
 0x25f   : > { %v1052_v42 = vadd.f32 1e-05, %v1049_v41 }
 0x260   : > { %v1048_v43 = vpop.xlane.xlu1 %1047  ;;  %v1046_v44 = vpop.xlane.xlu0 %1045 }
 0x261   : > { %5360 = vrsqrt.f32 %v1052_v42  ;;  %v1051_v45 = vmul.f32 0.0078125, %v1048_v43  ;;  %v1050_v46 = vmul.f32 0.0078125, %v1046_v44 }
 0x263   : > { %v1054_v47 = vadd.f32 1e-05, %v1051_v45  ;;  %v1053_v48 = vadd.f32 1e-05, %v1050_v46 }
 0x265   : > { %5362 = vrsqrt.f32 %v1054_v47 }
 0x266   : > { %5364 = vrsqrt.f32 %v1053_v48 }
 0x26b   : > { %v5361_v49 = vpop.eup %5360 }
 0x26c   : > { %v1058_v51 = vmul.f32 %v5361_v49, %v1037_v32 }
 0x26e   : > { %v1067_v53 = vmul.f32 %v4905_v50, %v1058_v51 }
 0x26f   : > { %v5363_v54 = vpop.eup %5362 }
 0x270   : > { %v5365_v55 = vpop.eup %5364  ;;  %v1076_v56 = vadd.f32 %v4906_v52, %v1067_v53  ;;  %v1060_v57 = vmul.f32 %v5363_v54, %v1039_v33 }
 0x271   : > { %v1059_v58 = vmul.f32 %v5365_v55, %v1038_v37 }
 0x272   : > { %1079 = vst [vmem:[#allocation2] sm:$0xff] %v1076_v56  ;;  %v1069_v59 = vmul.f32 %v4905_v50, %v1060_v57 }
 0x273   : > { %v1068_v60 = vmul.f32 %v4905_v50, %v1059_v58 }
 0x274   : > { %v1078_v61 = vadd.f32 %v4906_v52, %v1069_v59 }
 0x275   : > { %v1077_v62 = vadd.f32 %v4906_v52, %v1068_v60 }
 0x276   : > { %1081 = vst [vmem:[#allocation2 + $0x10] sm:$0xff] %v1078_v61 }
 0x277   : > { %1080 = vst [vmem:[#allocation2 + $0x8] sm:$0xff] %v1077_v62 }
 0x278 PF: > { %v5381_v2 = vld [vmem:[%s5770_s25 + $0x4] ss:$12 sps:$4 sm:$0xff]   ;;  %v5383_v3 = vld [vmem:[%s5770_s25] ss:$12 sps:$4 sm:$0xff]   ;;  %v5384_v4 = vld [vmem:[%s5770_s25 + $0x8] ss:$12 sps:$4 sm:$0xff]   ;;  %s6793_s30 = scalar_lea.vmem %s6736_s6, %s5749_s0  ;;  %s6794_s27 = scalar_lea.vmem %s6740_s10, %s5749_s0 }
 0x279   : > { %v1082_v63 = vld [vmem:[#allocation2] sm:$0xff]  ;;  %v5385_v5 = vld [vmem:[%s5770_s25 + $0x1c] ss:$12 sps:$4 sm:$0xff]   ;;  %1321 = vmatprep.subr.bf16.mxu0 %v5381_v2  ;;  %5141 = vmatprep.subr.bf16.mxu1 %v5384_v4  ;;  %v5393_v23 = vld [vmem:[%s5770_s25 + $0x4c] ss:$12 sps:$4 sm:$0xff]   ;;  %v5597_v34 = vmov 0  }
 0x27a   : > { %1090 = vadd.xlane.f32.xlu0 %v1082_v63  ;;  %1322 = vmatpush1.bf16.msra.mxu0 %v5383_v3  ;;  %v5387_v18 = vld [vmem:[%s5770_s25 + $0x18] ss:$12 sps:$4 sm:$0xff]   ;;  %v5388_v19 = vld [vmem:[%s5770_s25 + $0x20] ss:$12 sps:$4 sm:$0xff]   ;;  %v5391_v21 = vld [vmem:[%s5770_s25 + $0x30] ss:$12 sps:$4 sm:$0xff]  }
 0x27b   : > { %5142 = vmatpush3.bf16.msra.mxu1 %v5384_v4  ;;  %1323 = vmatprep.subr.bf16.mxu0 %v5385_v5  ;;  %v5389_v20 = vld [vmem:[%s5770_s25 + $0x34] ss:$12 sps:$4 sm:$0xff]   ;;  %v5392_v22 = vld [vmem:[%s5770_s25 + $0x38] ss:$12 sps:$4 sm:$0xff]   ;;  %v5396_v25 = vld [vmem:[%s5770_s25 + $0x50] ss:$12 sps:$4 sm:$0xff]  }
 0x27c   : > { %5143 = vmatprep.subr.bf16.mxu1 %v5388_v19  ;;  %v5395_v24 = vld [vmem:[%s5770_s25 + $0x48] ss:$12 sps:$4 sm:$0xff]   ;;  %v5397_v26 = vld [vmem:[%s5770_s25 + $0x64] ss:$12 sps:$4 sm:$0xff]   ;;  %v5399_v27 = vld [vmem:[%s5770_s25 + $0x60] ss:$12 sps:$4 sm:$0xff]   ;;  %1353 = vmatprep.mubr.bf16.mxu0 %v5597_v34 }
 0x27d   : > { %v1084_v0 = vld [vmem:[#allocation2 + $0x10] sm:$0xff]  ;;  %v5401_v29 = vld [vmem:[%s5770_s25 + $0x7c] ss:$12 sps:$4 sm:$0xff]   ;;  %v5404_v30 = vld [vmem:[%s5770_s25 + $0x80] ss:$12 sps:$4 sm:$0xff]   ;;  %s6791_s17 = sld [smem:[#allocation14_spill]] }
 0x27e   : > { %v1083_v1 = vld [vmem:[#allocation2 + $0x8] sm:$0xff]  ;;  %1094 = vadd.xlane.f32.xlu1 %v1084_v0  ;;  %1324 = vmatpush1.bf16.msra.mxu0 %v5387_v18  ;;  %v5403_v31 = vld [vmem:[%s5770_s25 + $0x78] ss:$12 sps:$4 sm:$0xff]   ;;  %v5405_v32 = vld [vmem:[%s5770_s25 + $0x94] ss:$12 sps:$4 sm:$0xff]   ;;  %s5599_s1 = smov 96  }
 0x27f   : > { %1092 = vadd.xlane.f32.xlu0 %v1083_v1  ;;  %5144 = vmatpush3.bf16.msra.mxu1 %v5388_v19  ;;  %v5400_v28 = vld [vmem:[%s5770_s25 + $0x68] ss:$12 sps:$4 sm:$0xff]   ;;  %v5408_v33 = vld [vmem:[%s5770_s25 + $0x98] ss:$12 sps:$4 sm:$0xff]   ;;  %v5407_v35 = vld [vmem:[%s5770_s25 + $0x90] ss:$12 sps:$4 sm:$0xff]  }
 0x280   : > { %1325 = vmatprep.subr.bf16.mxu0 %v5389_v20  ;;  %5145 = vmatprep.subr.bf16.mxu1 %v5392_v22  ;;  %v5409_v36 = vld [vmem:[%s5770_s25 + $0xac] ss:$12 sps:$4 sm:$0xff]   ;;  %v5412_v37 = vld [vmem:[%s5770_s25 + $0xb0] ss:$12 sps:$4 sm:$0xff]   ;;  %v5411_v38 = vld [vmem:[%s5770_s25 + $0xa8] ss:$12 sps:$4 sm:$0xff]  }
 0x281   : > { %v4908_v56 = vld [vmem:[%s6793_s30] ss:$0 sm:$0xff]  ;;  %s5600_s21 = smov 32   ;;  %vm2761_vm1 = vcmask 261120   ;;  %vm3016_vm3 = vcmask 195584   ;;  %vm3163_vm4 = vcmask 1043456  }
 0x282   : > { %1326 = vmatpush1.bf16.msra.mxu0 %v5391_v21  ;;  %v1176_v5 = vld [vmem:[%s5780_s23] sm:$0x7]  ;;  %s5598_s23 = smov 64   ;;  %vm3833_vm5 = vcmask 523264   ;;  %vm3837_vm6 = vcmask 785408  }
 0x283   : > { %5146 = vmatpush3.bf16.msra.mxu1 %v5392_v22  ;;  %1327 = vmatprep.subr.bf16.mxu0 %v5393_v23  ;;  %s6792_s5 = scalar_lea.vmem %s6791_s17, %s5749_s0  ;;  %s6796_s17 = scalar_lea.vmem %s6742_s12, %s5749_s0 }
 0x284   : > { %5147 = vmatprep.subr.bf16.mxu1 %v5396_v25  ;;  %v4907_v50 = vld [vmem:[%s6792_s5] ss:$0 sm:$0xff] }
 0x286   : > { %1328 = vmatpush1.bf16.msra.mxu0 %v5395_v24 }
 0x287   : > { %5148 = vmatpush3.bf16.msra.mxu1 %v5396_v25  ;;  %1329 = vmatprep.subr.bf16.mxu0 %v5397_v26 }
 0x288   : > { %5149 = vmatprep.subr.bf16.mxu1 %v5400_v28 }
 0x28a   : > { %1330 = vmatpush1.bf16.msra.mxu0 %v5399_v27 }
 0x28b   : > { %5150 = vmatpush3.bf16.msra.mxu1 %v5400_v28  ;;  %1331 = vmatprep.subr.bf16.mxu0 %v5401_v29 }
 0x28c   : > { %5151 = vmatprep.subr.bf16.mxu1 %v5404_v30 }
 0x28e   : > { %1332 = vmatpush1.bf16.msra.mxu0 %v5403_v31 }
 0x28f   : > { %5152 = vmatpush3.bf16.msra.mxu1 %v5404_v30  ;;  %1333 = vmatprep.subr.bf16.mxu0 %v5405_v32 }
 0x290   : > { %5153 = vmatprep.subr.bf16.mxu1 %v5408_v33 }
 0x292   : > { %1334 = vmatpush1.bf16.msra.mxu0 %v5407_v35 }
 0x293   : > { %5154 = vmatpush3.bf16.msra.mxu1 %v5408_v33  ;;  %1335 = vmatprep.subr.bf16.mxu0 %v5409_v36  ;;  %v5601_v33 = vmov 1983009808   ;;  %v5602_v36 = vmov 1934713408  }
 0x294   : > { %5155 = vmatprep.subr.bf16.mxu1 %v5412_v37  ;;  %v1456_v35 = vunpack.c.l.s4 %v5601_v33 }
 0x296   : > { %1336 = vmatpush1.bf16.msra.mxu0 %v5411_v38  ;;  %v1457_v38 = vunpack.c.0.s8 %v1456_v35 }
 0x297   : > { %5156 = vmatpush3.bf16.msra.mxu1 %v5412_v37  ;;  %v1488_v37 = vunpack.c.l.s4 %v5602_v36 }
 0x307   : > { %v1091_v6 = vpop.xlane.xlu0 %1090 }
 0x308   : > { %v1097_v8 = vmul.f32 0.0078125, %v1091_v6 }
 0x30a   : > { %v5880_v10 = vsub.f32 %v1082_v63, %v1097_v8 }
 0x30b   : > { %v1095_v7 = vpop.xlane.xlu1 %1094 }
 0x30c   : > { %v1099_v9 = vmul.f32 0.0078125, %v1095_v7  ;;  %v1093_v12 = vpop.xlane.xlu0 %1092  ;;  %v1103_v14 = vmul.f32 %v5880_v10, %v5880_v10 }
 0x30d   : > { %v1098_v13 = vmul.f32 0.0078125, %v1093_v12 }
 0x30e   : > { %v5882_v11 = vsub.f32 %v1084_v0, %v1099_v9  ;;  %1106 = vadd.xlane.f32.xlu1 %v1103_v14  ;;  %v1085_v0 = vlaneseq }
 0x30f   : > { %v5886_v15 = vsub.f32 %v1083_v1, %v1098_v13 }
 0x310   : > { %v1105_v16 = vmul.f32 %v5882_v11, %v5882_v11  ;;  %v5928_v1 = vshrl.u32 %v1085_v0, 7 }
 0x311   : > { %v1104_v17 = vmul.f32 %v5886_v15, %v5886_v15 }
 0x312   : > { %1110 = vadd.xlane.f32.xlu1 %v1105_v16  ;;  %v1180_v2 = vsub.s32 0, %v5928_v1  ;;  %v1184_v3 = vsub.s32 1, %v5928_v1  ;;  %v1188_v4 = vsub.s32 2, %v5928_v1 }
 0x313   : > { %1108 = vadd.xlane.f32.xlu0 %v1104_v17 }
 0x314   : > { %v1181_v6 = vrot.slane %v1176_v5, %v1180_v2  ;;  %v1185_v7 = vrot.slane %v1176_v5, %v1184_v3  ;;  %v1189_v8 = vrot.slane %v1176_v5, %v1188_v4 }
 0x39b   : > { %v1107_v39 = vpop.xlane.xlu1 %1106 }
 0x39c   : > { %v1112_v40 = vmul.f32 0.0078125, %v1107_v39 }
 0x39e   : > { %v1115_v41 = vadd.f32 1e-05, %v1112_v40 }
 0x39f   : > { %v1111_v42 = vpop.xlane.xlu1 %1110 }
 0x3a0   : > { %v1109_v43 = vpop.xlane.xlu0 %1108  ;;  %5461 = vrsqrt.f32 %v1115_v41  ;;  %v1114_v44 = vmul.f32 0.0078125, %v1111_v42  ;;  %v1489_v41 = vunpack.c.0.s8 %v1488_v37  ;;  %v6003_v42 = vsub.s32 %v1457_v38, %v5928_v1 }
 0x3a1   : > { %v1113_v45 = vmul.f32 0.0078125, %v1109_v43 }
 0x3a2   : > { %v1117_v46 = vadd.f32 1e-05, %v1114_v44 }
 0x3a3   : > { %v1116_v47 = vadd.f32 1e-05, %v1113_v45 }
 0x3a4   : > { %5463 = vrsqrt.f32 %v1117_v46 }
 0x3a5   : > { %5465 = vrsqrt.f32 %v1116_v47 }
 0x3aa   : > { %v5462_v48 = vpop.eup %5461 }
 0x3ab   : > { %v1121_v49 = vmul.f32 %v5462_v48, %v5880_v10 }
 0x3ad   : > { %v1130_v55 = vmul.f32 %v4907_v50, %v1121_v49  ;;  %v6010_v49 = vsub.s32 %v1489_v41, %v5928_v1 }
 0x3ae   : > { %v5464_v51 = vpop.eup %5463 }
 0x3af   : > { %v5466_v52 = vpop.eup %5465  ;;  %v1123_v53 = vmul.f32 %v5464_v51, %v5882_v11  ;;  %v1139_v60 = vadd.f32 %v4908_v56, %v1130_v55 }
 0x3b0   : > { %v1122_v54 = vmul.f32 %v5466_v52, %v5886_v15 }
 0x3b1   : > { %v1132_v57 = vmul.f32 %v4907_v50, %v1123_v53 }
 0x3b2   : > { %v1131_v58 = vmul.f32 %v4907_v50, %v1122_v54 }
 0x3b3   : > { %v1141_v59 = vadd.f32 %v4908_v56, %v1132_v57 }
 0x3b4   : > { %v1140_v61 = vadd.f32 %v4908_v56, %v1131_v58 }
 0x3b5   : > { %v1143_v62 = vpack.c.bf16 %v1141_v59, %v1141_v59 }
 0x3b6   : > { %v1142_v63 = vpack.c.bf16 %v1140_v61, %v1139_v60 }
 0x3b8   : > { %1354 = vmatmul.mubr.bf16.vlgmr.msra.gmra.mrb[0].mxu0 %v1142_v63  ;;  %5157 = vmatprep.mubr.bf16.mxu1 %v1142_v63 }
 0x3b9   : > { %5158 = vmatmul.mubr.bf16.vlgmr.msra.gmra.mrb[0].mxu1 %v1143_v62  ;;  %1363 = vmatprep.mubr.bf16.mxu0 %v5597_v34 }
 0x3c0   : > { %1364 = vmatmul.mubr.bf16.gmra.mrb[4].mxu0 %v1143_v62 }
 0x48b   : > { %v1355_v9 = vpop.f32.mrb[0].mxu0 }
 0x48c   : > { %v1357_v10 = vpop.f32.mrb[1].mxu0  ;;  %v5159_v11 = vpop.f32.mrb[0].mxu1  ;;  %v1356_v12 = vadd.f32 %v1355_v9, %v1181_v6 }
 0x48d   : > { %v5938_v13 = vadd.f32 %v1357_v10, %v1185_v7  ;;  %v5940_v14 = vadd.f32 %v5159_v11, %v1189_v8  ;;  %v1359_v15 = vpop.f32.mrb[2].mxu0  ;;  %v1406_v16 = vpop.f32.mrb[1].mxu1 }
 0x48e   : > { %v1361_v17 = vpop.f32.mrb[3].mxu0  ;;  %v5160_v18 = vpop.f32.mrb[2].mxu1  ;;  %v5946_v20 = vmul.f32 0.17677669, %v1356_v12  ;;  %v1360_v21 = vadd.f32 %v1359_v15, %v1181_v6  ;;  %v5984_v31 = vadd.f32 %v1406_v16, %v1189_v8 }
 0x48f   : > { %v1409_v19 = vpop.f32.mrb[3].mxu1  ;;  %1881 = vrot.lane.b32.xlu1 %v5938_v13, %s5598_s23  ;;  %1872 = vrot.lane.b32.xlu0 %v5938_v13, %s5599_s1  ;;  %v5954_v25 = vadd.f32 %v1361_v17, %v1185_v7 }
 0x490   : > { %v5952_v24 = vmul.f32 0.17677669, %v1360_v21  ;;  %v5994_v32 = vadd.f32 %v1409_v19, %v1189_v8 }
 0x493   : > { %v1365_v22 = vpop.f32.mrb[4].mxu0  ;;  %1890 = vrot.lane.b32.xlu0 %v5938_v13, %s5600_s21  ;;  %1426 = vrot.lane.b32.xlu1 %v5946_v20, %s5599_s1 }
 0x494   : > { %v1367_v23 = vpop.f32.mrb[5].mxu0  ;;  %v1366_v29 = vadd.f32 %v1365_v22, %v1181_v6 }
 0x495   : > { %v1369_v26 = vpop.f32.mrb[6].mxu0  ;;  %v5960_v28 = vadd.f32 %v1367_v23, %v1185_v7 }
 0x496   : > { %v1370_v27 = vpop.f32.mrb[7].mxu0  ;;  %v5978_v30 = vmul.f32 0.17677669, %v1366_v29 }
 0x497   : > { %1428 = vrot.lane.b32.xlu0 %v5952_v24, %s5599_s1  ;;  %1874 = vrot.lane.b32.xlu1 %v5954_v25, %s5599_s1 }
 0x49b   : > { %1876 = vrot.lane.b32.xlu0 %v5960_v28, %s5599_s1  ;;  %1883 = vrot.lane.b32.xlu1 %v5954_v25, %s5598_s23 }
 0x49f   : > { %1894 = vrot.lane.b32.xlu0 %v5960_v28, %s5600_s21  ;;  %1892 = vrot.lane.b32.xlu1 %v5954_v25, %s5600_s21 }
 0x4a3   : > { %1437 = vrot.lane.b32.xlu0 %v5952_v24, %s5598_s23  ;;  %1435 = vrot.lane.b32.xlu1 %v5946_v20, %s5598_s23 }
 0x4a7   : > { %1446 = vrot.lane.b32.xlu0 %v5952_v24, %s5600_s21  ;;  %1885 = vrot.lane.b32.xlu1 %v5960_v28, %s5598_s23 }
 0x4ab   : > { %1439 = vrot.lane.b32.xlu0 %v5978_v30, %s5598_s23  ;;  %1444 = vrot.lane.b32.xlu1 %v5946_v20, %s5600_s21 }
 0x4af   : > { %2318 = vrot.lane.b32.xlu0 %v5984_v31, %s5599_s1  ;;  %1430 = vrot.lane.b32.xlu1 %v5978_v30, %s5599_s1 }
 0x4b3   : > { %2336 = vrot.lane.b32.xlu0 %v5984_v31, %s5600_s21  ;;  %1448 = vrot.lane.b32.xlu1 %v5978_v30, %s5600_s21 }
 0x4b7   : > { %2320 = vrot.lane.b32.xlu1 %v5994_v32, %s5599_s1 }
 0x4bb   : > { %2327 = vrot.lane.b32.xlu1 %v5984_v31, %s5598_s23 }
 0x4bf   : > { %2329 = vrot.lane.b32.xlu1 %v5994_v32, %s5598_s23 }
 0x501   : > { %v1882_v39 = vpop.permute.xlu1 %1881  ;;  %v1873_v40 = vpop.permute.xlu0 %1872 }
 0x502   : > { %v1899_v43 = vcombine.low %v5938_v13, %v1882_v39  ;;  %v1900_v44 = vcombine.high %v5938_v13, %v1882_v39 }
 0x504   : > { %v1907_v50 = vrot.slane %v1899_v43, %v6003_v42  ;;  %v1914_v51 = vrot.slane %v1900_v44, %v6003_v42 }
 0x505   : > { %v1891_v45 = vpop.permute.xlu0 %1890  ;;  %v6007_v46 = vpop.permute.xlu1 %1426 }
 0x506   : > { %v1915_v47 = vcombine.low %v1873_v40, %v1891_v45  ;;  %v1916_v48 = vcombine.high %v1873_v40, %v1891_v45 }
 0x508   : > { %v1923_v52 = vrot.slane %v1915_v47, %v6003_v42  ;;  %v1930_v53 = vrot.slane %v1916_v48, %v6003_v42 }
 0x509   : > { %v6016_v54 = vpop.permute.xlu0 %1428  ;;  %v1875_v55 = vpop.permute.xlu1 %1874 }
 0x50a   : > { %v1931_v56 = vcombine.low %v1907_v50, %v1923_v52  ;;  %v1932_v57 = vcombine.high %v1907_v50, %v1923_v52  ;;  %v1947_v58 = vcombine.low %v1914_v51, %v1930_v53  ;;  %v1948_v59 = vcombine.high %v1914_v51, %v1930_v53 }
 0x50c   : > { %v1939_v60 = vrot.slane %v1931_v56, %v6010_v49  ;;  %v1946_v61 = vrot.slane %v1932_v57, %v6010_v49  ;;  %v1955_v62 = vrot.slane %v1947_v58, %v6010_v49  ;;  %v1962_v63 = vrot.slane %v1948_v59, %v6010_v49 }
 0x50d   : > { %v1877_v4 = vpop.permute.xlu0 %1876  ;;  %v1884_v5 = vpop.permute.xlu1 %1883 }
 0x50e   : > { %v2103_v6 = vcombine.low %v1939_v60, %v1946_v61  ;;  %v4939_v7 = vcombine.high %v1939_v60, %v1946_v61  ;;  %v2119_v8 = vcombine.low %v1955_v62, %v1962_v63  ;;  %v4940_v9 = vcombine.high %v1955_v62, %v1962_v63 }
 0x50f   : > { %v1967_v10 = vcombine.low %v5954_v25, %v1884_v5  ;;  %v1968_v18 = vcombine.high %v5954_v25, %v1884_v5 }
 0x510   : > { %v2110_v11 = vrot.slane %v2103_v6, %v6003_v42  ;;  %v2118_v12 = vrot.slane %v4939_v7, %v6003_v42  ;;  %v2126_v13 = vrot.slane %v2119_v8, %v6003_v42  ;;  %v2134_v15 = vrot.slane %v4940_v9, %v6003_v42 }
 0x511   : > { %v1895_v16 = vpop.permute.xlu0 %1894  ;;  %v1893_v17 = vpop.permute.xlu1 %1892  ;;  %v1975_v23 = vrot.slane %v1967_v10, %v6003_v42  ;;  %v1982_v39 = vrot.slane %v1968_v18, %v6003_v42 }
 0x512   : > { %v1983_v19 = vcombine.low %v1875_v55, %v1893_v17  ;;  %v1984_v21 = vcombine.high %v1875_v55, %v1893_v17  ;;  %v2051_v22 = vcombine.low %v1877_v4, %v1895_v16  ;;  %v2052_v29 = vcombine.high %v1877_v4, %v1895_v16 }
 0x513   : > { %v2135_v36 = vcombine.low %v2110_v11, %v2118_v12  ;;  %v2151_v37 = vcombine.low %v2126_v13, %v2134_v15  ;;  %v2136_v38 = vcombine.high %v2110_v11, %v2118_v12  ;;  %v2152_v41 = vcombine.high %v2126_v13, %v2134_v15 }
 0x514   : > { %v1991_v26 = vrot.slane %v1983_v19, %v6003_v42  ;;  %v1998_v27 = vrot.slane %v1984_v21, %v6003_v42  ;;  %v2059_v43 = vrot.slane %v2051_v22, %v6003_v42  ;;  %v2066_v50 = vrot.slane %v2052_v29, %v6003_v42 }
 0x515   : > { %v1438_v33 = vpop.permute.xlu0 %1437  ;;  %v6031_v35 = vpop.permute.xlu1 %1435  ;;  %v6039_v53 = vrot.slane %v2135_v36, %v6010_v49  ;;  %v6042_v55 = vrot.slane %v2151_v37, %v6010_v49  ;;  %v6045_v56 = vrot.slane %v2136_v38, %v6010_v49  ;;  %v6052_v59 = vrot.slane %v2152_v41, %v6010_v49 }
 0x516   : > { %v1999_v40 = vcombine.low %v1975_v23, %v1991_v26  ;;  %v2000_v25 = vcombine.high %v1975_v23, %v1991_v26  ;;  %v2015_v44 = vcombine.low %v1982_v39, %v1998_v27  ;;  %v2016_v45 = vcombine.high %v1982_v39, %v1998_v27 }
 0x517   : > { %v1521_v47 = vcombine.low %v5952_v24, %v1438_v33  ;;  %v1522_v48 = vcombine.high %v5952_v24, %v1438_v33  ;;  %v1453_v24 = vcombine.low %v5946_v20, %v6031_v35  ;;  %v1454_v15 = vcombine.high %v5946_v20, %v6031_v35 }
 0x518   : > { %v2007_v57 = vrot.slane %v1999_v40, %v6010_v49  ;;  %v2014_v58 = vrot.slane %v2000_v25, %v6010_v49  ;;  %v2023_v4 = vrot.slane %v2015_v44, %v6010_v49  ;;  %v2030_v5 = vrot.slane %v2016_v45, %v6010_v49 }
 0x519   : > { %v1447_v51 = vpop.permute.xlu0 %1446  ;;  %v1886_v52 = vpop.permute.xlu1 %1885  ;;  %v1529_v6 = vrot.slane %v1521_v47, %v6003_v42  ;;  %v1536_v7 = vrot.slane %v1522_v48, %v6003_v42  ;;  %v6069_v16 = vrot.slane %v1453_v24, %v6003_v42 }
 0x51a   : > { %v1537_v60 = vcombine.low %v6016_v54, %v1447_v51  ;;  %v1538_v61 = vcombine.high %v6016_v54, %v1447_v51  ;;  %v2035_v62 = vcombine.low %v5960_v28, %v1886_v52  ;;  %v2036_v63 = vcombine.high %v5960_v28, %v1886_v52 }
 0x51b   : > { %v2171_v13 = vcombine.low %v2007_v57, %v2014_v58  ;;  %v4941_v28 = vcombine.high %v2007_v57, %v2014_v58  ;;  %v2187_v29 = vcombine.low %v2023_v4, %v2030_v5  ;;  %v4942_v33 = vcombine.high %v2023_v4, %v2030_v5 }
 0x51c   : > { %v1545_v8 = vrot.slane %v1537_v60, %v6003_v42  ;;  %v1552_v9 = vrot.slane %v1538_v61, %v6003_v42  ;;  %v2043_v10 = vrot.slane %v2035_v62, %v6003_v42  ;;  %v2050_v54 = vrot.slane %v2036_v63, %v6003_v42 }
 0x51d   : > { %v1440_v11 = vpop.permute.xlu0 %1439  ;;  %v1445_v12 = vpop.permute.xlu1 %1444  ;;  %v6086_v47 = vrot.slane %v2171_v13, %v6003_v42  ;;  %v6089_v48 = vrot.slane %v4941_v28, %v6003_v42  ;;  %v6093_v52 = vrot.slane %v2187_v29, %v6003_v42  ;;  %v6096_v57 = vrot.slane %v4942_v33, %v6003_v42 }
 0x51e   : > { %v1553_v17 = vcombine.low %v1529_v6, %v1545_v8  ;;  %v1554_v18 = vcombine.high %v1529_v6, %v1545_v8  ;;  %v1569_v19 = vcombine.low %v1536_v7, %v1552_v9  ;;  %v1570_v21 = vcombine.high %v1536_v7, %v1552_v9 }
 0x51f   : > { %v2067_v22 = vcombine.low %v2043_v10, %v2059_v43  ;;  %v2068_v23 = vcombine.high %v2043_v10, %v2059_v43  ;;  %v2083_v26 = vcombine.low %v2050_v54, %v2066_v50  ;;  %v2084_v27 = vcombine.high %v2050_v54, %v2066_v50 }
 0x520   : > { %v1561_v36 = vrot.slane %v1553_v17, %v6010_v49  ;;  %v1568_v37 = vrot.slane %v1554_v18, %v6010_v49  ;;  %v6074_v20 = vrot.slane %v1569_v19, %v6010_v49  ;;  %v6077_v35 = vrot.slane %v1570_v21, %v6010_v49 }
 0x521   : > { %v1431_v38 = vpop.permute.xlu1 %1430  ;;  %v2075_v39 = vrot.slane %v2067_v22, %v6010_v49  ;;  %v2082_v40 = vrot.slane %v2068_v23, %v6010_v49  ;;  %v2319_v25 = vpop.permute.xlu0 %2318  ;;  %v2091_v41 = vrot.slane %v2083_v26, %v6010_v49  ;;  %v2098_v43 = vrot.slane %v2084_v27, %v6010_v49 }
 0x522   : > { %v1469_v44 = vcombine.low %v6007_v46, %v1445_v12  ;;  %v1470_v45 = vcombine.high %v6007_v46, %v1445_v12  ;;  %v1468_v50 = vrot.slane %v1454_v15, %v6003_v42  ;;  %v1725_v51 = vcombine.low %v1561_v36, %v1568_v37 }
 0x523   : > { %v1589_v58 = vcombine.low %v5978_v30, %v1440_v11  ;;  %v1590_v24 = vcombine.high %v5978_v30, %v1440_v11  ;;  %v4935_v60 = vcombine.high %v1561_v36, %v1568_v37  ;;  %v1741_v61 = vcombine.low %v6074_v20, %v6077_v35 }
 0x524   : > { %v4936_v62 = vcombine.high %v6074_v20, %v6077_v35  ;;  %v2239_v63 = vcombine.low %v2075_v39, %v2082_v40  ;;  %v4943_v4 = vcombine.high %v2075_v39, %v2082_v40  ;;  %v2255_v5 = vcombine.low %v2091_v41, %v2098_v43 }
 0x525   : > { %v1449_v46 = vpop.permute.xlu1 %1448  ;;  %v1477_v6 = vrot.slane %v1469_v44, %v6003_v42  ;;  %v1484_v7 = vrot.slane %v1470_v45, %v6003_v42  ;;  %v6107_v8 = vrot.slane %v1725_v51, %v6003_v42  ;;  %v4944_v9 = vcombine.high %v2091_v41, %v2098_v43  ;;  %v2337_v30 = vpop.permute.xlu0 %2336 }
 0x526   : > { %v1605_v10 = vcombine.low %v1431_v38, %v1449_v46  ;;  %v1606_v54 = vcombine.high %v1431_v38, %v1449_v46  ;;  %v1597_v15 = vrot.slane %v1589_v58, %v6003_v42  ;;  %v1604_v17 = vrot.slane %v1590_v24, %v6003_v42 }
 0x527   : > { %v1485_v11 = vcombine.low %v6069_v16, %v1477_v6  ;;  %v1486_v12 = vcombine.high %v6069_v16, %v1477_v6  ;;  %v1501_v13 = vcombine.low %v1468_v50, %v1484_v7  ;;  %v1502_v28 = vcombine.high %v1468_v50, %v1484_v7 }
 0x528   : > { %v1613_v18 = vrot.slane %v1605_v10, %v6003_v42  ;;  %v1620_v19 = vrot.slane %v1606_v54, %v6003_v42  ;;  %v6116_v21 = vrot.slane %v4935_v60, %v6003_v42  ;;  %v6119_v22 = vrot.slane %v1741_v61, %v6003_v42 }
 0x529   : > { %v2361_v23 = vcombine.low %v2319_v25, %v2337_v30  ;;  %v2362_v26 = vcombine.high %v2319_v25, %v2337_v30  ;;  %v6121_v36 = vpop.permute.xlu1 %2320  ;;  %v1493_v37 = vrot.slane %v1485_v11, %v6010_v49  ;;  %v1500_v38 = vrot.slane %v1486_v12, %v6010_v49 }
 0x52a   : > { %v1621_v27 = vcombine.low %v1597_v15, %v1613_v18  ;;  %v1622_v16 = vcombine.high %v1597_v15, %v1613_v18  ;;  %v1637_v29 = vcombine.low %v1604_v17, %v1620_v19  ;;  %v1638_v33 = vcombine.high %v1604_v17, %v1620_v19 }
 0x52b   : > { %v6126_v39 = vrot.slane %v1501_v13, %v6010_v49  ;;  %v6129_v40 = vrot.slane %v1502_v28, %v6010_v49  ;;  %v2246_v45 = vrot.slane %v2239_v63, %v6003_v42  ;;  %v2254_v50 = vrot.slane %v4943_v4, %v6003_v42 }
 0x52c   : > { %v1629_v41 = vrot.slane %v1621_v27, %v6010_v49  ;;  %v1636_v25 = vrot.slane %v1622_v16, %v6010_v49  ;;  %v1645_v43 = vrot.slane %v1637_v29, %v6010_v49  ;;  %v1652_v44 = vrot.slane %v1638_v33, %v6010_v49 }
 0x52d   : > { %v2262_v51 = vrot.slane %v2255_v5, %v6003_v42  ;;  %v2270_v58 = vrot.slane %v4944_v9, %v6003_v42  ;;  %v2369_v24 = vrot.slane %v2361_v23, %v6003_v42  ;;  %v6141_v46 = vrot.slane %v2362_v26, %v6003_v42  ;;  %v2328_v54 = vpop.permute.xlu1 %2327 }
 0x52e   : > { %v1793_v60 = vcombine.low %v1629_v41, %v1636_v25  ;;  %v4937_v61 = vcombine.high %v1629_v41, %v1636_v25  ;;  %v1657_v6 = vcombine.low %v1493_v37, %v1500_v38  ;;  %v4933_v7 = vcombine.high %v1493_v37, %v1500_v38 }
 0x52f   : > { %v2203_v30 = vcombine.low %v6086_v47, %v6089_v48  ;;  %v2219_v63 = vcombine.low %v6093_v52, %v6096_v57  ;;  %v1673_v4 = vcombine.low %v6126_v39, %v6129_v40  ;;  %v4934_v5 = vcombine.high %v6126_v39, %v6129_v40 }
 0x530   : > { %v1809_v9 = vcombine.low %v1645_v43, %v1652_v44  ;;  %v4938_v10 = vcombine.high %v1645_v43, %v1652_v44  ;;  %v2204_v13 = vcombine.high %v6086_v47, %v6089_v48  ;;  %v2220_v28 = vcombine.high %v6093_v52, %v6096_v57 }
 0x531   : > { %v6152_v11 = vrot.slane %v2203_v30, %v6010_v49  ;;  %v2227_v12 = vrot.slane %v2219_v63, %v6010_v49  ;;  %v6160_v15 = vrot.slane %v1793_v60, %v6003_v42  ;;  %v6163_v17 = vrot.slane %v4937_v61, %v6003_v42 }
 0x532   : > { %v2167_v18 = vcombine.low %v6039_v53, %v6042_v55  ;;  %v2169_v19 = vcombine.low %v6045_v56, %v6052_v59  ;;  %v6171_v26 = vrot.slane %v2204_v13, %v6010_v49  ;;  %v6174_v47 = vrot.slane %v2220_v28, %v6010_v49 }
 0x533   : > { %v2235_v23 = vcombine.low %v6152_v11, %v2227_v12  ;;  %v2345_v48 = vcombine.low %v5984_v31, %v2328_v54  ;;  %v6178_v52 = vrot.slane %v1809_v9, %v6003_v42  ;;  %v6181_v57 = vrot.slane %v4938_v10, %v6003_v42 }
 0x534   : > { %v2346_v27 = vcombine.high %v5984_v31, %v2328_v54  ;;  %v2271_v16 = vcombine.low %v2246_v45, %v2254_v50  ;;  %v2237_v33 = vcombine.low %v6171_v26, %v6174_v47  ;;  %v2287_v38 = vcombine.low %v2262_v51, %v2270_v58 }
 0x535   : > { %v2307_v29 = vpack.c.bf16 %v2235_v23, %v2167_v18  ;;  %v2353_v37 = vrot.slane %v2345_v48, %v6003_v42  ;;  %v1664_v39 = vrot.slane %v1657_v6, %v6003_v42  ;;  %v2272_v25 = vcombine.high %v2246_v45, %v2254_v50 }
 0x536   : > { %v2360_v40 = vrot.slane %v2346_v27, %v6003_v42  ;;  %v6190_v41 = vrot.slane %v2271_v16, %v6010_v49  ;;  %v2311_v43 = vpack.c.bf16 %v2237_v33, %v2169_v19  ;;  %v1672_v61 = vrot.slane %v4933_v7, %v6003_v42 }
 0x537   : > { %5285 = vmatprep.subr.msk.bf16.mxu1 %vm2761_vm1, %v2307_v29  ;;  %v2769_v31 = vsel %vm2761_vm1, %v2307_v29, 0  ;;  %v2377_v44 = vcombine.low %v2353_v37, %v2369_v24  ;;  %v2378_v60 = vcombine.high %v2353_v37, %v2369_v24  ;;  %v1826_v30 = vcombine.high %v6160_v15, %v6163_v17 }
 0x538   : > { %v1842_v6 = vcombine.high %v6178_v52, %v6181_v57  ;;  %5162 = vmatpush3.bf16.xpose.msra.mxu1 %v2769_v31  ;;  %v2295_v63 = vrot.slane %v2287_v38, %v6010_v49  ;;  %5289 = vmatprep.subr.msk.bf16.mxu0 %vm2761_vm1, %v2311_v43  ;;  %v2889_v45 = vsel %vm2761_vm1, %v2311_v43, 0  ;;  %v2393_v50 = vcombine.low %v2360_v40, %v6141_v46 }
 0x539   : > { %v6204_v9 = vrot.slane %v2272_v25, %v6010_v49  ;;  %v2288_v24 = vcombine.high %v2262_v51, %v2270_v58  ;;  %5178 = vmatpush3.bf16.xpose.msra.mxu0 %v2889_v45  ;;  %v2385_v7 = vrot.slane %v2377_v44, %v6010_v49  ;;  %v2392_v10 = vrot.slane %v2378_v60, %v6010_v49 }
 0x53a   : > { %v2394_v54 = vcombine.high %v2360_v40, %v6141_v46  ;;  %v2303_v13 = vcombine.low %v6190_v41, %v2295_v63  ;;  %v1680_v28 = vrot.slane %v1673_v4, %v6003_v42  ;;  %v1688_v18 = vrot.slane %v4934_v5, %v6003_v42 }
 0x53b   : > { %v6213_v19 = vrot.slane %v2288_v24, %v6010_v49  ;;  %v2236_v23 = vcombine.high %v6152_v11, %v2227_v12  ;;  %v1756_v51 = vrot.slane %v4936_v62, %v6003_v42  ;;  %v1825_v58 = vcombine.low %v6160_v15, %v6163_v17 }
 0x53c   : > { %v1841_v46 = vcombine.low %v6178_v52, %v6181_v57  ;;  %v2308_v48 = vpack.c.bf16 %v2303_v13, %v2303_v13  ;;  %v6225_v4 = vrot.slane %v1826_v30, %v6010_v49  ;;  %v6228_v5 = vrot.slane %v1842_v6, %v6010_v49 }
 0x53d   : > { %v2305_v11 = vcombine.low %v6204_v9, %v6213_v19  ;;  %v2168_v20 = vcombine.high %v6039_v53, %v6042_v55  ;;  %v2401_v35 = vrot.slane %v2393_v50, %v6010_v49  ;;  %v2408_v62 = vrot.slane %v2394_v54, %v6010_v49 }
 0x53e   : > { %v2549_v12 = vcombine.low %v2385_v7, %v2392_v10  ;;  %5286 = vmatprep.subr.msk.bf16.mxu1 %vm2761_vm1, %v2308_v48  ;;  %v2772_v15 = vsel %vm2761_vm1, %v2308_v48, 0  ;;  %v1689_v57 = vcombine.low %v1664_v39, %v1672_v61  ;;  %v1705_v27 = vcombine.low %v1680_v28, %v1688_v18 }
 0x53f   : > { %v2312_v17 = vpack.c.bf16 %v2305_v11, %v2305_v11  ;;  %v2309_v52 = vpack.c.bf16 %v2236_v23, %v2168_v20  ;;  %v4945_v16 = vcombine.high %v2385_v7, %v2392_v10  ;;  %v1757_v29 = vcombine.low %v6107_v8, %v6116_v21 }
 0x540   : > { %5164 = vmatpush3.bf16.xpose.msra.mxu1 %v2772_v15  ;;  %v1773_v53 = vcombine.low %v6119_v22, %v1756_v51  ;;  %v1690_v55 = vcombine.high %v1664_v39, %v1672_v61  ;;  %v1697_v37 = vrot.slane %v1689_v57, %v6010_v49  ;;  %v1713_v38 = vrot.slane %v1705_v27, %v6010_v49 }
 0x541   : > { %5290 = vmatprep.subr.msk.bf16.mxu0 %vm2761_vm1, %v2312_v17  ;;  %v2892_v33 = vsel %vm2761_vm1, %v2312_v17, 0  ;;  %5287 = vmatprep.subr.msk.bf16.mxu1 %vm2761_vm1, %v2309_v52  ;;  %v1706_v40 = vcombine.high %v1680_v28, %v1688_v18  ;;  %v1765_v25 = vrot.slane %v1757_v29, %v6010_v49  ;;  %v1758_v39 = vcombine.high %v6107_v8, %v6116_v21 }
 0x542   : > { %5180 = vmatpush3.bf16.xpose.msra.mxu0 %v2892_v33  ;;  %v1781_v43 = vrot.slane %v1773_v53, %v6010_v49  ;;  %v1704_v31 = vrot.slane %v1690_v55, %v6010_v49  ;;  %v1721_v44 = vcombine.low %v1697_v37, %v1713_v38  ;;  %v1774_v61 = vcombine.high %v6119_v22, %v1756_v51 }
 0x543   : > { %v1720_v60 = vrot.slane %v1706_v40, %v6010_v49  ;;  %v1833_v30 = vrot.slane %v1825_v58, %v6010_v49  ;;  %v1859_v6 = vcombine.low %v6225_v4, %v6228_v5  ;;  %v1772_v50 = vrot.slane %v1758_v39, %v6010_v49 }
 0x544   : > { %v1789_v45 = vcombine.low %v1765_v25, %v1781_v43  ;;  %v1849_v24 = vrot.slane %v1841_v46, %v6010_v49  ;;  %v2565_v7 = vcombine.low %v2401_v35, %v2408_v62  ;;  %v4946_v10 = vcombine.high %v2401_v35, %v2408_v62 }
 0x545   : > { %v1723_v54 = vcombine.low %v1704_v31, %v1720_v60  ;;  %v1788_v8 = vrot.slane %v1774_v61, %v6010_v49  ;;  %v2304_v28 = vcombine.high %v6190_v41, %v2295_v63  ;;  %v6261_v22 = vrot.slane %v2549_v12, %v6003_v42 }
 0x546   : > { %v1861_v21 = vpack.c.bf16 %v1789_v45, %v1721_v44  ;;  %v1857_v13 = vcombine.low %v1833_v30, %v1849_v24  ;;  %v6264_v18 = vrot.slane %v4945_v16, %v6003_v42  ;;  %v1722_v51 = vcombine.high %v1697_v37, %v1713_v38 }
 0x547   : > { %v1791_v23 = vcombine.low %v1772_v50, %v1788_v8  ;;  %v1866_v46 = vpack.c.bf16 %v1859_v6, %v1859_v6  ;;  %v6268_v48 = vrot.slane %v2565_v7, %v6003_v42  ;;  %v6271_v11 = vrot.slane %v4946_v10, %v6003_v42 }
 0x548   : > { %5165 = vmatprep.mubr.msk.bf16.mxu1 %vm2761_vm1, %v1861_v21  ;;  %v1862_v58 = vpack.c.bf16 %v1857_v13, %v1857_v13  ;;  %v1790_v41 = vcombine.high %v1765_v25, %v1781_v43  ;;  %v2829_v63 = vsel %vm2761_vm1, %v2309_v52, 0  ;;  %v2310_v35 = vpack.c.bf16 %v2304_v28, %v2304_v28 }
 0x549   : > { %v1865_v20 = vpack.c.bf16 %v1791_v23, %v1723_v54  ;;  %v2582_v12 = vcombine.high %v6261_v22, %v6264_v18  ;;  %v2598_v17 = vcombine.high %v6268_v48, %v6271_v11  ;;  %v2238_v52 = vcombine.high %v6171_v26, %v6174_v47 }
 0x54a   : > { %5166 = vmatmul.mubr.msk.bf16.vlgmr.msra.gmra.mrb[4].mxu1 %vm2761_vm1, %v1862_v58  ;;  %v1863_v62 = vpack.c.bf16 %v1790_v41, %v1722_v51  ;;  %v2170_v27 = vcombine.high %v6045_v56, %v6052_v59  ;;  %v2832_v53 = vsel %vm2761_vm1, %v2310_v35, 0  ;;  %v1858_v33 = vcombine.high %v1833_v30, %v1849_v24 }
 0x54b   : > { %5181 = vmatprep.mubr.msk.bf16.mxu0 %vm2761_vm1, %v1865_v20  ;;  %5170 = vmatpush3.bf16.xpose.msra.mxu1 %v2829_v63  ;;  %v6282_v15 = vrot.slane %v2582_v12, %v6010_v49  ;;  %v6289_v57 = vrot.slane %v2598_v17, %v6010_v49  ;;  %v1724_v26 = vcombine.high %v1704_v31, %v1720_v60 }
 0x54c   : > { %5182 = vmatmul.mubr.msk.bf16.vlgmr.msra.gmra.mrb[8].mxu0 %vm2761_vm1, %v1866_v46  ;;  %5288 = vmatprep.subr.msk.bf16.mxu1 %vm2761_vm1, %v2310_v35  ;;  %v2313_v55 = vpack.c.bf16 %v2238_v52, %v2170_v27  ;;  %v2306_v47 = vcombine.high %v6204_v9, %v6213_v19  ;;  %v1792_v37 = vcombine.high %v1772_v50, %v1788_v8  ;;  %v1086_v19 = vand.u32 127, %v1085_v0 }
 0x54d   : > { %5173 = vmatprep.mubr.msk.bf16.mxu1 %vm2761_vm1, %v1863_v62  ;;  %v2615_v16 = vcombine.low %v6282_v15, %v6289_v57  ;;  %v2616_v29 = vcombine.high %v6282_v15, %v6289_v57  ;;  %v1864_v38 = vpack.c.bf16 %v1858_v33, %v1858_v33  ;;  %v1860_v43 = vcombine.high %v6225_v4, %v6228_v5 }
 0x54e   : > { %v1867_v56 = vpack.c.bf16 %v1792_v37, %v1724_v26  ;;  %v2949_v59 = vsel %vm2761_vm1, %v2313_v55, 0  ;;  %v2314_v40 = vpack.c.bf16 %v2306_v47, %v2306_v47  ;;  %vm1087_vm2 = vcmp.lt.s32.totalorder %v1086_v19, 17 }
 0x54f   : > { %v1868_v9 = vpack.c.bf16 %v1860_v43, %v1860_v43 }
 0x550   : > { %v2952_v25 = vsel %vm2761_vm1, %v2314_v40, 0 }
 0x553   : > { %5172 = vmatpush3.bf16.xpose.msra.mxu1 %v2832_v53 }
 0x554   : > { %5291 = vmatprep.subr.msk.bf16.mxu1 %vm2761_vm1, %v2313_v55 }
 0x55a   : > { %5174 = vmatmul.mubr.msk.bf16.vlgmr.msra.gmra.mrb[8].mxu1 %vm2761_vm1, %v1864_v38 }
 0x55b   : > { %5186 = vmatpush3.bf16.xpose.msra.mxu1 %v2949_v59  ;;  %5189 = vmatprep.mubr.msk.bf16.mxu1 %vm2761_vm1, %v1867_v56  ;;  %v2330_v56 = vpop.permute.xlu1 %2329 }
 0x55c   : > { %5292 = vmatprep.subr.msk.bf16.mxu1 %vm2761_vm1, %v2314_v40 }
 0x563   : > { %5188 = vmatpush3.bf16.xpose.msra.mxu1 %v2952_v25 }
 0x56a   : > { %5190 = vmatmul.mubr.msk.bf16.vlgmr.msra.gmra.mrb[12].mxu1 %vm2761_vm1, %v1868_v9 }
 0x61d   : > { %v5167_v31 = vpop.f32.mrb[4].mxu1 }
 0x61e   : > { %v3006_v39 = vsel %vm1087_vm2, %v5167_v31, -1e+30  ;;  %v2808_v44 = vpop.f32.mrb[5].mxu1 }
 0x61f   : > { %v5183_v60 = vpop.f32.mrb[8].mxu0  ;;  %v3004_v61 = vsel %vm1087_vm2, %v2808_v44, -1e+30  ;;  %v5168_v30 = vpop.f32.mrb[6].mxu1  ;;  %v3023_v6 = vsel %vm3016_vm3, %v3006_v39, -inf }
 0x620   : > { %v6314_v45 = vsel %vm1087_vm2, %v5183_v60, -1e+30  ;;  %v2928_v4 = vpop.f32.mrb[9].mxu0  ;;  %3024 = vmax.xlane.f32.xlu0 %v3023_v6  ;;  %v2811_v5 = vpop.f32.mrb[7].mxu1  ;;  %v3017_v13 = vsel %vm3016_vm3, %v3004_v61, -inf }
 0x621   : > { %v6317_v0 = vsel %vm1087_vm2, %v2928_v4, -1e+30  ;;  %v5184_v50 = vpop.f32.mrb[10].mxu0  ;;  %v3005_v24 = vsel %vm1087_vm2, %v2811_v5, -1e+30  ;;  %v3041_v8 = vsel %vm3016_vm3, %v6314_v45, -inf }
 0x622   : > { %v2931_v7 = vpop.f32.mrb[11].mxu0  ;;  %v3020_v10 = vsel %vm3016_vm3, %v3005_v24, -inf  ;;  %v3035_v28 = vsel %vm3016_vm3, %v6317_v0, -inf }
 0x623   : > { %v6322_v54 = vsel %vm1087_vm2, %v2931_v7, -1e+30  ;;  %3021 = vmax.xlane.f32.xlu1 %v3020_v10 }
 0x624   : > { %3042 = vmax.xlane.f32.xlu0 %v3041_v8  ;;  %v3038_v21 = vsel %vm3016_vm3, %v6322_v54, -inf }
 0x627   : > { %3039 = vmax.xlane.f32.xlu1 %v3038_v21 }
 0x628   : > { %3018 = vmax.xlane.f32.xlu0 %v3017_v13 }
 0x62c   : > { %3036 = vmax.xlane.f32.xlu0 %v3035_v28 }
 0x62d   : > { %v5175_v23 = vpop.f32.mrb[8].mxu1 }
 0x62e   : > { %v3009_v51 = vsel %vm1087_vm2, %v5175_v23, -1e+30  ;;  %v2868_v58 = vpop.f32.mrb[9].mxu1 }
 0x62f   : > { %v3007_v46 = vsel %vm1087_vm2, %v2868_v58, -1e+30  ;;  %v5176_v20 = vpop.f32.mrb[10].mxu1  ;;  %v3032_v41 = vsel %vm3016_vm3, %v3009_v51, -inf }
 0x630   : > { %3033 = vmax.xlane.f32.xlu1 %v3032_v41  ;;  %v2871_v63 = vpop.f32.mrb[11].mxu1  ;;  %v3026_v35 = vsel %vm3016_vm3, %v3007_v46, -inf }
 0x631   : > { %v3008_v62 = vsel %vm1087_vm2, %v2871_v63, -1e+30  ;;  %3027 = vmax.xlane.f32.xlu0 %v3026_v35 }
 0x632   : > { %v3029_v12 = vsel %vm3016_vm3, %v3008_v62, -inf }
 0x635   : > { %3030 = vmax.xlane.f32.xlu0 %v3029_v12 }
 0x63d   : > { %v5191_v17 = vpop.f32.mrb[12].mxu1 }
 0x63e   : > { %v6338_v52 = vsel %vm1087_vm2, %v5191_v17, -1e+30  ;;  %v2988_v27 = vpop.f32.mrb[13].mxu1 }
 0x63f   : > { %v6341_v53 = vsel %vm1087_vm2, %v2988_v27, -1e+30  ;;  %v5192_v55 = vpop.f32.mrb[14].mxu1  ;;  %v3050_v33 = vsel %vm3016_vm3, %v6338_v52, -inf }
 0x640   : > { %3051 = vmax.xlane.f32.xlu1 %v3050_v33  ;;  %v2991_v26 = vpop.f32.mrb[15].mxu1  ;;  %v3044_v47 = vsel %vm3016_vm3, %v6341_v53, -inf  ;;  %v2413_v55 = vcombine.low %v5994_v32, %v2330_v56  ;;  %v2414_v33 = vcombine.high %v5994_v32, %v2330_v56 }
 0x641   : > { %v6348_v37 = vsel %vm1087_vm2, %v2991_v26, -1e+30  ;;  %3045 = vmax.xlane.f32.xlu0 %v3044_v47 }
 0x642   : > { %v3047_v38 = vsel %vm3016_vm3, %v6348_v37, -inf }
 0x644   : > { %3048 = vmax.xlane.f32.xlu1 %v3047_v38 }
 0x655   : > { %2338 = vrot.lane.b32.xlu1 %v5994_v32, %s5600_s21 }
 0x657   : > { %2322 = vrot.lane.b32.xlu0 %v5940_v14, %s5599_s1 }
 0x6ad   : > { %v3025_v59 = vpop.xlane.xlu0 %3024 }
 0x6ae   : > { %v3055_v40 = vsub.f32 %v3006_v39, %v3025_v59  ;;  %v2421_v59 = vrot.slane %v2413_v55, %v6003_v42 }
 0x6b0   : > { %v3069_v25 = vmul.f32 1.442695, %v3055_v40  ;;  %v3022_v43 = vpop.xlane.xlu1 %3021  ;;  %v2428_v40 = vrot.slane %v2414_v33, %v6003_v42 }
 0x6b1   : > { %v3054_v9 = vsub.f32 %v3005_v24, %v3022_v43  ;;  %v6356_v19 = vpop.xlane.xlu0 %3042 }
 0x6b2   : > { %5467 = vpow2.f32 %v3069_v25 }
 0x6b3   : > { %v3067_v31 = vmul.f32 1.442695, %v3054_v9 }
 0x6b4   : > { %v6358_v6 = vpop.xlane.xlu1 %3039 }
 0x6b5   : > { %5469 = vpow2.f32 %v3067_v31  ;;  %v3019_v44 = vpop.xlane.xlu0 %3018 }
 0x6b6   : > { %v3053_v60 = vsub.f32 %v3004_v61, %v3019_v44 }
 0x6b8   : > { %v3065_v30 = vmul.f32 1.442695, %v3053_v60 }
 0x6b9   : > { %v6360_v4 = vpop.xlane.xlu0 %3036 }
 0x6ba   : > { %5471 = vpow2.f32 %v3065_v30 }
 0x6bc   : > { %v6362_v5 = vpop.eup %5467 }
 0x6bd   : > { %v3034_v50 = vpop.xlane.xlu1 %3033  ;;  %v3095_v39 = vsel %vm3016_vm3, %v6362_v5, 0.0 }
 0x6be   : > { %v3058_v24 = vsub.f32 %v3009_v51, %v3034_v50  ;;  %v3028_v7 = vpop.xlane.xlu0 %3027  ;;  %3096 = vadd.xlane.f32.xlu0 %v3095_v39  ;;  %v2581_v50 = vcombine.low %v6261_v22, %v6264_v18  ;;  %v2597_v39 = vcombine.low %v6268_v48, %v6271_v11 }
 0x6bf   : > { %v6366_v10 = vpop.eup %5469  ;;  %v3056_v8 = vsub.f32 %v3007_v46, %v3028_v7 }
 0x6c0   : > { %v3075_v21 = vmul.f32 1.442695, %v3058_v24  ;;  %v3092_v61 = vsel %vm3016_vm3, %v6366_v10, 0.0 }
 0x6c1   : > { %v3071_v13 = vmul.f32 1.442695, %v3056_v8  ;;  %3093 = vadd.xlane.f32.xlu1 %v3092_v61 }
 0x6c2   : > { %5473 = vpow2.f32 %v3075_v21  ;;  %v3031_v28 = vpop.xlane.xlu0 %3030 }
 0x6c3   : > { %5475 = vpow2.f32 %v3071_v13  ;;  %v3057_v23 = vsub.f32 %v3008_v62, %v3031_v28 }
 0x6c4   : > { %v6370_v58 = vpop.eup %5471 }
 0x6c5   : > { %v3073_v20 = vmul.f32 1.442695, %v3057_v23  ;;  %v3089_v51 = vsel %vm3016_vm3, %v6370_v58, 0.0 }
 0x6c6   : > { %3090 = vadd.xlane.f32.xlu0 %v3089_v51  ;;  %v2605_v51 = vrot.slane %v2597_v39, %v6010_v49 }
 0x6c7   : > { %5477 = vpow2.f32 %v3073_v20  ;;  %v2589_v20 = vrot.slane %v2581_v50, %v6010_v49 }
 0x6c9   : > { %v2613_v33 = vcombine.low %v2589_v20, %v2605_v51 }
 0x6cc   : > { %v6374_v41 = vpop.eup %5473 }
 0x6cd   : > { %v6376_v46 = vpop.eup %5475  ;;  %v6378_v63 = vpop.xlane.xlu1 %3051  ;;  %v3104_v35 = vsel %vm3016_vm3, %v6374_v41, 0.0 }
 0x6ce   : > { %3105 = vadd.xlane.f32.xlu1 %v3104_v35  ;;  %v3098_v62 = vsel %vm3016_vm3, %v6376_v46, 0.0 }
 0x6cf   : > { %3099 = vadd.xlane.f32.xlu0 %v3098_v62 }
 0x6d1   : > { %v6384_v12 = vpop.eup %5477  ;;  %v6386_v17 = vpop.xlane.xlu1 %3048 }
 0x6d2   : > { %v3101_v27 = vsel %vm3016_vm3, %v6384_v12, 0.0 }
 0x6d3   : > { %3102 = vadd.xlane.f32.xlu1 %v3101_v27 }
 0x6d5   : > { %v2339_v26 = vpop.permute.xlu1 %2338 }
 0x6d6   : > { %v2429_v47 = vcombine.low %v6121_v36, %v2339_v26  ;;  %v2430_v38 = vcombine.high %v6121_v36, %v2339_v26  ;;  %v2614_v26 = vcombine.high %v2589_v20, %v2605_v51 }
 0x6d8   : > { %v2437_v25 = vrot.slane %v2429_v47, %v6003_v42  ;;  %v2444_v43 = vrot.slane %v2430_v38, %v6003_v42 }
 0x6da   : > { %v2445_v9 = vcombine.low %v2421_v59, %v2437_v25  ;;  %v2446_v31 = vcombine.high %v2421_v59, %v2437_v25  ;;  %v2461_v44 = vcombine.low %v2428_v40, %v2444_v43  ;;  %v2462_v60 = vcombine.high %v2428_v40, %v2444_v43 }
 0x6dc   : > { %v2453_v30 = vrot.slane %v2445_v9, %v6010_v49  ;;  %v2460_v32 = vrot.slane %v2446_v31, %v6010_v49  ;;  %v2469_v56 = vrot.slane %v2461_v44, %v6010_v49  ;;  %v2476_v36 = vrot.slane %v2462_v60, %v6010_v49  ;;  %v3046_v60 = vpop.xlane.xlu0 %3045 }
 0x6dd   : > { %v3060_v44 = vsub.f32 %v6322_v54, %v6358_v6  ;;  %v3064_v54 = vsub.f32 %v6338_v52, %v6378_v63 }
 0x6de   : > { %v2617_v24 = vcombine.low %v2453_v30, %v2460_v32  ;;  %v4947_v7 = vcombine.high %v2453_v30, %v2460_v32  ;;  %v2633_v8 = vcombine.low %v2469_v56, %v2476_v36  ;;  %v4948_v21 = vcombine.high %v2469_v56, %v2476_v36 }
 0x6df   : > { %v3059_v30 = vsub.f32 %v6317_v0, %v6360_v4  ;;  %v3079_v32 = vmul.f32 1.442695, %v3060_v44  ;;  %v3061_v56 = vsub.f32 %v6314_v45, %v6356_v19  ;;  %v3087_v0 = vmul.f32 1.442695, %v3064_v54 }
 0x6e0   : > { %v2624_v61 = vrot.slane %v2617_v24, %v6003_v42  ;;  %v2632_v13 = vrot.slane %v4947_v7, %v6003_v42  ;;  %v2640_v28 = vrot.slane %v2633_v8, %v6003_v42  ;;  %v2648_v23 = vrot.slane %v4948_v21, %v6003_v42  ;;  %v2323_v8 = vpop.permute.xlu0 %2322 }
 0x6e1   : > { %v3077_v15 = vmul.f32 1.442695, %v3059_v30  ;;  %5479 = vpow2.f32 %v3079_v32  ;;  %v3081_v36 = vmul.f32 1.442695, %v3061_v56 }
 0x6e2   : > { %v2649_v22 = vcombine.low %v2624_v61, %v2632_v13  ;;  %v2665_v18 = vcombine.low %v2640_v28, %v2648_v23  ;;  %v2650_v35 = vcombine.high %v2624_v61, %v2632_v13  ;;  %v2666_v48 = vcombine.high %v2640_v28, %v2648_v23 }
 0x6e3   : > { %5481 = vpow2.f32 %v3077_v15 }
 0x6e4   : > { %2331 = vrot.lane.b32.xlu1 %v5940_v14, %s5598_s23  ;;  %v2657_v11 = vrot.slane %v2649_v22, %v6010_v49  ;;  %v2673_v62 = vrot.slane %v2665_v18, %v6010_v49  ;;  %v2664_v27 = vrot.slane %v2650_v35, %v6010_v49  ;;  %v2680_v55 = vrot.slane %v2666_v48, %v6010_v49 }
 0x6e5   : > { %2340 = vrot.lane.b32.xlu0 %v5940_v14, %s5600_s21 }
 0x6e6   : > { %v2681_v47 = vcombine.low %v2657_v11, %v2673_v62  ;;  %v2682_v38 = vcombine.high %v2657_v11, %v2673_v62  ;;  %v2683_v59 = vcombine.low %v2664_v27, %v2680_v55  ;;  %v2684_v40 = vcombine.high %v2664_v27, %v2680_v55 }
 0x6e8   : > { %v2753_v25 = vpack.c.bf16 %v2681_v47, %v2613_v33  ;;  %v2755_v43 = vpack.c.bf16 %v2682_v38, %v2614_v26  ;;  %v6423_v9 = vpack.c.bf16 %v2683_v59, %v2615_v16  ;;  %v6428_v31 = vpack.c.bf16 %v2684_v40, %v2616_v29 }
 0x6e9   : > { %v3062_v16 = vsub.f32 %v6341_v53, %v3046_v60  ;;  %v3063_v29 = vsub.f32 %v6348_v37, %v6386_v17 }
 0x6ea   : > { %5193 = vmatprep.subr.bf16.mxu0 %v2753_v25  ;;  %5201 = vmatprep.subr.bf16.mxu1 %v2755_v43 }
 0x6eb   : > { %5194 = vmatpush3.bf16.msra.mxu0 %v2753_v25  ;;  %5202 = vmatpush3.bf16.msra.mxu1 %v2755_v43  ;;  %v3083_v57 = vmul.f32 1.442695, %v3062_v16  ;;  %v3085_v6 = vmul.f32 1.442695, %v3063_v29  ;;  %v6441_v53 = vpop.eup %5479 }
 0x6ec   : > { %v3110_v19 = vsel %vm3016_vm3, %v6441_v53, 0.0 }
 0x6ed   : > { %5483 = vpow2.f32 %v3083_v57  ;;  %v6443_v45 = vpop.eup %5481 }
 0x6ee   : > { %5485 = vpow2.f32 %v3081_v36  ;;  %v3107_v63 = vsel %vm3016_vm3, %v6443_v45, 0.0 }
 0x6ef   : > { %5487 = vpow2.f32 %v3085_v6 }
 0x6f0   : > { %5489 = vpow2.f32 %v3087_v0 }
 0x6f7   : > { %v6447_v4 = vpop.eup %5483 }
 0x6f8   : > { %v6449_v37 = vpop.eup %5485  ;;  %v3116_v52 = vsel %vm3016_vm3, %v6447_v4, 0.0 }
 0x6f9   : > { %v6455_v17 = vpop.eup %5487  ;;  %v3113_v50 = vsel %vm3016_vm3, %v6449_v37, 0.0 }
 0x6fa   : > { %v3119_v39 = vsel %vm3016_vm3, %v6455_v17, 0.0  ;;  %v6461_v24 = vpop.eup %5489 }
 0x6fb   : > { %v3122_v7 = vsel %vm3016_vm3, %v6461_v24, 0.0 }
 0x704   : > { %3111 = vadd.xlane.f32.xlu0 %v3110_v19 }
 0x708   : > { %3117 = vadd.xlane.f32.xlu0 %v3116_v52  ;;  %3108 = vadd.xlane.f32.xlu1 %v3107_v63 }
 0x70c   : > { %3114 = vadd.xlane.f32.xlu1 %v3113_v50  ;;  %3120 = vadd.xlane.f32.xlu0 %v3119_v39 }
 0x710   : > { %3123 = vadd.xlane.f32.xlu0 %v3122_v7 }
 0x74b   : > { %v3097_v21 = vpop.xlane.xlu0 %3096 }
 0x74e   : > { %v3094_v61 = vpop.xlane.xlu1 %3093 }
 0x74f   : > { %5491 = vrcp.f32 %v3094_v61 }
 0x753   : > { %v3091_v13 = vpop.xlane.xlu0 %3090 }
 0x754   : > { %5493 = vrcp.f32 %v3091_v13 }
 0x759   : > { %v5492_v23 = vpop.eup %5491 }
 0x75a   : > { %v3138_v18 = vmul.f32 %v5492_v23, %v6366_v10 }
 0x75b   : > { %v3106_v28 = vpop.xlane.xlu1 %3105 }
 0x75c   : > { %v3100_v20 = vpop.xlane.xlu0 %3099 }
 0x75d   : > { %5495 = vrcp.f32 %v3100_v20 }
 0x75e   : > { %v5494_v51 = vpop.eup %5493 }
 0x75f   : > { %v3137_v22 = vmul.f32 %v5494_v51, %v6370_v58 }
 0x760   : > { %v2341_v35 = vpop.permute.xlu0 %2340  ;;  %v3103_v48 = vpop.xlane.xlu1 %3102 }
 0x761   : > { %5497 = vrcp.f32 %v3103_v48  ;;  %v3149_v11 = vpack.c.bf16 %v3138_v18, %v3137_v22  ;;  %v2497_v62 = vcombine.low %v2323_v8, %v2341_v35  ;;  %v2498_v27 = vcombine.high %v2323_v8, %v2341_v35 }
 0x762   : > { %5499 = vrcp.f32 %v3097_v21 }
 0x763   : > { %5197 = vmatprep.mubr.msk.bf16.mxu0 %vm3016_vm3, %v3149_v11  ;;  %v2505_v47 = vrot.slane %v2497_v62, %v6003_v42  ;;  %v2512_v38 = vrot.slane %v2498_v27, %v6003_v42  ;;  %5501 = vrcp.f32 %v3106_v28 }
 0x764   : > { %v2332_v55 = vpop.permute.xlu1 %2331 }
 0x765   : > { %v2481_v33 = vcombine.low %v5940_v14, %v2332_v55  ;;  %v2482_v26 = vcombine.high %v5940_v14, %v2332_v55 }
 0x767   : > { %v2489_v58 = vrot.slane %v2481_v33, %v6003_v42  ;;  %v2496_v10 = vrot.slane %v2482_v26, %v6003_v42  ;;  %v5496_v59 = vpop.eup %5495 }
 0x768   : > { %v3140_v56 = vmul.f32 %v5496_v59, %v6376_v46 }
 0x769   : > { %v2513_v40 = vcombine.low %v2489_v58, %v2505_v47  ;;  %v2514_v25 = vcombine.high %v2489_v58, %v2505_v47  ;;  %v2529_v43 = vcombine.low %v2496_v10, %v2512_v38  ;;  %v2530_v44 = vcombine.high %v2496_v10, %v2512_v38 }
 0x76b   : > { %v5498_v60 = vpop.eup %5497  ;;  %v2521_v30 = vrot.slane %v2513_v40, %v6010_v49  ;;  %v2528_v14 = vrot.slane %v2514_v25, %v6010_v49  ;;  %v2537_v32 = vrot.slane %v2529_v43, %v6010_v49  ;;  %v2544_v16 = vrot.slane %v2530_v44, %v6010_v49 }
 0x76c   : > { %v3141_v15 = vmul.f32 %v5498_v60, %v6384_v12  ;;  %v5500_v12 = vpop.eup %5499 }
 0x76d   : > { %v2685_v57 = vcombine.low %v2521_v30, %v2528_v14  ;;  %v4949_v29 = vcombine.high %v2521_v30, %v2528_v14  ;;  %v2701_v36 = vcombine.low %v2537_v32, %v2544_v16  ;;  %v4950_v54 = vcombine.high %v2537_v32, %v2544_v16  ;;  %v5502_v61 = vpop.eup %5501 }
 0x76e   : > { %v3151_v6 = vpack.c.bf16 %v3141_v15, %v3140_v56  ;;  %v3139_v51 = vmul.f32 %v5500_v12, %v6362_v5  ;;  %v3142_v22 = vmul.f32 %v5502_v61, %v6374_v41 }
 0x76f   : > { %v2692_v0 = vrot.slane %v2685_v57, %v6003_v42  ;;  %v2700_v19 = vrot.slane %v4949_v29, %v6003_v42  ;;  %v2708_v52 = vrot.slane %v2701_v36, %v6003_v42  ;;  %v2716_v63 = vrot.slane %v4950_v54, %v6003_v42  ;;  %v5416_v54 = vld [vmem:[%s5775_s22 + $0x18] sm:$0xff]  }
 0x770   : > { %5205 = vmatprep.mubr.msk.bf16.mxu1 %vm3016_vm3, %v3151_v6  ;;  %v3150_v5 = vpack.c.bf16 %v3139_v51, %v3139_v51  ;;  %v3152_v41 = vpack.c.bf16 %v3142_v22, %v3142_v22 }
 0x771   : > { %v2717_v50 = vcombine.low %v2692_v0, %v2700_v19  ;;  %v2733_v39 = vcombine.low %v2708_v52, %v2716_v63  ;;  %v2718_v46 = vcombine.high %v2692_v0, %v2700_v19  ;;  %v2734_v7 = vcombine.high %v2708_v52, %v2716_v63 }
 0x773   : > { %v2725_v8 = vrot.slane %v2717_v50, %v6010_v49  ;;  %v2741_v21 = vrot.slane %v2733_v39, %v6010_v49  ;;  %v2732_v23 = vrot.slane %v2718_v46, %v6010_v49  ;;  %v2748_v20 = vrot.slane %v2734_v7, %v6010_v49 }
 0x775   : > { %v2749_v13 = vcombine.low %v2725_v8, %v2741_v21  ;;  %v2750_v28 = vcombine.high %v2725_v8, %v2741_v21  ;;  %v2751_v62 = vcombine.low %v2732_v23, %v2748_v20  ;;  %v2752_v27 = vcombine.high %v2732_v23, %v2748_v20 }
 0x777   : > { %v2754_v18 = vpack.c.bf16 %v2749_v13, %v2749_v13  ;;  %v2756_v35 = vpack.c.bf16 %v2750_v28, %v2750_v28  ;;  %v2758_v55 = vpack.c.bf16 %v2751_v62, %v2751_v62  ;;  %v2760_v33 = vpack.c.bf16 %v2752_v27, %v2752_v27 }
 0x779   : > { %5293 = vmatprep.subr.msk.bf16.mxu0 %vm3163_vm4, %v2754_v18  ;;  %5294 = vmatprep.subr.msk.bf16.mxu1 %vm3163_vm4, %v2756_v35  ;;  %v3165_v48 = vsel %vm3163_vm4, %v2754_v18, 0  ;;  %v3222_v11 = vsel %vm3163_vm4, %v2756_v35, 0  ;;  %v3279_v26 = vsel %vm3163_vm4, %v2758_v55, 0  ;;  %v3336_v47 = vsel %vm3163_vm4, %v2760_v33, 0 }
 0x77a   : > { %5196 = vmatpush3.bf16.msra.mxu0 %v3165_v48  ;;  %5204 = vmatpush3.bf16.msra.mxu1 %v3222_v11 }
 0x77b   : > { %5209 = vmatprep.subr.bf16.mxu0 %v6423_v9  ;;  %5217 = vmatprep.subr.bf16.mxu1 %v6428_v31 }
 0x77d   : > { %5198 = vmatmul.mubr.msk.bf16.vlgmr.msra.gmra.mrb[12].mxu0 %vm3016_vm3, %v3150_v5  ;;  %5206 = vmatmul.mubr.msk.bf16.vlgmr.msra.gmra.mrb[16].mxu1 %vm3016_vm3, %v3152_v41 }
 0x77e   : > { %5210 = vmatpush3.bf16.msra.mxu0 %v6423_v9  ;;  %5218 = vmatpush3.bf16.msra.mxu1 %v6428_v31 }
 0x77f   : > { %5295 = vmatprep.subr.msk.bf16.mxu0 %vm3163_vm4, %v2758_v55  ;;  %5296 = vmatprep.subr.msk.bf16.mxu1 %vm3163_vm4, %v2760_v33 }
 0x782   : > { %5212 = vmatpush3.bf16.msra.mxu0 %v3279_v26  ;;  %5220 = vmatpush3.bf16.msra.mxu1 %v3336_v47 }
 0x791   : > { %v3112_v38 = vpop.xlane.xlu0 %3111 }
 0x792   : > { %5503 = vrcp.f32 %v3112_v38 }
 0x795   : > { %v3118_v58 = vpop.xlane.xlu0 %3117  ;;  %v3109_v10 = vpop.xlane.xlu1 %3108 }
 0x796   : > { %5505 = vrcp.f32 %v3109_v10 }
 0x797   : > { %5507 = vrcp.f32 %v3118_v58 }
 0x799   : > { %v3121_v59 = vpop.xlane.xlu0 %3120  ;;  %v3115_v9 = vpop.xlane.xlu1 %3114 }
 0x79a   : > { %5509 = vrcp.f32 %v3121_v59 }
 0x79b   : > { %5511 = vrcp.f32 %v3115_v9 }
 0x79c   : > { %v5504_v40 = vpop.eup %5503 }
 0x79d   : > { %v3124_v31 = vpop.xlane.xlu0 %3123  ;;  %v3144_v60 = vmul.f32 %v5504_v40, %v6441_v53 }
 0x79e   : > { %5513 = vrcp.f32 %v3124_v31 }
 0x7a0   : > { %v5506_v25 = vpop.eup %5505 }
 0x7a1   : > { %v5508_v43 = vpop.eup %5507  ;;  %v3143_v44 = vmul.f32 %v5506_v25, %v6443_v45 }
 0x7a2   : > { %v3146_v16 = vmul.f32 %v5508_v43, %v6447_v4  ;;  %v5413_v4 = vld [vmem:[%s5775_s22] sm:$0xff]  }
 0x7a3   : > { %v3153_v14 = vpack.c.bf16 %v3144_v60, %v3143_v44  ;;  %5225 = vmatprep.subr.bf16.mxu0 %v5413_v4 }
 0x7a4   : > { %v5510_v30 = vpop.eup %5509 }
 0x7a5   : > { %v5512_v32 = vpop.eup %5511  ;;  %v3147_v56 = vmul.f32 %v5510_v30, %v6455_v17  ;;  %5213 = vmatprep.mubr.msk.bf16.mxu0 %vm3016_vm3, %v3153_v14  ;;  %v5415_v17 = vld [vmem:[%s5775_s22 + $0x10] sm:$0xff]  }
 0x7a6   : > { %v3145_v15 = vmul.f32 %v5512_v32, %v6449_v37  ;;  %v5414_v37 = vld [vmem:[%s5775_s22 + $0x8] sm:$0xff]  }
 0x7a7   : > { %v3155_v57 = vpack.c.bf16 %v3147_v56, %v3146_v16 }
 0x7a8   : > { %v5514_v29 = vpop.eup %5513  ;;  %v3154_v45 = vpack.c.bf16 %v3145_v15, %v3145_v15 }
 0x7a9   : > { %v3148_v53 = vmul.f32 %v5514_v29, %v6461_v24  ;;  %5221 = vmatprep.mubr.msk.bf16.mxu1 %vm3016_vm3, %v3155_v57 }
 0x7aa   : > { %5214 = vmatmul.mubr.msk.bf16.vlgmr.msra.gmra.mrb[16].mxu0 %vm3016_vm3, %v3154_v45 }
 0x7ab   : > { %v3156_v36 = vpack.c.bf16 %v3148_v53, %v3148_v53  ;;  %5226 = vmatpush3.bf16.msra.mxu0 %v5413_v4 }
 0x7ac   : > { %5227 = vmatprep.subr.bf16.mxu0 %v5414_v37 }
 0x7ad   : > { %5222 = vmatmul.mubr.msk.bf16.vlgmr.msra.gmra.mrb[20].mxu1 %vm3016_vm3, %v3156_v36 }
 0x7ae   : > { %4163 = vmatprep.mubr.bf16.mxu1 %v5597_v34 }
 0x7af   : > { %5228 = vmatpush3.bf16.msra.mxu0 %v5414_v37 }
 0x7b0   : > { %5229 = vmatprep.subr.bf16.mxu0 %v5415_v17 }
 0x7b3   : > { %5230 = vmatpush3.bf16.msra.mxu0 %v5415_v17 }
 0x7b4   : > { %5231 = vmatprep.subr.bf16.mxu0 %v5416_v54 }
 0x7b7   : > { %5232 = vmatpush3.bf16.msra.mxu0 %v5416_v54 }
 0x850   : > { %v5199_v24 = vpop.f32.mrb[12].mxu0  ;;  %v5207_v6 = vpop.f32.mrb[16].mxu1 }
 0x851   : > { %v3201_v0 = vpop.f32.mrb[13].mxu0  ;;  %v3258_v19 = vpop.f32.mrb[17].mxu1 }
 0x852   : > { %v5200_v52 = vpop.f32.mrb[14].mxu0  ;;  %v5208_v63 = vpop.f32.mrb[18].mxu1 }
 0x853   : > { %v3204_v50 = vpop.f32.mrb[15].mxu0  ;;  %v3261_v39 = vpop.f32.mrb[19].mxu1 }
 0x87d   : > { %v5215_v46 = vpop.f32.mrb[16].mxu0 }
 0x87e   : > { %v3522_v7 = vcombine.low %v5199_v24, %v5215_v46  ;;  %v3523_v12 = vcombine.high %v5199_v24, %v5215_v46  ;;  %v3315_v8 = vpop.f32.mrb[17].mxu0  ;;  %v5417_v24 = vld [vmem:[%s5775_s22 + $0x20] sm:$0xff]  }
 0x87f   : > { %v3386_v21 = vcombine.low %v3201_v0, %v3315_v8  ;;  %v3387_v61 = vcombine.high %v3201_v0, %v3315_v8  ;;  %v5216_v13 = vpop.f32.mrb[18].mxu0  ;;  %5233 = vmatprep.subr.bf16.mxu0 %v5417_v24 }
 0x880   : > { %v3318_v28 = vpop.f32.mrb[19].mxu0  ;;  %v5223_v23 = vpop.f32.mrb[20].mxu1  ;;  %v3530_v27 = vrot.slane %v3522_v7, %v6003_v42  ;;  %v3537_v5 = vrot.slane %v3523_v12, %v6003_v42  ;;  %5234 = vmatpush3.bf16.msra.mxu0 %v5417_v24 }
 0x881   : > { %v3454_v20 = vcombine.low %v3204_v50, %v3318_v28  ;;  %v3455_v51 = vcombine.high %v3204_v50, %v3318_v28  ;;  %v3372_v22 = vpop.f32.mrb[21].mxu1  ;;  %v3538_v18 = vcombine.low %v5207_v6, %v5223_v23  ;;  %v3539_v35 = vcombine.high %v5207_v6, %v5223_v23 }
 0x882   : > { %v3402_v48 = vcombine.low %v3258_v19, %v3372_v22  ;;  %v3403_v11 = vcombine.high %v3258_v19, %v3372_v22  ;;  %v5224_v62 = vpop.f32.mrb[22].mxu1  ;;  %v3394_v41 = vrot.slane %v3386_v21, %v6003_v42  ;;  %v3401_v55 = vrot.slane %v3387_v61, %v6003_v42 }
 0x883   : > { %v3375_v33 = vpop.f32.mrb[23].mxu1  ;;  %v3546_v26 = vrot.slane %v3538_v18, %v6003_v42  ;;  %v3553_v47 = vrot.slane %v3539_v35, %v6003_v42  ;;  %v3462_v10 = vrot.slane %v3454_v20, %v6003_v42  ;;  %v3469_v59 = vrot.slane %v3455_v51, %v6003_v42 }
 0x884   : > { %v3410_v38 = vrot.slane %v3402_v48, %v6003_v42  ;;  %v3417_v58 = vrot.slane %v3403_v11, %v6003_v42  ;;  %v3470_v9 = vcombine.low %v3261_v39, %v3375_v33  ;;  %v3471_v31 = vcombine.high %v3261_v39, %v3375_v33 }
 0x885   : > { %v3554_v40 = vcombine.low %v3530_v27, %v3546_v26  ;;  %v3555_v25 = vcombine.high %v3530_v27, %v3546_v26  ;;  %v3570_v43 = vcombine.low %v3537_v5, %v3553_v47  ;;  %v3571_v44 = vcombine.high %v3537_v5, %v3553_v47 }
 0x886   : > { %v3418_v60 = vcombine.low %v3394_v41, %v3410_v38  ;;  %v3419_v30 = vcombine.high %v3394_v41, %v3410_v38  ;;  %v3434_v14 = vcombine.low %v3401_v55, %v3417_v58  ;;  %v3435_v32 = vcombine.high %v3401_v55, %v3417_v58 }
 0x887   : > { %v3562_v16 = vrot.slane %v3554_v40, %v6010_v49  ;;  %v3569_v56 = vrot.slane %v3555_v25, %v6010_v49  ;;  %v3578_v15 = vrot.slane %v3570_v43, %v6010_v49  ;;  %v3585_v57 = vrot.slane %v3571_v44, %v6010_v49 }
 0x888   : > { %v3426_v29 = vrot.slane %v3418_v60, %v6010_v49  ;;  %v3433_v45 = vrot.slane %v3419_v30, %v6010_v49  ;;  %v3442_v53 = vrot.slane %v3434_v14, %v6010_v49  ;;  %v3449_v36 = vrot.slane %v3435_v32, %v6010_v49 }
 0x889   : > { %v3726_v4 = vcombine.low %v3562_v16, %v3569_v56  ;;  %v4971_v37 = vcombine.high %v3562_v16, %v3569_v56  ;;  %v3742_v17 = vcombine.low %v3578_v15, %v3585_v57  ;;  %v4972_v54 = vcombine.high %v3578_v15, %v3585_v57 }
 0x88a   : > { %v3590_v6 = vcombine.low %v3426_v29, %v3433_v45  ;;  %v4967_v0 = vcombine.high %v3426_v29, %v3433_v45  ;;  %v3606_v19 = vcombine.low %v3442_v53, %v3449_v36  ;;  %v4968_v52 = vcombine.high %v3442_v53, %v3449_v36  ;;  %v5419_v53 = vld [vmem:[%s5775_s22 + $0x30] sm:$0xff]  }
 0x88b   : > { %v3478_v63 = vrot.slane %v3470_v9, %v6003_v42  ;;  %v3485_v50 = vrot.slane %v3471_v31, %v6003_v42  ;;  %v3733_v39 = vrot.slane %v3726_v4, %v6003_v42  ;;  %v3741_v46 = vrot.slane %v4971_v37, %v6003_v42  ;;  %v5418_v31 = vld [vmem:[%s5775_s22 + $0x28] sm:$0xff]  }
 0x88c   : > { %v3597_v7 = vrot.slane %v3590_v6, %v6003_v42  ;;  %v3605_v12 = vrot.slane %v4967_v0, %v6003_v42  ;;  %v3613_v8 = vrot.slane %v3606_v19, %v6003_v42  ;;  %v3621_v21 = vrot.slane %v4968_v52, %v6003_v42  ;;  %5235 = vmatprep.subr.bf16.mxu0 %v5418_v31  ;;  %v5420_v19 = vld [vmem:[%s5775_s22 + $0x38] sm:$0xff]  }
 0x88d   : > { %v3486_v61 = vcombine.low %v3462_v10, %v3478_v63  ;;  %v3487_v13 = vcombine.high %v3462_v10, %v3478_v63  ;;  %v3502_v28 = vcombine.low %v3469_v59, %v3485_v50  ;;  %v3503_v23 = vcombine.high %v3469_v59, %v3485_v50  ;;  %5236 = vmatpush3.bf16.msra.mxu0 %v5418_v31  ;;  %v4981_v31 = vld [vmem:[%s6794_s27] ss:$0 sm:$0xff] }
 0x88e   : > { %v3749_v20 = vrot.slane %v3742_v17, %v6003_v42  ;;  %v3757_v51 = vrot.slane %v4972_v54, %v6003_v42  ;;  %v3759_v22 = vcombine.high %v3733_v39, %v3741_v46  ;;  %v3758_v18 = vcombine.low %v3733_v39, %v3741_v46  ;;  %5237 = vmatprep.subr.bf16.mxu0 %v5419_v53 }
 0x88f   : > { %v3494_v35 = vrot.slane %v3486_v61, %v6010_v49  ;;  %v3501_v48 = vrot.slane %v3487_v13, %v6010_v49  ;;  %v3510_v11 = vrot.slane %v3502_v28, %v6010_v49  ;;  %v3517_v62 = vrot.slane %v3503_v23, %v6010_v49 }
 0x890   : > { %v3773_v27 = vrot.slane %v3759_v22, %v6010_v49  ;;  %v3775_v5 = vcombine.high %v3749_v20, %v3757_v51  ;;  %v6555_v41 = vrot.slane %v3758_v18, %v6010_v49  ;;  %v3774_v55 = vcombine.low %v3749_v20, %v3757_v51 }
 0x891   : > { %v3658_v33 = vcombine.low %v3494_v35, %v3501_v48  ;;  %v4969_v26 = vcombine.high %v3494_v35, %v3501_v48  ;;  %v3674_v47 = vcombine.low %v3510_v11, %v3517_v62  ;;  %v4970_v38 = vcombine.high %v3510_v11, %v3517_v62  ;;  %5238 = vmatpush3.bf16.msra.mxu0 %v5419_v53  ;;  %v5424_v53 = vld [vmem:[%s5799_s29 + $0x10] ss:$8 sps:$4 sm:$0xff]  }
 0x892   : > { %v3789_v58 = vrot.slane %v3775_v5, %v6010_v49  ;;  %v3782_v10 = vrot.slane %v3774_v55, %v6010_v49  ;;  %v3622_v59 = vcombine.low %v3597_v7, %v3605_v12  ;;  %v3638_v9 = vcombine.low %v3613_v8, %v3621_v21  ;;  %5239 = vmatprep.subr.bf16.mxu0 %v5420_v19 }
 0x893   : > { %v3665_v40 = vrot.slane %v3658_v33, %v6003_v42  ;;  %v3673_v25 = vrot.slane %v4969_v26, %v6003_v42  ;;  %v3681_v43 = vrot.slane %v3674_v47, %v6003_v42  ;;  %v3689_v44 = vrot.slane %v4970_v38, %v6003_v42 }
 0x894   : > { %v3792_v60 = vcombine.low %v3773_v27, %v3789_v58  ;;  %v3791_v30 = vcombine.high %v6555_v41, %v3782_v10  ;;  %v3793_v14 = vcombine.high %v3773_v27, %v3789_v58  ;;  %v3630_v32 = vrot.slane %v3622_v59, %v6010_v49 }
 0x895   : > { %v3646_v16 = vrot.slane %v3638_v9, %v6010_v49  ;;  %v3690_v56 = vcombine.low %v3665_v40, %v3673_v25  ;;  %v3706_v15 = vcombine.low %v3681_v43, %v3689_v44  ;;  %v3623_v57 = vcombine.high %v3597_v7, %v3605_v12  ;;  %5240 = vmatpush3.bf16.msra.mxu0 %v5420_v19 }
 0x896   : > { %3813 = vrot.lane.b32.xlu1 %v3792_v60, %s5598_s23  ;;  %3801 = vrot.lane.b32.xlu0 %v3791_v30, %s5600_s21  ;;  %v3639_v42 = vcombine.high %v3613_v8, %v3621_v21  ;;  %v3691_v29 = vcombine.high %v3665_v40, %v3673_v25  ;;  %v3707_v45 = vcombine.high %v3681_v43, %v3689_v44  ;;  %v5533_v25 = vld [vmem:[#allocation2] sm:$0xff] }
 0x897   : > { %v3654_v36 = vcombine.low %v3630_v32, %v3646_v16  ;;  %v3655_v4 = vcombine.high %v3630_v32, %v3646_v16  ;;  %v3698_v37 = vrot.slane %v3690_v56, %v6010_v49  ;;  %v3714_v17 = vrot.slane %v3706_v15, %v6010_v49  ;;  %v5535_v16 = vld [vmem:[#allocation2 + $0x10] sm:$0xff] }
 0x898   : > { %v3637_v54 = vrot.slane %v3623_v57, %v6010_v49  ;;  %v3653_v24 = vrot.slane %v3639_v42, %v6010_v49  ;;  %v3705_v6 = vrot.slane %v3691_v29, %v6010_v49  ;;  %v3721_v0 = vrot.slane %v3707_v45, %v6010_v49  ;;  %v5421_v42 = vld [vmem:[%s5799_s29] ss:$8 sps:$4 sm:$0xff]   ;;  %v5423_v29 = vld [vmem:[%s5799_s29 + $0x4] ss:$8 sps:$4 sm:$0xff]   ;;  %v5426_v45 = vld [vmem:[%s5799_s29 + $0x14] ss:$8 sps:$4 sm:$0xff]  }
 0x899   : > { %v3723_v52 = vcombine.high %v3698_v37, %v3714_v17  ;;  %v3722_v63 = vcombine.low %v3698_v37, %v3714_v17  ;;  %v3790_v50 = vcombine.low %v6555_v41, %v3782_v10  ;;  %4131 = vmatprep.subr.bf16.mxu1 %v5423_v29  ;;  %v5450_v29 = vld [vmem:[%s5809_s20 + $0x10] sm:$0xff]  }
 0x89a   : > { %3825 = vrot.lane.b32.xlu0 %v3793_v14, %s5599_s1  ;;  %v3656_v39 = vcombine.low %v3637_v54, %v3653_v24  ;;  %v3724_v46 = vcombine.low %v3705_v6, %v3721_v0  ;;  %v3657_v7 = vcombine.high %v3637_v54, %v3653_v24  ;;  %v3725_v12 = vcombine.high %v3705_v6, %v3721_v0  ;;  %v5534_v14 = vld [vmem:[#allocation2 + $0x8] sm:$0xff] }
 0x89b   : > { %v5366_v8 = vpack.i.bf16 %v3723_v52, %v3655_v4  ;;  %4132 = vmatpush1.bf16.msra.mxu1 %v5421_v42  ;;  %v5449_v42 = vld [vmem:[%s5809_s20 + $0x50] sm:$0xff]  }
 0x89c   : > { %v5371_v21 = vpack.i.bf16 %v3724_v46, %v3656_v39  ;;  %v5376_v61 = vpack.i.bf16 %v3725_v12, %v3657_v7  ;;  %4133 = vmatprep.subr.bf16.mxu1 %v5426_v45  ;;  %v5427_v39 = vld [vmem:[%s5799_s29 + $0x20] ss:$8 sps:$4 sm:$0xff]   ;;  %v5429_v46 = vld [vmem:[%s5799_s29 + $0x24] ss:$8 sps:$4 sm:$0xff]   ;;  %v5432_v7 = vld [vmem:[%s5799_s29 + $0x34] ss:$8 sps:$4 sm:$0xff]  }
 0x89d   : > { %5367 = vrot.lane.b32.xlu1 %v5366_v8, %s5600_s21  ;;  %v5430_v12 = vld [vmem:[%s5799_s29 + $0x30] ss:$8 sps:$4 sm:$0xff]   ;;  %v5435_v8 = vld [vmem:[%s5799_s29 + $0x44] ss:$8 sps:$4 sm:$0xff]  }
 0x89e   : > { %v5452_v45 = vld [vmem:[%s5809_s20 + $0x18] sm:$0xff]  }
 0x89f   : > { %4134 = vmatpush1.bf16.msra.mxu1 %v5424_v53  ;;  %v5453_v53 = vld [vmem:[%s5809_s20 + $0x60] sm:$0xff]  }
 0x8a0   : > { %4135 = vmatprep.subr.bf16.mxu1 %v5429_v46 }
 0x8a1   : > { %5372 = vrot.lane.b32.xlu1 %v5371_v21, %s5598_s23  ;;  %v5433_v21 = vld [vmem:[%s5799_s29 + $0x40] ss:$8 sps:$4 sm:$0xff]  }
 0x8a3   : > { %4136 = vmatpush1.bf16.msra.mxu1 %v5427_v39 }
 0x8a4   : > { %4137 = vmatprep.subr.bf16.mxu1 %v5432_v7 }
 0x8a5   : > { %5377 = vrot.lane.b32.xlu1 %v5376_v61, %s5599_s1  ;;  %v5438_v61 = vld [vmem:[%s5799_s29 + $0x54] ss:$8 sps:$4 sm:$0xff]  }
 0x8a7   : > { %4138 = vmatpush1.bf16.msra.mxu1 %v5430_v12 }
 0x8a8   : > { %4139 = vmatprep.subr.bf16.mxu1 %v5435_v8 }
 0x8ab   : > { %4140 = vmatpush1.bf16.msra.mxu1 %v5433_v21 }
 0x8ac   : > { %4141 = vmatprep.subr.bf16.mxu1 %v5438_v61 }
 0x908   : > { %v3814_v49 = vpop.permute.xlu1 %3813  ;;  %v3802_v28 = vpop.permute.xlu0 %3801 }
 0x909   : > { %v3832_v20 = vsel %vm2761_vm1, %v3790_v50, %v3802_v28  ;;  %v5439_v28 = vld [vmem:[%s5799_s29 + $0x60] ss:$8 sps:$4 sm:$0xff]  }
 0x90a   : > { %v3836_v11 = vsel %vm3833_vm5, %v3832_v20, %v3814_v49  ;;  %v5436_v49 = vld [vmem:[%s5799_s29 + $0x50] ss:$8 sps:$4 sm:$0xff]  }
 0x90b   : > { %4142 = vmatpush1.bf16.msra.mxu1 %v5436_v49  ;;  %v5442_v20 = vld [vmem:[%s5799_s29 + $0x70] ss:$8 sps:$4 sm:$0xff]  }
 0x90c   : > { %v3826_v48 = vpop.permute.xlu0 %3825 }
 0x90d   : > { %v3840_v33 = vsel %vm3837_vm6, %v3836_v11, %v3826_v48 }
 0x90e   : > { %v3842_v59 = vpack.c.bf16 %v3840_v33, %v3840_v33 }
 0x90f   : > { %v5368_v13 = vpop.permute.xlu1 %5367 }
 0x910   : > { %v5370_v51 = vunpack.i.h.bf16 %v5368_v13  ;;  %v5369_v22 = vunpack.i.l.bf16 %v5368_v13  ;;  %v5441_v13 = vld [vmem:[%s5799_s29 + $0x64] ss:$8 sps:$4 sm:$0xff]  }
 0x911   : > { %4143 = vmatprep.subr.bf16.mxu1 %v5441_v13 }
 0x912   : > { %v3830_v27 = vsel %vm2761_vm1, %v3654_v36, %v5369_v22  ;;  %v3831_v5 = vsel %vm2761_vm1, %v3722_v63, %v5370_v51  ;;  %4144 = vmatpush1.bf16.msra.mxu1 %v5439_v28 }
 0x913   : > { %v5373_v23 = vpop.permute.xlu1 %5372 }
 0x914   : > { %v5375_v18 = vunpack.i.h.bf16 %v5373_v23  ;;  %v5374_v35 = vunpack.i.l.bf16 %v5373_v23  ;;  %v5444_v23 = vld [vmem:[%s5799_s29 + $0x74] ss:$8 sps:$4 sm:$0xff]   ;;  %s6795_s29 = scalar_lea.vmem %s6741_s11, %s5749_s0  ;;  %s6797_s0 = sld [smem:[#allocation3_spill]] }
 0x915   : > { %4145 = vmatprep.subr.bf16.mxu1 %v5444_v23 }
 0x916   : > { %v3834_v26 = vsel %vm3833_vm5, %v3830_v27, %v5374_v35  ;;  %v3835_v47 = vsel %vm3833_vm5, %v3831_v5, %v5375_v18  ;;  %4146 = vmatpush1.bf16.msra.mxu1 %v5442_v20 }
 0x917   : > { %v5378_v62 = vpop.permute.xlu1 %5377 }
 0x918   : > { %v5380_v41 = vunpack.i.h.bf16 %v5378_v62  ;;  %v5379_v55 = vunpack.i.l.bf16 %v5378_v62 }
 0x91a   : > { %v3838_v38 = vsel %vm3837_vm6, %v3834_v26, %v5379_v55  ;;  %v3839_v58 = vsel %vm3837_vm6, %v3835_v47, %v5380_v41  ;;  %v4982_v55 = vld [vmem:[%s6795_s29] ss:$0 sm:$0xff]  ;;  %p5017_p8 = scmp.ne.s32.totalorder %s6797_s0, 1 }
 0x91b   : > { %v3841_v10 = vpack.c.bf16 %v3839_v58, %v3838_v38  ;;  %v4983_v58 = vld [vmem:[%s6796_s17] ss:$0 sm:$0xff]  ;;  %s6798_s7 = sld [smem:[#allocation18_spill]] (!%p5017_p8)  ;;  %vm5604_vm7 = vmmov (!%p5017_p8), 0   ;;  %s6799_s0 = sld [smem:[#allocation20_spill]] (!%p5017_p8) }
 0x91c   : > { %s6801_s5 = sld [smem:[#allocation21_spill]] (!%p5017_p8) }
 0x91d   : > { %5241 = vmatprep.mubr.bf16.mxu0 %v3841_v10 }
 0x91e   : > { %5242 = vmatmul.mubr.bf16.vlgmr.msra.gmra.mrb[20].mxu0 %v3842_v59 }
 0x9f1   : > { %v5243_v9 = vpop.f32.mrb[20].mxu0 }
 0x9f2   : > { %v3941_v40 = vpop.f32.mrb[21].mxu0  ;;  %v3957_v56 = vadd.f32 %v5535_v16, %v5243_v9  ;;  %v5447_v16 = vld [vmem:[%s5809_s20 + $0x48] sm:$0xff]  }
 0x9f3   : > { %v3955_v43 = vadd.f32 %v5533_v25, %v3941_v40  ;;  %v5244_v44 = vpop.f32.mrb[22].mxu0 }
 0x9f4   : > { %v3944_v60 = vpop.f32.mrb[23].mxu0  ;;  %v6596_v57 = vadd.f32 %v4981_v31, %v3957_v56  ;;  %v5448_v56 = vld [vmem:[%s5809_s20 + $0x8] sm:$0xff]  }
 0x9f5   : > { %v6590_v30 = vadd.f32 %v4981_v31, %v3955_v43  ;;  %v3956_v32 = vadd.f32 %v5534_v14, %v3944_v60  ;;  %v5445_v14 = vld [vmem:[%s5809_s20 + $0x40] sm:$0xff]  }
 0x9f6   : > { %5095 = vmatprep.subr.bf16.mxu0 %v5445_v14 }
 0x9f7   : > { %v6592_v15 = vadd.f32 %v4981_v31, %v3956_v32  ;;  %3970 = vadd.xlane.f32.xlu1 %v6590_v30  ;;  %v5446_v32 = vld [vmem:[%s5809_s20] sm:$0xff]  }
 0x9f8   : > { %5096 = vmatpush3.bf16.msra.mxu0 %v5446_v32 }
 0x9f9   : > { %3972 = vadd.xlane.f32.xlu0 %v6592_v15  ;;  %5097 = vmatprep.subr.bf16.mxu0 %v5447_v16 }
 0x9fc   : > { %5098 = vmatpush3.bf16.msra.mxu0 %v5448_v56 }
 0x9fd   : > { %3974 = vadd.xlane.f32.xlu0 %v6596_v57  ;;  %5099 = vmatprep.subr.bf16.mxu0 %v5449_v42 }
 0xa00   : > { %5100 = vmatpush3.bf16.msra.mxu0 %v5450_v29 }
 0xa84   : > { %v3971_v36 = vpop.xlane.xlu1 %3970 }
 0xa85   : > { %v3976_v4 = vmul.f32 0.0078125, %v3971_v36  ;;  %v5454_v36 = vld [vmem:[%s5809_s20 + $0x20] sm:$0xff]  }
 0xa86   : > { %v3973_v37 = vpop.xlane.xlu0 %3972 }
 0xa87   : > { %v3979_v17 = vsub.f32 %v6590_v30, %v3976_v4  ;;  %v3977_v54 = vmul.f32 0.0078125, %v3973_v37  ;;  %v5455_v4 = vld [vmem:[%s5809_s20 + $0x68] sm:$0xff]  }
 0xa88   : > { %v5456_v37 = vld [vmem:[%s5809_s20 + $0x28] sm:$0xff]  }
 0xa89   : > { %v3980_v24 = vsub.f32 %v6592_v15, %v3977_v54  ;;  %v3982_v6 = vmul.f32 %v3979_v17, %v3979_v17  ;;  %v5458_v54 = vld [vmem:[%s5809_s20 + $0x30] sm:$0xff]  }
 0xa8a   : > { %v3975_v0 = vpop.xlane.xlu0 %3974 }
 0xa8b   : > { %v3978_v19 = vmul.f32 0.0078125, %v3975_v0  ;;  %3985 = vadd.xlane.f32.xlu0 %v3982_v6  ;;  %v3983_v52 = vmul.f32 %v3980_v24, %v3980_v24  ;;  %v5460_v6 = vld [vmem:[%s5809_s20 + $0x38] sm:$0xff]   ;;  %v4039_v0 = vld [vmem:[%s5804_s26] sm:$0x3]  ;;  %s6800_s26 = sld [smem:[#allocation19_spill]] (!%p5017_p8) }
 0xa8d   : > { %v3981_v63 = vsub.f32 %v6596_v57, %v3978_v19  ;;  %3987 = vadd.xlane.f32.xlu1 %v3983_v52  ;;  %v4044_v19 = vrot.slane %v4039_v0, %v1180_v2  ;;  %v4048_v52 = vrot.slane %v4039_v0, %v1184_v3 }
 0xa8f   : > { %v3984_v50 = vmul.f32 %v3981_v63, %v3981_v63 }
 0xa91   : > { %3989 = vadd.xlane.f32.xlu0 %v3984_v50 }
 0xb18   : > { %v3986_v51 = vpop.xlane.xlu0 %3985 }
 0xb19   : > { %v3991_v22 = vmul.f32 0.0078125, %v3986_v51 }
 0xb1a   : > { %v3988_v18 = vpop.xlane.xlu1 %3987 }
 0xb1b   : > { %v3994_v35 = vadd.f32 1e-05, %v3991_v22  ;;  %v3992_v48 = vmul.f32 0.0078125, %v3988_v18 }
 0xb1d   : > { %5515 = vrsqrt.f32 %v3994_v35  ;;  %v3995_v11 = vadd.f32 1e-05, %v3992_v48 }
 0xb1e   : > { %v3990_v62 = vpop.xlane.xlu0 %3989 }
 0xb1f   : > { %5517 = vrsqrt.f32 %v3995_v11  ;;  %v3993_v27 = vmul.f32 0.0078125, %v3990_v62 }
 0xb21   : > { %v3996_v5 = vadd.f32 1e-05, %v3993_v27 }
 0xb23   : > { %5519 = vrsqrt.f32 %v3996_v5 }
 0xb27   : > { %v5516_v41 = vpop.eup %5515 }
 0xb28   : > { %v4000_v33 = vmul.f32 %v5516_v41, %v3979_v17  ;;  %v5457_v17 = vld [vmem:[%s5809_s20 + $0x70] sm:$0xff]  }
 0xb29   : > { %v5518_v26 = vpop.eup %5517 }
 0xb2a   : > { %v4001_v47 = vmul.f32 %v5518_v26, %v3980_v24  ;;  %v4009_v38 = vmul.f32 %v4982_v55, %v4000_v33  ;;  %v5459_v24 = vld [vmem:[%s5809_s20 + $0x78] sm:$0xff]  }
 0xb2c   : > { %v4010_v10 = vmul.f32 %v4982_v55, %v4001_v47  ;;  %v4018_v9 = vadd.f32 %v4983_v58, %v4009_v38 }
 0xb2d   : > { %v5520_v59 = vpop.eup %5519 }
 0xb2e   : > { %v4019_v31 = vadd.f32 %v4983_v58, %v4010_v10  ;;  %v4002_v40 = vmul.f32 %v5520_v59, %v3981_v63 }
 0xb30   : > { %v4021_v25 = vpack.c.bf16 %v4019_v31, %v4018_v9  ;;  %v4011_v43 = vmul.f32 %v4982_v55, %v4002_v40 }
 0xb32   : > { %4164 = vmatmul.mubr.bf16.vlgmr.msra.gmra.mrb[24].mxu1 %v4021_v25  ;;  %v4020_v44 = vadd.f32 %v4983_v58, %v4011_v43 }
 0xb33   : > { %4173 = vmatprep.mubr.bf16.mxu1 %v5597_v34  ;;  %v5451_v34 = vld [vmem:[%s5809_s20 + $0x58] sm:$0xff]  }
 0xb34   : > { %v4022_v60 = vpack.c.bf16 %v4020_v44, %v4020_v44  ;;  %5101 = vmatprep.subr.bf16.mxu0 %v5451_v34 }
 0xb35   : > { %5102 = vmatpush3.bf16.msra.mxu0 %v5452_v45 }
 0xb36   : > { %5103 = vmatprep.subr.bf16.mxu0 %v5453_v53 }
 0xb39   : > { %5104 = vmatpush3.bf16.msra.mxu0 %v5454_v36 }
 0xb3a   : > { %4174 = vmatmul.mubr.bf16.gmra.mrb[28].mxu1 %v4022_v60  ;;  %5105 = vmatprep.subr.bf16.mxu0 %v5455_v4 }
 0xb3d   : > { %5106 = vmatpush3.bf16.msra.mxu0 %v5456_v37 }
 0xb3e   : > { %5107 = vmatprep.subr.bf16.mxu0 %v5457_v17 }
 0xb41   : > { %5108 = vmatpush3.bf16.msra.mxu0 %v5458_v54 }
 0xb42   : > { %5109 = vmatprep.subr.bf16.mxu0 %v5459_v24 }
 0xb45   : > { %5110 = vmatpush3.bf16.msra.mxu0 %v5460_v6 }
 0xc05   : > { %v4165_v63 = vpop.f32.mrb[24].mxu1 }
 0xc06   : > { %v4166_v50 = vadd.f32 %v4165_v63, %v4044_v19  ;;  %v4167_v39 = vpop.f32.mrb[25].mxu1 }
 0xc07   : > { %v4168_v46 = vadd.f32 %v4167_v39, %v4048_v52  ;;  %v4169_v7 = vpop.f32.mrb[26].mxu1 }
 0xc08   : > { %v4182_v12 = vmul.f32 %v4166_v50, %v4166_v50  ;;  %v4170_v8 = vadd.f32 %v4169_v7, %v4044_v19  ;;  %v4171_v21 = vpop.f32.mrb[27].mxu1 }
 0xc09   : > { %v4183_v61 = vmul.f32 %v4168_v46, %v4168_v46  ;;  %v4172_v49 = vadd.f32 %v4171_v21, %v4048_v52 }
 0xc0a   : > { %v4188_v13 = vmul.f32 %v4182_v12, %v4166_v50  ;;  %v4184_v28 = vmul.f32 %v4170_v8, %v4170_v8 }
 0xc0b   : > { %v4189_v23 = vmul.f32 %v4183_v61, %v4168_v46  ;;  %v4185_v20 = vmul.f32 %v4172_v49, %v4172_v49 }
 0xc0c   : > { %v4194_v51 = vmul.f32 0.044715, %v4188_v13  ;;  %v4190_v22 = vmul.f32 %v4184_v28, %v4170_v8 }
 0xc0d   : > { %v4195_v2 = vmul.f32 0.044715, %v4189_v23  ;;  %v4191_v18 = vmul.f32 %v4185_v20, %v4172_v49  ;;  %v4175_v1 = vpop.f32.mrb[28].mxu1 }
 0xc0e   : > { %v4200_v3 = vadd.f32 %v4194_v51, %v4166_v50  ;;  %v4196_v35 = vmul.f32 0.044715, %v4190_v22  ;;  %v4176_v48 = vadd.f32 %v4175_v1, %v4044_v19  ;;  %v4177_v11 = vpop.f32.mrb[29].mxu1  ;;  %v5016_v22 = vld [vmem:[%s861_s2] ss:$0 sm:$0xff] }
 0xc0f   : > { %v4201_v62 = vadd.f32 %v4195_v2, %v4168_v46  ;;  %v4197_v27 = vmul.f32 0.044715, %v4191_v18  ;;  %v4178_v5 = vadd.f32 %v4177_v11, %v4048_v52  ;;  %v4179_v41 = vpop.f32.mrb[30].mxu1 }
 0xc10   : > { %v4206_v55 = vmul.f32 0.7978846, %v4200_v3  ;;  %v4202_v33 = vadd.f32 %v4196_v35, %v4170_v8  ;;  %v4186_v26 = vmul.f32 %v4176_v48, %v4176_v48  ;;  %v4180_v47 = vpop.f32.mrb[31].mxu1 }
 0xc11   : > { %v4207_v38 = vmul.f32 0.7978846, %v4201_v62  ;;  %v4203_v58 = vadd.f32 %v4197_v27, %v4172_v49  ;;  %v4187_v10 = vmul.f32 %v4178_v5, %v4178_v5  ;;  %v5539_v47 = vld [vmem:[%s6798_s7 + $0x18] sm:$0xff] (!%p5017_p8)  }
 0xc12   : > { %5521 = vtanh.f32 %v4206_v55  ;;  %v4208_v59 = vmul.f32 0.7978846, %v4202_v33  ;;  %v4192_v9 = vmul.f32 %v4186_v26, %v4176_v48  ;;  %v5537_v26 = vld [vmem:[%s6798_s7 + $0x8] sm:$0xff] (!%p5017_p8)  }
 0xc13   : > { %5523 = vtanh.f32 %v4207_v38  ;;  %v4209_v31 = vmul.f32 0.7978846, %v4203_v58  ;;  %v4193_v40 = vmul.f32 %v4187_v10, %v4178_v5  ;;  %v5540_v38 = vld [vmem:[%s6798_s7 + $0x20] sm:$0xff] (!%p5017_p8)   ;;  %v5541_v58 = vld [vmem:[%s6798_s7 + $0x28] sm:$0xff] (!%p5017_p8)   ;;  %v5542_v10 = vld [vmem:[%s6798_s7 + $0x30] sm:$0xff] (!%p5017_p8)  }
 0xc14   : > { %5525 = vtanh.f32 %v4208_v59  ;;  %v4198_v25 = vmul.f32 0.044715, %v4192_v9  ;;  %v5543_v59 = vld [vmem:[%s6798_s7 + $0x38] sm:$0xff] (!%p5017_p8)  }
 0xc15   : > { %5527 = vtanh.f32 %v4209_v31  ;;  %v4199_v43 = vmul.f32 0.044715, %v4193_v40  ;;  %v5544_v31 = vld [vmem:[%s6799_s0] sm:$0xff] (!%p5017_p8)   ;;  %v5545_v40 = vld [vmem:[%s6799_s0 + $0x8] sm:$0xff] (!%p5017_p8)  }
 0xc16   : > { %v4204_v44 = vadd.f32 %v4198_v25, %v4176_v48  ;;  %v5546_v25 = vld [vmem:[%s6799_s0 + $0x10] sm:$0xff] (!%p5017_p8)  }
 0xc17   : > { %v4205_v60 = vadd.f32 %v4199_v43, %v4178_v5  ;;  %v5547_v43 = vld [vmem:[%s6799_s0 + $0x18] sm:$0xff] (!%p5017_p8)  }
 0xc18   : > { %v4210_v14 = vmul.f32 0.7978846, %v4204_v44  ;;  %v5548_v44 = vld [vmem:[%s6799_s0 + $0x20] sm:$0xff] (!%p5017_p8)  }
 0xc19   : > { %v4211_v32 = vmul.f32 0.7978846, %v4205_v60  ;;  %v5549_v60 = vld [vmem:[%s6799_s0 + $0x28] sm:$0xff] (!%p5017_p8)  }
 0xc1a   : > { %5529 = vtanh.f32 %v4210_v14  ;;  %v5550_v14 = vld [vmem:[%s6799_s0 + $0x30] sm:$0xff] (!%p5017_p8)  }
 0xc1b   : > { %5531 = vtanh.f32 %v4211_v32  ;;  %v5551_v32 = vld [vmem:[%s6799_s0 + $0x38] sm:$0xff] (!%p5017_p8)  }
 0xc1c   : > { %v5522_v16 = vpop.eup %5521 }
 0xc1d   : > { %v5524_v56 = vpop.eup %5523  ;;  %v4218_v42 = vadd.f32 1.0, %v5522_v16  ;;  %v5018_v16 = vld [vmem:[%s6800_s26] ss:$0 sm:$0xff] (!%p5017_p8) }
 0xc1e   : > { %v5526_v29 = vpop.eup %5525  ;;  %v4219_v34 = vadd.f32 1.0, %v5524_v56 }
 0xc1f   : > { %v5528_v45 = vpop.eup %5527  ;;  %v4224_v53 = vmul.f32 0.5, %v4218_v42  ;;  %v4220_v36 = vadd.f32 1.0, %v5526_v29 }
 0xc20   : > { %v4221_v4 = vadd.f32 1.0, %v5528_v45  ;;  %v4225_v37 = vmul.f32 0.5, %v4219_v34 }
 0xc21   : > { %v4226_v17 = vmul.f32 0.5, %v4220_v36  ;;  %v4230_v24 = vmul.f32 %v4224_v53, %v4166_v50 }
 0xc22   : > { %v4227_v54 = vmul.f32 0.5, %v4221_v4  ;;  %v4231_v19 = vmul.f32 %v4225_v37, %v4168_v46 }
 0xc23   : > { %v4232_v6 = vmul.f32 %v4226_v17, %v4170_v8 }
 0xc24   : > { %v5530_v0 = vpop.eup %5529  ;;  %v4233_v52 = vmul.f32 %v4227_v54, %v4172_v49 }
 0xc25   : > { %v5532_v63 = vpop.eup %5531  ;;  %v4236_v39 = vpack.c.bf16 %v4232_v6, %v4230_v24  ;;  %v4222_v7 = vadd.f32 1.0, %v5530_v0 }
 0xc26   : > { %v4237_v12 = vpack.c.bf16 %v4233_v52, %v4231_v19  ;;  %v4223_v21 = vadd.f32 1.0, %v5532_v63 }
 0xc27   : > { %v4228_v61 = vmul.f32 0.5, %v4222_v7 }
 0xc28   : > { %4400 = vmatprep.mubr.bf16.mxu0 %v4237_v12  ;;  %v4229_v13 = vmul.f32 0.5, %v4223_v21 }
 0xc29   : > { %4401 = vmatmul.mubr.bf16.vlgmr.msra.gmra.mrb[24].mxu0 %v4236_v39  ;;  %v4234_v23 = vmul.f32 %v4228_v61, %v4176_v48 }
 0xc2a   : > { %v4235_v28 = vmul.f32 %v4229_v13, %v4178_v5 }
 0xc2b   : > { %v4238_v51 = vpack.c.bf16 %v4234_v23, %v4234_v23 }
 0xc2c   : > { %v4239_v20 = vpack.c.bf16 %v4235_v28, %v4235_v28 }
 0xc2e   : > { %4408 = vmatprep.mubr.bf16.mxu0 %v4239_v20  ;;  %v5027_v20 = vld [vmem:[%s6801_s5] ss:$0 sm:$0xff] (!%p5017_p8) }
 0xc31   : > { %4409 = vmatmul.mubr.bf16.gmra.mrb[28].mxu0 %v4238_v51 }
 0xcfc   : > { %v5111_v50 = vpop.f32.mrb[24].mxu0 }
 0xcfd   : > { %v5112_v8 = vpop.f32.mrb[25].mxu0 }
 0xcfe   : > { %v5113_v46 = vadd.f32 %v5112_v8, %v5111_v50  ;;  %v5114_v49 = vpop.f32.mrb[26].mxu0 }
 0xcff   : > { %v5115_v2 = vpop.f32.mrb[27].mxu0 }
 0xd00   : > { %v4416_v18 = vadd.f32 %v5113_v46, %v6590_v30  ;;  %v5116_v1 = vadd.f32 %v5115_v2, %v5114_v49  ;;  %v5536_v30 = vld [vmem:[%s6798_s7] sm:$0xff] (!%p5017_p8)  }
 0xd02   : > { %v4426_v3 = vadd.f32 %v5016_v22, %v4416_v18  ;;  %v4417_v35 = vadd.f32 %v5116_v1, %v6592_v15  ;;  %v5603_v15 = vmov (!%p5017_p8), 0.0  }
 0xd03   : > { %5245 = vmatprep.subr.bf16.mxu0 (!%p5017_p8), %v5603_v15  ;;  %5265 = vmatprep.subr.bf16.mxu1 (!%p5017_p8), %v5603_v15 }
 0xd04   : > { %4429 = vst [vmem:[#allocation2] sm:$0xff] %v4426_v3  ;;  %v4427_v48 = vadd.f32 %v5016_v22, %v4417_v35  ;;  %v5117_v11 = vpop.f32.mrb[28].mxu0  ;;  %5246 = vmatpush3.bf16.msra.mxu0 (!%p5017_p8), %v5536_v30  ;;  %5261 = vmatprep.mubr.msk.bf16.mxu0 (!%p5017_p8), %vm5604_vm7, %v5603_v15 }
 0xd05   : > { %v5118_v62 = vpop.f32.mrb[29].mxu0  ;;  %5247 = vmatprep.subr.bf16.mxu0 (!%p5017_p8), %v5603_v15  ;;  %5281 = vmatprep.mubr.msk.bf16.mxu1 (!%p5017_p8), %vm5604_vm7, %v5603_v15 }
 0xd06   : > { %4430 = vst [vmem:[#allocation2 + $0x8] sm:$0xff] %v4427_v48  ;;  %v5119_v27 = vadd.f32 %v5118_v62, %v5117_v11  ;;  %v5120_v5 = vpop.f32.mrb[30].mxu0  ;;  %4435 = sbr.rel (%p5017_p8) target bundleno = 3825 (0xef1), region = 112  ;;  %v4436_v9 = vpack.c.bf16 (!%p5017_p8), %v4427_v48, %v4426_v3  ;;  %5266 = vmatpush3.bf16.msra.mxu1 (!%p5017_p8), %v5544_v31 }
 0xd07   : > { %v5121_v41 = vpop.f32.mrb[31].mxu0  ;;  %5267 = vmatprep.subr.bf16.mxu1 (!%p5017_p8), %v5603_v15 }
 0xd08   : > { %v4418_v55 = vadd.f32 %v5119_v27, %v6596_v57  ;;  %5248 = vmatpush3.bf16.msra.mxu0 (!%p5017_p8), %v5537_v26  ;;  %v5538_v57 = vld [vmem:[%s6798_s7 + $0x10] sm:$0xff] (!%p5017_p8)  }
 0xd09   : > { %5249 = vmatprep.subr.bf16.mxu0 (!%p5017_p8), %v5603_v15 }
 0xd0a   : > { %v4428_v33 = vadd.f32 %v5016_v22, %v4418_v55  ;;  %5268 = vmatpush3.bf16.msra.mxu1 (!%p5017_p8), %v5545_v40 }
 0xd0b   : > { %5269 = vmatprep.subr.bf16.mxu1 (!%p5017_p8), %v5603_v15 }
 0xd0c   : > { %4431 = vst [vmem:[#allocation2 + $0x10] sm:$0xff] %v4428_v33  ;;  %5250 = vmatpush3.bf16.msra.mxu0 (!%p5017_p8), %v5538_v57 }
 0xd0d   : > { %5251 = vmatprep.subr.bf16.mxu0 %v5603_v15 }
 0xd0e   : > { %5270 = vmatpush3.bf16.msra.mxu1 %v5546_v25 }
 0xd0f   : > { %5271 = vmatprep.subr.bf16.mxu1 %v5603_v15 }
 0xd10   : > { %5252 = vmatpush3.bf16.msra.mxu0 %v5539_v47 }
 0xd11   : > { %5253 = vmatprep.subr.bf16.mxu0 %v5603_v15 }
 0xd12   : > { %5272 = vmatpush3.bf16.msra.mxu1 %v5547_v43 }
 0xd13   : > { %5273 = vmatprep.subr.bf16.mxu1 %v5603_v15 }
 0xd14   : > { %5254 = vmatpush3.bf16.msra.mxu0 %v5540_v38 }
 0xd15   : > { %5255 = vmatprep.subr.bf16.mxu0 %v5603_v15 }
 0xd16   : > { %5274 = vmatpush3.bf16.msra.mxu1 %v5548_v44 }
 0xd17   : > { %5275 = vmatprep.subr.bf16.mxu1 %v5603_v15 }
 0xd18   : > { %5256 = vmatpush3.bf16.msra.mxu0 %v5541_v58 }
 0xd19   : > { %5257 = vmatprep.subr.bf16.mxu0 %v5603_v15 }
 0xd1a   : > { %5276 = vmatpush3.bf16.msra.mxu1 %v5549_v60 }
 0xd1b   : > { %5277 = vmatprep.subr.bf16.mxu1 %v5603_v15 }
 0xd1c   : > { %5258 = vmatpush3.bf16.msra.mxu0 %v5542_v10 }
 0xd1d   : > { %5259 = vmatprep.subr.bf16.mxu0 %v5603_v15 }
 0xd1e   : > { %5278 = vmatpush3.bf16.msra.mxu1 %v5550_v14 }
 0xd1f   : > { %5279 = vmatprep.subr.bf16.mxu1 %v5603_v15 }
 0xd20   : > { %5260 = vmatpush3.bf16.msra.mxu0 %v5543_v59 }
 0xd22   : > { %5280 = vmatpush3.bf16.msra.mxu1 %v5551_v32 }
 0xd23   : > { %5262 = vmatmul.mubr.bf16.vlgmr.msra.gmra.mrb[0].mxu0 %v4436_v9 }
 0xdf6   : > { %v4542_v56 = vpop.f32.mrb[0].mxu0 }
 0xdf7   : > { %v4543_v42 = vadd.f32 %v5018_v16, %v4542_v56  ;;  %v5263_v29 = vpop.f32.mrb[1].mxu0 }
 0xdf8   : > { %v4545_v34 = vpop.f32.mrb[2].mxu0 }
 0xdf9   : > { %v4549_v45 = vmul.f32 %v4543_v42, %v4543_v42  ;;  %v4546_v53 = vadd.f32 %v5018_v16, %v4545_v34  ;;  %v5264_v36 = vpop.f32.mrb[3].mxu0 }
 0xdfb   : > { %v4551_v4 = vmul.f32 %v4549_v45, %v4543_v42  ;;  %v4550_v37 = vmul.f32 %v4546_v53, %v4546_v53 }
 0xdfd   : > { %v4553_v17 = vmul.f32 0.044715, %v4551_v4  ;;  %v4552_v54 = vmul.f32 %v4550_v37, %v4546_v53 }
 0xdff   : > { %v4555_v24 = vadd.f32 %v4553_v17, %v4543_v42  ;;  %v4554_v6 = vmul.f32 0.044715, %v4552_v54 }
 0xe01   : > { %v4557_v0 = vmul.f32 0.7978846, %v4555_v24  ;;  %v4556_v19 = vadd.f32 %v4554_v6, %v4546_v53 }
 0xe03   : > { %5552 = vtanh.f32 %v4557_v0  ;;  %v4558_v52 = vmul.f32 0.7978846, %v4556_v19 }
 0xe05   : > { %5554 = vtanh.f32 %v4558_v52 }
 0xe0d   : > { %v5553_v63 = vpop.eup %5552 }
 0xe0e   : > { %v4561_v39 = vadd.f32 1.0, %v5553_v63 }
 0xe0f   : > { %v5555_v7 = vpop.eup %5554 }
 0xe10   : > { %v4562_v12 = vadd.f32 1.0, %v5555_v7  ;;  %v4563_v21 = vmul.f32 0.5, %v4561_v39 }
 0xe12   : > { %v4564_v61 = vmul.f32 0.5, %v4562_v12  ;;  %v4565_v13 = vmul.f32 %v4563_v21, %v4543_v42 }
 0xe14   : > { %v4566_v28 = vmul.f32 %v4564_v61, %v4546_v53 }
 0xe16   : > { %v4567_v23 = vpack.c.bf16 %v4566_v28, %v4565_v13 }
 0xe18   : > { %5282 = vmatmul.mubr.bf16.vlgmr.msra.gmra.mrb[0].mxu1 %v4567_v23 }
 0xeeb   : > { %v4673_v51 = vpop.f32.mrb[0].mxu1 }
 0xeec   : > { %v4674_v50 = vadd.f32 %v5027_v20, %v4673_v51  ;;  %v5283_v8 = vpop.f32.mrb[1].mxu1 }
 0xeed   : > { %v4676_v46 = vpop.f32.mrb[2].mxu1 }
 0xeee   : > { %4680 = vst [vmem:[%s5818_s9] sm:$0xff] %v4674_v50  ;;  %v4677_v49 = vadd.f32 %v5027_v20, %v4676_v46  ;;  %v5284_v22 = vpop.f32.mrb[3].mxu1 }
 0xef0   : > { %4681 = vst [vmem:[%s5818_s9 + $0x8] sm:$0xff] %v4677_v49 }
 0xef1 PF: > { %s6802_s8 = sld [smem:[#allocation6_spill]]  ;;  %s6803_s2 = sld [smem:[#allocation4_spill]] }
 0xef2   : > { %s6804_s25 = sld [smem:[#allocation5_spill]]  ;;  %s6805_s26 = sld [smem:[#allocation7_spill]] }
 0xef3   : > { %s6806_s27 = sld [smem:[#allocation8_spill]] }
 0xef7   : > { %s31_s3 = sadd.s32 1, %s6802_s8  }
 0xef8   : > { %p28_p9 = scmp.ge.s32.totalorder %s31_s3, 6  }
 0xefa   :  { %30 = sbr.rel (!%p28_p9) target bundleno = 15 (0xf), region = 178 }

// kernel: forward.3
= control target key start
LH: loop header
LB: loop body
LE: loop exit
PB: predicated region body
PF: predicated region fallthrough
CT: control target
= control target key end

     0   :  { %15 = vsyncpa [#allocation4], 0  ;;  %s6563_s13 = smov 0   ;;  %s8369_s0 = inlined_call_operand.vmem [shape: f32[40,128], index: 0, kind: input, shape index: {}]   ;;  %s8370_s1 = inlined_call_operand.vmem [shape: f32[40,128], index: 1, kind: input, shape index: {}]   ;;  %s8371_s2 = inlined_call_operand.vmem [shape: f32[40,128], index: 2, kind: input, shape index: {}]   ;;  %s8372_s3 = inlined_call_operand.vmem [shape: f32[1,128], index: 3, kind: input, shape index: {}]   ;;  %s8373_s4 = inlined_call_operand.vmem [shape: f32[2,1,128], index: 4, kind: input, shape index: {}]   ;;  %s8374_s5 = inlined_call_operand.vmem [shape: bf16[2,128,384], index: 5, kind: input, shape index: {}]   ;;  %s8375_s6 = inlined_call_operand.vmem [shape: bf16[2,128,128], index: 6, kind: input, shape index: {}]   ;;  %s8376_s7 = inlined_call_operand.vmem [shape: f32[2,1,128], index: 7, kind: input, shape index: {}]   ;;  %s8377_s8 = inlined_call_operand.vmem [shape: bf16[2,128,512], index: 8, kind: input, shape index: {}]   ;;  %s8378_s9 = inlined_call_operand.vmem [shape: bf16[2,256,128], index: 9, kind: input, shape index: {}]   ;;  %s8379_s10 = inlined_call_operand.hbm [shape: f32[40,128], index: 10, kind: output, shape index: {}]  }
   0x1 LB: > { %s6569_s14 = sadd.s32 4294967295, %s6493_s13   ;;  %p5662_p0 = scmp.ge.s32.totalorder %s6493_s13, 1  ;;  %s6493_s13 = sphi %s6563_s13, %s21_s13  }
   0x2   : > { %p354_p1 = scmp.lt.s32.totalorder %s6493_s13, 3 }
   0x4   : > { %p355_p2 = pnand %p5662_p0, %p354_p1 }
   0x6   : > { %358 = sbr.rel (%p355_p2) target bundleno = 2785 (0xae1), region = 60 }
   0xd   : > { %p408_p3 = scmp.lt.s32.totalorder %s6569_s14, 1  ;;  %p5670_p4 = scmp.ne.s32.totalorder %s6569_s14, 0 }
   0xe   : > { %v439_v0 = vld [vmem:[%s8369_s0] sm:$0xff] (!%p5670_p4)  ;;  %v440_v1 = vld [vmem:[%s8369_s0 + $0x8] sm:$0xff] (!%p5670_p4)  ;;  %v441_v2 = vld [vmem:[%s8369_s0 + $0x10] sm:$0xff] (!%p5670_p4) }
   0xf   : > { %s6575_s15 = scalar_select %p408_p3, %s6569_s14, 1 }
  0x10   : > { %438 = sbr.rel (%p5670_p4) target bundleno = 23 (0x17), region = 64  ;;  %444 = vst [vmem:[#allocation2] sm:$0xff] (!%p5670_p4), %v439_v0  ;;  %445 = vst [vmem:[#allocation2 + $0x8] sm:$0xff] (!%p5670_p4), %v440_v1  ;;  %v442_v3 = vld [vmem:[%s8369_s0 + $0x18] sm:$0xff] (!%p5670_p4)  ;;  %v443_v4 = vld [vmem:[%s8369_s0 + $0x20] sm:$0xff] (!%p5670_p4) }
  0x11   : > { %s6140_s19 = smul.u32 192, %s6575_s15  ;;  %s5833_s20 = sshll.u32 %s6575_s15, 6  ;;  %446 = vst [vmem:[#allocation2 + $0x10] sm:$0xff] (!%p5670_p4), %v441_v2  ;;  %447 = vst [vmem:[#allocation2 + $0x18] sm:$0xff] (!%p5670_p4), %v442_v3 }
  0x12   : > { %s423_s23 = scalar_lea.vmem %s8376_s7, %s6575_s15  ;;  %s6595_s29 = scalar_lea.vmem %s8375_s6, %s5833_s20  ;;  %448 = vst [vmem:[#allocation2 + $0x20] sm:$0xff] (!%p5670_p4), %v443_v4 }
  0x13   : > { %s6590_s26 = scalar_lea.vmem %s8374_s5, %s6140_s19  ;;  %s5834_s30 = sshll.u32 %s6575_s15, 8 }
  0x14   : > { %s5835_s11 = sshll.u32 %s6575_s15, 7  ;;  %s6602_s17 = scalar_lea.vmem %s8377_s8, %s5834_s30 }
  0x15   : > { %s6607_s22 = scalar_lea.vmem %s8378_s9, %s5835_s11 }
  0x17 PF: > { %v6625_v5 = vld [vmem:[#allocation2] sm:$0xff]  ;;  %v6627_v6 = vld [vmem:[#allocation2 + $0x8] sm:$0xff]  ;;  %v8382_v11 = vmov 0.0   ;;  %v6208_v23 = vld [vmem:[%s6590_s26 + $0x30] ss:$12 sps:$4 sm:$0xff]   ;;  %v8380_v40 = vmov 0   ;;  %s8393_s21 = scalar_lea.vmem %s8373_s4, %s6575_s15 }
  0x18   : > { %v6629_v7 = vld [vmem:[#allocation2 + $0x10] sm:$0xff]  ;;  %v480_v8 = vmul.f32 %v6625_v5, %v6625_v5  ;;  %v6635_v10 = vld [vmem:[#allocation2 + $0x18] sm:$0xff]  ;;  %5940 = vmatprep.subr.bf16.mxu1 %v8382_v11  ;;  %v6200_v14 = vld [vmem:[%s6590_s26] ss:$12 sps:$4 sm:$0xff]   ;;  %v481_v15 = vmul.f32 %v6627_v6, %v6627_v6  ;;  %722 = vmatprep.mubr.bf16.mxu0 %v8380_v40  ;;  %vm6497_vm0 = vmmov 0   ;;  %s6498_s19 = smov 112  }
  0x19   : > { %v482_v9 = vmul.f32 %v6629_v7, %v6629_v7  ;;  %v6638_v12 = vld [vmem:[#allocation2 + $0x20] sm:$0xff]  ;;  %v483_v16 = vmul.f32 %v6635_v10, %v6635_v10  ;;  %v6201_v17 = vld [vmem:[%s6590_s26 + $0x8] ss:$12 sps:$4 sm:$0xff]   ;;  %v6210_v25 = vld [vmem:[%s6590_s26 + $0x4c] ss:$12 sps:$4 sm:$0xff]   ;;  %5956 = vmatprep.mubr.msk.bf16.mxu1 %vm6497_vm0, %v8382_v11  ;;  %s6499_s24 = smov 16  }
  0x1a   : > { %v6198_v13 = vld [vmem:[%s6590_s26 + $0x4] ss:$12 sps:$4 sm:$0xff]   ;;  %485 = vadd.xlane.f32.xlu0 %v480_v8  ;;  %v6202_v18 = vld [vmem:[%s6590_s26 + $0x1c] ss:$12 sps:$4 sm:$0xff]   ;;  %5941 = vmatpush3.bf16.msra.mxu1 %v6201_v17  ;;  %v6205_v20 = vld [vmem:[%s6590_s26 + $0x20] ss:$12 sps:$4 sm:$0xff]   ;;  %v484_v21 = vmul.f32 %v6638_v12, %v6638_v12 }
  0x1b   : > { %489 = vadd.xlane.f32.xlu1 %v482_v9  ;;  %690 = vmatprep.subr.bf16.mxu0 %v6198_v13  ;;  %v6204_v19 = vld [vmem:[%s6590_s26 + $0x18] ss:$12 sps:$4 sm:$0xff]   ;;  %v6206_v22 = vld [vmem:[%s6590_s26 + $0x34] ss:$12 sps:$4 sm:$0xff]   ;;  %v6213_v27 = vld [vmem:[%s6590_s26 + $0x50] ss:$12 sps:$4 sm:$0xff]  }
  0x1c   : > { %691 = vmatpush1.bf16.msra.mxu0 %v6200_v14  ;;  %5942 = vmatprep.subr.bf16.mxu1 %v8382_v11  ;;  %v6209_v24 = vld [vmem:[%s6590_s26 + $0x38] ss:$12 sps:$4 sm:$0xff]   ;;  %v6212_v26 = vld [vmem:[%s6590_s26 + $0x48] ss:$12 sps:$4 sm:$0xff]   ;;  %v6216_v29 = vld [vmem:[%s6590_s26 + $0x60] ss:$12 sps:$4 sm:$0xff]  }
  0x1d   : > { %692 = vmatprep.subr.bf16.mxu0 %v6202_v18  ;;  %v6214_v28 = vld [vmem:[%s6590_s26 + $0x64] ss:$12 sps:$4 sm:$0xff]   ;;  %v6217_v30 = vld [vmem:[%s6590_s26 + $0x68] ss:$12 sps:$4 sm:$0xff]   ;;  %v6221_v33 = vld [vmem:[%s6590_s26 + $0x80] ss:$12 sps:$4 sm:$0xff]  }
  0x1e   : > { %487 = vadd.xlane.f32.xlu0 %v481_v15  ;;  %5943 = vmatpush3.bf16.msra.mxu1 %v6205_v20  ;;  %v6218_v31 = vld [vmem:[%s6590_s26 + $0x7c] ss:$12 sps:$4 sm:$0xff]   ;;  %v6220_v32 = vld [vmem:[%s6590_s26 + $0x78] ss:$12 sps:$4 sm:$0xff]   ;;  %v6222_v34 = vld [vmem:[%s6590_s26 + $0x94] ss:$12 sps:$4 sm:$0xff]  }
  0x1f   : > { %491 = vadd.xlane.f32.xlu1 %v483_v16  ;;  %5944 = vmatprep.subr.bf16.mxu1 %v8382_v11  ;;  %v6224_v35 = vld [vmem:[%s6590_s26 + $0x90] ss:$12 sps:$4 sm:$0xff]   ;;  %v6225_v36 = vld [vmem:[%s6590_s26 + $0x98] ss:$12 sps:$4 sm:$0xff]   ;;  %v6228_v38 = vld [vmem:[%s6590_s26 + $0xa8] ss:$12 sps:$4 sm:$0xff]  }
  0x20   : > { %693 = vmatpush1.bf16.msra.mxu0 %v6204_v19  ;;  %v6226_v37 = vld [vmem:[%s6590_s26 + $0xac] ss:$12 sps:$4 sm:$0xff]   ;;  %v6229_v39 = vld [vmem:[%s6590_s26 + $0xb0] ss:$12 sps:$4 sm:$0xff]   ;;  %v5671_v60 = vld [vmem:[%s8393_s21] ss:$0 sm:$0xff] }
  0x21   : > { %694 = vmatprep.subr.bf16.mxu0 %v6206_v22  ;;  %s6500_s18 = smov 96   ;;  %s6501_s30 = smov 64   ;;  %vm3128_vm2 = vcmask 261120   ;;  %vm3466_vm4 = vcmask 326656   ;;  %vm3708_vm9 = vcmask 1043456   ;;  %vm4717_vm10 = vcmask 523264  }
  0x22   : > { %493 = vadd.xlane.f32.xlu0 %v484_v21  ;;  %5945 = vmatpush3.bf16.msra.mxu1 %v6209_v24  ;;  %s6502_s11 = smov 32   ;;  %vm4723_vm11 = vcmask 785408   ;;  %p5827_p5 = scmp.ne.s32.totalorder %s6569_s14, 1 }
  0x23   : > { %5946 = vmatprep.subr.bf16.mxu1 %v8382_v11 }
  0x24   : > { %695 = vmatpush1.bf16.msra.mxu0 %v6208_v23 }
  0x25   : > { %696 = vmatprep.subr.bf16.mxu0 %v6210_v25 }
  0x26   : > { %5947 = vmatpush3.bf16.msra.mxu1 %v6213_v27 }
  0x27   : > { %5948 = vmatprep.subr.bf16.mxu1 %v8382_v11 }
  0x28   : > { %697 = vmatpush1.bf16.msra.mxu0 %v6212_v26 }
  0x29   : > { %698 = vmatprep.subr.bf16.mxu0 %v6214_v28 }
  0x2a   : > { %5949 = vmatpush3.bf16.msra.mxu1 %v6217_v30 }
  0x2b   : > { %5950 = vmatprep.subr.bf16.mxu1 %v8382_v11 }
  0x2c   : > { %699 = vmatpush1.bf16.msra.mxu0 %v6216_v29 }
  0x2d   : > { %700 = vmatprep.subr.bf16.mxu0 %v6218_v31 }
  0x2e   : > { %5951 = vmatpush3.bf16.msra.mxu1 %v6221_v33 }
  0x2f   : > { %5952 = vmatprep.subr.bf16.mxu1 %v8382_v11 }
  0x30   : > { %701 = vmatpush1.bf16.msra.mxu0 %v6220_v32 }
  0x31   : > { %702 = vmatprep.subr.bf16.mxu0 %v6222_v34 }
  0x32   : > { %5953 = vmatpush3.bf16.msra.mxu1 %v6225_v36 }
  0x33   : > { %5954 = vmatprep.subr.bf16.mxu1 %v8382_v11 }
  0x34   : > { %703 = vmatpush1.bf16.msra.mxu0 %v6224_v35 }
  0x35   : > { %704 = vmatprep.subr.bf16.mxu0 %v6226_v37 }
  0x36   : > { %5955 = vmatpush3.bf16.msra.mxu1 %v6229_v39 }
  0x37   : > { %5986 = vmatprep.subr.bf16.mxu1 %v8382_v11 }
  0x38   : > { %705 = vmatpush1.bf16.msra.mxu0 %v6228_v38 }
  0x39   : > { %5968 = vmatprep.subr.bf16.mxu0 %v8382_v11 }
  0xa7   : > { %v486_v41 = vpop.xlane.xlu0 %485 }
  0xa8   : > { %v490_v42 = vpop.xlane.xlu1 %489  ;;  %v496_v43 = vmul.f32 0.0078125, %v486_v41 }
  0xa9   : > { %v498_v44 = vmul.f32 0.0078125, %v490_v42  ;;  %v464_v42 = vlaneseq }
  0xaa   : > { %v501_v45 = vadd.f32 1e-06, %v496_v43 }
  0xab   : > { %v488_v46 = vpop.xlane.xlu0 %487  ;;  %v503_v47 = vadd.f32 1e-06, %v498_v44  ;;  %v6761_v43 = vand.u32 127, %v464_v42 }
  0xac   : > { %v492_v48 = vpop.xlane.xlu1 %491  ;;  %6302 = vrsqrt.f32 %v501_v45  ;;  %v497_v49 = vmul.f32 0.0078125, %v488_v46 }
  0xad   : > { %v499_v50 = vmul.f32 0.0078125, %v492_v48  ;;  %6304 = vrsqrt.f32 %v503_v47  ;;  %8395 = vst [vmem:[#allocation7_spill] sm:$0xff] %v6761_v43  ;;  %v470_v44 = vand.u32 31, %v6761_v43  ;;  %v454_v47 = vld [vmem:[%s8370_s1] sm:$0xff] }
  0xae   : > { %v502_v51 = vadd.f32 1e-06, %v497_v49  ;;  %v459_v49 = vld [vmem:[%s8371_s2] sm:$0xff] }
  0xaf   : > { %v504_v52 = vadd.f32 1e-06, %v499_v50  ;;  %v494_v53 = vpop.xlane.xlu0 %493  ;;  %vm6764_vm1 = vcmp.lt.s32.totalorder %v470_v44, 16 }
  0xb0   : > { %6306 = vrsqrt.f32 %v502_v51  ;;  %v500_v54 = vmul.f32 0.0078125, %v494_v53 }
  0xb1   : > { %6308 = vrsqrt.f32 %v504_v52 }
  0xb2   : > { %v505_v55 = vadd.f32 1e-06, %v500_v54 }
  0xb4   : > { %6310 = vrsqrt.f32 %v505_v55 }
  0xb6   : > { %v6303_v56 = vpop.eup %6302 }
  0xb7   : > { %v6305_v57 = vpop.eup %6304  ;;  %v511_v58 = vmul.f32 %v6303_v56, %v6625_v5 }
  0xb8   : > { %v513_v1 = vmul.f32 %v6305_v57, %v6629_v7 }
  0xb9   : > { %v522_v63 = vmul.f32 %v5671_v60, %v511_v58 }
  0xba   : > { %v6307_v59 = vpop.eup %6306  ;;  %v524_v4 = vmul.f32 %v5671_v60, %v513_v1  ;;  %v455_v1 = vld [vmem:[%s8370_s1 + $0x8] sm:$0xff] }
  0xbb   : > { %v6309_v61 = vpop.eup %6308  ;;  %v512_v62 = vmul.f32 %v6307_v59, %v6627_v6 }
  0xbc   : > { %v514_v2 = vmul.f32 %v6309_v61, %v6635_v10 }
  0xbd   : > { %v523_v0 = vmul.f32 %v5671_v60, %v512_v62 }
  0xbe   : > { %v525_v5 = vmul.f32 %v5671_v60, %v514_v2  ;;  %v6311_v8 = vpop.eup %6310 }
  0xbf   : > { %v527_v3 = vpack.c.bf16 %v523_v0, %v522_v63  ;;  %v515_v6 = vmul.f32 %v6311_v8, %v6638_v12  ;;  %v460_v8 = vld [vmem:[%s8371_s2 + $0x8] sm:$0xff] }
  0xc0   : > { %v528_v9 = vpack.c.bf16 %v525_v5, %v524_v4 }
  0xc1   : > { %723 = vmatmul.mubr.bf16.vlgmr.msra.gmra.mrb[0].mxu0 %v527_v3  ;;  %5957 = vmatmul.mubr.bf16.vlgmr.msra.gmra.mrb[0].mxu1 %v527_v3  ;;  %v526_v13 = vmul.f32 %v5671_v60, %v515_v6 }
  0xc2   : > { %732 = vmatprep.mubr.bf16.mxu0 %v8380_v40  ;;  %5960 = vmatprep.mubr.msk.bf16.mxu1 %vm6497_vm0, %v8382_v11 }
  0xc3   : > { %v529_v7 = vpack.c.bf16 %v526_v13, %v526_v13 }
  0xc9   : > { %733 = vmatmul.mubr.bf16.gmra.mrb[4].mxu0 %v528_v9  ;;  %5961 = vmatmul.mubr.bf16.gmra.mrb[4].mxu1 %v528_v9  ;;  %v461_v9 = vld [vmem:[%s8371_s2 + $0x10] sm:$0xff] }
  0xca   : > { %742 = vmatprep.mubr.bf16.mxu0 %v8380_v40  ;;  %5964 = vmatprep.mubr.msk.bf16.mxu1 %vm6497_vm0, %v8382_v11 }
  0xd1   : > { %743 = vmatmul.mubr.bf16.gmra.mrb[8].mxu0 %v529_v7  ;;  %5965 = vmatmul.mubr.bf16.gmra.mrb[8].mxu1 %v529_v7 }
  0xd2   : > { %5974 = vmatprep.mubr.msk.bf16.mxu0 %vm6497_vm0, %v8382_v11  ;;  %5992 = vmatprep.mubr.msk.bf16.mxu1 %vm6497_vm0, %v8382_v11 }
 0x194   : > { %v724_v10 = vpop.f32.mrb[0].mxu0  ;;  %v6702_v14 = vpop.f32.mrb[0].mxu1 }
 0x195   : > { %v726_v12 = vpop.f32.mrb[1].mxu0  ;;  %v5958_v15 = vpop.f32.mrb[1].mxu1  ;;  %v807_v37 = vmul.f32 0.17677669, %v724_v10 }
 0x196   : > { %v6704_v16 = vpop.f32.mrb[2].mxu1  ;;  %857 = vrot.lane.b32.xlu1 %v726_v12, %s6498_s19  ;;  %v728_v17 = vpop.f32.mrb[2].mxu0  ;;  %v887_v52 = vmul.f32 %v726_v12, %v454_v47 }
 0x197   : > { %v6707_v18 = vpop.f32.mrb[3].mxu0  ;;  %v5959_v19 = vpop.f32.mrb[3].mxu1  ;;  %v808_v36 = vmul.f32 0.17677669, %v728_v17  ;;  %v456_v17 = vld [vmem:[%s8370_s1 + $0x10] sm:$0xff] }
 0x198   : > { %859 = vrot.lane.b32.xlu0 %v6707_v18, %s6498_s19 }
 0x199   : > { %v843_v10 = vmul.f32 %v808_v36, %v455_v1 }
 0x19a   : > { %872 = vrot.lane.b32.xlu1 %v726_v12, %s6499_s24 }
 0x19c   : > { %v734_v20 = vpop.f32.mrb[4].mxu0  ;;  %v6712_v21 = vpop.f32.mrb[4].mxu1 }
 0x19d   : > { %v6714_v22 = vpop.f32.mrb[5].mxu0  ;;  %v5962_v23 = vpop.f32.mrb[5].mxu1  ;;  %v6744_v39 = vmul.f32 0.17677669, %v734_v20 }
 0x19e   : > { %v6716_v24 = vpop.f32.mrb[6].mxu1  ;;  %874 = vrot.lane.b32.xlu1 %v6707_v18, %s6499_s24  ;;  %v738_v25 = vpop.f32.mrb[6].mxu0  ;;  %v842_v23 = vmul.f32 %v807_v37, %v454_v47 }
 0x19f   : > { %v6720_v26 = vpop.f32.mrb[7].mxu0  ;;  %v5963_v27 = vpop.f32.mrb[7].mxu1  ;;  %v6741_v38 = vmul.f32 0.17677669, %v738_v25 }
 0x1a0   : > { %863 = vrot.lane.b32.xlu0 %v6720_v26, %s6498_s19 }
 0x1a2   : > { %861 = vrot.lane.b32.xlu1 %v6714_v22, %s6498_s19 }
 0x1a4   : > { %878 = vrot.lane.b32.xlu0 %v6720_v26, %s6499_s24  ;;  %v744_v28 = vpop.f32.mrb[8].mxu0  ;;  %v6728_v29 = vpop.f32.mrb[8].mxu1 }
 0x1a5   : > { %8394 = vst [vmem:[#allocation6_spill] sm:$0xff] %v6728_v29  ;;  %v6730_v30 = vpop.f32.mrb[9].mxu0  ;;  %v5966_v31 = vpop.f32.mrb[9].mxu1  ;;  %v6752_v41 = vmul.f32 0.17677669, %v744_v28 }
 0x1a6   : > { %876 = vrot.lane.b32.xlu1 %v6714_v22, %s6499_s24  ;;  %v748_v32 = vpop.f32.mrb[10].mxu0  ;;  %v804_v33 = vpop.f32.mrb[10].mxu1 }
 0x1a7   : > { %v5967_v34 = vpop.f32.mrb[11].mxu1  ;;  %v749_v35 = vpop.f32.mrb[11].mxu0  ;;  %v889_v32 = vmul.f32 %v6714_v22, %v456_v17 }
 0x1a8   : > { %880 = vrot.lane.b32.xlu0 %v6730_v30, %s6499_s24 }
 0x1aa   : > { %865 = vrot.lane.b32.xlu1 %v6730_v30, %s6498_s19 }
 0x1ac   : > { %814 = vrot.lane.b32.xlu0 %v808_v36, %s6498_s19 }
 0x1ae   : > { %812 = vrot.lane.b32.xlu1 %v807_v37, %s6498_s19 }
 0x1b0   : > { %829 = vrot.lane.b32.xlu0 %v808_v36, %s6499_s24  ;;  %v888_v36 = vmul.f32 %v6707_v18, %v455_v1 }
 0x1b2   : > { %827 = vrot.lane.b32.xlu1 %v807_v37, %s6499_s24 }
 0x1b4   : > { %818 = vrot.lane.b32.xlu0 %v6741_v38, %s6498_s19 }
 0x1b6   : > { %816 = vrot.lane.b32.xlu1 %v6744_v39, %s6498_s19 }
 0x1b8   : > { %833 = vrot.lane.b32.xlu0 %v6741_v38, %s6499_s24 }
 0x1ba   : > { %831 = vrot.lane.b32.xlu1 %v6744_v39, %s6499_s24 }
 0x1bc   : > { %835 = vrot.lane.b32.xlu0 %v6752_v41, %s6499_s24 }
 0x1be   : > { %820 = vrot.lane.b32.xlu1 %v6752_v41, %s6498_s19 }
 0x208   : > { %v858_v45 = vpop.permute.xlu1 %857 }
 0x209   : > { %v867_v48 = vsub.f32 0.0, %v858_v45 }
 0x20a   : > { %v860_v53 = vpop.permute.xlu0 %859 }
 0x20b   : > { %v868_v5 = vsub.f32 0.0, %v860_v53 }
 0x20c   : > { %v873_v50 = vpop.permute.xlu1 %872 }
 0x20d   : > { %v882_v51 = vsel %vm6764_vm1, %v867_v48, %v873_v50 }
 0x20e   : > { %v892_v54 = vmul.f32 %v882_v51, %v459_v49 }
 0x210   : > { %v6776_v55 = vadd.f32 %v892_v54, %v887_v52  ;;  %v875_v56 = vpop.permute.xlu1 %874  ;;  %v462_v54 = vld [vmem:[%s8371_s2 + $0x18] sm:$0xff] }
 0x211   : > { %v883_v19 = vsel %vm6764_vm1, %v868_v5, %v875_v56 }
 0x212   : > { %1649 = vrot.lane.b32.xlu1 %v6776_v55, %s6500_s18  ;;  %v864_v57 = vpop.permute.xlu0 %863  ;;  %v893_v33 = vmul.f32 %v883_v19, %v460_v8 }
 0x213   : > { %v870_v18 = vsub.f32 0.0, %v864_v57  ;;  %v457_v57 = vld [vmem:[%s8370_s1 + $0x18] sm:$0xff] }
 0x214   : > { %v862_v58 = vpop.permute.xlu1 %861  ;;  %v6816_v45 = vadd.f32 %v893_v33, %v888_v36 }
 0x215   : > { %v869_v2 = vsub.f32 0.0, %v862_v58 }
 0x216   : > { %1664 = vrot.lane.b32.xlu1 %v6776_v55, %s6501_s30  ;;  %v879_v59 = vpop.permute.xlu0 %878 }
 0x217   : > { %v885_v56 = vsel %vm6764_vm1, %v870_v18, %v879_v59 }
 0x218   : > { %v877_v60 = vpop.permute.xlu1 %876  ;;  %v895_v1 = vmul.f32 %v885_v56, %v462_v54 }
 0x219   : > { %v884_v6 = vsel %vm6764_vm1, %v869_v2, %v877_v60  ;;  %v458_v60 = vld [vmem:[%s8370_s1 + $0x20] sm:$0xff] }
 0x21a   : > { %1679 = vrot.lane.b32.xlu1 %v6776_v55, %s6502_s11  ;;  %v881_v61 = vpop.permute.xlu0 %880  ;;  %v894_v25 = vmul.f32 %v884_v6, %v461_v9  ;;  %v845_v6 = vmul.f32 %v6741_v38, %v457_v57  ;;  %v6503_v38 = vmov 1983009808  }
 0x21b   : > { %v955_v46 = vunpack.c.l.s4 %v6503_v38 }
 0x21c   : > { %v866_v62 = vpop.permute.xlu1 %865  ;;  %v6812_v44 = vadd.f32 %v894_v25, %v889_v32 }
 0x21d   : > { %v871_v51 = vsub.f32 0.0, %v866_v62  ;;  %v463_v62 = vld [vmem:[%s8371_s2 + $0x20] sm:$0xff] }
 0x21e   : > { %v815_v63 = vpop.permute.xlu0 %814 }
 0x21f   : > { %v823_v3 = vsub.f32 0.0, %v815_v63  ;;  %v886_v59 = vsel %vm6764_vm1, %v871_v51, %v881_v61  ;;  %v891_v61 = vmul.f32 %v6730_v30, %v458_v60 }
 0x220   : > { %v813_v0 = vpop.permute.xlu1 %812 }
 0x221   : > { %v822_v13 = vsub.f32 0.0, %v813_v0  ;;  %v846_v0 = vmul.f32 %v6752_v41, %v458_v60 }
 0x222   : > { %v830_v4 = vpop.permute.xlu0 %829 }
 0x223   : > { %v838_v7 = vsel %vm6764_vm1, %v823_v3, %v830_v4  ;;  %v890_v3 = vmul.f32 %v6720_v26, %v457_v57  ;;  %v896_v4 = vmul.f32 %v886_v59, %v463_v62 }
 0x224   : > { %v848_v12 = vmul.f32 %v838_v7, %v460_v8  ;;  %v828_v15 = vpop.permute.xlu1 %827 }
 0x225   : > { %v837_v20 = vsel %vm6764_vm1, %v822_v13, %v828_v15  ;;  %v6858_v8 = vadd.f32 %v895_v1, %v890_v3  ;;  %v6862_v41 = vadd.f32 %v896_v4, %v891_v61 }
 0x226   : > { %v6804_v27 = vadd.f32 %v848_v12, %v843_v10  ;;  %v847_v28 = vmul.f32 %v837_v20, %v459_v49  ;;  %v819_v31 = vpop.permute.xlu0 %818  ;;  %v844_v49 = vmul.f32 %v6744_v39, %v456_v17  ;;  %v956_v10 = vunpack.c.0.s8 %v955_v46 }
 0x227   : > { %v825_v26 = vsub.f32 0.0, %v819_v31  ;;  %v6930_v12 = vshrl.u32 %v464_v42, 7  ;;  %v6504_v17 = vmov 1934713408  }
 0x228   : > { %v6807_v34 = vadd.f32 %v847_v28, %v842_v23  ;;  %v817_v35 = vpop.permute.xlu1 %816  ;;  %909 = vrot.lane.b32.xlu1 %v6804_v27, %s6500_s18  ;;  %v987_v19 = vunpack.c.l.s4 %v6504_v17 }
 0x229   : > { %v824_v37 = vsub.f32 0.0, %v817_v35  ;;  %8398 = vst [vmem:[#allocation8_spill] sm:$0xff] %v6930_v12  ;;  %v6933_v20 = vsub.s32 %v956_v10, %v6930_v12 }
 0x22a   : > { %907 = vrot.lane.b32.xlu0 %v6807_v34, %s6500_s18  ;;  %v834_v47 = vpop.permute.xlu0 %833  ;;  %v988_v31 = vunpack.c.0.s8 %v987_v19 }
 0x22b   : > { %v840_v30 = vsel %vm6764_vm1, %v825_v26, %v834_v47 }
 0x22c   : > { %v832_v48 = vpop.permute.xlu1 %831  ;;  %1653 = vrot.lane.b32.xlu1 %v6812_v44, %s6500_s18  ;;  %v6942_v47 = vsub.s32 %v988_v31, %v6930_v12 }
 0x22d   : > { %v839_v22 = vsel %vm6764_vm1, %v824_v37, %v832_v48 }
 0x22e   : > { %v849_v50 = vmul.f32 %v839_v22, %v461_v9  ;;  %1651 = vrot.lane.b32.xlu0 %v6816_v45, %s6500_s18  ;;  %v836_v58 = vpop.permute.xlu0 %835  ;;  %v850_v9 = vmul.f32 %v840_v30, %v462_v54 }
 0x230   : > { %v6825_v52 = vadd.f32 %v849_v50, %v844_v49  ;;  %v821_v53 = vpop.permute.xlu1 %820  ;;  %1668 = vrot.lane.b32.xlu1 %v6812_v44, %s6501_s30  ;;  %v6879_v13 = vadd.f32 %v850_v9, %v845_v6 }
 0x231   : > { %v826_v39 = vsub.f32 0.0, %v821_v53 }
 0x232   : > { %1666 = vrot.lane.b32.xlu0 %v6816_v45, %s6501_s30 }
 0x233   : > { %v841_v63 = vsel %vm6764_vm1, %v826_v39, %v836_v58 }
 0x234   : > { %v851_v2 = vmul.f32 %v841_v63, %v463_v62  ;;  %1683 = vrot.lane.b32.xlu1 %v6812_v44, %s6502_s11 }
 0x236   : > { %v6853_v5 = vadd.f32 %v851_v2, %v846_v0  ;;  %1681 = vrot.lane.b32.xlu0 %v6816_v45, %s6502_s11 }
 0x238   : > { %924 = vrot.lane.b32.xlu1 %v6804_v27, %s6501_s30 }
 0x23a   : > { %1655 = vrot.lane.b32.xlu0 %v6858_v8, %s6500_s18 }
 0x23c   : > { %1657 = vrot.lane.b32.xlu1 %v6862_v41, %s6500_s18 }
 0x23e   : > { %1670 = vrot.lane.b32.xlu0 %v6858_v8, %s6501_s30 }
 0x240   : > { %1687 = vrot.lane.b32.xlu1 %v6862_v41, %s6502_s11 }
 0x242   : > { %1685 = vrot.lane.b32.xlu0 %v6858_v8, %s6502_s11 }
 0x244   : > { %939 = vrot.lane.b32.xlu1 %v6804_v27, %s6502_s11 }
 0x246   : > { %922 = vrot.lane.b32.xlu0 %v6807_v34, %s6501_s30 }
 0x248   : > { %913 = vrot.lane.b32.xlu1 %v6879_v13, %s6500_s18 }
 0x24a   : > { %1672 = vrot.lane.b32.xlu0 %v6862_v41, %s6501_s30 }
 0x24c   : > { %928 = vrot.lane.b32.xlu1 %v6879_v13, %s6501_s30 }
 0x24e   : > { %937 = vrot.lane.b32.xlu0 %v6807_v34, %s6502_s11 }
 0x250   : > { %943 = vrot.lane.b32.xlu1 %v6879_v13, %s6502_s11 }
 0x252   : > { %911 = vrot.lane.b32.xlu0 %v6825_v52, %s6500_s18 }
 0x254   : > { %930 = vrot.lane.b32.xlu1 %v6853_v5, %s6501_s30 }
 0x256   : > { %926 = vrot.lane.b32.xlu0 %v6825_v52, %s6501_s30 }
 0x258   : > { %2391 = vrot.lane.b32.xlu1 %v6702_v14, %s6500_s18 }
 0x25a   : > { %941 = vrot.lane.b32.xlu0 %v6825_v52, %s6502_s11 }
 0x25c   : > { %2406 = vrot.lane.b32.xlu1 %v6702_v14, %s6501_s30 }
 0x25e   : > { %915 = vrot.lane.b32.xlu0 %v6853_v5, %s6500_s18 }
 0x260   : > { %2408 = vrot.lane.b32.xlu1 %v6704_v16, %s6501_s30 }
 0x262   : > { %945 = vrot.lane.b32.xlu0 %v6853_v5, %s6502_s11 }
 0x264   : > { %2421 = vrot.lane.b32.xlu1 %v6702_v14, %s6502_s11 }
 0x266   : > { %2393 = vrot.lane.b32.xlu0 %v6704_v16, %s6500_s18 }
 0x268   : > { %2395 = vrot.lane.b32.xlu1 %v6712_v21, %s6500_s18 }
 0x26a   : > { %2423 = vrot.lane.b32.xlu0 %v6704_v16, %s6502_s11 }
 0x26c   : > { %2410 = vrot.lane.b32.xlu1 %v6712_v21, %s6501_s30 }
 0x26e   : > { %2397 = vrot.lane.b32.xlu0 %v6716_v24, %s6500_s18 }
 0x270   : > { %2412 = vrot.lane.b32.xlu1 %v6716_v24, %s6501_s30 }
 0x272   : > { %2427 = vrot.lane.b32.xlu0 %v6716_v24, %s6502_s11 }
 0x274   : > { %2425 = vrot.lane.b32.xlu1 %v6712_v21, %s6502_s11 }
 0x284   : > { %v1650_v7 = vpop.permute.xlu1 %1649 }
 0x288   : > { %v1665_v15 = vpop.permute.xlu1 %1664 }
 0x289   : > { %v1694_v23 = vcombine.low %v6776_v55, %v1665_v15  ;;  %v1695_v25 = vcombine.high %v6776_v55, %v1665_v15 }
 0x28b   : > { %v1702_v42 = vrot.slane %v1694_v23, %v6933_v20  ;;  %v1709_v37 = vrot.slane %v1695_v25, %v6933_v20 }
 0x28c   : > { %v1680_v28 = vpop.permute.xlu1 %1679 }
 0x28d   : > { %v1710_v32 = vcombine.low %v1650_v7, %v1680_v28  ;;  %v1711_v33 = vcombine.high %v1650_v7, %v1680_v28 }
 0x28f   : > { %v1718_v35 = vrot.slane %v1710_v32, %v6933_v20  ;;  %v1725_v36 = vrot.slane %v1711_v33, %v6933_v20 }
 0x291   : > { %v1726_v48 = vcombine.low %v1702_v42, %v1718_v35  ;;  %v1727_v22 = vcombine.high %v1702_v42, %v1718_v35  ;;  %v1742_v49 = vcombine.low %v1709_v37, %v1725_v36  ;;  %v1743_v50 = vcombine.high %v1709_v37, %v1725_v36 }
 0x293   : > { %v1734_v55 = vrot.slane %v1726_v48, %v6942_v47  ;;  %v1741_v18 = vrot.slane %v1727_v22, %v6942_v47  ;;  %v1750_v51 = vrot.slane %v1742_v49, %v6942_v47  ;;  %v1757_v53 = vrot.slane %v1743_v50, %v6942_v47 }
 0x295   : > { %v2034_v54 = vcombine.low %v1734_v55, %v1741_v18  ;;  %v5706_v56 = vcombine.high %v1734_v55, %v1741_v18  ;;  %v2050_v39 = vcombine.low %v1750_v51, %v1757_v53  ;;  %v5707_v58 = vcombine.high %v1750_v51, %v1757_v53 }
 0x297   : > { %v2041_v62 = vrot.slane %v2034_v54, %v6933_v20  ;;  %v2049_v59 = vrot.slane %v5706_v56, %v6933_v20  ;;  %v2057_v63 = vrot.slane %v2050_v39, %v6933_v20  ;;  %v2065_v0 = vrot.slane %v5707_v58, %v6933_v20 }
 0x299   : > { %v2066_v4 = vcombine.low %v2041_v62, %v2049_v59  ;;  %v2082_v61 = vcombine.low %v2057_v63, %v2065_v0  ;;  %v2067_v7 = vcombine.high %v2041_v62, %v2049_v59  ;;  %v2083_v10 = vcombine.high %v2057_v63, %v2065_v0 }
 0x29a   : > { %v6948_v57 = vpop.permute.xlu1 %909 }
 0x29b   : > { %v6959_v38 = vrot.slane %v2066_v4, %v6942_v47  ;;  %v6962_v46 = vrot.slane %v2082_v61, %v6942_v47  ;;  %v6975_v48 = vrot.slane %v2067_v7, %v6942_v47  ;;  %v6978_v22 = vrot.slane %v2083_v10, %v6942_v47 }
 0x29c   : > { %v6950_v60 = vpop.permute.xlu0 %907 }
 0x29d   : > { %v2098_v42 = vcombine.low %v6959_v38, %v6962_v46  ;;  %v2099_v37 = vcombine.high %v6959_v38, %v6962_v46 }
 0x29e   : > { %v1654_v1 = vpop.permute.xlu1 %1653 }
 0x2a0   : > { %v1652_v2 = vpop.permute.xlu0 %1651 }
 0x2a2   : > { %v1669_v3 = vpop.permute.xlu1 %1668 }
 0x2a3   : > { %v1830_v26 = vcombine.low %v6812_v44, %v1669_v3  ;;  %v1831_v30 = vcombine.high %v6812_v44, %v1669_v3 }
 0x2a4   : > { %v1667_v9 = vpop.permute.xlu0 %1666 }
 0x2a5   : > { %v1838_v19 = vrot.slane %v1830_v26, %v6933_v20  ;;  %v1845_v23 = vrot.slane %v1831_v30, %v6933_v20  ;;  %v1762_v25 = vcombine.low %v6816_v45, %v1667_v9  ;;  %v1763_v44 = vcombine.high %v6816_v45, %v1667_v9 }
 0x2a6   : > { %v1684_v6 = vpop.permute.xlu1 %1683 }
 0x2a7   : > { %v1846_v15 = vcombine.low %v1654_v1, %v1684_v6  ;;  %v1847_v17 = vcombine.high %v1654_v1, %v1684_v6  ;;  %v1770_v18 = vrot.slane %v1762_v25, %v6933_v20  ;;  %v1777_v51 = vrot.slane %v1763_v44, %v6933_v20 }
 0x2a8   : > { %v1682_v28 = vpop.permute.xlu0 %1681 }
 0x2a9   : > { %v1854_v31 = vrot.slane %v1846_v15, %v6933_v20  ;;  %v1861_v32 = vrot.slane %v1847_v17, %v6933_v20  ;;  %v1778_v33 = vcombine.low %v1652_v2, %v1682_v28  ;;  %v1779_v35 = vcombine.high %v1652_v2, %v1682_v28 }
 0x2aa   : > { %v925_v36 = vpop.permute.xlu1 %924 }
 0x2ab   : > { %v1862_v45 = vcombine.low %v1838_v19, %v1854_v31  ;;  %v1863_v49 = vcombine.high %v1838_v19, %v1854_v31  ;;  %v1878_v50 = vcombine.low %v1845_v23, %v1861_v32  ;;  %v1879_v55 = vcombine.high %v1845_v23, %v1861_v32 }
 0x2ac   : > { %v1786_v53 = vrot.slane %v1778_v33, %v6933_v20  ;;  %v1793_v54 = vrot.slane %v1779_v35, %v6933_v20  ;;  %v1656_v56 = vpop.permute.xlu0 %1655  ;;  %v1020_v23 = vcombine.low %v6804_v27, %v925_v36  ;;  %v1021_v25 = vcombine.high %v6804_v27, %v925_v36 }
 0x2ad   : > { %v1870_v39 = vrot.slane %v1862_v45, %v6942_v47  ;;  %v1877_v58 = vrot.slane %v1863_v49, %v6942_v47  ;;  %v1886_v62 = vrot.slane %v1878_v50, %v6942_v47  ;;  %v1893_v59 = vrot.slane %v1879_v55, %v6942_v47 }
 0x2ae   : > { %v1794_v63 = vcombine.low %v1770_v18, %v1786_v53  ;;  %v1795_v0 = vcombine.high %v1770_v18, %v1786_v53  ;;  %v1810_v1 = vcombine.low %v1777_v51, %v1793_v54  ;;  %v1811_v2 = vcombine.high %v1777_v51, %v1793_v54  ;;  %v1658_v3 = vpop.permute.xlu1 %1657 }
 0x2af   : > { %v2170_v4 = vcombine.low %v1870_v39, %v1877_v58  ;;  %v5710_v61 = vcombine.high %v1870_v39, %v1877_v58  ;;  %v2186_v17 = vcombine.low %v1886_v62, %v1893_v59  ;;  %v5711_v19 = vcombine.high %v1886_v62, %v1893_v59 }
 0x2b0   : > { %v1802_v9 = vrot.slane %v1794_v63, %v6942_v47  ;;  %v1809_v6 = vrot.slane %v1795_v0, %v6942_v47  ;;  %v1818_v7 = vrot.slane %v1810_v1, %v6942_v47  ;;  %v1825_v10 = vrot.slane %v1811_v2, %v6942_v47  ;;  %v1671_v15 = vpop.permute.xlu0 %1670 }
 0x2b1   : > { %v6999_v35 = vrot.slane %v2170_v4, %v6933_v20  ;;  %v7002_v45 = vrot.slane %v5710_v61, %v6933_v20  ;;  %v1898_v49 = vcombine.low %v6858_v8, %v1671_v15  ;;  %v1899_v50 = vcombine.high %v6858_v8, %v1671_v15 }
 0x2b2   : > { %v2102_v44 = vcombine.low %v1802_v9, %v1809_v6  ;;  %v5708_v28 = vcombine.high %v1802_v9, %v1809_v6  ;;  %v2118_v31 = vcombine.low %v1818_v7, %v1825_v10  ;;  %v5709_v32 = vcombine.high %v1818_v7, %v1825_v10  ;;  %v1688_v33 = vpop.permute.xlu1 %1687 }
 0x2b3   : > { %v7019_v53 = vrot.slane %v2186_v17, %v6933_v20  ;;  %v7022_v54 = vrot.slane %v5711_v19, %v6933_v20  ;;  %v1982_v8 = vcombine.low %v1658_v3, %v1688_v33  ;;  %v1983_v39 = vcombine.high %v1658_v3, %v1688_v33 }
 0x2b4   : > { %v7007_v55 = vrot.slane %v2102_v44, %v6933_v20  ;;  %v7010_v27 = vrot.slane %v5708_v28, %v6933_v20  ;;  %v7013_v36 = vrot.slane %v2118_v31, %v6933_v20  ;;  %v7016_v18 = vrot.slane %v5709_v32, %v6933_v20  ;;  %v1686_v51 = vpop.permute.xlu0 %1685 }
 0x2b5   : > { %v1028_v58 = vrot.slane %v1020_v23, %v6933_v20  ;;  %v1035_v62 = vrot.slane %v1021_v25, %v6933_v20  ;;  %v1914_v59 = vcombine.low %v1656_v56, %v1686_v51  ;;  %v1915_v63 = vcombine.high %v1656_v56, %v1686_v51 }
 0x2b6   : > { %v940_v0 = vpop.permute.xlu1 %939  ;;  %v1906_v1 = vrot.slane %v1898_v49, %v6933_v20  ;;  %v1913_v2 = vrot.slane %v1899_v50, %v6933_v20  ;;  %v2134_v3 = vcombine.low %v7007_v55, %v7010_v27  ;;  %v2150_v7 = vcombine.low %v7013_v36, %v7016_v18 }
 0x2b7   : > { %v1036_v4 = vcombine.low %v6948_v57, %v940_v0  ;;  %v1037_v61 = vcombine.high %v6948_v57, %v940_v0  ;;  %v1922_v9 = vrot.slane %v1914_v59, %v6933_v20  ;;  %v1929_v6 = vrot.slane %v1915_v63, %v6933_v20 }
 0x2b8   : > { %v7037_v56 = vrot.slane %v1982_v8, %v6933_v20  ;;  %v7040_v10 = vrot.slane %v1983_v39, %v6933_v20  ;;  %v923_v17 = vpop.permute.xlu0 %922 }
 0x2b9   : > { %v1044_v15 = vrot.slane %v1036_v4, %v6933_v20  ;;  %v1051_v57 = vrot.slane %v1037_v61, %v6933_v20  ;;  %v1930_v19 = vcombine.low %v1906_v1, %v1922_v9  ;;  %v1931_v23 = vcombine.high %v1906_v1, %v1922_v9 }
 0x2ba   : > { %v1946_v25 = vcombine.low %v1913_v2, %v1929_v6  ;;  %v1947_v44 = vcombine.high %v1913_v2, %v1929_v6  ;;  %v7044_v28 = vpop.permute.xlu1 %913  ;;  %v2158_v4 = vrot.slane %v2150_v7, %v6942_v47 }
 0x2bb   : > { %v1052_v31 = vcombine.low %v1028_v58, %v1044_v15  ;;  %v1053_v32 = vcombine.high %v1028_v58, %v1044_v15  ;;  %v1068_v33 = vcombine.low %v1035_v62, %v1051_v57  ;;  %v1069_v49 = vcombine.high %v1035_v62, %v1051_v57 }
 0x2bc   : > { %v1938_v50 = vrot.slane %v1930_v19, %v6942_v47  ;;  %v1945_v51 = vrot.slane %v1931_v23, %v6942_v47  ;;  %v1954_v8 = vrot.slane %v1946_v25, %v6942_v47  ;;  %v1961_v39 = vrot.slane %v1947_v44, %v6942_v47  ;;  %v1673_v57 = vpop.permute.xlu0 %1672 }
 0x2bd   : > { %v1060_v59 = vrot.slane %v1052_v31, %v6942_v47  ;;  %v1067_v63 = vrot.slane %v1053_v32, %v6942_v47  ;;  %v1076_v0 = vrot.slane %v1068_v33, %v6942_v47  ;;  %v1083_v1 = vrot.slane %v1069_v49, %v6942_v47 }
 0x2be   : > { %v2238_v2 = vcombine.low %v1938_v50, %v1945_v51  ;;  %v5712_v58 = vcombine.high %v1938_v50, %v1945_v51  ;;  %v2142_v62 = vrot.slane %v2134_v3, %v6942_v47  ;;  %v929_v19 = vpop.permute.xlu1 %928  ;;  %v2254_v23 = vcombine.low %v1954_v8, %v1961_v39 }
 0x2bf   : > { %v1360_v61 = vcombine.low %v1060_v59, %v1067_v63  ;;  %v5698_v9 = vcombine.high %v1060_v59, %v1067_v63  ;;  %v1376_v6 = vcombine.low %v1076_v0, %v1083_v1  ;;  %v5699_v15 = vcombine.high %v1076_v0, %v1083_v1 }
 0x2c0   : > { %v5713_v25 = vcombine.high %v1954_v8, %v1961_v39  ;;  %v952_v44 = vcombine.low %v6807_v34, %v923_v17  ;;  %v953_v31 = vcombine.high %v6807_v34, %v923_v17  ;;  %v7063_v49 = vrot.slane %v2238_v2, %v6933_v20 }
 0x2c1   : > { %v1367_v32 = vrot.slane %v1360_v61, %v6933_v20  ;;  %v1375_v33 = vrot.slane %v5698_v9, %v6933_v20  ;;  %v1383_v3 = vrot.slane %v1376_v6, %v6933_v20  ;;  %v1391_v7 = vrot.slane %v5699_v15, %v6933_v20 }
 0x2c2   : > { %v7066_v50 = vrot.slane %v5712_v58, %v6933_v20  ;;  %v1966_v51 = vcombine.low %v6862_v41, %v1673_v57  ;;  %v1967_v8 = vcombine.high %v6862_v41, %v1673_v57  ;;  %v7071_v63 = vrot.slane %v2254_v23, %v6933_v20  ;;  %v944_v6 = vpop.permute.xlu1 %943 }
 0x2c3   : > { %v1392_v34 = vcombine.low %v1367_v32, %v1375_v33  ;;  %v1393_v17 = vcombine.high %v1367_v32, %v1375_v33  ;;  %v1408_v39 = vcombine.low %v1383_v3, %v1391_v7  ;;  %v1409_v59 = vcombine.high %v1383_v3, %v1391_v7 }
 0x2c4   : > { %v1974_v0 = vrot.slane %v1966_v51, %v6933_v20  ;;  %v1981_v1 = vrot.slane %v1967_v8, %v6933_v20  ;;  %v1156_v2 = vcombine.low %v6879_v13, %v929_v19  ;;  %v7093_v33 = vrot.slane %v5713_v25, %v6933_v20  ;;  %v938_v8 = vpop.permute.xlu0 %937 }
 0x2c5   : > { %v7077_v58 = vrot.slane %v1392_v34, %v6942_v47  ;;  %v7080_v61 = vrot.slane %v1393_v17, %v6942_v47  ;;  %v7083_v41 = vrot.slane %v1408_v39, %v6942_v47  ;;  %v7086_v9 = vrot.slane %v1409_v59, %v6942_v47 }
 0x2c6   : > { %v1998_v15 = vcombine.low %v1974_v0, %v7037_v56  ;;  %v1999_v57 = vcombine.high %v1974_v0, %v7037_v56  ;;  %v2014_v23 = vcombine.low %v1981_v1, %v7040_v10  ;;  %v2015_v32 = vcombine.high %v1981_v1, %v7040_v10 }
 0x2c7   : > { %8399 = vst [vmem:[#allocation9_spill] sm:$0xff] %v7080_v61  ;;  %8400 = vst [vmem:[#allocation10_spill] sm:$0xff] %v7086_v9  ;;  %v960_v3 = vrot.slane %v952_v44, %v6933_v20  ;;  %v967_v7 = vrot.slane %v953_v31, %v6933_v20  ;;  %v1157_v51 = vcombine.high %v6879_v13, %v929_v19 }
 0x2c8   : > { %v7099_v34 = vrot.slane %v1998_v15, %v6942_v47  ;;  %v7102_v17 = vrot.slane %v1999_v57, %v6942_v47  ;;  %v7105_v56 = vrot.slane %v2014_v23, %v6942_v47  ;;  %v7108_v10 = vrot.slane %v2015_v32, %v6942_v47  ;;  %v7129_v57 = vpop.permute.xlu1 %930 }
 0x2c9   : > { %v2166_v13 = vcombine.low %v2142_v62, %v2158_v4  ;;  %v2167_v19 = vcombine.high %v2142_v62, %v2158_v4  ;;  %v1164_v0 = vrot.slane %v1156_v2, %v6933_v20  ;;  %v968_v62 = vcombine.low %v6950_v60, %v938_v8 }
 0x2ca   : > { %v2306_v59 = vcombine.low %v7099_v34, %v7102_v17  ;;  %v969_v4 = vcombine.high %v6950_v60, %v938_v8  ;;  %v5714_v23 = vcombine.high %v7099_v34, %v7102_v17  ;;  %v2322_v2 = vcombine.low %v7105_v56, %v7108_v10  ;;  %v7142_v8 = vpop.permute.xlu0 %911 }
 0x2cb   : > { %v2374_v1 = vpack.c.bf16 %v2166_v13, %v2098_v42  ;;  %v2377_v15 = vpack.c.bf16 %v2167_v19, %v2099_v37  ;;  %v5715_v32 = vcombine.high %v7105_v56, %v7108_v10  ;;  %v1171_v42 = vrot.slane %v1157_v51, %v6933_v20 }
 0x2cc   : > { %v976_v37 = vrot.slane %v968_v62, %v6933_v20  ;;  %v983_v60 = vrot.slane %v969_v4, %v6933_v20  ;;  %v7145_v34 = vrot.slane %v2306_v59, %v6933_v20  ;;  %v1172_v17 = vcombine.low %v7044_v28, %v944_v6  ;;  %v7161_v4 = vpop.permute.xlu1 %2391 }
 0x2cd   : > { %v3139_v38 = vsel %vm3128_vm2, %v2374_v1, 0  ;;  %v3213_v46 = vsel %vm3128_vm2, %v2377_v15, 0  ;;  %v1173_v56 = vcombine.high %v7044_v28, %v944_v6  ;;  %v1224_v59 = vcombine.low %v6853_v5, %v7129_v57 }
 0x2ce   : > { %5969 = vmatpush3.bf16.xpose.msra.mxu0 %v3139_v38  ;;  %5987 = vmatpush3.bf16.xpose.msra.mxu1 %v3213_v46  ;;  %v984_v51 = vcombine.low %v960_v3, %v976_v37  ;;  %v985_v10 = vcombine.high %v960_v3, %v976_v37  ;;  %v1000_v13 = vcombine.low %v967_v7, %v983_v60 }
 0x2cf   : > { %v1001_v19 = vcombine.high %v967_v7, %v983_v60  ;;  %5970 = vmatprep.subr.bf16.mxu0 %v8382_v11  ;;  %v1180_v1 = vrot.slane %v1172_v17, %v6933_v20  ;;  %v1187_v15 = vrot.slane %v1173_v56, %v6933_v20  ;;  %v1225_v62 = vcombine.high %v6853_v5, %v7129_v57  ;;  %v927_v57 = vpop.permute.xlu0 %926 }
 0x2d0   : > { %5988 = vmatprep.subr.bf16.mxu1 %v8382_v11  ;;  %v992_v28 = vrot.slane %v984_v51, %v6942_v47  ;;  %v999_v6 = vrot.slane %v985_v10, %v6942_v47  ;;  %v1008_v3 = vrot.slane %v1000_v13, %v6942_v47  ;;  %v2407_v30 = vpop.permute.xlu1 %2406 }
 0x2d1   : > { %v1015_v7 = vrot.slane %v1001_v19, %v6942_v47  ;;  %v1188_v38 = vcombine.low %v1164_v0, %v1180_v1  ;;  %v1189_v46 = vcombine.high %v1164_v0, %v1180_v1  ;;  %v1204_v37 = vcombine.low %v1171_v42, %v1187_v15 }
 0x2d2   : > { %v1205_v60 = vcombine.high %v1171_v42, %v1187_v15  ;;  %v1292_v17 = vcombine.low %v992_v28, %v999_v6  ;;  %v5696_v56 = vcombine.high %v992_v28, %v999_v6 }
 0x2d3   : > { %v1308_v40 = vcombine.low %v1008_v3, %v1015_v7  ;;  %v5697_v5 = vcombine.high %v1008_v3, %v1015_v7  ;;  %v1196_v39 = vrot.slane %v1188_v38, %v6942_v47  ;;  %v1203_v51 = vrot.slane %v1189_v46, %v6942_v47 }
 0x2d4   : > { %v1212_v10 = vrot.slane %v1204_v37, %v6942_v47  ;;  %v1219_v13 = vrot.slane %v1205_v60, %v6942_v47  ;;  %v1299_v19 = vrot.slane %v1292_v17, %v6933_v20  ;;  %v1307_v31 = vrot.slane %v5696_v56, %v6933_v20 }
 0x2d5   : > { %v1315_v0 = vrot.slane %v1308_v40, %v6933_v20  ;;  %v1323_v42 = vrot.slane %v5697_v5, %v6933_v20  ;;  %v1496_v1 = vcombine.low %v1196_v39, %v1203_v51  ;;  %v5702_v15 = vcombine.high %v1196_v39, %v1203_v51 }
 0x2d6   : > { %v1512_v28 = vcombine.low %v1212_v10, %v1219_v13  ;;  %v5703_v6 = vcombine.high %v1212_v10, %v1219_v13  ;;  %v1324_v3 = vcombine.low %v1299_v19, %v1307_v31  ;;  %v1325_v7 = vcombine.high %v1299_v19, %v1307_v31 }
 0x2d7   : > { %v1340_v38 = vcombine.low %v1315_v0, %v1323_v42  ;;  %v1341_v46 = vcombine.high %v1315_v0, %v1323_v42  ;;  %v7172_v37 = vrot.slane %v5714_v23, %v6933_v20  ;;  %v7175_v60 = vrot.slane %v2322_v2, %v6933_v20  ;;  %v942_v2 = vpop.permute.xlu0 %941 }
 0x2d8   : > { %v7178_v17 = vrot.slane %v5715_v32, %v6933_v20  ;;  %v7181_v40 = vrot.slane %v1224_v59, %v6933_v20  ;;  %v7184_v39 = vrot.slane %v1324_v3, %v6942_v47  ;;  %v7190_v56 = vrot.slane %v1496_v1, %v6933_v20  ;;  %v2409_v3 = vpop.permute.xlu1 %2408 }
 0x2d9   : > { %v7187_v31 = vrot.slane %v1340_v38, %v6942_v47  ;;  %v7193_v23 = vrot.slane %v5702_v15, %v6933_v20  ;;  %v7196_v5 = vrot.slane %v1512_v28, %v6933_v20  ;;  %v1088_v32 = vcombine.low %v6825_v52, %v927_v57 }
 0x2da   : > { %v1089_v59 = vcombine.high %v6825_v52, %v927_v57  ;;  %v2202_v51 = vcombine.low %v6999_v35, %v7002_v45  ;;  %v7203_v10 = vrot.slane %v1325_v7, %v6942_v47  ;;  %v7206_v13 = vrot.slane %v1341_v46, %v6942_v47 }
 0x2db   : > { %v7209_v19 = vrot.slane %v5703_v6, %v6933_v20  ;;  %v7212_v0 = vrot.slane %v1225_v62, %v6933_v20  ;;  %v2218_v1 = vcombine.low %v7019_v53, %v7022_v54  ;;  %v2270_v15 = vcombine.low %v7063_v49, %v7066_v50  ;;  %v916_v42 = vpop.permute.xlu0 %915 }
 0x2dc   : > { %v2210_v57 = vrot.slane %v2202_v51, %v6942_v47  ;;  %v2286_v28 = vcombine.low %v7071_v63, %v7093_v33  ;;  %v1104_v62 = vcombine.low %v7142_v8, %v942_v2  ;;  %v1105_v6 = vcombine.high %v7142_v8, %v942_v2 }
 0x2dd   : > { %v1096_v7 = vrot.slane %v1088_v32, %v6933_v20  ;;  %v1103_v38 = vrot.slane %v1089_v59, %v6933_v20  ;;  %v2226_v46 = vrot.slane %v2218_v1, %v6942_v47  ;;  %v2436_v51 = vcombine.low %v6702_v14, %v2407_v30 }
 0x2de   : > { %v2278_v26 = vrot.slane %v2270_v15, %v6942_v47  ;;  %v2294_v44 = vrot.slane %v2286_v28, %v6942_v47  ;;  %v1112_v52 = vrot.slane %v1104_v62, %v6933_v20  ;;  %v1119_v25 = vrot.slane %v1105_v6, %v6933_v20 }
 0x2df   : > { %v2234_v11 = vcombine.low %v2210_v57, %v2226_v46  ;;  %v2235_v8 = vcombine.high %v2210_v57, %v2226_v46  ;;  %v2437_v2 = vcombine.high %v6702_v14, %v2407_v30  ;;  %v2504_v32 = vcombine.low %v6704_v16, %v2409_v3 }
 0x2e0   : > { %v2302_v59 = vcombine.low %v2278_v26, %v2294_v44  ;;  %v2303_v29 = vcombine.high %v2278_v26, %v2294_v44  ;;  %v1120_v1 = vcombine.low %v1096_v7, %v1112_v52  ;;  %v1121_v43 = vcombine.high %v1096_v7, %v1112_v52  ;;  %v946_v52 = vpop.permute.xlu0 %945 }
 0x2e1   : > { %v1136_v12 = vcombine.low %v1103_v38, %v1119_v25  ;;  %v1137_v9 = vcombine.high %v1103_v38, %v1119_v25  ;;  %v2444_v15 = vrot.slane %v2436_v51, %v6933_v20  ;;  %v2505_v28 = vcombine.high %v6704_v16, %v2409_v3 }
 0x2e2   : > { %v2375_v62 = vpack.c.bf16 %v2302_v59, %v2234_v11  ;;  %v2378_v61 = vpack.c.bf16 %v2303_v29, %v2235_v8  ;;  %v1128_v6 = vrot.slane %v1120_v1, %v6942_v47  ;;  %v1135_v57 = vrot.slane %v1121_v43, %v6942_v47 }
 0x2e3   : > { %v1144_v14 = vrot.slane %v1136_v12, %v6942_v47  ;;  %v1151_v30 = vrot.slane %v1137_v9, %v6942_v47  ;;  %v7244_v26 = vrot.slane %v2437_v2, %v6933_v20  ;;  %v2338_v25 = vcombine.low %v7145_v34, %v7172_v37  ;;  %v2422_v9 = vpop.permute.xlu1 %2421 }
 0x2e4   : > { %v3142_v44 = vsel %vm3128_vm2, %v2375_v62, 0  ;;  %v3216_v16 = vsel %vm3128_vm2, %v2378_v61, 0  ;;  %v1428_v11 = vcombine.low %v1128_v6, %v1135_v57  ;;  %v5700_v29 = vcombine.high %v1128_v6, %v1135_v57 }
 0x2e5   : > { %5971 = vmatpush3.bf16.xpose.msra.mxu0 %v3142_v44  ;;  %5989 = vmatpush3.bf16.xpose.msra.mxu1 %v3216_v16  ;;  %v1444_v43 = vcombine.low %v1144_v14, %v1151_v30  ;;  %v5701_v3 = vcombine.high %v1144_v14, %v1151_v30  ;;  %v7251_v12 = vrot.slane %v2504_v32, %v6933_v20  ;;  %v8401_v7 = vmov 0.0  }
 0x2e6   : > { %5972 = vmatprep.subr.bf16.mxu0 %v8401_v7  ;;  %5990 = vmatprep.subr.bf16.mxu1 %v8401_v7  ;;  %v7256_v38 = vrot.slane %v2505_v28, %v6933_v20  ;;  %v2346_v61 = vrot.slane %v2338_v25, %v6942_v47  ;;  %v2354_v46 = vcombine.low %v7175_v60, %v7178_v17 }
 0x2e7   : > { %v7262_v51 = vrot.slane %v1428_v11, %v6933_v20  ;;  %v7265_v8 = vrot.slane %v5700_v29, %v6933_v20  ;;  %v1240_v2 = vcombine.low %v916_v42, %v946_v52  ;;  %v1241_v32 = vcombine.high %v916_v42, %v946_v52  ;;  %v2394_v11 = vpop.permute.xlu0 %2393 }
 0x2e8   : > { %v7268_v59 = vrot.slane %v1444_v43, %v6933_v20  ;;  %v2362_v1 = vrot.slane %v2354_v46, %v6942_v47  ;;  %v2452_v28 = vcombine.low %v7161_v4, %v2422_v9  ;;  %v2453_v62 = vcombine.high %v7161_v4, %v2422_v9 }
 0x2e9   : > { %v7274_v6 = vrot.slane %v5701_v3, %v6933_v20  ;;  %v1248_v57 = vrot.slane %v1240_v2, %v6933_v20  ;;  %v1255_v14 = vrot.slane %v1241_v32, %v6933_v20  ;;  %v2135_v30 = vcombine.high %v7007_v55, %v7010_v27  ;;  %v7286_v55 = vpop.permute.xlu1 %2395 }
 0x2ea   : > { %v2370_v42 = vcombine.low %v2346_v61, %v2362_v1  ;;  %v2371_v25 = vcombine.high %v2346_v61, %v2362_v1  ;;  %v2460_v44 = vrot.slane %v2452_v28, %v6933_v20  ;;  %v2467_v16 = vrot.slane %v2453_v62, %v6933_v20 }
 0x2eb   : > { %v1256_v29 = vcombine.low %v7181_v40, %v1248_v57  ;;  %v1257_v4 = vcombine.high %v7181_v40, %v1248_v57  ;;  %v1272_v52 = vcombine.low %v7212_v0, %v1255_v14  ;;  %v1273_v43 = vcombine.high %v7212_v0, %v1255_v14 }
 0x2ec   : > { %v2376_v3 = vpack.c.bf16 %v2370_v42, %v2370_v42  ;;  %v2379_v9 = vpack.c.bf16 %v2371_v25, %v2371_v25  ;;  %v2468_v46 = vcombine.low %v2444_v15, %v2460_v44  ;;  %v2469_v2 = vcombine.high %v2444_v15, %v2460_v44 }
 0x2ed   : > { %v1264_v27 = vrot.slane %v1256_v29, %v6942_v47  ;;  %v1271_v61 = vrot.slane %v1257_v4, %v6942_v47  ;;  %v1280_v32 = vrot.slane %v1272_v52, %v6942_v47  ;;  %v1287_v1 = vrot.slane %v1273_v43, %v6942_v47  ;;  %v2424_v4 = vpop.permute.xlu0 %2423 }
 0x2ee   : > { %v3145_v40 = vsel %vm3128_vm2, %v2376_v3, 0  ;;  %v3219_v28 = vsel %vm3128_vm2, %v2379_v9, 0  ;;  %v2476_v0 = vrot.slane %v2468_v46, %v6942_v47  ;;  %v2483_v62 = vrot.slane %v2469_v2, %v6942_v47 }
 0x2ef   : > { %5973 = vmatpush3.bf16.xpose.msra.mxu0 %v3145_v40  ;;  %5991 = vmatpush3.bf16.xpose.msra.mxu1 %v3219_v28  ;;  %v1564_v15 = vcombine.low %v1264_v27, %v1271_v61  ;;  %v5704_v57 = vcombine.high %v1264_v27, %v1271_v61  ;;  %v1580_v14 = vcombine.low %v1280_v32, %v1287_v1  ;;  %v2411_v40 = vpop.permute.xlu1 %2410 }
 0x2f0   : > { %v5705_v42 = vcombine.high %v1280_v32, %v1287_v1  ;;  %v2484_v25 = vcombine.low %v7244_v26, %v2467_v16  ;;  %v2485_v44 = vcombine.high %v7244_v26, %v2467_v16  ;;  %v2776_v29 = vcombine.low %v2476_v0, %v2483_v62  ;;  %6004 = vmatprep.subr.bf16.mxu0 %v8401_v7 }
 0x2f1   : > { %v7300_v52 = vrot.slane %v1564_v15, %v6933_v20  ;;  %v5716_v43 = vcombine.high %v2476_v0, %v2483_v62  ;;  %v8402_v3 = vcombine.low %v7184_v39, %v7187_v31  ;;  %v8403_v9 = vcombine.low %v7077_v58, %v7083_v41  ;;  %6022 = vmatprep.subr.bf16.mxu1 %v8401_v7 }
 0x2f2   : > { %v8404_v2 = vcombine.high %v7184_v39, %v7187_v31  ;;  %v8405_v26 = vcombine.high %v7077_v58, %v7083_v41  ;;  %v7316_v27 = vrot.slane %v5704_v57, %v6933_v20  ;;  %v7319_v61 = vrot.slane %v1580_v14, %v6933_v20 }
 0x2f3   : > { %v1632_v46 = vpack.c.bf16 %v8403_v9, %v8402_v3  ;;  %v2492_v32 = vrot.slane %v2484_v25, %v6942_v47  ;;  %v2499_v1 = vrot.slane %v2485_v44, %v6942_v47  ;;  %v7324_v28 = vrot.slane %v5705_v42, %v6933_v20 }
 0x2f4   : > { %v1635_v16 = vpack.c.bf16 %v8405_v26, %v8404_v2  ;;  %v2149_v39 = vrot.slane %v2135_v30, %v6942_v47  ;;  %v2151_v58 = vcombine.high %v7013_v36, %v7016_v18  ;;  %v2520_v41 = vcombine.low %v2394_v11, %v2424_v4 }
 0x2f5   : > { %v7330_v31 = vrot.slane %v2776_v29, %v6933_v20  ;;  %v2792_v0 = vcombine.low %v2492_v32, %v2499_v1  ;;  %v5717_v62 = vcombine.high %v2492_v32, %v2499_v1  ;;  %v2521_v15 = vcombine.high %v2394_v11, %v2424_v4 }
 0x2f6   : > { %v7333_v57 = vrot.slane %v5716_v43, %v6933_v20  ;;  %v2165_v14 = vrot.slane %v2151_v58, %v6942_v47  ;;  %v2528_v42 = vrot.slane %v2520_v41, %v6933_v20  ;;  %v2572_v25 = vcombine.low %v6712_v21, %v2411_v40  ;;  %5975 = vmatmul.mubr.msk.bf16.vlgmr.msra.gmra.mrb[12].mxu0 %vm3128_vm2, %v1632_v46 }
 0x2f7   : > { %5993 = vmatmul.mubr.msk.bf16.vlgmr.msra.gmra.mrb[12].mxu1 %vm3128_vm2, %v1635_v16  ;;  %v2535_v36 = vrot.slane %v2521_v15, %v6933_v20  ;;  %v2573_v18 = vcombine.high %v6712_v21, %v2411_v40  ;;  %v1460_v30 = vcombine.low %v7262_v51, %v7265_v8  ;;  %5978 = vmatprep.mubr.msk.bf16.mxu0 %vm6497_vm0, %v8401_v7  ;;  %v2398_v40 = vpop.permute.xlu0 %2397 }
 0x2f8   : > { %v2168_v11 = vcombine.low %v2149_v39, %v2165_v14  ;;  %v2169_v44 = vcombine.high %v2149_v39, %v2165_v14  ;;  %v2536_v29 = vcombine.low %v7251_v12, %v2528_v42  ;;  %v2537_v4 = vcombine.high %v7251_v12, %v2528_v42  ;;  %5996 = vmatprep.mubr.msk.bf16.mxu1 %vm6497_vm0, %v8401_v7  ;;  %v2413_v42 = vpop.permute.xlu1 %2412 }
 0x2f9   : > { %v7349_v43 = vrot.slane %v2792_v0, %v6933_v20  ;;  %v7352_v3 = vrot.slane %v5717_v62, %v6933_v20  ;;  %v2552_v21 = vcombine.low %v7256_v38, %v2535_v36  ;;  %v2553_v9 = vcombine.high %v7256_v38, %v2535_v36 }
 0x2fa   : > { %v8406_v46 = vcombine.low %v6975_v48, %v6978_v22  ;;  %v8407_v2 = vcombine.high %v6975_v48, %v6978_v22  ;;  %v2544_v16 = vrot.slane %v2536_v29, %v6942_v47  ;;  %v2551_v32 = vrot.slane %v2537_v4, %v6942_v47 }
 0x2fb   : > { %v7367_v1 = vrot.slane %v2552_v21, %v6942_v47  ;;  %v7370_v38 = vrot.slane %v2553_v9, %v6942_v47  ;;  %v1468_v39 = vrot.slane %v1460_v30, %v6942_v47  ;;  %v1476_v58 = vcombine.low %v7268_v59, %v7274_v6 }
 0x2fc   : > { %v2380_v12 = vpack.c.bf16 %v2168_v11, %v8406_v46  ;;  %v2383_v26 = vpack.c.bf16 %v2169_v44, %v8407_v2  ;;  %v2844_v22 = vcombine.low %v2544_v16, %v2551_v32  ;;  %v5718_v0 = vcombine.high %v2544_v16, %v2551_v32 }
 0x2fd   : > { %v7378_v62 = vrot.slane %v2572_v25, %v6933_v20  ;;  %v7381_v15 = vrot.slane %v2573_v18, %v6933_v20  ;;  %v1484_v14 = vrot.slane %v1476_v58, %v6942_v47  ;;  %v2860_v36 = vcombine.low %v7367_v1, %v7370_v38 }
 0x2fe   : > { %v3287_v41 = vsel %vm3128_vm2, %v2380_v12, 0  ;;  %v3361_v48 = vsel %vm3128_vm2, %v2383_v26, 0  ;;  %v5719_v30 = vcombine.high %v7367_v1, %v7370_v38  ;;  %v1528_v11 = vcombine.low %v7190_v56, %v7193_v23 }
 0x2ff   : > { %6005 = vmatpush3.bf16.xpose.msra.mxu0 %v3287_v41  ;;  %6023 = vmatpush3.bf16.xpose.msra.mxu1 %v3361_v48  ;;  %v1544_v44 = vcombine.low %v7196_v5, %v7209_v19  ;;  %v7394_v25 = vrot.slane %v2844_v22, %v6933_v20  ;;  %v7397_v18 = vrot.slane %v5718_v0, %v6933_v20 }
 0x300   : > { %6006 = vmatprep.subr.bf16.mxu0 %v8401_v7  ;;  %v1492_v29 = vcombine.low %v1468_v39, %v1484_v14  ;;  %v1493_v4 = vcombine.high %v1468_v39, %v1484_v14  ;;  %6024 = vmatprep.subr.bf16.mxu1 %v8401_v7  ;;  %v1536_v21 = vrot.slane %v1528_v11, %v6942_v47  ;;  %v2428_v39 = vpop.permute.xlu0 %2427 }
 0x301   : > { %v1552_v9 = vrot.slane %v1544_v44, %v6942_v47  ;;  %v2640_v46 = vcombine.low %v6716_v24, %v2413_v42  ;;  %v2641_v12 = vcombine.high %v6716_v24, %v2413_v42  ;;  %v2203_v2 = vcombine.high %v6999_v35, %v7002_v45 }
 0x302   : > { %v2219_v26 = vcombine.high %v7019_v53, %v7022_v54  ;;  %v2271_v16 = vcombine.high %v7063_v49, %v7066_v50  ;;  %v2287_v32 = vcombine.high %v7071_v63, %v7093_v33  ;;  %v2426_v54 = vpop.permute.xlu1 %2425  ;;  %v2656_v0 = vcombine.low %v2398_v40, %v2428_v39 }
 0x303   : > { %v1560_v58 = vcombine.low %v1536_v21, %v1552_v9  ;;  %v1561_v41 = vcombine.high %v1536_v21, %v1552_v9  ;;  %v2648_v48 = vrot.slane %v2640_v46, %v6933_v20  ;;  %v2655_v22 = vrot.slane %v2641_v12, %v6933_v20 }
 0x304   : > { %v2217_v24 = vrot.slane %v2203_v2, %v6942_v47  ;;  %v2233_v35 = vrot.slane %v2219_v26, %v6942_v47  ;;  %v2285_v45 = vrot.slane %v2271_v16, %v6942_v47  ;;  %v2301_v53 = vrot.slane %v2287_v32, %v6942_v47 }
 0x305   : > { %v1633_v49 = vpack.c.bf16 %v1560_v58, %v1492_v29  ;;  %v1636_v50 = vpack.c.bf16 %v1561_v41, %v1493_v4  ;;  %v2657_v63 = vcombine.high %v2398_v40, %v2428_v39  ;;  %v2664_v44 = vrot.slane %v2656_v0, %v6933_v20 }
 0x306   : > { %v2236_v33 = vcombine.low %v2217_v24, %v2233_v35  ;;  %v2304_v14 = vcombine.low %v2285_v45, %v2301_v53  ;;  %v2237_v42 = vcombine.high %v2217_v24, %v2233_v35  ;;  %v2305_v11 = vcombine.high %v2285_v45, %v2301_v53 }
 0x307   : > { %5979 = vmatmul.mubr.msk.bf16.gmra.mrb[16].mxu0 %vm3128_vm2, %v1633_v49  ;;  %5997 = vmatmul.mubr.msk.bf16.gmra.mrb[16].mxu1 %vm3128_vm2, %v1636_v50  ;;  %v2671_v21 = vrot.slane %v2657_v63, %v6933_v20  ;;  %v2588_v9 = vcombine.low %v7286_v55, %v2426_v54  ;;  %v2589_v29 = vcombine.high %v7286_v55, %v2426_v54 }
 0x308   : > { %v2381_v46 = vpack.c.bf16 %v2304_v14, %v2236_v33  ;;  %v2384_v12 = vpack.c.bf16 %v2305_v11, %v2237_v42  ;;  %5982 = vmatprep.mubr.msk.bf16.mxu0 %vm6497_vm0, %v8401_v7  ;;  %6000 = vmatprep.mubr.msk.bf16.mxu1 %vm6497_vm0, %v8401_v7  ;;  %v2672_v40 = vcombine.low %v2648_v48, %v2664_v44 }
 0x309   : > { %v2673_v4 = vcombine.high %v2648_v48, %v2664_v44  ;;  %v2688_v2 = vcombine.low %v2655_v22, %v2671_v21  ;;  %v2689_v26 = vcombine.high %v2655_v22, %v2671_v21  ;;  %v2596_v39 = vrot.slane %v2588_v9, %v6933_v20 }
 0x30a   : > { %v3290_v16 = vsel %vm3128_vm2, %v2381_v46, 0  ;;  %v3364_v32 = vsel %vm3128_vm2, %v2384_v12, 0  ;;  %v2603_v58 = vrot.slane %v2589_v29, %v6933_v20  ;;  %v2680_v55 = vrot.slane %v2672_v40, %v6942_v47 }
 0x30b   : > { %6007 = vmatpush3.bf16.xpose.msra.mxu0 %v3290_v16  ;;  %6025 = vmatpush3.bf16.xpose.msra.mxu1 %v3364_v32  ;;  %v2687_v41 = vrot.slane %v2673_v4, %v6942_v47  ;;  %v2696_v24 = vrot.slane %v2688_v2, %v6942_v47  ;;  %v2703_v48 = vrot.slane %v2689_v26, %v6942_v47 }
 0x30c   : > { %v2604_v22 = vcombine.low %v7378_v62, %v2596_v39  ;;  %v2605_v35 = vcombine.high %v7378_v62, %v2596_v39  ;;  %v2620_v45 = vcombine.low %v7381_v15, %v2603_v58  ;;  %6008 = vmatprep.subr.bf16.mxu0 %v8401_v7  ;;  %v2621_v49 = vcombine.high %v7381_v15, %v2603_v58 }
 0x30d   : > { %v2980_v53 = vcombine.low %v2680_v55, %v2687_v41  ;;  %v5722_v54 = vcombine.high %v2680_v55, %v2687_v41  ;;  %v1596_v50 = vcombine.low %v7300_v52, %v7316_v27  ;;  %6026 = vmatprep.subr.bf16.mxu1 %v8401_v7  ;;  %v2996_v0 = vcombine.low %v2696_v24, %v2703_v48 }
 0x30e   : > { %v5723_v63 = vcombine.high %v2696_v24, %v2703_v48  ;;  %v2612_v33 = vrot.slane %v2604_v22, %v6942_v47  ;;  %v2619_v14 = vrot.slane %v2605_v35, %v6942_v47  ;;  %v7450_v62 = vrot.slane %v2860_v36, %v6933_v20 }
 0x30f   : > { %v7456_v15 = vrot.slane %v5719_v30, %v6933_v20  ;;  %v2628_v42 = vrot.slane %v2620_v45, %v6942_v47  ;;  %v2635_v11 = vrot.slane %v2621_v49, %v6942_v47  ;;  %v7461_v44 = vrot.slane %v2980_v53, %v6933_v20 }
 0x310   : > { %v7464_v21 = vrot.slane %v5722_v54, %v6933_v20  ;;  %v2912_v9 = vcombine.low %v2612_v33, %v2619_v14  ;;  %v5720_v46 = vcombine.high %v2612_v33, %v2619_v14  ;;  %v1604_v29 = vrot.slane %v1596_v50, %v6942_v47 }
 0x311   : > { %v2928_v36 = vcombine.low %v2628_v42, %v2635_v11  ;;  %v5721_v12 = vcombine.high %v2628_v42, %v2635_v11  ;;  %v1612_v1 = vcombine.low %v7319_v61, %v7324_v28  ;;  %v7470_v38 = vrot.slane %v2996_v0, %v6933_v20 }
 0x312   : > { %v7473_v30 = vrot.slane %v5723_v63, %v6933_v20  ;;  %v2339_v40 = vcombine.high %v7145_v34, %v7172_v37  ;;  %v2355_v4 = vcombine.high %v7175_v60, %v7178_v17  ;;  %v7480_v2 = vrot.slane %v2912_v9, %v6933_v20 }
 0x313   : > { %v7483_v26 = vrot.slane %v5720_v46, %v6933_v20  ;;  %v7486_v16 = vrot.slane %v2928_v36, %v6933_v20  ;;  %v1620_v32 = vrot.slane %v1612_v1, %v6942_v47  ;;  %v7490_v39 = vrot.slane %v5721_v12, %v6933_v20 }
 0x314   : > { %v2353_v58 = vrot.slane %v2339_v40, %v6942_v47  ;;  %v2369_v34 = vrot.slane %v2355_v4, %v6942_v47  ;;  %v2808_v37 = vcombine.low %v7330_v31, %v7333_v57  ;;  %v2824_v55 = vcombine.low %v7349_v43, %v7352_v3 }
 0x315   : > { %v1628_v60 = vcombine.low %v1604_v29, %v1620_v32  ;;  %v1629_v17 = vcombine.high %v1604_v29, %v1620_v32  ;;  %v2876_v41 = vcombine.low %v7394_v25, %v7397_v18  ;;  %v2892_v35 = vcombine.low %v7450_v62, %v7456_v15 }
 0x316   : > { %v2372_v24 = vcombine.low %v2353_v58, %v2369_v34  ;;  %v2373_v48 = vcombine.high %v2353_v58, %v2369_v34  ;;  %v2816_v22 = vrot.slane %v2808_v37, %v6942_v47  ;;  %v2832_v54 = vrot.slane %v2824_v55, %v6942_v47  ;;  %v8409_v58 = vld [vmem:[#allocation10_spill] sm:$0xff] }
 0x317   : > { %v1634_v45 = vpack.c.bf16 %v1628_v60, %v1628_v60  ;;  %v1637_v53 = vpack.c.bf16 %v1629_v17, %v1629_v17  ;;  %v2884_v49 = vrot.slane %v2876_v41, %v6942_v47  ;;  %v2900_v63 = vrot.slane %v2892_v35, %v6942_v47 }
 0x318   : > { %v2382_v50 = vpack.c.bf16 %v2372_v24, %v2372_v24  ;;  %v2385_v0 = vpack.c.bf16 %v2373_v48, %v2373_v48  ;;  %v1461_v33 = vcombine.high %v7262_v51, %v7265_v8  ;;  %v2840_v14 = vcombine.low %v2816_v22, %v2832_v54 }
 0x319   : > { %5983 = vmatmul.mubr.msk.bf16.gmra.mrb[20].mxu0 %vm3128_vm2, %v1634_v45  ;;  %6001 = vmatmul.mubr.msk.bf16.gmra.mrb[20].mxu1 %vm3128_vm2, %v1637_v53  ;;  %v2841_v42 = vcombine.high %v2816_v22, %v2832_v54  ;;  %v1477_v11 = vcombine.high %v7268_v59, %v7274_v6  ;;  %v2908_v51 = vcombine.low %v2884_v49, %v2900_v63 }
 0x31a   : > { %v3293_v9 = vsel %vm3128_vm2, %v2382_v50, 0  ;;  %v3367_v46 = vsel %vm3128_vm2, %v2385_v0, 0  ;;  %6010 = vmatprep.mubr.msk.bf16.mxu0 %vm6497_vm0, %v8401_v7  ;;  %6028 = vmatprep.mubr.msk.bf16.mxu1 %vm6497_vm0, %v8401_v7  ;;  %v2909_v8 = vcombine.high %v2884_v49, %v2900_v63  ;;  %v1358_v36 = vcombine.low %v7203_v10, %v7206_v13 }
 0x31b   : > { %v1359_v12 = vcombine.high %v7203_v10, %v7206_v13  ;;  %6009 = vmatpush3.bf16.xpose.msra.mxu0 %v3293_v9  ;;  %6027 = vmatpush3.bf16.xpose.msra.mxu1 %v3367_v46  ;;  %v1529_v59 = vcombine.high %v7190_v56, %v7193_v23  ;;  %v3116_v6 = vpack.c.bf16 %v2908_v51, %v2840_v14 }
 0x31c   : > { %6040 = vmatprep.subr.bf16.mxu0 %v8401_v7  ;;  %6058 = vmatprep.subr.bf16.mxu1 %v8401_v7  ;;  %v3119_v29 = vpack.c.bf16 %v2909_v8, %v2841_v42  ;;  %v1545_v1 = vcombine.high %v7196_v5, %v7209_v19  ;;  %v1475_v40 = vrot.slane %v1461_v33, %v6942_v47  ;;  %v8408_v19 = vld [vmem:[#allocation9_spill] sm:$0xff] }
 0x31d   : > { %v1491_v4 = vrot.slane %v1477_v11, %v6942_v47  ;;  %v1543_v10 = vrot.slane %v1529_v59, %v6942_v47  ;;  %v2944_v13 = vcombine.low %v7480_v2, %v7483_v26  ;;  %v2960_v23 = vcombine.low %v7486_v16, %v7490_v39 }
 0x31e   : > { %v1559_v56 = vrot.slane %v1545_v1, %v6942_v47  ;;  %v3012_v32 = vcombine.low %v7461_v44, %v7464_v21  ;;  %v3028_v5 = vcombine.low %v7470_v38, %v7473_v30  ;;  %v8410_v34 = vcombine.low %v8408_v19, %v8409_v58 }
 0x31f   : > { %v2952_v60 = vrot.slane %v2944_v13, %v6942_v47  ;;  %v1597_v17 = vcombine.high %v7300_v52, %v7316_v27  ;;  %v2809_v55 = vcombine.high %v7330_v31, %v7333_v57  ;;  %v8411_v41 = vcombine.high %v8408_v19, %v8409_v58 }
 0x320   : > { %v1638_v37 = vpack.c.bf16 %v8410_v34, %v1358_v36  ;;  %v2968_v48 = vrot.slane %v2960_v23, %v6942_v47  ;;  %v3020_v22 = vrot.slane %v3012_v32, %v6942_v47  ;;  %v1613_v35 = vcombine.high %v7319_v61, %v7324_v28  ;;  %v8412_v23 = vld [vmem:[#allocation8_spill] sm:$0xff] }
 0x321   : > { %v1641_v24 = vpack.c.bf16 %v8411_v41, %v1359_v12  ;;  %v1494_v45 = vcombine.low %v1475_v40, %v1491_v4  ;;  %v1562_v53 = vcombine.low %v1543_v10, %v1559_v56  ;;  %v1495_v54 = vcombine.high %v1475_v40, %v1491_v4 }
 0x322   : > { %v3036_v49 = vrot.slane %v3028_v5, %v6942_v47  ;;  %6011 = vmatmul.mubr.msk.bf16.vlgmr.msra.gmra.mrb[24].mxu0 %vm3128_vm2, %v1638_v37  ;;  %v1563_v52 = vcombine.high %v1543_v10, %v1559_v56  ;;  %v2976_v27 = vcombine.low %v2952_v60, %v2968_v48  ;;  %v1611_v31 = vrot.slane %v1597_v17, %v6942_v47  ;;  %v8413_v5 = vld [vmem:[#allocation7_spill] sm:$0xff] }
 0x323   : > { %6029 = vmatmul.mubr.msk.bf16.vlgmr.msra.gmra.mrb[24].mxu1 %vm3128_vm2, %v1641_v24  ;;  %6041 = vmatpush3.bf16.msra.mxu0 %v3116_v6  ;;  %v2977_v50 = vcombine.high %v2952_v60, %v2968_v48  ;;  %v1627_v61 = vrot.slane %v1613_v35, %v6942_v47  ;;  %v2823_v28 = vrot.slane %v2809_v55, %v6942_v47  ;;  %v7611_v32 = vadd.s32 8, %v8412_v23 }
 0x324   : > { %6059 = vmatpush3.bf16.msra.mxu1 %v3119_v29  ;;  %v3044_v57 = vcombine.low %v3020_v22, %v3036_v49  ;;  %v3045_v0 = vcombine.high %v3020_v22, %v3036_v49  ;;  %6014 = vmatprep.mubr.msk.bf16.mxu0 %vm6497_vm0, %v8401_v7  ;;  %v2825_v63 = vcombine.high %v7349_v43, %v7352_v3  ;;  %v7644_v49 = vadd.s32 16, %v8412_v23 }
 0x325   : > { %6032 = vmatprep.mubr.msk.bf16.mxu1 %vm6497_vm0, %v8401_v7  ;;  %6042 = vmatprep.subr.bf16.mxu0 %v8401_v7  ;;  %v2877_v42 = vcombine.high %v7394_v25, %v7397_v18  ;;  %v1639_v11 = vpack.c.bf16 %v1562_v53, %v1494_v45  ;;  %v1642_v9 = vpack.c.bf16 %v1563_v52, %v1495_v54 }
 0x326   : > { %6060 = vmatprep.subr.bf16.mxu1 %v8401_v7  ;;  %v3117_v33 = vpack.c.bf16 %v3044_v57, %v2976_v27  ;;  %v3120_v14 = vpack.c.bf16 %v3045_v0, %v2977_v50  ;;  %v2839_v46 = vrot.slane %v2825_v63, %v6942_v47  ;;  %v2893_v51 = vcombine.high %v7450_v62, %v7456_v15 }
 0x327   : > { %v2891_v43 = vrot.slane %v2877_v42, %v6942_v47  ;;  %v2945_v3 = vcombine.high %v7480_v2, %v7483_v26  ;;  %v2961_v8 = vcombine.high %v7486_v16, %v7490_v39  ;;  %v3013_v12 = vcombine.high %v7461_v44, %v7464_v21 }
 0x328   : > { %6043 = vmatpush3.bf16.msra.mxu0 %v3117_v33  ;;  %6061 = vmatpush3.bf16.msra.mxu1 %v3120_v14  ;;  %v2842_v25 = vcombine.low %v2823_v28, %v2839_v46  ;;  %v2907_v18 = vrot.slane %v2893_v51, %v6942_v47  ;;  %v2843_v36 = vcombine.high %v2823_v28, %v2839_v46  ;;  %v7649_v27 = vadd.s32 24, %v8412_v23 }
 0x329   : > { %6044 = vmatprep.subr.bf16.mxu0 %v8401_v7  ;;  %6062 = vmatprep.subr.bf16.mxu1 %v8401_v7  ;;  %v2959_v62 = vrot.slane %v2945_v3, %v6942_v47  ;;  %v2975_v15 = vrot.slane %v2961_v8, %v6942_v47  ;;  %v3029_v2 = vcombine.high %v7470_v38, %v7473_v30  ;;  %v3430_v8 = vadd.s32 32, %v8412_v23 }
 0x32a   : > { %6015 = vmatmul.mubr.msk.bf16.gmra.mrb[28].mxu0 %vm3128_vm2, %v1639_v11  ;;  %v1630_v26 = vcombine.low %v1611_v31, %v1627_v61  ;;  %v2910_v16 = vcombine.low %v2891_v43, %v2907_v18  ;;  %v2911_v39 = vcombine.high %v2891_v43, %v2907_v18  ;;  %v3027_v6 = vrot.slane %v3013_v12, %v6942_v47 }
 0x32b   : > { %6033 = vmatmul.mubr.msk.bf16.gmra.mrb[28].mxu1 %vm3128_vm2, %v1642_v9  ;;  %6018 = vmatprep.mubr.msk.bf16.mxu0 %vm6497_vm0, %v8401_v7  ;;  %v2978_v59 = vcombine.low %v2959_v62, %v2975_v15  ;;  %v3043_v44 = vrot.slane %v3029_v2, %v6942_v47  ;;  %v1631_v21 = vcombine.high %v1611_v31, %v1627_v61 }
 0x32c   : > { %6036 = vmatprep.mubr.msk.bf16.mxu1 %vm6497_vm0, %v8401_v7  ;;  %v7596_v38 = vpack.c.bf16 %v2910_v16, %v2842_v25  ;;  %v7598_v30 = vpack.c.bf16 %v2911_v39, %v2843_v36  ;;  %v2979_v29 = vcombine.high %v2959_v62, %v2975_v15  ;;  %v1640_v13 = vpack.c.bf16 %v1630_v26, %v1630_v26 }
 0x32d   : > { %v3046_v1 = vcombine.low %v3027_v6, %v3043_v44  ;;  %v3047_v40 = vcombine.high %v3027_v6, %v3043_v44  ;;  %v1643_v56 = vpack.c.bf16 %v1631_v21, %v1631_v21  ;;  %vm3431_vm3 = vcmp.ge.s32.totalorder %v8412_v23, %v8413_v5 }
 0x32e   : > { %vm3432_vm5 = vcmp.ge.s32.totalorder %v7611_v32, %v8413_v5  ;;  %vm3433_vm6 = vcmp.ge.s32.totalorder %v7644_v49, %v8413_v5  ;;  %vm3434_vm7 = vcmp.ge.s32.totalorder %v7649_v27, %v8413_v5  ;;  %vm3435_vm8 = vcmp.ge.s32.totalorder %v3430_v8, %v8413_v5 }
 0x32f   : > { %v7600_v4 = vpack.c.bf16 %v3046_v1, %v2978_v59  ;;  %v7602_v10 = vpack.c.bf16 %v3047_v40, %v2979_v29 }
 0x332   : > { %6019 = vmatmul.mubr.msk.bf16.gmra.mrb[32].mxu0 %vm3128_vm2, %v1640_v13 }
 0x333   : > { %6037 = vmatmul.mubr.msk.bf16.gmra.mrb[32].mxu1 %vm3128_vm2, %v1643_v56  ;;  %6046 = vmatprep.mubr.msk.bf16.mxu0 %vm6497_vm0, %v8401_v7 }
 0x334   : > { %6064 = vmatprep.mubr.msk.bf16.mxu1 %vm6497_vm0, %v8401_v7 }
 0x3c9   : > { %v3181_v19 = vpop.f32.mrb[12].mxu0 }
 0x3ca   : > { %v3255_v58 = vpop.f32.mrb[12].mxu1  ;;  %v7620_v34 = vsel %vm3431_vm3, %v3181_v19, -1e+30  ;;  %v5976_v60 = vpop.f32.mrb[13].mxu0 }
 0x3cb   : > { %v7625_v37 = vsel %vm3431_vm3, %v3255_v58, -1e+30  ;;  %v5994_v17 = vpop.f32.mrb[13].mxu1  ;;  %v3184_v55 = vpop.f32.mrb[14].mxu0  ;;  %v3467_v48 = vsel %vm3466_vm4, %v7620_v34, -inf }
 0x3cc   : > { %v3258_v41 = vpop.f32.mrb[14].mxu1  ;;  %v3482_v24 = vsel %vm3466_vm4, %v7625_v37, -inf  ;;  %v7634_v22 = vsel %vm3432_vm5, %v3184_v55, -1e+30  ;;  %3468 = vmax.xlane.f32.xlu1 %v3467_v48  ;;  %v5977_v45 = vpop.f32.mrb[15].mxu0 }
 0x3cd   : > { %3483 = vmax.xlane.f32.xlu0 %v3482_v24  ;;  %v5995_v35 = vpop.f32.mrb[15].mxu1  ;;  %v3470_v53 = vsel %vm3466_vm4, %v7634_v22, -inf  ;;  %v7641_v54 = vsel %vm3432_vm5, %v3258_v41, -1e+30 }
 0x3ce   : > { %v3485_v52 = vsel %vm3466_vm4, %v7641_v54, -inf }
 0x3d1   : > { %3471 = vmax.xlane.f32.xlu0 %v3470_v53 }
 0x3d5   : > { %3486 = vmax.xlane.f32.xlu0 %v3485_v52 }
 0x3da   : > { %v3189_v31 = vpop.f32.mrb[16].mxu0  ;;  %v3263_v57 = vpop.f32.mrb[16].mxu1 }
 0x3db   : > { %v7658_v50 = vsel %vm3433_vm6, %v3189_v31, -1e+30  ;;  %v5980_v0 = vpop.f32.mrb[17].mxu0  ;;  %v5998_v61 = vpop.f32.mrb[17].mxu1  ;;  %v7665_v14 = vsel %vm3433_vm6, %v3263_v57, -1e+30 }
 0x3dc   : > { %v3192_v28 = vpop.f32.mrb[18].mxu0  ;;  %v3266_v63 = vpop.f32.mrb[18].mxu1  ;;  %v3473_v33 = vsel %vm3466_vm4, %v7658_v50, -inf  ;;  %v3488_v43 = vsel %vm3466_vm4, %v7665_v14, -inf }
 0x3dd   : > { %v7670_v42 = vsel %vm3434_vm7, %v3192_v28, -1e+30  ;;  %v5999_v11 = vpop.f32.mrb[19].mxu1  ;;  %3474 = vmax.xlane.f32.xlu1 %v3473_v33  ;;  %v5981_v9 = vpop.f32.mrb[19].mxu0  ;;  %v7677_v51 = vsel %vm3434_vm7, %v3266_v63, -1e+30 }
 0x3de   : > { %v3476_v46 = vsel %vm3466_vm4, %v7670_v42, -inf  ;;  %v3491_v3 = vsel %vm3466_vm4, %v7677_v51, -inf }
 0x3df   : > { %3477 = vmax.xlane.f32.xlu0 %v3476_v46 }
 0x3e1   : > { %3489 = vmax.xlane.f32.xlu1 %v3488_v43 }
 0x3e3   : > { %3492 = vmax.xlane.f32.xlu0 %v3491_v3 }
 0x3ec   : > { %v3197_v25 = vpop.f32.mrb[20].mxu0  ;;  %v3271_v18 = vpop.f32.mrb[20].mxu1 }
 0x3ed   : > { %v7687_v36 = vsel %vm3435_vm8, %v3197_v25, -1e+30  ;;  %v7691_v62 = vsel %vm3435_vm8, %v3271_v18, -1e+30  ;;  %v5984_v15 = vpop.f32.mrb[21].mxu0  ;;  %v6002_v12 = vpop.f32.mrb[21].mxu1 }
 0x3ee   : > { %v3200_v2 = vpop.f32.mrb[22].mxu0  ;;  %v3274_v26 = vpop.f32.mrb[22].mxu1  ;;  %v3479_v16 = vsel %vm3466_vm4, %v7687_v36, -inf  ;;  %v3494_v39 = vsel %vm3466_vm4, %v7691_v62, -inf }
 0x3ef   : > { %v6003_v59 = vpop.f32.mrb[23].mxu1  ;;  %3480 = vmax.xlane.f32.xlu1 %v3479_v16  ;;  %v5985_v6 = vpop.f32.mrb[23].mxu0  ;;  %3495 = vmax.xlane.f32.xlu0 %v3494_v39 }
 0x3f0   : > { %v8414_v59 = vld [vmem:[#allocation6_spill] sm:$0xff] }
 0x3f5   : > { %v3329_v44 = vpop.f32.mrb[24].mxu0 }
 0x3f6   : > { %v3403_v21 = vpop.f32.mrb[24].mxu1  ;;  %v7700_v29 = vsel %vm3431_vm3, %v3329_v44, -1e+30  ;;  %v6012_v1 = vpop.f32.mrb[25].mxu0 }
 0x3f7   : > { %v6030_v40 = vpop.f32.mrb[25].mxu1  ;;  %v3332_v13 = vpop.f32.mrb[26].mxu0  ;;  %v3497_v19 = vsel %vm3466_vm4, %v7700_v29, -inf  ;;  %v7707_v58 = vsel %vm3431_vm3, %v3403_v21, -1e+30 }
 0x3f8   : > { %v3406_v56 = vpop.f32.mrb[26].mxu1  ;;  %v7712_v60 = vsel %vm3432_vm5, %v3332_v13, -1e+30  ;;  %3498 = vmax.xlane.f32.xlu1 %v3497_v19  ;;  %v6013_v55 = vpop.f32.mrb[27].mxu0  ;;  %v3512_v23 = vsel %vm3466_vm4, %v7707_v58, -inf }
 0x3f9   : > { %v6031_v17 = vpop.f32.mrb[27].mxu1  ;;  %v3500_v41 = vsel %vm3466_vm4, %v7712_v60, -inf  ;;  %v7719_v24 = vsel %vm3432_vm5, %v3406_v56, -1e+30 }
 0x3fa   : > { %3501 = vmax.xlane.f32.xlu0 %v3500_v41  ;;  %v3515_v45 = vsel %vm3466_vm4, %v7719_v24, -inf }
 0x3fc   : > { %3513 = vmax.xlane.f32.xlu1 %v3512_v23 }
 0x3fd   : > { %v3337_v48 = vpop.f32.mrb[28].mxu0 }
 0x3fe   : > { %v3411_v35 = vpop.f32.mrb[28].mxu1  ;;  %v7728_v53 = vsel %vm3433_vm6, %v3337_v48, -1e+30  ;;  %3516 = vmax.xlane.f32.xlu0 %v3515_v45  ;;  %v6016_v32 = vpop.f32.mrb[29].mxu0 }
 0x3ff   : > { %v6034_v52 = vpop.f32.mrb[29].mxu1  ;;  %v3340_v31 = vpop.f32.mrb[30].mxu0  ;;  %v3503_v0 = vsel %vm3466_vm4, %v7728_v53, -inf  ;;  %v7735_v61 = vsel %vm3433_vm6, %v3411_v35, -1e+30 }
 0x400   : > { %v3414_v57 = vpop.f32.mrb[30].mxu1  ;;  %v7740_v28 = vsel %vm3434_vm7, %v3340_v31, -1e+30  ;;  %3504 = vmax.xlane.f32.xlu1 %v3503_v0  ;;  %v6017_v33 = vpop.f32.mrb[31].mxu0  ;;  %v3518_v49 = vsel %vm3466_vm4, %v7735_v61, -inf }
 0x401   : > { %v6035_v63 = vpop.f32.mrb[31].mxu1  ;;  %v3506_v11 = vsel %vm3466_vm4, %v7740_v28, -inf  ;;  %v7747_v9 = vsel %vm3434_vm7, %v3414_v57, -1e+30 }
 0x402   : > { %3507 = vmax.xlane.f32.xlu0 %v3506_v11  ;;  %v3521_v3 = vsel %vm3466_vm4, %v7747_v9, -inf }
 0x404   : > { %3519 = vmax.xlane.f32.xlu1 %v3518_v49 }
 0x405   : > { %v3345_v46 = vpop.f32.mrb[32].mxu0 }
 0x406   : > { %v3419_v43 = vpop.f32.mrb[32].mxu1  ;;  %v7755_v25 = vsel %vm3435_vm8, %v3345_v46, -1e+30  ;;  %3522 = vmax.xlane.f32.xlu0 %v3521_v3  ;;  %v6020_v15 = vpop.f32.mrb[33].mxu0 }
 0x407   : > { %v7759_v18 = vsel %vm3435_vm8, %v3419_v43, -1e+30  ;;  %v6038_v27 = vpop.f32.mrb[33].mxu1  ;;  %v3348_v12 = vpop.f32.mrb[34].mxu0  ;;  %v3509_v5 = vsel %vm3466_vm4, %v7755_v25, -inf }
 0x408   : > { %v3422_v2 = vpop.f32.mrb[34].mxu1  ;;  %v6021_v26 = vpop.f32.mrb[35].mxu0  ;;  %v3524_v39 = vsel %vm3466_vm4, %v7759_v18, -inf }
 0x409   : > { %v6039_v16 = vpop.f32.mrb[35].mxu1 }
 0x40a   : > { %3525 = vmax.xlane.f32.xlu0 %v3524_v39 }
 0x415   : > { %2399 = vrot.lane.b32.xlu1 %v8414_v59, %s6500_s18 }
 0x420   : > { %2414 = vrot.lane.b32.xlu0 %v8414_v59, %s6501_s30 }
 0x439   : > { %3510 = vmax.xlane.f32.xlu1 %v3509_v5 }
 0x459   : > { %v3469_v8 = vpop.xlane.xlu1 %3468 }
 0x45a   : > { %v3484_v6 = vpop.xlane.xlu0 %3483  ;;  %v3527_v44 = vsub.f32 %v7620_v34, %v3469_v8 }
 0x45b   : > { %v3532_v21 = vsub.f32 %v7625_v37, %v3484_v6 }
 0x45c   : > { %v3547_v1 = vmul.f32 1.442695, %v3527_v44 }
 0x45d   : > { %v3557_v40 = vmul.f32 1.442695, %v3532_v21 }
 0x45e   : > { %v3472_v13 = vpop.xlane.xlu0 %3471  ;;  %6312 = vpow2.f32 %v3547_v1 }
 0x45f   : > { %v3528_v56 = vsub.f32 %v7634_v22, %v3472_v13  ;;  %6314 = vpow2.f32 %v3557_v40 }
 0x461   : > { %v3549_v19 = vmul.f32 1.442695, %v3528_v56 }
 0x462   : > { %v3487_v17 = vpop.xlane.xlu0 %3486 }
 0x463   : > { %6316 = vpow2.f32 %v3549_v19  ;;  %v3533_v55 = vsub.f32 %v7641_v54, %v3487_v17 }
 0x465   : > { %v3559_v41 = vmul.f32 1.442695, %v3533_v55 }
 0x467   : > { %6318 = vpow2.f32 %v3559_v41 }
 0x468   : > { %v7773_v23 = vpop.eup %6312 }
 0x469   : > { %v7775_v34 = vpop.eup %6314  ;;  %v3587_v35 = vsel %vm3466_vm4, %v7773_v23, 0.0 }
 0x46a   : > { %v3475_v48 = vpop.xlane.xlu1 %3474  ;;  %3588 = vadd.xlane.f32.xlu1 %v3587_v35  ;;  %v3602_v22 = vsel %vm3466_vm4, %v7775_v34, 0.0 }
 0x46b   : > { %v3529_v37 = vsub.f32 %v7658_v50, %v3475_v48  ;;  %3603 = vadd.xlane.f32.xlu0 %v3602_v22 }
 0x46c   : > { %v3478_v45 = vpop.xlane.xlu0 %3477 }
 0x46d   : > { %v3551_v52 = vmul.f32 1.442695, %v3529_v37  ;;  %v7782_v54 = vpop.eup %6316  ;;  %v3530_v21 = vsub.f32 %v7670_v42, %v3478_v45 }
 0x46e   : > { %v3490_v32 = vpop.xlane.xlu1 %3489  ;;  %v3590_v57 = vsel %vm3466_vm4, %v7782_v54, 0.0 }
 0x46f   : > { %6320 = vpow2.f32 %v3551_v52  ;;  %v3534_v31 = vsub.f32 %v7665_v14, %v3490_v32  ;;  %3591 = vadd.xlane.f32.xlu0 %v3590_v57  ;;  %v3553_v19 = vmul.f32 1.442695, %v3530_v21 }
 0x470   : > { %v3493_v50 = vpop.xlane.xlu0 %3492 }
 0x471   : > { %v3561_v0 = vmul.f32 1.442695, %v3534_v31  ;;  %v3535_v63 = vsub.f32 %v7677_v51, %v3493_v50  ;;  %v7788_v33 = vpop.eup %6318 }
 0x472   : > { %v3605_v49 = vsel %vm3466_vm4, %v7788_v33, 0.0 }
 0x473   : > { %6322 = vpow2.f32 %v3561_v0  ;;  %v3563_v11 = vmul.f32 1.442695, %v3535_v63  ;;  %3606 = vadd.xlane.f32.xlu0 %v3605_v49 }
 0x475   : > { %6324 = vpow2.f32 %v3563_v11 }
 0x479   : > { %v7792_v46 = vpop.eup %6320 }
 0x47a   : > { %v3593_v14 = vsel %vm3466_vm4, %v7792_v46, 0.0 }
 0x47b   : > { %3594 = vadd.xlane.f32.xlu0 %v3593_v14  ;;  %2429 = vrot.lane.b32.xlu1 %v8414_v59, %s6502_s11 }
 0x47c   : > { %v3481_v43 = vpop.xlane.xlu1 %3480  ;;  %v3496_v26 = vpop.xlane.xlu0 %3495 }
 0x47d   : > { %v7796_v3 = vpop.eup %6322  ;;  %v3531_v51 = vsub.f32 %v7687_v36, %v3481_v43  ;;  %v3536_v17 = vsub.f32 %v7691_v62, %v3496_v26 }
 0x47e   : > { %v3608_v27 = vsel %vm3466_vm4, %v7796_v3, 0.0 }
 0x47f   : > { %v7803_v15 = vpop.eup %6324  ;;  %v3555_v12 = vmul.f32 1.442695, %v3531_v51  ;;  %3609 = vadd.xlane.f32.xlu0 %v3608_v27  ;;  %v3565_v42 = vmul.f32 1.442695, %v3536_v17 }
 0x480   : > { %v3611_v2 = vsel %vm3466_vm4, %v7803_v15, 0.0 }
 0x481   : > { %6326 = vpow2.f32 %v3555_v12 }
 0x483   : > { %3612 = vadd.xlane.f32.xlu0 %v3611_v2 }
 0x485   : > { %v3499_v16 = vpop.xlane.xlu1 %3498 }
 0x486   : > { %v3537_v39 = vsub.f32 %v7700_v29, %v3499_v16 }
 0x487   : > { %v3502_v5 = vpop.xlane.xlu0 %3501 }
 0x488   : > { %v3567_v36 = vmul.f32 1.442695, %v3537_v39  ;;  %v3538_v48 = vsub.f32 %v7712_v60, %v3502_v5 }
 0x489   : > { %v3514_v8 = vpop.xlane.xlu1 %3513 }
 0x48a   : > { %6328 = vpow2.f32 %v3567_v36  ;;  %v3542_v6 = vsub.f32 %v7707_v58, %v3514_v8  ;;  %v3569_v62 = vmul.f32 1.442695, %v3538_v48 }
 0x48b   : > { %v7809_v44 = vpop.eup %6326  ;;  %v3517_v56 = vpop.xlane.xlu0 %3516 }
 0x48c   : > { %v3577_v1 = vmul.f32 1.442695, %v3542_v6  ;;  %v3599_v40 = vsel %vm3466_vm4, %v7809_v44, 0.0 }
 0x48d   : > { %v3505_v13 = vpop.xlane.xlu1 %3504  ;;  %3600 = vadd.xlane.f32.xlu0 %v3599_v40 }
 0x48e   : > { %6330 = vpow2.f32 %v3577_v1  ;;  %v3539_v29 = vsub.f32 %v7728_v53, %v3505_v13  ;;  %v3543_v53 = vsub.f32 %v7719_v24, %v3517_v56 }
 0x48f   : > { %v3508_v35 = vpop.xlane.xlu0 %3507 }
 0x490   : > { %v3571_v55 = vmul.f32 1.442695, %v3539_v29  ;;  %v3579_v60 = vmul.f32 1.442695, %v3543_v53  ;;  %v3540_v31 = vsub.f32 %v7740_v28, %v3508_v35 }
 0x491   : > { %v3520_v41 = vpop.xlane.xlu1 %3519 }
 0x492   : > { %6332 = vpow2.f32 %v3571_v55  ;;  %v3544_v58 = vsub.f32 %v7735_v61, %v3520_v41  ;;  %v3573_v24 = vmul.f32 1.442695, %v3540_v31 }
 0x493   : > { %6334 = vpow2.f32 %v3553_v19  ;;  %v3523_v32 = vpop.xlane.xlu0 %3522 }
 0x494   : > { %v7818_v37 = vpop.eup %6328  ;;  %v3581_v45 = vmul.f32 1.442695, %v3544_v58  ;;  %v3545_v63 = vsub.f32 %v7747_v9, %v3523_v32 }
 0x495   : > { %v3617_v22 = vsel %vm3466_vm4, %v7818_v37, 0.0  ;;  %v2400_v1 = vpop.permute.xlu1 %2399 }
 0x496   : > { %6336 = vpow2.f32 %v3581_v45  ;;  %3618 = vadd.xlane.f32.xlu0 %v3617_v22  ;;  %v3583_v51 = vmul.f32 1.442695, %v3545_v63 }
 0x497   : > { %6338 = vpow2.f32 %v3565_v42  ;;  %v3526_v49 = vpop.xlane.xlu0 %3525 }
 0x498   : > { %v7823_v52 = vpop.eup %6330  ;;  %6340 = vpow2.f32 %v3569_v62  ;;  %v3546_v27 = vsub.f32 %v7759_v18, %v3526_v49 }
 0x499   : > { %v3632_v61 = vsel %vm3466_vm4, %v7823_v52, 0.0  ;;  %6342 = vpow2.f32 %v3579_v60 }
 0x49a   : > { %3633 = vadd.xlane.f32.xlu0 %v3632_v61  ;;  %6344 = vpow2.f32 %v3573_v24  ;;  %v3585_v2 = vmul.f32 1.442695, %v3546_v27 }
 0x49b   : > { %6346 = vpow2.f32 %v3583_v51  ;;  %v2415_v17 = vpop.permute.xlu0 %2414 }
 0x49c   : > { %v7828_v57 = vpop.eup %6332  ;;  %6348 = vpow2.f32 %v3585_v2  ;;  %v2708_v58 = vcombine.low %v8414_v59, %v2415_v17  ;;  %v2709_v42 = vcombine.high %v8414_v59, %v2415_v17 }
 0x49d   : > { %v7830_v50 = vpop.eup %6334  ;;  %v3623_v0 = vsel %vm3466_vm4, %v7828_v57, 0.0 }
 0x49e   : > { %3624 = vadd.xlane.f32.xlu0 %v3623_v0  ;;  %v3596_v14 = vsel %vm3466_vm4, %v7830_v50, 0.0  ;;  %v2723_v62 = vrot.slane %v2709_v42, %v6933_v20 }
 0x49f   : > { %3597 = vadd.xlane.f32.xlu1 %v3596_v14 }
 0x4a0   : > { %v7835_v11 = vpop.eup %6336 }
 0x4a1   : > { %v7839_v43 = vpop.eup %6338  ;;  %v3638_v28 = vsel %vm3466_vm4, %v7835_v11, 0.0 }
 0x4a2   : > { %3639 = vadd.xlane.f32.xlu0 %v3638_v28  ;;  %v3614_v9 = vsel %vm3466_vm4, %v7839_v43, 0.0  ;;  %v7846_v12 = vpop.eup %6340 }
 0x4a3   : > { %3615 = vadd.xlane.f32.xlu1 %v3614_v9  ;;  %v3620_v26 = vsel %vm3466_vm4, %v7846_v12, 0.0  ;;  %v7850_v16 = vpop.eup %6342 }
 0x4a4   : > { %v3635_v39 = vsel %vm3466_vm4, %v7850_v16, 0.0  ;;  %v7854_v36 = vpop.eup %6344 }
 0x4a5   : > { %v3626_v18 = vsel %vm3466_vm4, %v7854_v36, 0.0  ;;  %v7858_v5 = vpop.eup %6346 }
 0x4a6   : > { %v3641_v8 = vsel %vm3466_vm4, %v7858_v5, 0.0  ;;  %v7862_v6 = vpop.eup %6348 }
 0x4a7   : > { %3621 = vadd.xlane.f32.xlu1 %v3620_v26  ;;  %v3644_v21 = vsel %vm3466_vm4, %v7862_v6, 0.0 }
 0x4ab   : > { %3636 = vadd.xlane.f32.xlu1 %v3635_v39 }
 0x4af   : > { %3627 = vadd.xlane.f32.xlu1 %v3626_v18 }
 0x4b3   : > { %3642 = vadd.xlane.f32.xlu1 %v3641_v8 }
 0x4b7   : > { %3645 = vadd.xlane.f32.xlu1 %v3644_v21 }
 0x4c6   : > { %v3511_v40 = vpop.xlane.xlu1 %3510 }
 0x4c7   : > { %v3541_v13 = vsub.f32 %v7755_v25, %v3511_v40  ;;  %v2716_v25 = vrot.slane %v2708_v58, %v6933_v20 }
 0x4c9   : > { %v3575_v56 = vmul.f32 1.442695, %v3541_v13 }
 0x4cb   : > { %6350 = vpow2.f32 %v3575_v56 }
 0x4d5   : > { %v7867_v29 = vpop.eup %6350 }
 0x4d6   : > { %v3629_v19 = vsel %vm3466_vm4, %v7867_v29, 0.0 }
 0x4d7   : > { %3630 = vadd.xlane.f32.xlu0 %v3629_v19 }
 0x4f7   : > { %v3589_v55 = vpop.xlane.xlu1 %3588 }
 0x4f8   : > { %v3604_v41 = vpop.xlane.xlu0 %3603  ;;  %6352 = vrcp.f32 %v3589_v55 }
 0x4fb   : > { %v2430_v48 = vpop.permute.xlu1 %2429 }
 0x4fc   : > { %v2724_v35 = vcombine.low %v2400_v1, %v2430_v48  ;;  %v2725_v45 = vcombine.high %v2400_v1, %v2430_v48  ;;  %v3592_v22 = vpop.xlane.xlu0 %3591 }
 0x4fd   : > { %6354 = vrcp.f32 %v3592_v22 }
 0x4fe   : > { %v2732_v53 = vrot.slane %v2724_v35, %v6933_v20  ;;  %v2739_v61 = vrot.slane %v2725_v45, %v6933_v20 }
 0x500   : > { %v2740_v32 = vcombine.low %v2716_v25, %v2732_v53  ;;  %v2741_v60 = vcombine.high %v2716_v25, %v2732_v53  ;;  %v2756_v31 = vcombine.low %v2723_v62, %v2739_v61  ;;  %v2757_v0 = vcombine.high %v2723_v62, %v2739_v61  ;;  %v3607_v24 = vpop.xlane.xlu0 %3606 }
 0x501   : > { %6356 = vrcp.f32 %v3607_v24 }
 0x502   : > { %v2748_v59 = vrot.slane %v2740_v32, %v6942_v47  ;;  %v2755_v63 = vrot.slane %v2741_v60, %v6942_v47  ;;  %v2764_v49 = vrot.slane %v2756_v31, %v6942_v47  ;;  %v2771_v14 = vrot.slane %v2757_v0, %v6942_v47  ;;  %v6353_v21 = vpop.eup %6352 }
 0x503   : > { %6358 = vrcp.f32 %v3604_v41  ;;  %v3667_v61 = vmul.f32 %v6353_v21, %v7773_v23 }
 0x504   : > { %v3048_v28 = vcombine.low %v2748_v59, %v2755_v63  ;;  %v5724_v51 = vcombine.high %v2748_v59, %v2755_v63  ;;  %v3064_v27 = vcombine.low %v2764_v49, %v2771_v14  ;;  %v5725_v9 = vcombine.high %v2764_v49, %v2771_v14 }
 0x506   : > { %v3055_v2 = vrot.slane %v3048_v28, %v6933_v20  ;;  %v3063_v26 = vrot.slane %v5724_v51, %v6933_v20  ;;  %v3071_v39 = vrot.slane %v3064_v27, %v6933_v20  ;;  %v3079_v8 = vrot.slane %v5725_v9, %v6933_v20 }
 0x507   : > { %v6355_v40 = vpop.eup %6354 }
 0x508   : > { %v7884_v18 = vpop.xlane.xlu0 %3594  ;;  %v3080_v1 = vcombine.low %v3055_v2, %v3063_v26  ;;  %v3096_v13 = vcombine.low %v3071_v39, %v3079_v8  ;;  %v3081_v41 = vcombine.high %v3055_v2, %v3063_v26  ;;  %v3097_v35 = vcombine.high %v3071_v39, %v3079_v8 }
 0x509   : > { %v3668_v45 = vmul.f32 %v6355_v40, %v7782_v54 }
 0x50a   : > { %v3088_v19 = vrot.slane %v3080_v1, %v6942_v47  ;;  %v3104_v55 = vrot.slane %v3096_v13, %v6942_v47  ;;  %v3095_v0 = vrot.slane %v3081_v41, %v6942_v47  ;;  %v3111_v24 = vrot.slane %v3097_v35, %v6942_v47 }
 0x50b   : > { %v6357_v17 = vpop.eup %6356  ;;  %v3687_v54 = vpack.c.bf16 %v3668_v45, %v3667_v61 }
 0x50c   : > { %v3610_v56 = vpop.xlane.xlu0 %3609  ;;  %v3112_v42 = vcombine.low %v3088_v19, %v3104_v55  ;;  %v3113_v48 = vcombine.high %v3088_v19, %v3104_v55  ;;  %v3673_v25 = vmul.f32 %v6357_v17, %v7788_v33  ;;  %v3114_v23 = vcombine.low %v3095_v0, %v3111_v24 }
 0x50d   : > { %v6359_v58 = vpop.eup %6358  ;;  %6360 = vrcp.f32 %v3610_v56 }
 0x50e   : > { %v3118_v62 = vpack.c.bf16 %v3112_v42, %v3112_v42  ;;  %v3121_v53 = vpack.c.bf16 %v3113_v48, %v3113_v48  ;;  %v3672_v32 = vmul.f32 %v6359_v58, %v7775_v34  ;;  %v3115_v34 = vcombine.high %v3095_v0, %v3111_v24 }
 0x50f   : > { %v3124_v49 = vpack.c.bf16 %v3114_v23, %v3114_v23 }
 0x510   : > { %v3613_v22 = vpop.xlane.xlu0 %3612  ;;  %v3710_v60 = vsel %vm3708_vm9, %v3118_v62, 0  ;;  %v3778_v31 = vsel %vm3708_vm9, %v3121_v53, 0  ;;  %v3690_v59 = vpack.c.bf16 %v3673_v25, %v3672_v32  ;;  %v3127_v14 = vpack.c.bf16 %v3115_v34, %v3115_v34 }
 0x511   : > { %6362 = vrcp.f32 %v3613_v22  ;;  %6045 = vmatpush3.bf16.msra.mxu0 %v3710_v60  ;;  %6063 = vmatpush3.bf16.msra.mxu1 %v3778_v31  ;;  %v3846_v51 = vsel %vm3708_vm9, %v3124_v49, 0  ;;  %v6232_v49 = vld [vmem:[%s6595_s29 + $0x10] sm:$0xff]  }
 0x512   : > { %6076 = vmatprep.subr.bf16.mxu0 %v8401_v7  ;;  %6094 = vmatprep.subr.bf16.mxu1 %v8401_v7  ;;  %v3914_v27 = vsel %vm3708_vm9, %v3127_v14, 0  ;;  %6364 = vrcp.f32 %v7884_v18 }
 0x514   : > { %6047 = vmatmul.mubr.msk.bf16.vlgmr.msra.gmra.mrb[36].mxu0 %vm3466_vm4, %v3687_v54  ;;  %6065 = vmatmul.mubr.msk.bf16.vlgmr.msra.gmra.mrb[36].mxu1 %vm3466_vm4, %v3690_v59 }
 0x515   : > { %6077 = vmatpush3.bf16.msra.mxu0 %v7596_v38  ;;  %6095 = vmatpush3.bf16.msra.mxu1 %v7598_v30 }
 0x516   : > { %6078 = vmatprep.subr.bf16.mxu0 %v8401_v7  ;;  %6096 = vmatprep.subr.bf16.mxu1 %v8401_v7 }
 0x517   : > { %v6361_v33 = vpop.eup %6360  ;;  %6068 = vmatprep.mubr.msk.bf16.mxu1 %vm6497_vm0, %v8401_v7  ;;  %6050 = vmatprep.mubr.msk.bf16.mxu0 %vm6497_vm0, %v8401_v7 }
 0x518   : > { %v3674_v38 = vmul.f32 %v6361_v33, %v7796_v3 }
 0x519   : > { %6079 = vmatpush3.bf16.msra.mxu0 %v7600_v4  ;;  %6097 = vmatpush3.bf16.msra.mxu1 %v7602_v10 }
 0x51a   : > { %6080 = vmatprep.subr.bf16.mxu0 %v8401_v7  ;;  %6098 = vmatprep.subr.bf16.mxu1 %v8401_v7  ;;  %v3601_v4 = vpop.xlane.xlu0 %3600 }
 0x51b   : > { %v6363_v63 = vpop.eup %6362 }
 0x51c   : > { %v3675_v30 = vmul.f32 %v6363_v63, %v7803_v15  ;;  %v6365_v26 = vpop.eup %6364  ;;  %v6231_v63 = vld [vmem:[%s6595_s29 + $0x8] sm:$0xff]  }
 0x51d   : > { %6081 = vmatpush3.bf16.msra.mxu0 %v3846_v51  ;;  %6099 = vmatpush3.bf16.msra.mxu1 %v3914_v27  ;;  %v3669_v1 = vmul.f32 %v6365_v26, %v7792_v46 }
 0x51e   : > { %v3691_v28 = vpack.c.bf16 %v3675_v30, %v3674_v38  ;;  %6112 = vmatprep.subr.bf16.mxu0 %v8401_v7  ;;  %v6233_v38 = vld [vmem:[%s6595_s29 + $0x18] sm:$0xff]  }
 0x520   : > { %6069 = vmatmul.mubr.msk.bf16.gmra.mrb[40].mxu1 %vm3466_vm4, %v3691_v28 }
 0x521   : > { %6072 = vmatprep.mubr.msk.bf16.mxu1 %vm6497_vm0, %v8401_v7 }
 0x523   : > { %v3619_v10 = vpop.xlane.xlu0 %3618 }
 0x527   : > { %v3634_v15 = vpop.xlane.xlu0 %3633 }
 0x52b   : > { %v3625_v39 = vpop.xlane.xlu0 %3624 }
 0x52c   : > { %v3598_v3 = vpop.xlane.xlu1 %3597 }
 0x52d   : > { %6366 = vrcp.f32 %v3598_v3 }
 0x52e   : > { %6368 = vrcp.f32 %v3601_v4  ;;  %v6234_v4 = vld [vmem:[%s6595_s29 + $0x20] sm:$0xff]  }
 0x52f   : > { %v3640_v19 = vpop.xlane.xlu0 %3639 }
 0x530   : > { %v3616_v9 = vpop.xlane.xlu1 %3615 }
 0x531   : > { %6370 = vrcp.f32 %v3616_v9 }
 0x532   : > { %6372 = vrcp.f32 %v3634_v15  ;;  %v6235_v15 = vld [vmem:[%s6595_s29 + $0x28] sm:$0xff]  }
 0x534   : > { %v3622_v2 = vpop.xlane.xlu1 %3621 }
 0x535   : > { %6374 = vrcp.f32 %v3622_v2 }
 0x537   : > { %v6367_v8 = vpop.eup %6366 }
 0x538   : > { %v3637_v21 = vpop.xlane.xlu1 %3636  ;;  %v3670_v40 = vmul.f32 %v6367_v8, %v7830_v50  ;;  %v6369_v13 = vpop.eup %6368 }
 0x539   : > { %6376 = vrcp.f32 %v3637_v21  ;;  %v3671_v58 = vmul.f32 %v6369_v13, %v7809_v44 }
 0x53a   : > { %v3688_v18 = vpack.c.bf16 %v3670_v40, %v3669_v1  ;;  %6378 = vrcp.f32 %v3619_v10 }
 0x53b   : > { %v6371_v56 = vpop.eup %6370  ;;  %6380 = vrcp.f32 %v3640_v19  ;;  %v3689_v48 = vpack.c.bf16 %v3671_v58, %v3671_v58 }
 0x53c   : > { %v3628_v17 = vpop.xlane.xlu1 %3627  ;;  %6051 = vmatmul.mubr.msk.bf16.gmra.mrb[40].mxu0 %vm3466_vm4, %v3688_v18  ;;  %v3676_v55 = vmul.f32 %v6371_v56, %v7839_v43  ;;  %v6373_v50 = vpop.eup %6372 }
 0x53d   : > { %6054 = vmatprep.mubr.msk.bf16.mxu0 %vm6497_vm0, %v8401_v7  ;;  %6382 = vrcp.f32 %v3628_v17  ;;  %v3682_v43 = vmul.f32 %v6373_v50, %v7823_v52 }
 0x53e   : > { %v3692_v41 = vpack.c.bf16 %v3676_v55, %v3676_v55 }
 0x53f   : > { %v6375_v42 = vpop.eup %6374 }
 0x540   : > { %v3643_v46 = vpop.xlane.xlu1 %3642  ;;  %6073 = vmatmul.mubr.msk.bf16.gmra.mrb[44].mxu1 %vm3466_vm4, %v3692_v41  ;;  %v3678_v25 = vmul.f32 %v6375_v42, %v7846_v12 }
 0x541   : > { %6384 = vrcp.f32 %v3643_v46  ;;  %6100 = vmatprep.mubr.msk.bf16.mxu1 %vm6497_vm0, %v8401_v7 }
 0x542   : > { %6386 = vrcp.f32 %v3625_v39 }
 0x543   : > { %v6377_v35 = vpop.eup %6376 }
 0x544   : > { %v3683_v45 = vmul.f32 %v6377_v35, %v7850_v16  ;;  %v3646_v22 = vpop.xlane.xlu1 %3645  ;;  %6055 = vmatmul.mubr.msk.bf16.gmra.mrb[44].mxu0 %vm3466_vm4, %v3689_v48  ;;  %v6379_v44 = vpop.eup %6378 }
 0x545   : > { %6388 = vrcp.f32 %v3646_v22  ;;  %6082 = vmatprep.mubr.msk.bf16.mxu0 %vm6497_vm0, %v8401_v7  ;;  %v3677_v53 = vmul.f32 %v6379_v44, %v7818_v37  ;;  %v6381_v61 = vpop.eup %6380 }
 0x546   : > { %v3696_v62 = vpack.c.bf16 %v3683_v45, %v3682_v43  ;;  %v3684_v60 = vmul.f32 %v6381_v61, %v7835_v11 }
 0x547   : > { %v6383_v52 = vpop.eup %6382  ;;  %v3693_v16 = vpack.c.bf16 %v3678_v25, %v3677_v53 }
 0x548   : > { %6101 = vmatmul.mubr.msk.bf16.vlgmr.msra.gmra.mrb[48].mxu1 %vm3466_vm4, %v3696_v62  ;;  %v3680_v12 = vmul.f32 %v6383_v52, %v7854_v36 }
 0x549   : > { %6104 = vmatprep.mubr.msk.bf16.mxu1 %vm6497_vm0, %v8401_v7 }
 0x54b   : > { %v6385_v32 = vpop.eup %6384 }
 0x54c   : > { %6083 = vmatmul.mubr.msk.bf16.vlgmr.msra.gmra.mrb[48].mxu0 %vm3466_vm4, %v3693_v16  ;;  %v3685_v31 = vmul.f32 %v6385_v32, %v7858_v5  ;;  %v6387_v0 = vpop.eup %6386  ;;  %v8415_v5 = vmov 0  }
 0x54d   : > { %6086 = vmatprep.mubr.msk.bf16.mxu0 %vm6497_vm0, %v8401_v7  ;;  %v3679_v54 = vmul.f32 %v6387_v0, %v7828_v57 }
 0x54e   : > { %v3697_v37 = vpack.c.bf16 %v3685_v31, %v3684_v60 }
 0x54f   : > { %v6389_v24 = vpop.eup %6388  ;;  %v3694_v59 = vpack.c.bf16 %v3680_v12, %v3679_v54 }
 0x550   : > { %6105 = vmatmul.mubr.msk.bf16.gmra.mrb[52].mxu1 %vm3466_vm4, %v3697_v37  ;;  %v3686_v11 = vmul.f32 %v6389_v24, %v7862_v6  ;;  %v6230_v6 = vld [vmem:[%s6595_s29] sm:$0xff]  }
 0x551   : > { %6108 = vmatprep.mubr.msk.bf16.mxu1 %vm6497_vm0, %v8401_v7  ;;  %6113 = vmatpush3.bf16.msra.mxu0 %v6230_v6 }
 0x552   : > { %v3698_v36 = vpack.c.bf16 %v3686_v11, %v3686_v11  ;;  %6114 = vmatprep.subr.bf16.mxu0 %v8401_v7 }
 0x554   : > { %6087 = vmatmul.mubr.msk.bf16.gmra.mrb[52].mxu0 %vm3466_vm4, %v3694_v59 }
 0x555   : > { %6090 = vmatprep.mubr.msk.bf16.mxu0 %vm6497_vm0, %v8401_v7  ;;  %6115 = vmatpush3.bf16.msra.mxu0 %v6231_v63 }
 0x556   : > { %6116 = vmatprep.subr.bf16.mxu0 %v8401_v7 }
 0x558   : > { %6109 = vmatmul.mubr.msk.bf16.gmra.mrb[56].mxu1 %vm3466_vm4, %v3698_v36 }
 0x559   : > { %5131 = vmatprep.mubr.bf16.mxu1 %v8415_v5  ;;  %6117 = vmatpush3.bf16.msra.mxu0 %v6232_v49 }
 0x55a   : > { %6118 = vmatprep.subr.bf16.mxu0 %v8401_v7 }
 0x55d   : > { %6119 = vmatpush3.bf16.msra.mxu0 %v6233_v38 }
 0x55e   : > { %6120 = vmatprep.subr.bf16.mxu0 %v8401_v7 }
 0x561   : > { %6121 = vmatpush3.bf16.msra.mxu0 %v6234_v4 }
 0x562   : > { %6122 = vmatprep.subr.bf16.mxu0 %v8401_v7 }
 0x564   : > { %v3631_v57 = vpop.xlane.xlu0 %3630 }
 0x565   : > { %6390 = vrcp.f32 %v3631_v57  ;;  %6123 = vmatpush3.bf16.msra.mxu0 %v6235_v15 }
 0x566   : > { %6124 = vmatprep.subr.bf16.mxu0 %v8401_v7 }
 0x56f   : > { %v6391_v23 = vpop.eup %6390 }
 0x570   : > { %v3681_v34 = vmul.f32 %v6391_v23, %v7867_v29 }
 0x572   : > { %v3695_v33 = vpack.c.bf16 %v3681_v34, %v3681_v34 }
 0x574   : > { %6091 = vmatmul.mubr.msk.bf16.gmra.mrb[56].mxu0 %vm3466_vm4, %v3695_v33 }
 0x575   : > { %6128 = vmatprep.mubr.msk.bf16.mxu0 %vm6497_vm0, %v8401_v7 }
 0x5e7   : > { %v3746_v29 = vpop.f32.mrb[36].mxu0  ;;  %v3814_v30 = vpop.f32.mrb[36].mxu1 }
 0x5e8   : > { %v6048_v14 = vpop.f32.mrb[37].mxu0  ;;  %v6066_v28 = vpop.f32.mrb[37].mxu1 }
 0x5e9   : > { %v3749_v51 = vpop.f32.mrb[38].mxu0  ;;  %v3817_v27 = vpop.f32.mrb[38].mxu1 }
 0x5ea   : > { %v6049_v10 = vpop.f32.mrb[39].mxu0  ;;  %v6067_v3 = vpop.f32.mrb[39].mxu1 }
 0x5f3   : > { %v7973_v9 = vpop.f32.mrb[40].mxu1 }
 0x5f4   : > { %v6070_v2 = vpop.f32.mrb[41].mxu1 }
 0x5f5   : > { %v7975_v26 = vpop.f32.mrb[42].mxu1 }
 0x5f6   : > { %v6071_v39 = vpop.f32.mrb[43].mxu1 }
 0x60f   : > { %v7978_v8 = vpop.f32.mrb[40].mxu0 }
 0x610   : > { %v6052_v21 = vpop.f32.mrb[41].mxu0 }
 0x611   : > { %v7980_v1 = vpop.f32.mrb[42].mxu0 }
 0x612   : > { %v6053_v40 = vpop.f32.mrb[43].mxu0 }
 0x613   : > { %v7982_v13 = vpop.f32.mrb[44].mxu1 }
 0x614   : > { %v6074_v18 = vpop.f32.mrb[45].mxu1 }
 0x615   : > { %v3833_v56 = vpop.f32.mrb[46].mxu1 }
 0x616   : > { %v6075_v19 = vpop.f32.mrb[47].mxu1 }
 0x617   : > { %v7984_v17 = vpop.f32.mrb[44].mxu0 }
 0x618   : > { %v6056_v55 = vpop.f32.mrb[45].mxu0 }
 0x619   : > { %v3765_v41 = vpop.f32.mrb[46].mxu0 }
 0x61a   : > { %v6057_v58 = vpop.f32.mrb[47].mxu0 }
 0x61b   : > { %v3950_v46 = vpop.f32.mrb[48].mxu1 }
 0x61c   : > { %v3988_v50 = vcombine.low %v3814_v30, %v3950_v46  ;;  %v3989_v42 = vcombine.high %v3814_v30, %v3950_v46  ;;  %v6102_v48 = vpop.f32.mrb[49].mxu1 }
 0x61d   : > { %v3953_v35 = vpop.f32.mrb[50].mxu1 }
 0x61e   : > { %v4056_v43 = vcombine.low %v3817_v27, %v3953_v35  ;;  %v4057_v45 = vcombine.high %v3817_v27, %v3953_v35  ;;  %v6103_v22 = vpop.f32.mrb[51].mxu1  ;;  %v3996_v61 = vrot.slane %v3988_v50, %v6933_v20  ;;  %v4003_v52 = vrot.slane %v3989_v42, %v6933_v20 }
 0x61f   : > { %v3882_v44 = vpop.f32.mrb[48].mxu0 }
 0x620   : > { %v3972_v25 = vcombine.low %v3746_v29, %v3882_v44  ;;  %v3973_v62 = vcombine.high %v3746_v29, %v3882_v44  ;;  %v6084_v53 = vpop.f32.mrb[49].mxu0  ;;  %v4064_v12 = vrot.slane %v4056_v43, %v6933_v20  ;;  %v4071_v24 = vrot.slane %v4057_v45, %v6933_v20 }
 0x621   : > { %v3885_v16 = vpop.f32.mrb[50].mxu0 }
 0x622   : > { %v3980_v32 = vrot.slane %v3972_v25, %v6933_v20  ;;  %v3987_v60 = vrot.slane %v3973_v62, %v6933_v20  ;;  %v4040_v31 = vcombine.low %v3749_v51, %v3885_v16  ;;  %v4041_v0 = vcombine.high %v3749_v51, %v3885_v16  ;;  %v6085_v37 = vpop.f32.mrb[51].mxu0 }
 0x623   : > { %v3958_v54 = vpop.f32.mrb[52].mxu1 }
 0x624   : > { %v4004_v59 = vcombine.low %v3980_v32, %v3996_v61  ;;  %v4005_v11 = vcombine.high %v3980_v32, %v3996_v61  ;;  %v4020_v36 = vcombine.low %v3987_v60, %v4003_v52  ;;  %v4021_v57 = vcombine.high %v3987_v60, %v4003_v52  ;;  %v6106_v23 = vpop.f32.mrb[53].mxu1 }
 0x625   : > { %v4048_v34 = vrot.slane %v4040_v31, %v6933_v20  ;;  %v4055_v33 = vrot.slane %v4041_v0, %v6933_v20  ;;  %v4124_v6 = vcombine.low %v7973_v9, %v3958_v54  ;;  %v4125_v63 = vcombine.high %v7973_v9, %v3958_v54  ;;  %v3961_v49 = vpop.f32.mrb[54].mxu1 }
 0x626   : > { %v4012_v38 = vrot.slane %v4004_v59, %v6942_v47  ;;  %v4019_v29 = vrot.slane %v4005_v11, %v6942_v47  ;;  %v4028_v30 = vrot.slane %v4020_v36, %v6942_v47  ;;  %v4035_v14 = vrot.slane %v4021_v57, %v6942_v47  ;;  %v6107_v28 = vpop.f32.mrb[55].mxu1 }
 0x627   : > { %v4072_v51 = vcombine.low %v4048_v34, %v4064_v12  ;;  %v4073_v27 = vcombine.high %v4048_v34, %v4064_v12  ;;  %v4088_v4 = vcombine.low %v4055_v33, %v4071_v24  ;;  %v4089_v10 = vcombine.high %v4055_v33, %v4071_v24  ;;  %v3890_v3 = vpop.f32.mrb[52].mxu0 }
 0x628   : > { %v4312_v15 = vcombine.low %v4012_v38, %v4019_v29  ;;  %v5750_v2 = vcombine.high %v4012_v38, %v4019_v29  ;;  %v4328_v39 = vcombine.low %v4028_v30, %v4035_v14  ;;  %v5751_v21 = vcombine.high %v4028_v30, %v4035_v14  ;;  %v6088_v9 = vpop.f32.mrb[53].mxu0 }
 0x629   : > { %v4080_v40 = vrot.slane %v4072_v51, %v6942_v47  ;;  %v4087_v18 = vrot.slane %v4073_v27, %v6942_v47  ;;  %v4096_v56 = vrot.slane %v4088_v4, %v6942_v47  ;;  %v4103_v19 = vrot.slane %v4089_v10, %v6942_v47  ;;  %v3893_v55 = vpop.f32.mrb[54].mxu0 }
 0x62a   : > { %v8005_v41 = vrot.slane %v4312_v15, %v6933_v20  ;;  %v8008_v58 = vrot.slane %v5750_v2, %v6933_v20  ;;  %v6089_v46 = vpop.f32.mrb[55].mxu0  ;;  %v8013_v45 = vrot.slane %v4328_v39, %v6933_v20  ;;  %v8016_v22 = vrot.slane %v5751_v21, %v6933_v20 }
 0x62b   : > { %v4380_v50 = vcombine.low %v4080_v40, %v4087_v18  ;;  %v5752_v42 = vcombine.high %v4080_v40, %v4087_v18  ;;  %v4396_v48 = vcombine.low %v4096_v56, %v4103_v19  ;;  %v5753_v35 = vcombine.high %v4096_v56, %v4103_v19  ;;  %v8010_v43 = vpop.f32.mrb[56].mxu1 }
 0x62c   : > { %v4192_v44 = vcombine.low %v7975_v26, %v3961_v49  ;;  %v4193_v25 = vcombine.high %v7975_v26, %v3961_v49  ;;  %v6110_v62 = vpop.f32.mrb[57].mxu1  ;;  %v4132_v52 = vrot.slane %v4124_v6, %v6933_v20  ;;  %v4139_v16 = vrot.slane %v4125_v63, %v6933_v20 }
 0x62d   : > { %v8021_v53 = vrot.slane %v4380_v50, %v6933_v20  ;;  %v8024_v61 = vrot.slane %v5752_v42, %v6933_v20  ;;  %v3969_v32 = vpop.f32.mrb[58].mxu1  ;;  %v8029_v60 = vrot.slane %v4396_v48, %v6933_v20  ;;  %v8032_v31 = vrot.slane %v5753_v35, %v6933_v20 }
 0x62e   : > { %v4108_v26 = vcombine.low %v7978_v8, %v3890_v3  ;;  %v4109_v0 = vcombine.high %v7978_v8, %v3890_v3  ;;  %v6111_v37 = vpop.f32.mrb[59].mxu1  ;;  %v4176_v12 = vcombine.low %v7980_v1, %v3893_v55  ;;  %v4177_v24 = vcombine.high %v7980_v1, %v3893_v55 }
 0x62f   : > { %v4260_v54 = vcombine.low %v7982_v13, %v8010_v43  ;;  %v4261_v59 = vcombine.high %v7982_v13, %v8010_v43  ;;  %v4345_v57 = vcombine.high %v8005_v41, %v8008_v58  ;;  %v4361_v8 = vcombine.high %v8013_v45, %v8016_v22 }
 0x630   : > { %v4116_v11 = vrot.slane %v4108_v26, %v6933_v20  ;;  %v4123_v36 = vrot.slane %v4109_v0, %v6933_v20  ;;  %v4200_v23 = vrot.slane %v4192_v44, %v6933_v20  ;;  %v4207_v1 = vrot.slane %v4193_v25, %v6933_v20  ;;  %v6236_v44 = vld [vmem:[%s6595_s29 + $0x30] sm:$0xff]  }
 0x631   : > { %v4184_v34 = vrot.slane %v4176_v12, %v6933_v20  ;;  %v4191_v33 = vrot.slane %v4177_v24, %v6933_v20  ;;  %v4359_v32 = vrot.slane %v4345_v57, %v6942_v47  ;;  %v4375_v26 = vrot.slane %v4361_v8, %v6942_v47  ;;  %6125 = vmatpush3.bf16.msra.mxu0 %v6236_v44 }
 0x632   : > { %v4140_v6 = vcombine.low %v4116_v11, %v4132_v52  ;;  %v4141_v63 = vcombine.high %v4116_v11, %v4132_v52  ;;  %v4156_v49 = vcombine.low %v4123_v36, %v4139_v16  ;;  %v4157_v38 = vcombine.high %v4123_v36, %v4139_v16  ;;  %6126 = vmatprep.subr.bf16.mxu0 %v8401_v7 }
 0x633   : > { %v4208_v29 = vcombine.low %v4184_v34, %v4200_v23  ;;  %v4209_v30 = vcombine.high %v4184_v34, %v4200_v23  ;;  %v4224_v14 = vcombine.low %v4191_v33, %v4207_v1  ;;  %v4225_v28 = vcombine.high %v4191_v33, %v4207_v1  ;;  %v6237_v34 = vld [vmem:[%s6595_s29 + $0x38] sm:$0xff]  }
 0x634   : > { %v4148_v51 = vrot.slane %v4140_v6, %v6942_v47  ;;  %v4155_v27 = vrot.slane %v4141_v63, %v6942_v47  ;;  %v4164_v4 = vrot.slane %v4156_v49, %v6942_v47  ;;  %v4171_v10 = vrot.slane %v4157_v38, %v6942_v47 }
 0x635   : > { %v4216_v3 = vrot.slane %v4208_v29, %v6942_v47  ;;  %v4223_v15 = vrot.slane %v4209_v30, %v6942_v47  ;;  %v4232_v2 = vrot.slane %v4224_v14, %v6942_v47  ;;  %v4239_v39 = vrot.slane %v4225_v28, %v6942_v47  ;;  %6127 = vmatpush3.bf16.msra.mxu0 %v6237_v34 }
 0x636   : > { %v4448_v21 = vcombine.low %v4148_v51, %v4155_v27  ;;  %v5754_v9 = vcombine.high %v4148_v51, %v4155_v27  ;;  %v4464_v40 = vcombine.low %v4164_v4, %v4171_v10  ;;  %v5755_v18 = vcombine.high %v4164_v4, %v4171_v10 }
 0x637   : > { %v4516_v56 = vcombine.low %v4216_v3, %v4223_v15  ;;  %v5756_v19 = vcombine.high %v4216_v3, %v4223_v15  ;;  %v4532_v55 = vcombine.low %v4232_v2, %v4239_v39  ;;  %v5757_v46 = vcombine.high %v4232_v2, %v4239_v39 }
 0x638   : > { %v4455_v50 = vrot.slane %v4448_v21, %v6933_v20  ;;  %v4463_v42 = vrot.slane %v5754_v9, %v6933_v20  ;;  %v4471_v48 = vrot.slane %v4464_v40, %v6933_v20  ;;  %v4479_v35 = vrot.slane %v5755_v18, %v6933_v20 }
 0x639   : > { %v4523_v25 = vrot.slane %v4516_v56, %v6933_v20  ;;  %v4531_v62 = vrot.slane %v5756_v19, %v6933_v20  ;;  %v4539_v52 = vrot.slane %v4532_v55, %v6933_v20  ;;  %v4547_v16 = vrot.slane %v5757_v46, %v6933_v20 }
 0x63a   : > { %v4413_v0 = vcombine.high %v8021_v53, %v8024_v61  ;;  %v4429_v37 = vcombine.high %v8029_v60, %v8032_v31  ;;  %v4344_v12 = vcombine.low %v8005_v41, %v8008_v58  ;;  %v4360_v24 = vcombine.low %v8013_v45, %v8016_v22 }
 0x63b   : > { %v4412_v11 = vcombine.low %v8021_v53, %v8024_v61  ;;  %v4428_v36 = vcombine.low %v8029_v60, %v8032_v31  ;;  %v4378_v57 = vcombine.low %v4359_v32, %v4375_v26  ;;  %v4379_v1 = vcombine.high %v4359_v32, %v4375_v26 }
 0x63c   : > { %v4427_v8 = vrot.slane %v4413_v0, %v6942_v47  ;;  %v4443_v23 = vrot.slane %v4429_v37, %v6942_v47  ;;  %v8088_v41 = vrot.slane %v4344_v12, %v6942_v47  ;;  %v8091_v58 = vrot.slane %v4360_v24, %v6942_v47 }
 0x63d   : > { %v8094_v45 = vrot.slane %v4412_v11, %v6942_v47  ;;  %v8097_v22 = vrot.slane %v4428_v36, %v6942_v47  ;;  %v4481_v60 = vcombine.high %v4455_v50, %v4463_v42  ;;  %v4497_v31 = vcombine.high %v4471_v48, %v4479_v35 }
 0x63e   : > { %v4446_v53 = vcombine.low %v4427_v8, %v4443_v23  ;;  %v4447_v61 = vcombine.high %v4427_v8, %v4443_v23  ;;  %v4377_v33 = vcombine.high %v8088_v41, %v8091_v58  ;;  %v4549_v63 = vcombine.high %v4523_v25, %v4531_v62 }
 0x63f   : > { %v4445_v6 = vcombine.high %v8094_v45, %v8097_v22  ;;  %v4565_v49 = vcombine.high %v4539_v52, %v4547_v16  ;;  %v4495_v30 = vrot.slane %v4481_v60, %v6942_v47  ;;  %v4511_v14 = vrot.slane %v4497_v31, %v6942_v47 }
 0x640   : > { %v6173_v38 = vpack.i.bf16 %v4446_v53, %v4378_v57  ;;  %v6178_v29 = vpack.i.bf16 %v4447_v61, %v4379_v1  ;;  %v4563_v51 = vrot.slane %v4549_v63, %v6942_v47  ;;  %v4480_v4 = vcombine.low %v4455_v50, %v4463_v42 }
 0x641   : > { %v6168_v28 = vpack.i.bf16 %v4445_v6, %v4377_v33  ;;  %v4579_v27 = vrot.slane %v4565_v49, %v6942_v47  ;;  %v4514_v10 = vcombine.low %v4495_v30, %v4511_v14  ;;  %v4496_v3 = vcombine.low %v4471_v48, %v4479_v35 }
 0x642   : > { %6174 = vrot.lane.b32.xlu1 %v6173_v38, %s6501_s30  ;;  %v4548_v15 = vcombine.low %v4523_v25, %v4531_v62  ;;  %v4564_v2 = vcombine.low %v4539_v52, %v4547_v16  ;;  %v8110_v21 = vrot.slane %v4480_v4, %v6942_v47  ;;  %v4515_v9 = vcombine.high %v4495_v30, %v4511_v14 }
 0x643   : > { %6169 = vrot.lane.b32.xlu0 %v6168_v28, %s6502_s11  ;;  %v4582_v39 = vcombine.low %v4563_v51, %v4579_v27  ;;  %v4583_v40 = vcombine.high %v4563_v51, %v4579_v27  ;;  %v8113_v18 = vrot.slane %v4496_v3, %v6942_v47  ;;  %v4376_v55 = vcombine.low %v8088_v41, %v8091_v58 }
 0x644   : > { %v8116_v56 = vrot.slane %v4548_v15, %v6942_v47  ;;  %v8119_v19 = vrot.slane %v4564_v2, %v6942_v47  ;;  %v4444_v48 = vcombine.low %v8094_v45, %v8097_v22  ;;  %v4268_v16 = vrot.slane %v4260_v54, %v6933_v20 }
 0x645   : > { %v6188_v50 = vpack.i.bf16 %v4582_v39, %v4514_v10  ;;  %v6193_v42 = vpack.i.bf16 %v4583_v40, %v4515_v9  ;;  %v4513_v62 = vcombine.high %v8110_v21, %v8113_v18  ;;  %v4275_v0 = vrot.slane %v4261_v59, %v6933_v20 }
 0x646   : > { %6179 = vrot.lane.b32.xlu1 %v6178_v29, %s6500_s18  ;;  %v4581_v52 = vcombine.high %v8116_v56, %v8119_v19  ;;  %v4580_v26 = vcombine.low %v8116_v56, %v8119_v19 }
 0x647   : > { %v3898_v46 = vpop.f32.mrb[56].mxu0  ;;  %6189 = vrot.lane.b32.xlu0 %v6188_v50, %s6501_s30 }
 0x648   : > { %v4244_v35 = vcombine.low %v7984_v17, %v3898_v46  ;;  %v4245_v44 = vcombine.high %v7984_v17, %v3898_v46  ;;  %v6092_v25 = vpop.f32.mrb[57].mxu0  ;;  %v4512_v17 = vcombine.low %v8110_v21, %v8113_v18  ;;  %v6183_v54 = vpack.i.bf16 %v4581_v52, %v4513_v62 }
 0x649   : > { %v3901_v32 = vpop.f32.mrb[58].mxu0 }
 0x64a   : > { %v4252_v37 = vrot.slane %v4244_v35, %v6933_v20  ;;  %v4259_v12 = vrot.slane %v4245_v44, %v6933_v20  ;;  %v6093_v24 = vpop.f32.mrb[59].mxu0  ;;  %6184 = vrot.lane.b32.xlu1 %v6183_v54, %s6502_s11 }
 0x64c   : > { %v4276_v11 = vcombine.low %v4252_v37, %v4268_v16  ;;  %v4277_v36 = vcombine.high %v4252_v37, %v4268_v16  ;;  %v4292_v57 = vcombine.low %v4259_v12, %v4275_v0  ;;  %v4293_v8 = vcombine.high %v4259_v12, %v4275_v0 }
 0x64e   : > { %v4284_v23 = vrot.slane %v4276_v11, %v6942_v47  ;;  %v4291_v1 = vrot.slane %v4277_v36, %v6942_v47  ;;  %v4300_v34 = vrot.slane %v4292_v57, %v6942_v47  ;;  %v4307_v13 = vrot.slane %v4293_v8, %v6942_v47  ;;  %6194 = vrot.lane.b32.xlu1 %v6193_v42, %s6500_s18 }
 0x650   : > { %v4584_v43 = vcombine.low %v4284_v23, %v4291_v1  ;;  %v5758_v59 = vcombine.high %v4284_v23, %v4291_v1  ;;  %v4600_v45 = vcombine.low %v4300_v34, %v4307_v13  ;;  %v5759_v22 = vcombine.high %v4300_v34, %v4307_v13  ;;  %v6238_v1 = vld [vmem:[%s6602_s17] ss:$16 sps:$4 sm:$0xff]   ;;  %v6241_v34 = vld [vmem:[%s6602_s17 + $0x8] ss:$16 sps:$4 sm:$0xff]   ;;  %v6243_v13 = vld [vmem:[%s6602_s17 + $0xc] ss:$16 sps:$4 sm:$0xff]  }
 0x651   : > { %5160 = vmatprep.subr.bf16.mxu0 %v6243_v13 }
 0x652   : > { %v4591_v53 = vrot.slane %v4584_v43, %v6933_v20  ;;  %v4599_v61 = vrot.slane %v5758_v59, %v6933_v20  ;;  %v4607_v60 = vrot.slane %v4600_v45, %v6933_v20  ;;  %v4615_v31 = vrot.slane %v5759_v22, %v6933_v20  ;;  %v6246_v43 = vld [vmem:[%s6602_s17 + $0x24] ss:$16 sps:$4 sm:$0xff]   ;;  %v6249_v59 = vld [vmem:[%s6602_s17 + $0x2c] ss:$16 sps:$4 sm:$0xff]   ;;  %v6244_v45 = vld [vmem:[%s6602_s17 + $0x20] ss:$16 sps:$4 sm:$0xff]  }
 0x653   : > { %v6247_v22 = vld [vmem:[%s6602_s17 + $0x28] ss:$16 sps:$4 sm:$0xff]  }
 0x654   : > { %v4617_v33 = vcombine.high %v4591_v53, %v4599_v61  ;;  %v4633_v6 = vcombine.high %v4607_v60, %v4615_v31  ;;  %v4616_v63 = vcombine.low %v4591_v53, %v4599_v61  ;;  %v4632_v49 = vcombine.low %v4607_v60, %v4615_v31  ;;  %v6252_v53 = vld [vmem:[%s6602_s17 + $0x44] ss:$16 sps:$4 sm:$0xff]   ;;  %v6255_v61 = vld [vmem:[%s6602_s17 + $0x4c] ss:$16 sps:$4 sm:$0xff]   ;;  %v6250_v60 = vld [vmem:[%s6602_s17 + $0x40] ss:$16 sps:$4 sm:$0xff]  }
 0x655   : > { %v6253_v31 = vld [vmem:[%s6602_s17 + $0x48] ss:$16 sps:$4 sm:$0xff]  }
 0x656   : > { %v4631_v38 = vrot.slane %v4617_v33, %v6942_v47  ;;  %v4647_v29 = vrot.slane %v4633_v6, %v6942_v47  ;;  %v4624_v30 = vrot.slane %v4616_v63, %v6942_v47  ;;  %v4640_v14 = vrot.slane %v4632_v49, %v6942_v47  ;;  %v6442_v6 = vld [vmem:[#allocation2] sm:$0xff] }
 0x658   : > { %v4650_v28 = vcombine.low %v4631_v38, %v4647_v29  ;;  %v4649_v51 = vcombine.high %v4624_v30, %v4640_v14  ;;  %v4651_v27 = vcombine.high %v4631_v38, %v4647_v29  ;;  %v4648_v4 = vcombine.low %v4624_v30, %v4640_v14  ;;  %v6443_v29 = vld [vmem:[#allocation2 + $0x8] sm:$0xff] }
 0x65a   : > { %4685 = vrot.lane.b32.xlu1 %v4650_v28, %s6501_s30  ;;  %4665 = vrot.lane.b32.xlu0 %v4649_v51, %s6502_s11 }
 0x65e   : > { %4705 = vrot.lane.b32.xlu0 %v4651_v27, %s6500_s18 }
 0x6b4   : > { %v6175_v20 = vpop.permute.xlu1 %6174 }
 0x6b5   : > { %v6170_v10 = vpop.permute.xlu0 %6169  ;;  %v6177_v3 = vunpack.i.h.bf16 %v6175_v20  ;;  %v6176_v15 = vunpack.i.l.bf16 %v6175_v20 }
 0x6b6   : > { %v6172_v2 = vunpack.i.h.bf16 %v6170_v10  ;;  %v6171_v39 = vunpack.i.l.bf16 %v6170_v10 }
 0x6b8   : > { %v4713_v9 = vsel %vm3128_vm2, %v4444_v48, %v6172_v2  ;;  %v4712_v47 = vsel %vm3128_vm2, %v4376_v55, %v6171_v39  ;;  %v6180_v40 = vpop.permute.xlu1 %6179 }
 0x6b9   : > { %v6182_v46 = vunpack.i.h.bf16 %v6180_v40  ;;  %v6181_v50 = vunpack.i.l.bf16 %v6180_v40  ;;  %v4718_v42 = vsel %vm4717_vm10, %v4712_v47, %v6176_v15  ;;  %v4719_v35 = vsel %vm4717_vm10, %v4713_v9, %v6177_v3  ;;  %v6190_v62 = vpop.permute.xlu0 %6189  ;;  %v6445_v15 = vld [vmem:[#allocation2 + $0x18] sm:$0xff] }
 0x6ba   : > { %v6192_v41 = vunpack.i.h.bf16 %v6190_v62  ;;  %v6191_v58 = vunpack.i.l.bf16 %v6190_v62  ;;  %v6256_v62 = vld [vmem:[%s6602_s17 + $0x60] ss:$16 sps:$4 sm:$0xff]  }
 0x6bb   : > { %v4724_v44 = vsel %vm4723_vm11, %v4718_v42, %v6181_v50  ;;  %v4725_v25 = vsel %vm4723_vm11, %v4719_v35, %v6182_v46  ;;  %v6446_v46 = vld [vmem:[#allocation2 + $0x20] sm:$0xff] }
 0x6bc   : > { %v4729_v52 = vpack.c.bf16 %v4725_v25, %v4724_v44  ;;  %v6185_v48 = vpop.permute.xlu1 %6184 }
 0x6bd   : > { %v6187_v16 = vunpack.i.h.bf16 %v6185_v48  ;;  %v6186_v32 = vunpack.i.l.bf16 %v6185_v48  ;;  %v6259_v48 = vld [vmem:[%s6602_s17 + $0x68] ss:$16 sps:$4 sm:$0xff]  }
 0x6be   : > { %6129 = vmatmul.mubr.bf16.vlgmr.msra.gmra.mrb[60].mxu0 %v4729_v52  ;;  %v6258_v52 = vld [vmem:[%s6602_s17 + $0x64] ss:$16 sps:$4 sm:$0xff]  }
 0x6bf   : > { %v4714_v55 = vsel %vm3128_vm2, %v4512_v17, %v6186_v32  ;;  %v4715_v0 = vsel %vm3128_vm2, %v4580_v26, %v6187_v16  ;;  %6132 = vmatprep.mubr.msk.bf16.mxu0 %vm6497_vm0, %v8401_v7  ;;  %5161 = vmatpush1.bf16.msra.mxu0 %v6241_v34  ;;  %v6261_v16 = vld [vmem:[%s6602_s17 + $0x6c] ss:$16 sps:$4 sm:$0xff]   ;;  %v6264_v32 = vld [vmem:[%s6602_s17 + $0x84] ss:$16 sps:$4 sm:$0xff]  }
 0x6c0   : > { %v6195_v37 = vpop.permute.xlu1 %6194  ;;  %v4721_v54 = vsel %vm4717_vm10, %v4715_v0, %v6192_v41  ;;  %v4720_v11 = vsel %vm4717_vm10, %v4714_v55, %v6191_v58  ;;  %5162 = vmatprep.subr.bf16.mxu0 %v6249_v59  ;;  %v6267_v41 = vld [vmem:[%s6602_s17 + $0x8c] ss:$16 sps:$4 sm:$0xff]   ;;  %v6262_v58 = vld [vmem:[%s6602_s17 + $0x80] ss:$16 sps:$4 sm:$0xff]   ;;  %v6265_v55 = vld [vmem:[%s6602_s17 + $0x88] ss:$16 sps:$4 sm:$0xff]  }
 0x6c1   : > { %v6197_v12 = vunpack.i.h.bf16 %v6195_v37  ;;  %v6196_v24 = vunpack.i.l.bf16 %v6195_v37  ;;  %v6270_v0 = vld [vmem:[%s6602_s17 + $0xa4] ss:$16 sps:$4 sm:$0xff]   ;;  %v6273_v37 = vld [vmem:[%s6602_s17 + $0xac] ss:$16 sps:$4 sm:$0xff]  }
 0x6c3   : > { %v4726_v21 = vsel %vm4723_vm11, %v4720_v11, %v6196_v24  ;;  %v4727_v18 = vsel %vm4723_vm11, %v4721_v54, %v6197_v12  ;;  %5163 = vmatpush1.bf16.msra.mxu0 %v6247_v22  ;;  %v6268_v12 = vld [vmem:[%s6602_s17 + $0xa0] ss:$16 sps:$4 sm:$0xff]   ;;  %v6271_v24 = vld [vmem:[%s6602_s17 + $0xa8] ss:$16 sps:$4 sm:$0xff]   ;;  %v6276_v54 = vld [vmem:[%s6602_s17 + $0xc4] ss:$16 sps:$4 sm:$0xff]  }
 0x6c4   : > { %v4730_v56 = vpack.c.bf16 %v4727_v18, %v4726_v21  ;;  %5164 = vmatprep.subr.bf16.mxu0 %v6255_v61  ;;  %v6279_v11 = vld [vmem:[%s6602_s17 + $0xcc] ss:$16 sps:$4 sm:$0xff]   ;;  %v6274_v21 = vld [vmem:[%s6602_s17 + $0xc0] ss:$16 sps:$4 sm:$0xff]   ;;  %v6277_v18 = vld [vmem:[%s6602_s17 + $0xc8] ss:$16 sps:$4 sm:$0xff]  }
 0x6c6   : > { %6133 = vmatmul.mubr.bf16.gmra.mrb[64].mxu0 %v4730_v56  ;;  %v6282_v56 = vld [vmem:[%s6602_s17 + $0xe4] ss:$16 sps:$4 sm:$0xff]  }
 0x6c7   : > { %6136 = vmatprep.mubr.msk.bf16.mxu0 %vm6497_vm0, %v8401_v7  ;;  %v6240_v7 = vld [vmem:[%s6602_s17 + $0x4] ss:$16 sps:$4 sm:$0xff]   ;;  %5165 = vmatpush1.bf16.msra.mxu0 %v6253_v31  ;;  %v5768_v31 = vld [vmem:[%s423_s23] ss:$0 sm:$0xff] }
 0x6c8   : > { %5099 = vmatprep.subr.bf16.mxu1 %v6240_v7  ;;  %5166 = vmatprep.subr.bf16.mxu0 %v6261_v16  ;;  %v6294_v16 = vld [vmem:[%s6607_s22 + $0x60] sm:$0xff]  }
 0x6c9   : > { %5100 = vmatpush1.bf16.msra.mxu1 %v6238_v1 }
 0x6ca   : > { %5101 = vmatprep.subr.bf16.mxu1 %v6246_v43 }
 0x6cb   : > { %5167 = vmatpush1.bf16.msra.mxu0 %v6259_v48  ;;  %v6293_v48 = vld [vmem:[%s6607_s22 + $0x18] sm:$0xff]  }
 0x6cc   : > { %v4666_v19 = vpop.permute.xlu0 %4665  ;;  %v4686_v17 = vpop.permute.xlu1 %4685  ;;  %5168 = vmatprep.subr.bf16.mxu0 %v6267_v41  ;;  %v6296_v41 = vld [vmem:[%s6607_s22 + $0x68] sm:$0xff]  }
 0x6cd   : > { %v4716_v26 = vsel %vm3128_vm2, %v4648_v4, %v4666_v19  ;;  %5102 = vmatpush1.bf16.msra.mxu1 %v6244_v45  ;;  %v6444_v4 = vld [vmem:[#allocation2 + $0x10] sm:$0xff]  ;;  %v6285_v19 = vld [vmem:[%s6602_s17 + $0xec] ss:$16 sps:$4 sm:$0xff]  }
 0x6ce   : > { %v4722_v36 = vsel %vm4717_vm10, %v4716_v26, %v4686_v17  ;;  %5103 = vmatprep.subr.bf16.mxu1 %v6252_v53  ;;  %v6280_v17 = vld [vmem:[%s6602_s17 + $0xe0] ss:$16 sps:$4 sm:$0xff]   ;;  %v6283_v26 = vld [vmem:[%s6602_s17 + $0xe8] ss:$16 sps:$4 sm:$0xff]  }
 0x6cf   : > { %5169 = vmatpush1.bf16.msra.mxu0 %v6265_v55  ;;  %v6298_v55 = vld [vmem:[%s6607_s22 + $0x70] sm:$0xff]  }
 0x6d0   : > { %v4706_v57 = vpop.permute.xlu0 %4705  ;;  %5170 = vmatprep.subr.bf16.mxu0 %v6273_v37  ;;  %v6300_v37 = vld [vmem:[%s6607_s22 + $0x78] sm:$0xff]  }
 0x6d1   : > { %v4728_v8 = vsel %vm4723_vm11, %v4722_v36, %v4706_v57  ;;  %5104 = vmatpush1.bf16.msra.mxu1 %v6250_v60 }
 0x6d2   : > { %v4731_v23 = vpack.c.bf16 %v4728_v8, %v4728_v8  ;;  %5105 = vmatprep.subr.bf16.mxu1 %v6258_v52  ;;  %v6292_v52 = vld [vmem:[%s6607_s22 + $0x58] sm:$0xff]  }
 0x6d3   : > { %5171 = vmatpush1.bf16.msra.mxu0 %v6271_v24 }
 0x6d4   : > { %6137 = vmatmul.mubr.bf16.gmra.mrb[68].mxu0 %v4731_v23  ;;  %5172 = vmatprep.subr.bf16.mxu0 %v6279_v11 }
 0x6d5   : > { %5192 = vmatprep.mubr.bf16.mxu0 %v8415_v5  ;;  %5106 = vmatpush1.bf16.msra.mxu1 %v6256_v62  ;;  %v6291_v62 = vld [vmem:[%s6607_s22 + $0x10] sm:$0xff]  }
 0x6d6   : > { %5107 = vmatprep.subr.bf16.mxu1 %v6264_v32  ;;  %v6295_v32 = vld [vmem:[%s6607_s22 + $0x20] sm:$0xff]  }
 0x6d7   : > { %5173 = vmatpush1.bf16.msra.mxu0 %v6277_v18 }
 0x6d8   : > { %5174 = vmatprep.subr.bf16.mxu0 %v6285_v19 }
 0x6d9   : > { %5108 = vmatpush1.bf16.msra.mxu1 %v6262_v58  ;;  %v6297_v58 = vld [vmem:[%s6607_s22 + $0x28] sm:$0xff]  }
 0x6da   : > { %5109 = vmatprep.subr.bf16.mxu1 %v6270_v0  ;;  %v6299_v0 = vld [vmem:[%s6607_s22 + $0x30] sm:$0xff]  }
 0x6db   : > { %5175 = vmatpush1.bf16.msra.mxu0 %v6283_v26 }
 0x6dd   : > { %5110 = vmatpush1.bf16.msra.mxu1 %v6268_v12  ;;  %v6301_v12 = vld [vmem:[%s6607_s22 + $0x38] sm:$0xff]  }
 0x6de   : > { %5111 = vmatprep.subr.bf16.mxu1 %v6276_v54 }
 0x6e1   : > { %5112 = vmatpush1.bf16.msra.mxu1 %v6274_v21 }
 0x6e2   : > { %5113 = vmatprep.subr.bf16.mxu1 %v6282_v56 }
 0x6e5   : > { %5114 = vmatpush1.bf16.msra.mxu1 %v6280_v17 }
 0x791   : > { %v4830_v33 = vpop.f32.mrb[60].mxu0 }
 0x792   : > { %v8205_v63 = vadd.f32 %v6442_v6, %v4830_v33  ;;  %v6130_v49 = vpop.f32.mrb[61].mxu0 }
 0x793   : > { %v4833_v38 = vpop.f32.mrb[62].mxu0 }
 0x794   : > { %v8207_v30 = vadd.f32 %v6443_v29, %v4833_v38  ;;  %v6131_v14 = vpop.f32.mrb[63].mxu0  ;;  %v4858_v28 = vmul.f32 %v8205_v63, %v8205_v63 }
 0x796   : > { %4863 = vadd.xlane.f32.xlu1 %v4858_v28  ;;  %v4859_v51 = vmul.f32 %v8207_v30, %v8207_v30 }
 0x798   : > { %4865 = vadd.xlane.f32.xlu0 %v4859_v51 }
 0x799   : > { %v4838_v27 = vpop.f32.mrb[64].mxu0 }
 0x79a   : > { %v8213_v20 = vadd.f32 %v6444_v4, %v4838_v27  ;;  %v6134_v10 = vpop.f32.mrb[65].mxu0 }
 0x79b   : > { %v4841_v3 = vpop.f32.mrb[66].mxu0 }
 0x79c   : > { %v8215_v2 = vadd.f32 %v6445_v15, %v4841_v3  ;;  %v6135_v39 = vpop.f32.mrb[67].mxu0  ;;  %v4860_v9 = vmul.f32 %v8213_v20, %v8213_v20 }
 0x79e   : > { %4867 = vadd.xlane.f32.xlu0 %v4860_v9  ;;  %v4861_v47 = vmul.f32 %v8215_v2, %v8215_v2 }
 0x7a2   : > { %4869 = vadd.xlane.f32.xlu0 %v4861_v47 }
 0x7a7   : > { %v4846_v40 = vpop.f32.mrb[68].mxu0 }
 0x7a8   : > { %v8221_v50 = vadd.f32 %v6446_v46, %v4846_v40  ;;  %v6138_v42 = vpop.f32.mrb[69].mxu0 }
 0x7a9   : > { %v4849_v35 = vpop.f32.mrb[70].mxu0  ;;  %v6286_v42 = vld [vmem:[%s6607_s22 + $0x40] sm:$0xff]  }
 0x7aa   : > { %v6139_v44 = vpop.f32.mrb[71].mxu0  ;;  %v4862_v25 = vmul.f32 %v8221_v50, %v8221_v50  ;;  %v6287_v35 = vld [vmem:[%s6607_s22] sm:$0xff]   ;;  %5906 = vmatprep.subr.bf16.mxu1 %v6286_v42 }
 0x7ab   : > { %v6288_v44 = vld [vmem:[%s6607_s22 + $0x48] sm:$0xff]  }
 0x7ac   : > { %4871 = vadd.xlane.f32.xlu1 %v4862_v25  ;;  %v6289_v25 = vld [vmem:[%s6607_s22 + $0x8] sm:$0xff]  }
 0x823   : > { %v4864_v36 = vpop.xlane.xlu1 %4863 }
 0x824   : > { %v4873_v57 = vmul.f32 0.0078125, %v4864_v36 }
 0x825   : > { %v4866_v8 = vpop.xlane.xlu0 %4865 }
 0x826   : > { %v4878_v23 = vadd.f32 1e-06, %v4873_v57  ;;  %v4874_v1 = vmul.f32 0.0078125, %v4866_v8 }
 0x828   : > { %6392 = vrsqrt.f32 %v4878_v23  ;;  %v4879_v7 = vadd.f32 1e-06, %v4874_v1 }
 0x82a   : > { %6394 = vrsqrt.f32 %v4879_v7 }
 0x82b   : > { %v4868_v34 = vpop.xlane.xlu0 %4867 }
 0x82c   : > { %v4875_v13 = vmul.f32 0.0078125, %v4868_v34 }
 0x82e   : > { %v4880_v43 = vadd.f32 1e-06, %v4875_v13 }
 0x82f   : > { %v4870_v59 = vpop.xlane.xlu0 %4869 }
 0x830   : > { %6396 = vrsqrt.f32 %v4880_v43  ;;  %v4876_v45 = vmul.f32 0.0078125, %v4870_v59 }
 0x832   : > { %v6393_v22 = vpop.eup %6392  ;;  %v4881_v53 = vadd.f32 1e-06, %v4876_v45 }
 0x833   : > { %v4888_v61 = vmul.f32 %v6393_v22, %v8205_v63 }
 0x834   : > { %v6395_v60 = vpop.eup %6394  ;;  %6398 = vrsqrt.f32 %v4881_v53 }
 0x835   : > { %v4889_v33 = vmul.f32 %v6395_v60, %v8207_v30  ;;  %v4899_v49 = vmul.f32 %v5768_v31, %v4888_v61 }
 0x837   : > { %v4900_v38 = vmul.f32 %v5768_v31, %v4889_v33 }
 0x839   : > { %v4872_v6 = vpop.xlane.xlu1 %4871  ;;  %v4904_v14 = vpack.c.bf16 %v4900_v38, %v4899_v49 }
 0x83a   : > { %v4877_v29 = vmul.f32 0.0078125, %v4872_v6  ;;  %v6397_v28 = vpop.eup %6396 }
 0x83b   : > { %5132 = vmatmul.mubr.bf16.vlgmr.msra.gmra.mrb[60].mxu1 %v4904_v14  ;;  %5193 = vmatmul.mubr.bf16.vlgmr.msra.gmra.mrb[72].mxu0 %v4904_v14  ;;  %v4890_v27 = vmul.f32 %v6397_v28, %v8213_v20 }
 0x83c   : > { %v4882_v51 = vadd.f32 1e-06, %v4877_v29  ;;  %5141 = vmatprep.mubr.bf16.mxu1 %v8415_v5  ;;  %5202 = vmatprep.mubr.bf16.mxu0 %v8415_v5 }
 0x83d   : > { %v4901_v3 = vmul.f32 %v5768_v31, %v4890_v27  ;;  %5907 = vmatpush3.bf16.msra.mxu1 %v6287_v35 }
 0x83e   : > { %6400 = vrsqrt.f32 %v4882_v51  ;;  %v6399_v4 = vpop.eup %6398  ;;  %5908 = vmatprep.subr.bf16.mxu1 %v6288_v44 }
 0x83f   : > { %v4891_v10 = vmul.f32 %v6399_v4, %v8215_v2 }
 0x841   : > { %v4902_v15 = vmul.f32 %v5768_v31, %v4891_v10  ;;  %5909 = vmatpush3.bf16.msra.mxu1 %v6289_v25 }
 0x843   : > { %v4905_v39 = vpack.c.bf16 %v4902_v15, %v4901_v3 }
 0x845   : > { %5142 = vmatmul.mubr.bf16.gmra.mrb[64].mxu1 %v4905_v39  ;;  %5203 = vmatmul.mubr.bf16.gmra.mrb[76].mxu0 %v4905_v39 }
 0x846   : > { %5151 = vmatprep.mubr.bf16.mxu1 %v8415_v5  ;;  %5212 = vmatprep.mubr.bf16.mxu0 %v8415_v5  ;;  %v6290_v5 = vld [vmem:[%s6607_s22 + $0x50] sm:$0xff]  }
 0x847   : > { %5910 = vmatprep.subr.bf16.mxu1 %v6290_v5 }
 0x848   : > { %v6401_v9 = vpop.eup %6400  ;;  %5911 = vmatpush3.bf16.msra.mxu1 %v6291_v62 }
 0x849   : > { %v4892_v47 = vmul.f32 %v6401_v9, %v8221_v50  ;;  %5912 = vmatprep.subr.bf16.mxu1 %v6292_v52 }
 0x84b   : > { %v4903_v40 = vmul.f32 %v5768_v31, %v4892_v47 }
 0x84c   : > { %5913 = vmatpush3.bf16.msra.mxu1 %v6293_v48 }
 0x84d   : > { %v4906_v46 = vpack.c.bf16 %v4903_v40, %v4903_v40  ;;  %5914 = vmatprep.subr.bf16.mxu1 %v6294_v16 }
 0x84f   : > { %5152 = vmatmul.mubr.bf16.gmra.mrb[68].mxu1 %v4906_v46  ;;  %5213 = vmatmul.mubr.bf16.gmra.mrb[80].mxu0 %v4906_v46 }
 0x850   : > { %5915 = vmatpush3.bf16.msra.mxu1 %v6295_v32 }
 0x851   : > { %5916 = vmatprep.subr.bf16.mxu1 %v6296_v41 }
 0x854   : > { %5917 = vmatpush3.bf16.msra.mxu1 %v6297_v58 }
 0x855   : > { %5918 = vmatprep.subr.bf16.mxu1 %v6298_v55 }
 0x858   : > { %5919 = vmatpush3.bf16.msra.mxu1 %v6299_v0 }
 0x859   : > { %5920 = vmatprep.subr.bf16.mxu1 %v6300_v37 }
 0x85c   : > { %5921 = vmatpush3.bf16.msra.mxu1 %v6301_v12 }
 0x90e   : > { %v8275_v24 = vpop.f32.mrb[60].mxu1  ;;  %v8277_v54 = vpop.f32.mrb[72].mxu0 }
 0x90f   : > { %v5801_v11 = vmul.f32 -1.442695, %v8275_v24  ;;  %v8280_v21 = vpop.f32.mrb[61].mxu1  ;;  %v8282_v18 = vpop.f32.mrb[73].mxu0 }
 0x910   : > { %v5802_v56 = vmul.f32 -1.442695, %v8280_v21  ;;  %v8285_v19 = vpop.f32.mrb[62].mxu1  ;;  %v8287_v17 = vpop.f32.mrb[74].mxu0 }
 0x911   : > { %6402 = vpow2.f32 %v5801_v11  ;;  %v5803_v26 = vmul.f32 -1.442695, %v8285_v19  ;;  %v8290_v36 = vpop.f32.mrb[63].mxu1  ;;  %v8292_v57 = vpop.f32.mrb[75].mxu0 }
 0x912   : > { %6404 = vpow2.f32 %v5802_v56  ;;  %v5804_v8 = vmul.f32 -1.442695, %v8290_v36 }
 0x913   : > { %6406 = vpow2.f32 %v5803_v26 }
 0x914   : > { %6408 = vpow2.f32 %v5804_v8 }
 0x918   : > { %v8295_v23 = vpop.f32.mrb[64].mxu1  ;;  %v8297_v1 = vpop.f32.mrb[76].mxu0 }
 0x919   : > { %v5805_v7 = vmul.f32 -1.442695, %v8295_v23  ;;  %v8300_v34 = vpop.f32.mrb[65].mxu1  ;;  %v8302_v13 = vpop.f32.mrb[77].mxu0 }
 0x91a   : > { %v5806_v43 = vmul.f32 -1.442695, %v8300_v34  ;;  %v8305_v59 = vpop.f32.mrb[66].mxu1  ;;  %v8307_v45 = vpop.f32.mrb[78].mxu0 }
 0x91b   : > { %v6403_v22 = vpop.eup %6402  ;;  %6410 = vpow2.f32 %v5805_v7  ;;  %v5807_v53 = vmul.f32 -1.442695, %v8305_v59  ;;  %v8310_v61 = vpop.f32.mrb[67].mxu1 }
 0x91c   : > { %v8312_v60 = vpop.f32.mrb[79].mxu0  ;;  %v6405_v31 = vpop.eup %6404  ;;  %v5251_v33 = vadd.f32 1.0, %v6403_v22  ;;  %6412 = vpow2.f32 %v5806_v43  ;;  %v5808_v14 = vmul.f32 -1.442695, %v8310_v61 }
 0x91d   : > { %v6407_v6 = vpop.eup %6406  ;;  %v5252_v49 = vadd.f32 1.0, %v6405_v31  ;;  %6414 = vpow2.f32 %v5807_v53 }
 0x91e   : > { %v6409_v38 = vpop.eup %6408  ;;  %6416 = vrcp.f32 %v5251_v33  ;;  %v5253_v29 = vadd.f32 1.0, %v6407_v6 }
 0x91f   : > { %6418 = vrcp.f32 %v5252_v49  ;;  %v5254_v28 = vadd.f32 1.0, %v6409_v38 }
 0x920   : > { %6420 = vrcp.f32 %v5253_v29 }
 0x921   : > { %6422 = vrcp.f32 %v5254_v28 }
 0x922   : > { %v5153_v51 = vpop.f32.mrb[68].mxu1  ;;  %v8315_v27 = vpop.f32.mrb[80].mxu0  ;;  %6424 = vpow2.f32 %v5808_v14 }
 0x923   : > { %v5809_v4 = vmul.f32 -1.442695, %v5153_v51  ;;  %v5155_v10 = vpop.f32.mrb[69].mxu1  ;;  %v5216_v3 = vpop.f32.mrb[81].mxu0 }
 0x924   : > { %v5810_v15 = vmul.f32 -1.442695, %v5155_v10  ;;  %v5157_v39 = vpop.f32.mrb[70].mxu1  ;;  %v5218_v9 = vpop.f32.mrb[82].mxu0 }
 0x925   : > { %6426 = vpow2.f32 %v5809_v4  ;;  %v5158_v47 = vpop.f32.mrb[71].mxu1  ;;  %v5219_v40 = vpop.f32.mrb[83].mxu0 }
 0x926   : > { %6428 = vpow2.f32 %v5810_v15  ;;  %v6411_v46 = vpop.eup %6410 }
 0x927   : > { %v6413_v42 = vpop.eup %6412  ;;  %v5255_v35 = vadd.f32 1.0, %v6411_v46 }
 0x928   : > { %v6415_v44 = vpop.eup %6414  ;;  %v5256_v25 = vadd.f32 1.0, %v6413_v42 }
 0x929   : > { %v6417_v5 = vpop.eup %6416  ;;  %6430 = vrcp.f32 %v5255_v35  ;;  %v5257_v62 = vadd.f32 1.0, %v6415_v44 }
 0x92a   : > { %v6419_v52 = vpop.eup %6418  ;;  %v5281_v48 = vmul.f32 %v6417_v5, %v8275_v24  ;;  %6432 = vrcp.f32 %v5256_v25 }
 0x92b   : > { %v6421_v16 = vpop.eup %6420  ;;  %v5282_v32 = vmul.f32 %v6419_v52, %v8280_v21  ;;  %6434 = vrcp.f32 %v5257_v62 }
 0x92c   : > { %v6423_v41 = vpop.eup %6422  ;;  %v5291_v58 = vmul.f32 %v5281_v48, %v8277_v54  ;;  %v5283_v55 = vmul.f32 %v6421_v16, %v8285_v19 }
 0x92d   : > { %v6425_v0 = vpop.eup %6424  ;;  %v5292_v37 = vmul.f32 %v5282_v32, %v8282_v18  ;;  %v5284_v12 = vmul.f32 %v6423_v41, %v8290_v36 }
 0x92e   : > { %v5293_v56 = vmul.f32 %v5283_v55, %v8287_v17  ;;  %v5258_v26 = vadd.f32 1.0, %v6425_v0 }
 0x92f   : > { %v6427_v11 = vpop.eup %6426  ;;  %v5294_v8 = vmul.f32 %v5284_v12, %v8292_v57 }
 0x930   : > { %v6429_v24 = vpop.eup %6428  ;;  %v5259_v7 = vadd.f32 1.0, %v6427_v11  ;;  %v5301_v21 = vpack.c.bf16 %v5293_v56, %v5291_v58  ;;  %6436 = vrcp.f32 %v5258_v26 }
 0x931   : > { %v5260_v43 = vadd.f32 1.0, %v6429_v24  ;;  %v5302_v22 = vpack.c.bf16 %v5294_v8, %v5292_v37 }
 0x932   : > { %6438 = vrcp.f32 %v5259_v7 }
 0x933   : > { %6440 = vrcp.f32 %v5260_v43  ;;  %v6431_v54 = vpop.eup %6430  ;;  %5467 = vmatprep.mubr.bf16.mxu1 %v5302_v22 }
 0x934   : > { %v6433_v19 = vpop.eup %6432  ;;  %v5285_v18 = vmul.f32 %v6431_v54, %v8295_v23  ;;  %5468 = vmatmul.mubr.bf16.vlgmr.msra.gmra.mrb[72].mxu1 %v5301_v21 }
 0x935   : > { %v6435_v36 = vpop.eup %6434  ;;  %v5286_v17 = vmul.f32 %v6433_v19, %v8300_v34  ;;  %v5828_v19 = vld [vmem:[%s8372_s3] ss:$0 sm:$0xff] (!%p5827_p5) }
 0x936   : > { %v5295_v53 = vmul.f32 %v5285_v18, %v8297_v1  ;;  %v5287_v57 = vmul.f32 %v6435_v36, %v8305_v59 }
 0x937   : > { %v5296_v31 = vmul.f32 %v5286_v17, %v8302_v13 }
 0x938   : > { %v5297_v33 = vmul.f32 %v5287_v57, %v8307_v45 }
 0x93a   : > { %v6437_v6 = vpop.eup %6436  ;;  %v5303_v49 = vpack.c.bf16 %v5297_v33, %v5295_v53 }
 0x93b   : > { %v5288_v29 = vmul.f32 %v6437_v6, %v8310_v61 }
 0x93c   : > { %v6439_v38 = vpop.eup %6438 }
 0x93d   : > { %v6441_v14 = vpop.eup %6440  ;;  %v5289_v28 = vmul.f32 %v6439_v38, %v5153_v51  ;;  %v5298_v23 = vmul.f32 %v5288_v29, %v8312_v60 }
 0x93e   : > { %v5290_v4 = vmul.f32 %v6441_v14, %v5155_v10 }
 0x93f   : > { %v5299_v34 = vmul.f32 %v5289_v28, %v8315_v27  ;;  %v5304_v15 = vpack.c.bf16 %v5298_v23, %v5296_v31 }
 0x940   : > { %v5300_v1 = vmul.f32 %v5290_v4, %v5216_v3 }
 0x941   : > { %5475 = vmatprep.mubr.bf16.mxu1 %v5304_v15  ;;  %v5305_v13 = vpack.c.bf16 %v5299_v34, %v5299_v34 }
 0x942   : > { %v5306_v39 = vpack.c.bf16 %v5300_v1, %v5300_v1  ;;  %5476 = vmatmul.mubr.bf16.gmra.mrb[76].mxu1 %v5303_v49 }
 0x944   : > { %5483 = vmatprep.mubr.bf16.mxu1 %v5306_v39 }
 0x94a   : > { %5484 = vmatmul.mubr.bf16.gmra.mrb[80].mxu1 %v5305_v13 }
 0xa07   : > { %v5922_v59 = vpop.f32.mrb[72].mxu1 }
 0xa08   : > { %v5923_v45 = vpop.f32.mrb[73].mxu1 }
 0xa09   : > { %v5924_v9 = vadd.f32 %v5923_v45, %v5922_v59  ;;  %v5925_v47 = vpop.f32.mrb[74].mxu1 }
 0xa0a   : > { %v5926_v61 = vpop.f32.mrb[75].mxu1 }
 0xa0b   : > { %v5491_v51 = vadd.f32 %v5924_v9, %v8205_v63  ;;  %v5927_v40 = vadd.f32 %v5926_v61, %v5925_v47 }
 0xa0d   : > { %5496 = vst [vmem:[#allocation2] sm:$0xff] %v5491_v51  ;;  %v5492_v60 = vadd.f32 %v5927_v40, %v8207_v30  ;;  %v5506_v16 = vmul.f32 (!%p5827_p5), %v5491_v51, %v5491_v51 }
 0xa0f   : > { %5497 = vst [vmem:[#allocation2 + $0x8] sm:$0xff] %v5492_v60  ;;  %5511 = vadd.xlane.f32.xlu0 (!%p5827_p5), %v5506_v16 }
 0xa15   : > { %v5928_v27 = vpop.f32.mrb[76].mxu1 }
 0xa16   : > { %v5929_v10 = vpop.f32.mrb[77].mxu1 }
 0xa17   : > { %v5930_v3 = vadd.f32 %v5929_v10, %v5928_v27  ;;  %v5931_v46 = vpop.f32.mrb[78].mxu1 }
 0xa18   : > { %v5932_v42 = vpop.f32.mrb[79].mxu1 }
 0xa19   : > { %v5493_v35 = vadd.f32 %v5930_v3, %v8213_v20  ;;  %v5933_v44 = vadd.f32 %v5932_v42, %v5931_v46  ;;  %v5507_v20 = vmul.f32 (!%p5827_p5), %v5492_v60, %v5492_v60 }
 0xa1b   : > { %5498 = vst [vmem:[#allocation2 + $0x10] sm:$0xff] %v5493_v35  ;;  %v5494_v25 = vadd.f32 %v5933_v44, %v8215_v2  ;;  %v5508_v32 = vmul.f32 (!%p5827_p5), %v5493_v35, %v5493_v35  ;;  %5513 = vadd.xlane.f32.xlu0 (!%p5827_p5), %v5507_v20 }
 0xa1d   : > { %5499 = vst [vmem:[#allocation2 + $0x18] sm:$0xff] %v5494_v25  ;;  %v5934_v5 = vpop.f32.mrb[80].mxu1  ;;  %5504 = sbr.rel (%p5827_p5) target bundleno = 2759 (0xac7), region = 68  ;;  %5515 = vadd.xlane.f32.xlu1 (!%p5827_p5), %v5508_v32  ;;  %v5509_v41 = vmul.f32 (!%p5827_p5), %v5494_v25, %v5494_v25 }
 0xa1e   : > { %v5935_v62 = vpop.f32.mrb[81].mxu1 }
 0xa1f   : > { %v5936_v63 = vadd.f32 %v5935_v62, %v5934_v5  ;;  %v5937_v52 = vpop.f32.mrb[82].mxu1 }
 0xa20   : > { %v5938_v48 = vpop.f32.mrb[83].mxu1 }
 0xa21   : > { %v5495_v30 = vadd.f32 %v5936_v63, %v8221_v50  ;;  %5517 = vadd.xlane.f32.xlu1 (!%p5827_p5), %v5509_v41 }
 0xa23   : > { %5500 = vst [vmem:[#allocation2 + $0x20] sm:$0xff] %v5495_v30  ;;  %v5510_v2 = vmul.f32 (!%p5827_p5), %v5495_v30, %v5495_v30 }
 0xa25   : > { %5519 = vadd.xlane.f32.xlu0 %v5510_v2 }
 0xa9c   : > { %v5512_v58 = vpop.xlane.xlu0 %5511 }
 0xa9d   : > { %v5521_v0 = vmul.f32 0.0078125, %v5512_v58 }
 0xa9f   : > { %v5526_v12 = vadd.f32 1e-06, %v5521_v0 }
 0xaa1   : > { %6447 = vrsqrt.f32 %v5526_v12 }
 0xaa8   : > { %v5514_v11 = vpop.xlane.xlu0 %5513 }
 0xaa9   : > { %v5522_v26 = vmul.f32 0.0078125, %v5514_v11 }
 0xaaa   : > { %v5516_v55 = vpop.xlane.xlu1 %5515 }
 0xaab   : > { %v5523_v37 = vmul.f32 0.0078125, %v5516_v55  ;;  %v5527_v8 = vadd.f32 1e-06, %v5522_v26  ;;  %v6448_v54 = vpop.eup %6447 }
 0xaac   : > { %v5536_v36 = vmul.f32 %v6448_v54, %v5491_v51 }
 0xaad   : > { %v5528_v50 = vadd.f32 1e-06, %v5523_v37 }
 0xaae   : > { %v5518_v56 = vpop.xlane.xlu1 %5517  ;;  %v5547_v53 = vmul.f32 %v5828_v19, %v5536_v36 }
 0xaaf   : > { %v5524_v24 = vmul.f32 0.0078125, %v5518_v56  ;;  %6449 = vrsqrt.f32 %v5528_v50 }
 0xab0   : > { %6451 = vrsqrt.f32 %v5527_v8  ;;  %5552 = vst [vmem:[#allocation3] sm:$0xff] %v5547_v53 }
 0xab1   : > { %v5529_v7 = vadd.f32 1e-06, %v5524_v24 }
 0xab2   : > { %v5520_v21 = vpop.xlane.xlu0 %5519 }
 0xab3   : > { %v5525_v43 = vmul.f32 0.0078125, %v5520_v21  ;;  %6453 = vrsqrt.f32 %v5529_v7 }
 0xab5   : > { %v5530_v22 = vadd.f32 1e-06, %v5525_v43 }
 0xab7   : > { %6455 = vrsqrt.f32 %v5530_v22 }
 0xab9   : > { %v6450_v18 = vpop.eup %6449 }
 0xaba   : > { %v5538_v17 = vmul.f32 %v6450_v18, %v5493_v35  ;;  %v6452_v57 = vpop.eup %6451 }
 0xabb   : > { %v5537_v6 = vmul.f32 %v6452_v57, %v5492_v60 }
 0xabc   : > { %v5549_v31 = vmul.f32 %v5828_v19, %v5538_v17 }
 0xabd   : > { %v6454_v33 = vpop.eup %6453  ;;  %v5548_v38 = vmul.f32 %v5828_v19, %v5537_v6 }
 0xabe   : > { %5554 = vst [vmem:[#allocation3 + $0x10] sm:$0xff] %v5549_v31  ;;  %v5539_v49 = vmul.f32 %v6454_v33, %v5494_v25 }
 0xabf   : > { %5553 = vst [vmem:[#allocation3 + $0x8] sm:$0xff] %v5548_v38 }
 0xac0   : > { %v5550_v14 = vmul.f32 %v5828_v19, %v5539_v49 }
 0xac1   : > { %v6456_v29 = vpop.eup %6455 }
 0xac2   : > { %v5540_v28 = vmul.f32 %v6456_v29, %v5495_v30  ;;  %5555 = vst [vmem:[#allocation3 + $0x18] sm:$0xff] %v5550_v14 }
 0xac4   : > { %v5551_v23 = vmul.f32 %v5828_v19, %v5540_v28 }
 0xac6   : > { %5556 = vst [vmem:[#allocation3 + $0x20] sm:$0xff] %v5551_v23 }
 0xac7 PF: > { %p6145_p6 = scmp.eq.s32.totalorder %s6569_s14, 1  ;;  %s6505_s22 = smov [#allocation3]  }
 0xac8   : > { %s5563_s18 = sshll.u32 %s6505_s22, 4  ;;  %s5564_s18 = int_to_ptr.vmem [resolvable:$true] %s5563_s18 }
 0xac9   : > { %s6457_s30 = scalar_lea.vmem %s5564_s18, 640  ;;  %p6464_p10 = scmp.lt.s32.totalorder %s5564_s18, %s5564_s18 }
 0xaca   : > { %p6458_p7 = scmp.ne.s32.totalorder %s5564_s18, %s6457_s30  ;;  %p6465_p11 = scmp.lt.s32.totalorder %s6457_s30, %s6457_s30 }
 0xacc   : > { %p6459_p8 = pnand %p6458_p7, %p6145_p6  ;;  %p6466_p12 = por %p6465_p11, %p6464_p10 }
 0xace   : > { %p6460_p9 = pneg %p6459_p8 }
 0xad0   : > { %p6467_p13 = pnand %p6466_p12, %p6460_p9 }
 0xad2   : > { %6470 = shalt.err (!%p6467_p13)
}
 0xad3   : > { %s6471_s25 = scalar_lea.hbm %s8379_s10, 640 }
 0xad4   : > { %p6472_p0 = scmp.ne.s32.totalorder %s8379_s10, %s6471_s25  ;;  %p6477_p3 = scmp.lt.u32.totalorder %s6471_s25, %s8379_s10 }
 0xad6   : > { %p6473_p1 = pnand %p6472_p0, %p6145_p6 }
 0xad8   : > { %p6474_p2 = pneg %p6473_p1 }
 0xada   : > { %p6479_p4 = pnand %p6477_p3, %p6474_p2 }
 0xadc   : > { %6482 = shalt.err (!%p6479_p4)
}
 0xadd   : > { %s6506_s16 = smov 128   ;;  %s6507_s21 = smov 8  }
 0xade   : > { %6142 = dma.vmem_to_hbm [thread:$0]  (%p6145_p6), %s5564_s18, 640, %s8379_s10, [#allocation4], %s6506_s16, %s6506_s16, %s6507_s21  }
 0xadf   : > { %6488 = dma.done.wait (%p6145_p6), [#allocation4], 640  }
 0xae0   : > { %6490 = vsyncadd (%p6145_p6), [#allocation4], 4294966656 }
 0xae1 PF: > { %s21_s13 = sadd.s32 1, %s6493_s13  }
 0xae2   : > { %p18_p5 = scmp.ge.s32.totalorder %s21_s13, 4  }
 0xae4   :  { %20 = sbr.rel (!%p18_p5) target bundleno = 1 (0x1), region = 110 }
 0xaeb   :  { %5579 = vsyncpa [#allocation4], 1 }
 0xaec   :  { %5581 = vsyncpa [#allocation4 + $0x1], 1 }

</bundles_post_ra>
